<compile_context>
chip_gen: v7x
topology: tpu7x:2x2x1
jax: 0.10.0
libtpu: 0.0.40
codegen_flags: <defaults>
</compile_context>

<pallas_src>
import jax
import jax.numpy as jnp
from jax.experimental import pallas as pl
from jax.experimental.pallas import tpu as pltpu

N_OUT = 228          # real output width of the module's Linear / Sigmoid
N_PAD = 256          # lane-dense padded output width (multiple of 128)


# ----------------------------------------------------------------------------
# In-kernel helpers (operate on traced values; all slicing is on leading dims).
# ----------------------------------------------------------------------------
def _conv3x3_bias_relu(x, w, b):
    """Valid 3x3 conv + bias + ReLU.

    x: (Hi, Wi, Bblk, Cin) f32 value.
    w: (9, Cin, Cout) bf16 value, k = 3*kh + kw.
    b: (1, Cout) f32 value.
    Returns (Ho, Wo, Bblk, Cout) f32.

    The conv is 9 accumulated MXU matmuls with M = Ho*Wo*Bblk (batch folded
    into M) -- no im2col materialisation, no lane concatenation.  Operands are
    cast to bf16 only at the dot; accumulation is f32.
    """
    Hi, Wi, Bblk, Cin = x.shape
    Ho, Wo = Hi - 2, Wi - 2
    Cout = w.shape[-1]
    acc = jnp.zeros((Ho * Wo * Bblk, Cout), jnp.float32)
    for k in range(9):
        kh, kw = k // 3, k % 3
        patch = x[kh:kh + Ho, kw:kw + Wo]                  # leading-dim slice
        lhs = patch.reshape(Ho * Wo * Bblk, Cin).astype(jnp.bfloat16)
        acc = acc + jnp.dot(lhs, w[k], preferred_element_type=jnp.float32)
    acc = jnp.maximum(acc + b, 0.0)                        # bias + ReLU in f32
    return acc.reshape(Ho, Wo, Bblk, Cout)


def _maxpool_2x2(x):
    """2x2 / stride-2 max pool over the two LEADING (H, W) dims of an
    (H, W, Bblk, C) value.  Both reshapes only split leading dims (the
    (sublane, lane) = (Bblk, C) minor dims are untouched) -> no relayout and
    no per-column slice/concat."""
    H, W, Bblk, C = x.shape
    x = x.reshape(H // 2, 2, W, Bblk, C)
    x = jnp.maximum(x[:, 0], x[:, 1])                      # pool H
    x = x.reshape(H // 2, W // 2, 2, Bblk, C)
    return jnp.maximum(x[:, :, 0], x[:, :, 1])             # pool W


# ----------------------------------------------------------------------------
# Fused forward kernel: one grid step = one batch block of BBLK samples.
# ----------------------------------------------------------------------------
def _fused_cnn_kernel(x_ref, w1_ref, b1_ref, w2_ref, b2_ref, wf_ref, bf_ref,
                      sig_ref, raw_ref):
    x = x_ref[...]                                         # (H, W, Bblk, Cin) f32

    a = _conv3x3_bias_relu(x, w1_ref[...], b1_ref[...])    # conv1 + relu1
    a = _maxpool_2x2(a)                                    # maxpool1
    a = _conv3x3_bias_relu(a, w2_ref[...], b2_ref[...])    # conv2 + relu2
    a = _maxpool_2x2(a)                                    # maxpool2 -> (Hp2,Wp2,Bblk,C2)

    # FC: accumulate one (Bblk, C2) x (C2, N_PAD) matmul per pooled spatial
    # position.  No lane-axis concat/flatten; wf rows were pre-grouped per
    # (h, w) on the host to match this contraction order.
    Hp2, Wp2, Bblk, C2 = a.shape
    wf = wf_ref[...]                                       # (Hp2*Wp2, C2, N_PAD) bf16
    raw = jnp.zeros((Bblk, wf.shape[-1]), jnp.float32)
    for h in range(Hp2):
        for w in range(Wp2):
            raw = raw + jnp.dot(a[h, w].astype(jnp.bfloat16), wf[h * Wp2 + w],
                                preferred_element_type=jnp.float32)
    raw = raw + bf_ref[...]                                # (Bblk, N_PAD)

    raw_ref[...] = raw                                     # lane-dense 2-D stores
    sig_ref[...] = pl.reciprocal(1.0 + jnp.exp(-raw), approx=True)


# ----------------------------------------------------------------------------
# One-time host-side weight re-layout (call once, outside the jitted forward).
# ----------------------------------------------------------------------------
def prepare_params(params, H, W):
    Cin, C1 = params["w1"].shape[2], params["w1"].shape[3]
    C2 = params["w2"].shape[3]
    Hp2 = ((H - 2) // 2 - 2) // 2
    Wp2 = ((W - 2) // 2 - 2) // 2

    w1 = params["w1"].reshape(9, Cin, C1).astype(jnp.bfloat16)   # k = 3*kh + kw
    w2 = params["w2"].reshape(9, C1, C2).astype(jnp.bfloat16)
    b1 = params["b1"].reshape(1, C1).astype(jnp.float32)
    b2 = params["b2"].reshape(1, C2).astype(jnp.float32)
    # fc rows: torch (C,H,W) flatten order -> grouped per (h, w) position,
    # padded 228 -> 256 output lanes.
    wf = (params["wf"].reshape(C2, Hp2, Wp2, N_OUT)
          .transpose(1, 2, 0, 3).reshape(Hp2 * Wp2, C2, N_OUT))
    wf = jnp.pad(wf, ((0, 0), (0, 0), (0, N_PAD - N_OUT))).astype(jnp.bfloat16)
    bf = jnp.pad(params["bf"], (0, N_PAD - N_OUT)).reshape(1, N_PAD)
    bf = bf.astype(jnp.float32)
    return dict(w1=w1, b1=b1, w2=w2, b2=b2, wf=wf, bf=bf)


# ----------------------------------------------------------------------------
# Public wrapper: NCHW in (PyTorch convention), (sigmoid, raw) out.
# ----------------------------------------------------------------------------
def cnn_module_forward(x_nchw, prep, block_b=8):
    B, Cin, H, W = x_nchw.shape
    bblk = block_b if (B % block_b == 0) else B
    C1 = prep["w1"].shape[-1]
    C2 = prep["w2"].shape[-1]
    Hp2 = ((H - 2) // 2 - 2) // 2
    Wp2 = ((W - 2) // 2 - 2) // 2

    # Lay the input out as (H, W, B, Cin): H/W become leading (cheap-to-slice)
    # dims inside the kernel, batch is the sublane dim, channels the lane dim.
    x = jnp.transpose(x_nchw.astype(jnp.float32), (2, 3, 0, 1))

    sig, raw = pl.pallas_call(
        _fused_cnn_kernel,
        out_shape=(jax.ShapeDtypeStruct((B, N_PAD), jnp.float32),
                   jax.ShapeDtypeStruct((B, N_PAD), jnp.float32)),
        grid=(B // bblk,),
        in_specs=[
            pl.BlockSpec((H, W, bblk, Cin), lambda g: (0, 0, g, 0)),
            # Weight/bias blocks are grid-invariant (index_map constant); at
            # real sizes single-buffer them / keep wf in HBM and K-tile the FC.
            pl.BlockSpec((9, Cin, C1), lambda g: (0, 0, 0)),
            pl.BlockSpec((1, C1), lambda g: (0, 0)),
            pl.BlockSpec((9, C1, C2), lambda g: (0, 0, 0)),
            pl.BlockSpec((1, C2), lambda g: (0, 0)),
            pl.BlockSpec((Hp2 * Wp2, C2, N_PAD), lambda g: (0, 0, 0)),
            pl.BlockSpec((1, N_PAD), lambda g: (0, 0)),
        ],
        out_specs=(pl.BlockSpec((bblk, N_PAD), lambda g: (g, 0)),
                   pl.BlockSpec((bblk, N_PAD), lambda g: (g, 0))),
        compiler_params=pltpu.CompilerParams(
            dimension_semantics=("parallel",)),            # batch blocks across TCs (v7x)
    )(x, prep["w1"], prep["b1"], prep["w2"], prep["b2"], prep["wf"], prep["bf"])
    return sig[:, :N_OUT], raw[:, :N_OUT]                  # (sigmoid, raw), like torch


# ----------------------------------------------------------------------------
# Deterministic synthetic parameters (xavier-uniform-ish), torch layout-compatible.
# ----------------------------------------------------------------------------
def init_params(key, H, W):
    k1, k2, k3, k4, k5, k6 = jax.random.split(key, 6)

    def xavier(k, shape, fan_in, fan_out):
        a = jnp.sqrt(6.0 / (fan_in + fan_out))
        return jax.random.uniform(k, shape, jnp.float32, -a, a)

    # Conv weights stored as (KH, KW, Cin, Cout) (HWIO).
    w1 = xavier(k1, (3, 3, 3, 30), 3 * 9, 30 * 9)
    b1 = jax.random.uniform(k2, (30,), jnp.float32, -0.1, 0.1)
    w2 = xavier(k3, (3, 3, 30, 90), 30 * 9, 90 * 9)
    b2 = jax.random.uniform(k4, (90,), jnp.float32, -0.1, 0.1)

    Hp2 = ((H - 2) // 2 - 2) // 2
    Wp2 = ((W - 2) // 2 - 2) // 2
    F = 90 * Hp2 * Wp2
    # fc weight stored (in, out), rows in torch's (C,H,W) flatten order.
    wf = xavier(k5, (F, N_OUT), F, N_OUT)
    bf = jax.random.uniform(k6, (N_OUT,), jnp.float32, -0.01, 0.01)
    return dict(w1=w1, b1=b1, w2=w2, b2=b2, wf=wf, bf=bf)


# ----------------------------------------------------------------------------
# Pure-JAX reference mirroring the PyTorch module.  matmul_dtype=bf16 mirrors
# the kernel's mixed precision (bf16 operands, f32 accumulation) for a tight
# check; matmul_dtype=f32 is the exact torch-f32 semantics (loose check).
# ----------------------------------------------------------------------------
def reference_forward(x_nchw, params, matmul_dtype=jnp.float32):
    x = jnp.transpose(x_nchw, (0, 2, 3, 1))

    def conv_relu(h, w, b):
        y = jax.lax.conv_general_dilated(
            h.astype(matmul_dtype), w.astype(matmul_dtype),
            window_strides=(1, 1), padding="VALID",
            dimension_numbers=("NHWC", "HWIO", "NHWC"),
            preferred_element_type=jnp.float32)
        return jnp.maximum(y + b, 0.0)

    def pool(h):
        return jax.lax.reduce_window(
            h, -jnp.inf, jax.lax.max, (1, 2, 2, 1), (1, 2, 2, 1), "VALID")

    out = pool(conv_relu(x, params["w1"], params["b1"]))
    out = pool(conv_relu(out, params["w2"], params["b2"]))
    b = out.shape[0]
    flat = jnp.transpose(out, (0, 3, 1, 2)).reshape(b, -1)   # torch NCHW flatten
    raw = jnp.dot(flat.astype(matmul_dtype), params["wf"].astype(matmul_dtype),
                  preferred_element_type=jnp.float32) + params["bf"]
    return jax.nn.sigmoid(raw), raw


if __name__ == "__main__":
    key = jax.random.PRNGKey(0)
    kx, kp = jax.random.split(key)

    B, C, H, W = 16, 3, 18, 18                # small NCHW input, like PyTorch
    x = jax.random.normal(kx, (B, C, H, W), dtype=jnp.float32)
    params = init_params(kp, H, W)
    prep = prepare_params(params, H, W)       # one-time weight re-layout

    fwd = jax.jit(cnn_module_forward)
    sig, raw = fwd(x, prep)
    jax.block_until_ready((sig, raw))

    # Tight check vs. a reference using the SAME mixed precision as the kernel.
    sig_mx, raw_mx = reference_forward(x, params, matmul_dtype=jnp.bfloat16)
    # Loose check vs. the exact f32 module (covers bf16-operand rounding).
    _, raw_f32 = reference_forward(x, params, matmul_dtype=jnp.float32)

    assert sig.shape == (B, N_OUT) and raw.shape == (B, N_OUT)
    assert bool(jnp.all(jnp.isfinite(sig))) and bool(jnp.all(jnp.isfinite(raw)))
    assert bool(jnp.allclose(raw, raw_mx, atol=5e-3, rtol=5e-3)), "raw mismatch (mixed ref)"
    assert bool(jnp.allclose(sig, sig_mx, atol=2e-2, rtol=2e-2)), "sigmoid mismatch (mixed ref)"
    assert bool(jnp.allclose(raw, raw_f32, atol=6e-2, rtol=6e-2)), "raw mismatch (f32 ref)"
    print("KERNEL_OK")
</pallas_src>

<mosaic_0001>
module attributes {stable_mosaic.version = 11 : i64} {
  func.func @_fused_cnn_kernel(%arg0: i32, %arg1: memref<18x18x8x3xf32, #tpu.memory_space<vmem>>, %arg2: memref<9x3x30xbf16, #tpu.memory_space<vmem>>, %arg3: memref<1x30xf32, #tpu.memory_space<vmem>>, %arg4: memref<9x30x90xbf16, #tpu.memory_space<vmem>>, %arg5: memref<1x90xf32, #tpu.memory_space<vmem>>, %arg6: memref<9x90x256xbf16, #tpu.memory_space<vmem>>, %arg7: memref<1x256xf32, #tpu.memory_space<vmem>>, %arg8: memref<8x256xf32, #tpu.memory_space<vmem>>, %arg9: memref<8x256xf32, #tpu.memory_space<vmem>>) attributes {dimension_semantics = [#tpu.dimension_semantics<parallel>], iteration_bounds = array<i64: 2>, scalar_prefetch = 0 : i64, scratch_operands = 0 : i64, tpu.core_type = #tpu.core_type<tc>, window_params = [{transform_indices = @transform_0, window_bounds = array<i64: 18, 18, 8, 3>}, {pipeline_mode = #tpu.pipeline_mode<synchronous>, transform_indices = @transform_1, window_bounds = array<i64: 9, 3, 30>}, {pipeline_mode = #tpu.pipeline_mode<synchronous>, transform_indices = @transform_2, window_bounds = array<i64: 1, 30>}, {pipeline_mode = #tpu.pipeline_mode<synchronous>, transform_indices = @transform_3, window_bounds = array<i64: 9, 30, 90>}, {pipeline_mode = #tpu.pipeline_mode<synchronous>, transform_indices = @transform_4, window_bounds = array<i64: 1, 90>}, {pipeline_mode = #tpu.pipeline_mode<synchronous>, transform_indices = @transform_5, window_bounds = array<i64: 9, 90, 256>}, {pipeline_mode = #tpu.pipeline_mode<synchronous>, transform_indices = @transform_6, window_bounds = array<i64: 1, 256>}, {transform_indices = @transform_7, window_bounds = array<i64: 8, 256>}, {transform_indices = @transform_8, window_bounds = array<i64: 8, 256>}]} {
    %c0 = arith.constant 0 : index
    %c0_0 = arith.constant 0 : index
    %c0_1 = arith.constant 0 : index
    %c0_2 = arith.constant 0 : index
    %0 = vector.load %arg1[%c0, %c0_0, %c0_1, %c0_2] : memref<18x18x8x3xf32, #tpu.memory_space<vmem>>, vector<18x18x8x3xf32>
    %c0_3 = arith.constant 0 : index
    %c0_4 = arith.constant 0 : index
    %c0_5 = arith.constant 0 : index
    %1 = vector.load %arg2[%c0_3, %c0_4, %c0_5] : memref<9x3x30xbf16, #tpu.memory_space<vmem>>, vector<9x3x30xbf16>
    %c0_6 = arith.constant 0 : index
    %c0_7 = arith.constant 0 : index
    %2 = vector.load %arg3[%c0_6, %c0_7] : memref<1x30xf32, #tpu.memory_space<vmem>>, vector<1x30xf32>
    %cst = arith.constant 0.000000e+00 : f32
    %3 = vector.broadcast %cst : f32 to vector<2048x30xf32>
    %4 = vector.extract_strided_slice %0 {offsets = [0, 0, 0, 0], sizes = [16, 16, 8, 3], strides = [1, 1, 1, 1]} : vector<18x18x8x3xf32> to vector<16x16x8x3xf32>
    %5 = vector.shape_cast %4 : vector<16x16x8x3xf32> to vector<2048x3xf32>
    %6 = arith.truncf %5 : vector<2048x3xf32> to vector<2048x3xbf16>
    %7 = vector.extract_strided_slice %1 {offsets = [0, 0, 0], sizes = [1, 3, 30], strides = [1, 1, 1]} : vector<9x3x30xbf16> to vector<1x3x30xbf16>
    %8 = vector.shape_cast %7 : vector<1x3x30xbf16> to vector<3x30xbf16>
    %cst_8 = arith.constant dense<0.000000e+00> : vector<2048x30xf32>
    %9 = tpu.matmul %6, %8, %cst_8 {dimension_numbers = #tpu.dot_dimension_numbers<[1], [0], [0], [1], [0, 0, 1, 1], [], []>} : vector<2048x3xbf16>, vector<3x30xbf16>, vector<2048x30xf32> -> vector<2048x30xf32>
    %10 = arith.addf %3, %9 : vector<2048x30xf32>
    %11 = vector.extract_strided_slice %0 {offsets = [0, 1, 0, 0], sizes = [16, 16, 8, 3], strides = [1, 1, 1, 1]} : vector<18x18x8x3xf32> to vector<16x16x8x3xf32>
    %12 = vector.shape_cast %11 : vector<16x16x8x3xf32> to vector<2048x3xf32>
    %13 = arith.truncf %12 : vector<2048x3xf32> to vector<2048x3xbf16>
    %14 = vector.extract_strided_slice %1 {offsets = [1, 0, 0], sizes = [1, 3, 30], strides = [1, 1, 1]} : vector<9x3x30xbf16> to vector<1x3x30xbf16>
    %15 = vector.shape_cast %14 : vector<1x3x30xbf16> to vector<3x30xbf16>
    %cst_9 = arith.constant dense<0.000000e+00> : vector<2048x30xf32>
    %16 = tpu.matmul %13, %15, %cst_9 {dimension_numbers = #tpu.dot_dimension_numbers<[1], [0], [0], [1], [0, 0, 1, 1], [], []>} : vector<2048x3xbf16>, vector<3x30xbf16>, vector<2048x30xf32> -> vector<2048x30xf32>
    %17 = arith.addf %10, %16 : vector<2048x30xf32>
    %18 = vector.extract_strided_slice %0 {offsets = [0, 2, 0, 0], sizes = [16, 16, 8, 3], strides = [1, 1, 1, 1]} : vector<18x18x8x3xf32> to vector<16x16x8x3xf32>
    %19 = vector.shape_cast %18 : vector<16x16x8x3xf32> to vector<2048x3xf32>
    %20 = arith.truncf %19 : vector<2048x3xf32> to vector<2048x3xbf16>
    %21 = vector.extract_strided_slice %1 {offsets = [2, 0, 0], sizes = [1, 3, 30], strides = [1, 1, 1]} : vector<9x3x30xbf16> to vector<1x3x30xbf16>
    %22 = vector.shape_cast %21 : vector<1x3x30xbf16> to vector<3x30xbf16>
    %cst_10 = arith.constant dense<0.000000e+00> : vector<2048x30xf32>
    %23 = tpu.matmul %20, %22, %cst_10 {dimension_numbers = #tpu.dot_dimension_numbers<[1], [0], [0], [1], [0, 0, 1, 1], [], []>} : vector<2048x3xbf16>, vector<3x30xbf16>, vector<2048x30xf32> -> vector<2048x30xf32>
    %24 = arith.addf %17, %23 : vector<2048x30xf32>
    %25 = vector.extract_strided_slice %0 {offsets = [1, 0, 0, 0], sizes = [16, 16, 8, 3], strides = [1, 1, 1, 1]} : vector<18x18x8x3xf32> to vector<16x16x8x3xf32>
    %26 = vector.shape_cast %25 : vector<16x16x8x3xf32> to vector<2048x3xf32>
    %27 = arith.truncf %26 : vector<2048x3xf32> to vector<2048x3xbf16>
    %28 = vector.extract_strided_slice %1 {offsets = [3, 0, 0], sizes = [1, 3, 30], strides = [1, 1, 1]} : vector<9x3x30xbf16> to vector<1x3x30xbf16>
    %29 = vector.shape_cast %28 : vector<1x3x30xbf16> to vector<3x30xbf16>
    %cst_11 = arith.constant dense<0.000000e+00> : vector<2048x30xf32>
    %30 = tpu.matmul %27, %29, %cst_11 {dimension_numbers = #tpu.dot_dimension_numbers<[1], [0], [0], [1], [0, 0, 1, 1], [], []>} : vector<2048x3xbf16>, vector<3x30xbf16>, vector<2048x30xf32> -> vector<2048x30xf32>
    %31 = arith.addf %24, %30 : vector<2048x30xf32>
    %32 = vector.extract_strided_slice %0 {offsets = [1, 1, 0, 0], sizes = [16, 16, 8, 3], strides = [1, 1, 1, 1]} : vector<18x18x8x3xf32> to vector<16x16x8x3xf32>
    %33 = vector.shape_cast %32 : vector<16x16x8x3xf32> to vector<2048x3xf32>
    %34 = arith.truncf %33 : vector<2048x3xf32> to vector<2048x3xbf16>
    %35 = vector.extract_strided_slice %1 {offsets = [4, 0, 0], sizes = [1, 3, 30], strides = [1, 1, 1]} : vector<9x3x30xbf16> to vector<1x3x30xbf16>
    %36 = vector.shape_cast %35 : vector<1x3x30xbf16> to vector<3x30xbf16>
    %cst_12 = arith.constant dense<0.000000e+00> : vector<2048x30xf32>
    %37 = tpu.matmul %34, %36, %cst_12 {dimension_numbers = #tpu.dot_dimension_numbers<[1], [0], [0], [1], [0, 0, 1, 1], [], []>} : vector<2048x3xbf16>, vector<3x30xbf16>, vector<2048x30xf32> -> vector<2048x30xf32>
    %38 = arith.addf %31, %37 : vector<2048x30xf32>
    %39 = vector.extract_strided_slice %0 {offsets = [1, 2, 0, 0], sizes = [16, 16, 8, 3], strides = [1, 1, 1, 1]} : vector<18x18x8x3xf32> to vector<16x16x8x3xf32>
    %40 = vector.shape_cast %39 : vector<16x16x8x3xf32> to vector<2048x3xf32>
    %41 = arith.truncf %40 : vector<2048x3xf32> to vector<2048x3xbf16>
    %42 = vector.extract_strided_slice %1 {offsets = [5, 0, 0], sizes = [1, 3, 30], strides = [1, 1, 1]} : vector<9x3x30xbf16> to vector<1x3x30xbf16>
    %43 = vector.shape_cast %42 : vector<1x3x30xbf16> to vector<3x30xbf16>
    %cst_13 = arith.constant dense<0.000000e+00> : vector<2048x30xf32>
    %44 = tpu.matmul %41, %43, %cst_13 {dimension_numbers = #tpu.dot_dimension_numbers<[1], [0], [0], [1], [0, 0, 1, 1], [], []>} : vector<2048x3xbf16>, vector<3x30xbf16>, vector<2048x30xf32> -> vector<2048x30xf32>
    %45 = arith.addf %38, %44 : vector<2048x30xf32>
    %46 = vector.extract_strided_slice %0 {offsets = [2, 0, 0, 0], sizes = [16, 16, 8, 3], strides = [1, 1, 1, 1]} : vector<18x18x8x3xf32> to vector<16x16x8x3xf32>
    %47 = vector.shape_cast %46 : vector<16x16x8x3xf32> to vector<2048x3xf32>
    %48 = arith.truncf %47 : vector<2048x3xf32> to vector<2048x3xbf16>
    %49 = vector.extract_strided_slice %1 {offsets = [6, 0, 0], sizes = [1, 3, 30], strides = [1, 1, 1]} : vector<9x3x30xbf16> to vector<1x3x30xbf16>
    %50 = vector.shape_cast %49 : vector<1x3x30xbf16> to vector<3x30xbf16>
    %cst_14 = arith.constant dense<0.000000e+00> : vector<2048x30xf32>
    %51 = tpu.matmul %48, %50, %cst_14 {dimension_numbers = #tpu.dot_dimension_numbers<[1], [0], [0], [1], [0, 0, 1, 1], [], []>} : vector<2048x3xbf16>, vector<3x30xbf16>, vector<2048x30xf32> -> vector<2048x30xf32>
    %52 = arith.addf %45, %51 : vector<2048x30xf32>
    %53 = vector.extract_strided_slice %0 {offsets = [2, 1, 0, 0], sizes = [16, 16, 8, 3], strides = [1, 1, 1, 1]} : vector<18x18x8x3xf32> to vector<16x16x8x3xf32>
    %54 = vector.shape_cast %53 : vector<16x16x8x3xf32> to vector<2048x3xf32>
    %55 = arith.truncf %54 : vector<2048x3xf32> to vector<2048x3xbf16>
    %56 = vector.extract_strided_slice %1 {offsets = [7, 0, 0], sizes = [1, 3, 30], strides = [1, 1, 1]} : vector<9x3x30xbf16> to vector<1x3x30xbf16>
    %57 = vector.shape_cast %56 : vector<1x3x30xbf16> to vector<3x30xbf16>
    %cst_15 = arith.constant dense<0.000000e+00> : vector<2048x30xf32>
    %58 = tpu.matmul %55, %57, %cst_15 {dimension_numbers = #tpu.dot_dimension_numbers<[1], [0], [0], [1], [0, 0, 1, 1], [], []>} : vector<2048x3xbf16>, vector<3x30xbf16>, vector<2048x30xf32> -> vector<2048x30xf32>
    %59 = arith.addf %52, %58 : vector<2048x30xf32>
    %60 = vector.extract_strided_slice %0 {offsets = [2, 2, 0, 0], sizes = [16, 16, 8, 3], strides = [1, 1, 1, 1]} : vector<18x18x8x3xf32> to vector<16x16x8x3xf32>
    %61 = vector.shape_cast %60 : vector<16x16x8x3xf32> to vector<2048x3xf32>
    %62 = arith.truncf %61 : vector<2048x3xf32> to vector<2048x3xbf16>
    %63 = vector.extract_strided_slice %1 {offsets = [8, 0, 0], sizes = [1, 3, 30], strides = [1, 1, 1]} : vector<9x3x30xbf16> to vector<1x3x30xbf16>
    %64 = vector.shape_cast %63 : vector<1x3x30xbf16> to vector<3x30xbf16>
    %cst_16 = arith.constant dense<0.000000e+00> : vector<2048x30xf32>
    %65 = tpu.matmul %62, %64, %cst_16 {dimension_numbers = #tpu.dot_dimension_numbers<[1], [0], [0], [1], [0, 0, 1, 1], [], []>} : vector<2048x3xbf16>, vector<3x30xbf16>, vector<2048x30xf32> -> vector<2048x30xf32>
    %66 = arith.addf %59, %65 : vector<2048x30xf32>
    %67 = vector.broadcast %2 : vector<1x30xf32> to vector<2048x30xf32>
    %68 = arith.addf %66, %67 : vector<2048x30xf32>
    %cst_17 = arith.constant 0.000000e+00 : f32
    %69 = vector.broadcast %cst_17 : f32 to vector<2048x30xf32>
    %70 = arith.maximumf %68, %69 : vector<2048x30xf32>
    %71 = vector.shape_cast %70 : vector<2048x30xf32> to vector<16x16x8x30xf32>
    %72 = vector.shape_cast %71 : vector<16x16x8x30xf32> to vector<8x2x16x8x30xf32>
    %73 = vector.extract_strided_slice %72 {offsets = [0, 0, 0, 0, 0], sizes = [8, 1, 16, 8, 30], strides = [1, 1, 1, 1, 1]} : vector<8x2x16x8x30xf32> to vector<8x1x16x8x30xf32>
    %74 = vector.shape_cast %73 : vector<8x1x16x8x30xf32> to vector<8x16x8x30xf32>
    %75 = vector.extract_strided_slice %72 {offsets = [0, 1, 0, 0, 0], sizes = [8, 1, 16, 8, 30], strides = [1, 1, 1, 1, 1]} : vector<8x2x16x8x30xf32> to vector<8x1x16x8x30xf32>
    %76 = vector.shape_cast %75 : vector<8x1x16x8x30xf32> to vector<8x16x8x30xf32>
    %77 = arith.maximumf %74, %76 : vector<8x16x8x30xf32>
    %78 = vector.shape_cast %77 : vector<8x16x8x30xf32> to vector<8x8x2x8x30xf32>
    %79 = vector.extract_strided_slice %78 {offsets = [0, 0, 0, 0, 0], sizes = [8, 8, 1, 8, 30], strides = [1, 1, 1, 1, 1]} : vector<8x8x2x8x30xf32> to vector<8x8x1x8x30xf32>
    %80 = vector.shape_cast %79 : vector<8x8x1x8x30xf32> to vector<8x8x8x30xf32>
    %81 = vector.extract_strided_slice %78 {offsets = [0, 0, 1, 0, 0], sizes = [8, 8, 1, 8, 30], strides = [1, 1, 1, 1, 1]} : vector<8x8x2x8x30xf32> to vector<8x8x1x8x30xf32>
    %82 = vector.shape_cast %81 : vector<8x8x1x8x30xf32> to vector<8x8x8x30xf32>
    %83 = arith.maximumf %80, %82 : vector<8x8x8x30xf32>
    %c0_18 = arith.constant 0 : index
    %c0_19 = arith.constant 0 : index
    %c0_20 = arith.constant 0 : index
    %84 = vector.load %arg4[%c0_18, %c0_19, %c0_20] : memref<9x30x90xbf16, #tpu.memory_space<vmem>>, vector<9x30x90xbf16>
    %c0_21 = arith.constant 0 : index
    %c0_22 = arith.constant 0 : index
    %85 = vector.load %arg5[%c0_21, %c0_22] : memref<1x90xf32, #tpu.memory_space<vmem>>, vector<1x90xf32>
    %cst_23 = arith.constant 0.000000e+00 : f32
    %86 = vector.broadcast %cst_23 : f32 to vector<288x90xf32>
    %87 = vector.extract_strided_slice %83 {offsets = [0, 0, 0, 0], sizes = [6, 6, 8, 30], strides = [1, 1, 1, 1]} : vector<8x8x8x30xf32> to vector<6x6x8x30xf32>
    %88 = vector.shape_cast %87 : vector<6x6x8x30xf32> to vector<288x30xf32>
    %89 = arith.truncf %88 : vector<288x30xf32> to vector<288x30xbf16>
    %90 = vector.extract_strided_slice %84 {offsets = [0, 0, 0], sizes = [1, 30, 90], strides = [1, 1, 1]} : vector<9x30x90xbf16> to vector<1x30x90xbf16>
    %91 = vector.shape_cast %90 : vector<1x30x90xbf16> to vector<30x90xbf16>
    %cst_24 = arith.constant dense<0.000000e+00> : vector<288x90xf32>
    %92 = tpu.matmul %89, %91, %cst_24 {dimension_numbers = #tpu.dot_dimension_numbers<[1], [0], [0], [1], [0, 0, 1, 1], [], []>} : vector<288x30xbf16>, vector<30x90xbf16>, vector<288x90xf32> -> vector<288x90xf32>
    %93 = arith.addf %86, %92 : vector<288x90xf32>
    %94 = vector.extract_strided_slice %83 {offsets = [0, 1, 0, 0], sizes = [6, 6, 8, 30], strides = [1, 1, 1, 1]} : vector<8x8x8x30xf32> to vector<6x6x8x30xf32>
    %95 = vector.shape_cast %94 : vector<6x6x8x30xf32> to vector<288x30xf32>
    %96 = arith.truncf %95 : vector<288x30xf32> to vector<288x30xbf16>
    %97 = vector.extract_strided_slice %84 {offsets = [1, 0, 0], sizes = [1, 30, 90], strides = [1, 1, 1]} : vector<9x30x90xbf16> to vector<1x30x90xbf16>
    %98 = vector.shape_cast %97 : vector<1x30x90xbf16> to vector<30x90xbf16>
    %cst_25 = arith.constant dense<0.000000e+00> : vector<288x90xf32>
    %99 = tpu.matmul %96, %98, %cst_25 {dimension_numbers = #tpu.dot_dimension_numbers<[1], [0], [0], [1], [0, 0, 1, 1], [], []>} : vector<288x30xbf16>, vector<30x90xbf16>, vector<288x90xf32> -> vector<288x90xf32>
    %100 = arith.addf %93, %99 : vector<288x90xf32>
    %101 = vector.extract_strided_slice %83 {offsets = [0, 2, 0, 0], sizes = [6, 6, 8, 30], strides = [1, 1, 1, 1]} : vector<8x8x8x30xf32> to vector<6x6x8x30xf32>
    %102 = vector.shape_cast %101 : vector<6x6x8x30xf32> to vector<288x30xf32>
    %103 = arith.truncf %102 : vector<288x30xf32> to vector<288x30xbf16>
    %104 = vector.extract_strided_slice %84 {offsets = [2, 0, 0], sizes = [1, 30, 90], strides = [1, 1, 1]} : vector<9x30x90xbf16> to vector<1x30x90xbf16>
    %105 = vector.shape_cast %104 : vector<1x30x90xbf16> to vector<30x90xbf16>
    %cst_26 = arith.constant dense<0.000000e+00> : vector<288x90xf32>
    %106 = tpu.matmul %103, %105, %cst_26 {dimension_numbers = #tpu.dot_dimension_numbers<[1], [0], [0], [1], [0, 0, 1, 1], [], []>} : vector<288x30xbf16>, vector<30x90xbf16>, vector<288x90xf32> -> vector<288x90xf32>
    %107 = arith.addf %100, %106 : vector<288x90xf32>
    %108 = vector.extract_strided_slice %83 {offsets = [1, 0, 0, 0], sizes = [6, 6, 8, 30], strides = [1, 1, 1, 1]} : vector<8x8x8x30xf32> to vector<6x6x8x30xf32>
    %109 = vector.shape_cast %108 : vector<6x6x8x30xf32> to vector<288x30xf32>
    %110 = arith.truncf %109 : vector<288x30xf32> to vector<288x30xbf16>
    %111 = vector.extract_strided_slice %84 {offsets = [3, 0, 0], sizes = [1, 30, 90], strides = [1, 1, 1]} : vector<9x30x90xbf16> to vector<1x30x90xbf16>
    %112 = vector.shape_cast %111 : vector<1x30x90xbf16> to vector<30x90xbf16>
    %cst_27 = arith.constant dense<0.000000e+00> : vector<288x90xf32>
    %113 = tpu.matmul %110, %112, %cst_27 {dimension_numbers = #tpu.dot_dimension_numbers<[1], [0], [0], [1], [0, 0, 1, 1], [], []>} : vector<288x30xbf16>, vector<30x90xbf16>, vector<288x90xf32> -> vector<288x90xf32>
    %114 = arith.addf %107, %113 : vector<288x90xf32>
    %115 = vector.extract_strided_slice %83 {offsets = [1, 1, 0, 0], sizes = [6, 6, 8, 30], strides = [1, 1, 1, 1]} : vector<8x8x8x30xf32> to vector<6x6x8x30xf32>
    %116 = vector.shape_cast %115 : vector<6x6x8x30xf32> to vector<288x30xf32>
    %117 = arith.truncf %116 : vector<288x30xf32> to vector<288x30xbf16>
    %118 = vector.extract_strided_slice %84 {offsets = [4, 0, 0], sizes = [1, 30, 90], strides = [1, 1, 1]} : vector<9x30x90xbf16> to vector<1x30x90xbf16>
    %119 = vector.shape_cast %118 : vector<1x30x90xbf16> to vector<30x90xbf16>
    %cst_28 = arith.constant dense<0.000000e+00> : vector<288x90xf32>
    %120 = tpu.matmul %117, %119, %cst_28 {dimension_numbers = #tpu.dot_dimension_numbers<[1], [0], [0], [1], [0, 0, 1, 1], [], []>} : vector<288x30xbf16>, vector<30x90xbf16>, vector<288x90xf32> -> vector<288x90xf32>
    %121 = arith.addf %114, %120 : vector<288x90xf32>
    %122 = vector.extract_strided_slice %83 {offsets = [1, 2, 0, 0], sizes = [6, 6, 8, 30], strides = [1, 1, 1, 1]} : vector<8x8x8x30xf32> to vector<6x6x8x30xf32>
    %123 = vector.shape_cast %122 : vector<6x6x8x30xf32> to vector<288x30xf32>
    %124 = arith.truncf %123 : vector<288x30xf32> to vector<288x30xbf16>
    %125 = vector.extract_strided_slice %84 {offsets = [5, 0, 0], sizes = [1, 30, 90], strides = [1, 1, 1]} : vector<9x30x90xbf16> to vector<1x30x90xbf16>
    %126 = vector.shape_cast %125 : vector<1x30x90xbf16> to vector<30x90xbf16>
    %cst_29 = arith.constant dense<0.000000e+00> : vector<288x90xf32>
    %127 = tpu.matmul %124, %126, %cst_29 {dimension_numbers = #tpu.dot_dimension_numbers<[1], [0], [0], [1], [0, 0, 1, 1], [], []>} : vector<288x30xbf16>, vector<30x90xbf16>, vector<288x90xf32> -> vector<288x90xf32>
    %128 = arith.addf %121, %127 : vector<288x90xf32>
    %129 = vector.extract_strided_slice %83 {offsets = [2, 0, 0, 0], sizes = [6, 6, 8, 30], strides = [1, 1, 1, 1]} : vector<8x8x8x30xf32> to vector<6x6x8x30xf32>
    %130 = vector.shape_cast %129 : vector<6x6x8x30xf32> to vector<288x30xf32>
    %131 = arith.truncf %130 : vector<288x30xf32> to vector<288x30xbf16>
    %132 = vector.extract_strided_slice %84 {offsets = [6, 0, 0], sizes = [1, 30, 90], strides = [1, 1, 1]} : vector<9x30x90xbf16> to vector<1x30x90xbf16>
    %133 = vector.shape_cast %132 : vector<1x30x90xbf16> to vector<30x90xbf16>
    %cst_30 = arith.constant dense<0.000000e+00> : vector<288x90xf32>
    %134 = tpu.matmul %131, %133, %cst_30 {dimension_numbers = #tpu.dot_dimension_numbers<[1], [0], [0], [1], [0, 0, 1, 1], [], []>} : vector<288x30xbf16>, vector<30x90xbf16>, vector<288x90xf32> -> vector<288x90xf32>
    %135 = arith.addf %128, %134 : vector<288x90xf32>
    %136 = vector.extract_strided_slice %83 {offsets = [2, 1, 0, 0], sizes = [6, 6, 8, 30], strides = [1, 1, 1, 1]} : vector<8x8x8x30xf32> to vector<6x6x8x30xf32>
    %137 = vector.shape_cast %136 : vector<6x6x8x30xf32> to vector<288x30xf32>
    %138 = arith.truncf %137 : vector<288x30xf32> to vector<288x30xbf16>
    %139 = vector.extract_strided_slice %84 {offsets = [7, 0, 0], sizes = [1, 30, 90], strides = [1, 1, 1]} : vector<9x30x90xbf16> to vector<1x30x90xbf16>
    %140 = vector.shape_cast %139 : vector<1x30x90xbf16> to vector<30x90xbf16>
    %cst_31 = arith.constant dense<0.000000e+00> : vector<288x90xf32>
    %141 = tpu.matmul %138, %140, %cst_31 {dimension_numbers = #tpu.dot_dimension_numbers<[1], [0], [0], [1], [0, 0, 1, 1], [], []>} : vector<288x30xbf16>, vector<30x90xbf16>, vector<288x90xf32> -> vector<288x90xf32>
    %142 = arith.addf %135, %141 : vector<288x90xf32>
    %143 = vector.extract_strided_slice %83 {offsets = [2, 2, 0, 0], sizes = [6, 6, 8, 30], strides = [1, 1, 1, 1]} : vector<8x8x8x30xf32> to vector<6x6x8x30xf32>
    %144 = vector.shape_cast %143 : vector<6x6x8x30xf32> to vector<288x30xf32>
    %145 = arith.truncf %144 : vector<288x30xf32> to vector<288x30xbf16>
    %146 = vector.extract_strided_slice %84 {offsets = [8, 0, 0], sizes = [1, 30, 90], strides = [1, 1, 1]} : vector<9x30x90xbf16> to vector<1x30x90xbf16>
    %147 = vector.shape_cast %146 : vector<1x30x90xbf16> to vector<30x90xbf16>
    %cst_32 = arith.constant dense<0.000000e+00> : vector<288x90xf32>
    %148 = tpu.matmul %145, %147, %cst_32 {dimension_numbers = #tpu.dot_dimension_numbers<[1], [0], [0], [1], [0, 0, 1, 1], [], []>} : vector<288x30xbf16>, vector<30x90xbf16>, vector<288x90xf32> -> vector<288x90xf32>
    %149 = arith.addf %142, %148 : vector<288x90xf32>
    %150 = vector.broadcast %85 : vector<1x90xf32> to vector<288x90xf32>
    %151 = arith.addf %149, %150 : vector<288x90xf32>
    %cst_33 = arith.constant 0.000000e+00 : f32
    %152 = vector.broadcast %cst_33 : f32 to vector<288x90xf32>
    %153 = arith.maximumf %151, %152 : vector<288x90xf32>
    %154 = vector.shape_cast %153 : vector<288x90xf32> to vector<6x6x8x90xf32>
    %155 = vector.shape_cast %154 : vector<6x6x8x90xf32> to vector<3x2x6x8x90xf32>
    %156 = vector.extract_strided_slice %155 {offsets = [0, 0, 0, 0, 0], sizes = [3, 1, 6, 8, 90], strides = [1, 1, 1, 1, 1]} : vector<3x2x6x8x90xf32> to vector<3x1x6x8x90xf32>
    %157 = vector.shape_cast %156 : vector<3x1x6x8x90xf32> to vector<3x6x8x90xf32>
    %158 = vector.extract_strided_slice %155 {offsets = [0, 1, 0, 0, 0], sizes = [3, 1, 6, 8, 90], strides = [1, 1, 1, 1, 1]} : vector<3x2x6x8x90xf32> to vector<3x1x6x8x90xf32>
    %159 = vector.shape_cast %158 : vector<3x1x6x8x90xf32> to vector<3x6x8x90xf32>
    %160 = arith.maximumf %157, %159 : vector<3x6x8x90xf32>
    %161 = vector.shape_cast %160 : vector<3x6x8x90xf32> to vector<3x3x2x8x90xf32>
    %162 = vector.extract_strided_slice %161 {offsets = [0, 0, 0, 0, 0], sizes = [3, 3, 1, 8, 90], strides = [1, 1, 1, 1, 1]} : vector<3x3x2x8x90xf32> to vector<3x3x1x8x90xf32>
    %163 = vector.shape_cast %162 : vector<3x3x1x8x90xf32> to vector<3x3x8x90xf32>
    %164 = vector.extract_strided_slice %161 {offsets = [0, 0, 1, 0, 0], sizes = [3, 3, 1, 8, 90], strides = [1, 1, 1, 1, 1]} : vector<3x3x2x8x90xf32> to vector<3x3x1x8x90xf32>
    %165 = vector.shape_cast %164 : vector<3x3x1x8x90xf32> to vector<3x3x8x90xf32>
    %166 = arith.maximumf %163, %165 : vector<3x3x8x90xf32>
    %c0_34 = arith.constant 0 : index
    %c0_35 = arith.constant 0 : index
    %c0_36 = arith.constant 0 : index
    %167 = vector.load %arg6[%c0_34, %c0_35, %c0_36] : memref<9x90x256xbf16, #tpu.memory_space<vmem>>, vector<9x90x256xbf16>
    %cst_37 = arith.constant 0.000000e+00 : f32
    %168 = vector.broadcast %cst_37 : f32 to vector<8x256xf32>
    %169 = vector.extract_strided_slice %166 {offsets = [0, 0, 0, 0], sizes = [1, 1, 8, 90], strides = [1, 1, 1, 1]} : vector<3x3x8x90xf32> to vector<1x1x8x90xf32>
    %170 = vector.shape_cast %169 : vector<1x1x8x90xf32> to vector<8x90xf32>
    %171 = arith.truncf %170 : vector<8x90xf32> to vector<8x90xbf16>
    %172 = vector.extract_strided_slice %167 {offsets = [0, 0, 0], sizes = [1, 90, 256], strides = [1, 1, 1]} : vector<9x90x256xbf16> to vector<1x90x256xbf16>
    %173 = vector.shape_cast %172 : vector<1x90x256xbf16> to vector<90x256xbf16>
    %cst_38 = arith.constant dense<0.000000e+00> : vector<8x256xf32>
    %174 = tpu.matmul %171, %173, %cst_38 {dimension_numbers = #tpu.dot_dimension_numbers<[1], [0], [0], [1], [0, 0, 1, 1], [], []>} : vector<8x90xbf16>, vector<90x256xbf16>, vector<8x256xf32> -> vector<8x256xf32>
    %175 = arith.addf %168, %174 : vector<8x256xf32>
    %176 = vector.extract_strided_slice %166 {offsets = [0, 1, 0, 0], sizes = [1, 1, 8, 90], strides = [1, 1, 1, 1]} : vector<3x3x8x90xf32> to vector<1x1x8x90xf32>
    %177 = vector.shape_cast %176 : vector<1x1x8x90xf32> to vector<8x90xf32>
    %178 = arith.truncf %177 : vector<8x90xf32> to vector<8x90xbf16>
    %179 = vector.extract_strided_slice %167 {offsets = [1, 0, 0], sizes = [1, 90, 256], strides = [1, 1, 1]} : vector<9x90x256xbf16> to vector<1x90x256xbf16>
    %180 = vector.shape_cast %179 : vector<1x90x256xbf16> to vector<90x256xbf16>
    %cst_39 = arith.constant dense<0.000000e+00> : vector<8x256xf32>
    %181 = tpu.matmul %178, %180, %cst_39 {dimension_numbers = #tpu.dot_dimension_numbers<[1], [0], [0], [1], [0, 0, 1, 1], [], []>} : vector<8x90xbf16>, vector<90x256xbf16>, vector<8x256xf32> -> vector<8x256xf32>
    %182 = arith.addf %175, %181 : vector<8x256xf32>
    %183 = vector.extract_strided_slice %166 {offsets = [0, 2, 0, 0], sizes = [1, 1, 8, 90], strides = [1, 1, 1, 1]} : vector<3x3x8x90xf32> to vector<1x1x8x90xf32>
    %184 = vector.shape_cast %183 : vector<1x1x8x90xf32> to vector<8x90xf32>
    %185 = arith.truncf %184 : vector<8x90xf32> to vector<8x90xbf16>
    %186 = vector.extract_strided_slice %167 {offsets = [2, 0, 0], sizes = [1, 90, 256], strides = [1, 1, 1]} : vector<9x90x256xbf16> to vector<1x90x256xbf16>
    %187 = vector.shape_cast %186 : vector<1x90x256xbf16> to vector<90x256xbf16>
    %cst_40 = arith.constant dense<0.000000e+00> : vector<8x256xf32>
    %188 = tpu.matmul %185, %187, %cst_40 {dimension_numbers = #tpu.dot_dimension_numbers<[1], [0], [0], [1], [0, 0, 1, 1], [], []>} : vector<8x90xbf16>, vector<90x256xbf16>, vector<8x256xf32> -> vector<8x256xf32>
    %189 = arith.addf %182, %188 : vector<8x256xf32>
    %190 = vector.extract_strided_slice %166 {offsets = [1, 0, 0, 0], sizes = [1, 1, 8, 90], strides = [1, 1, 1, 1]} : vector<3x3x8x90xf32> to vector<1x1x8x90xf32>
    %191 = vector.shape_cast %190 : vector<1x1x8x90xf32> to vector<8x90xf32>
    %192 = arith.truncf %191 : vector<8x90xf32> to vector<8x90xbf16>
    %193 = vector.extract_strided_slice %167 {offsets = [3, 0, 0], sizes = [1, 90, 256], strides = [1, 1, 1]} : vector<9x90x256xbf16> to vector<1x90x256xbf16>
    %194 = vector.shape_cast %193 : vector<1x90x256xbf16> to vector<90x256xbf16>
    %cst_41 = arith.constant dense<0.000000e+00> : vector<8x256xf32>
    %195 = tpu.matmul %192, %194, %cst_41 {dimension_numbers = #tpu.dot_dimension_numbers<[1], [0], [0], [1], [0, 0, 1, 1], [], []>} : vector<8x90xbf16>, vector<90x256xbf16>, vector<8x256xf32> -> vector<8x256xf32>
    %196 = arith.addf %189, %195 : vector<8x256xf32>
    %197 = vector.extract_strided_slice %166 {offsets = [1, 1, 0, 0], sizes = [1, 1, 8, 90], strides = [1, 1, 1, 1]} : vector<3x3x8x90xf32> to vector<1x1x8x90xf32>
    %198 = vector.shape_cast %197 : vector<1x1x8x90xf32> to vector<8x90xf32>
    %199 = arith.truncf %198 : vector<8x90xf32> to vector<8x90xbf16>
    %200 = vector.extract_strided_slice %167 {offsets = [4, 0, 0], sizes = [1, 90, 256], strides = [1, 1, 1]} : vector<9x90x256xbf16> to vector<1x90x256xbf16>
    %201 = vector.shape_cast %200 : vector<1x90x256xbf16> to vector<90x256xbf16>
    %cst_42 = arith.constant dense<0.000000e+00> : vector<8x256xf32>
    %202 = tpu.matmul %199, %201, %cst_42 {dimension_numbers = #tpu.dot_dimension_numbers<[1], [0], [0], [1], [0, 0, 1, 1], [], []>} : vector<8x90xbf16>, vector<90x256xbf16>, vector<8x256xf32> -> vector<8x256xf32>
    %203 = arith.addf %196, %202 : vector<8x256xf32>
    %204 = vector.extract_strided_slice %166 {offsets = [1, 2, 0, 0], sizes = [1, 1, 8, 90], strides = [1, 1, 1, 1]} : vector<3x3x8x90xf32> to vector<1x1x8x90xf32>
    %205 = vector.shape_cast %204 : vector<1x1x8x90xf32> to vector<8x90xf32>
    %206 = arith.truncf %205 : vector<8x90xf32> to vector<8x90xbf16>
    %207 = vector.extract_strided_slice %167 {offsets = [5, 0, 0], sizes = [1, 90, 256], strides = [1, 1, 1]} : vector<9x90x256xbf16> to vector<1x90x256xbf16>
    %208 = vector.shape_cast %207 : vector<1x90x256xbf16> to vector<90x256xbf16>
    %cst_43 = arith.constant dense<0.000000e+00> : vector<8x256xf32>
    %209 = tpu.matmul %206, %208, %cst_43 {dimension_numbers = #tpu.dot_dimension_numbers<[1], [0], [0], [1], [0, 0, 1, 1], [], []>} : vector<8x90xbf16>, vector<90x256xbf16>, vector<8x256xf32> -> vector<8x256xf32>
    %210 = arith.addf %203, %209 : vector<8x256xf32>
    %211 = vector.extract_strided_slice %166 {offsets = [2, 0, 0, 0], sizes = [1, 1, 8, 90], strides = [1, 1, 1, 1]} : vector<3x3x8x90xf32> to vector<1x1x8x90xf32>
    %212 = vector.shape_cast %211 : vector<1x1x8x90xf32> to vector<8x90xf32>
    %213 = arith.truncf %212 : vector<8x90xf32> to vector<8x90xbf16>
    %214 = vector.extract_strided_slice %167 {offsets = [6, 0, 0], sizes = [1, 90, 256], strides = [1, 1, 1]} : vector<9x90x256xbf16> to vector<1x90x256xbf16>
    %215 = vector.shape_cast %214 : vector<1x90x256xbf16> to vector<90x256xbf16>
    %cst_44 = arith.constant dense<0.000000e+00> : vector<8x256xf32>
    %216 = tpu.matmul %213, %215, %cst_44 {dimension_numbers = #tpu.dot_dimension_numbers<[1], [0], [0], [1], [0, 0, 1, 1], [], []>} : vector<8x90xbf16>, vector<90x256xbf16>, vector<8x256xf32> -> vector<8x256xf32>
    %217 = arith.addf %210, %216 : vector<8x256xf32>
    %218 = vector.extract_strided_slice %166 {offsets = [2, 1, 0, 0], sizes = [1, 1, 8, 90], strides = [1, 1, 1, 1]} : vector<3x3x8x90xf32> to vector<1x1x8x90xf32>
    %219 = vector.shape_cast %218 : vector<1x1x8x90xf32> to vector<8x90xf32>
    %220 = arith.truncf %219 : vector<8x90xf32> to vector<8x90xbf16>
    %221 = vector.extract_strided_slice %167 {offsets = [7, 0, 0], sizes = [1, 90, 256], strides = [1, 1, 1]} : vector<9x90x256xbf16> to vector<1x90x256xbf16>
    %222 = vector.shape_cast %221 : vector<1x90x256xbf16> to vector<90x256xbf16>
    %cst_45 = arith.constant dense<0.000000e+00> : vector<8x256xf32>
    %223 = tpu.matmul %220, %222, %cst_45 {dimension_numbers = #tpu.dot_dimension_numbers<[1], [0], [0], [1], [0, 0, 1, 1], [], []>} : vector<8x90xbf16>, vector<90x256xbf16>, vector<8x256xf32> -> vector<8x256xf32>
    %224 = arith.addf %217, %223 : vector<8x256xf32>
    %225 = vector.extract_strided_slice %166 {offsets = [2, 2, 0, 0], sizes = [1, 1, 8, 90], strides = [1, 1, 1, 1]} : vector<3x3x8x90xf32> to vector<1x1x8x90xf32>
    %226 = vector.shape_cast %225 : vector<1x1x8x90xf32> to vector<8x90xf32>
    %227 = arith.truncf %226 : vector<8x90xf32> to vector<8x90xbf16>
    %228 = vector.extract_strided_slice %167 {offsets = [8, 0, 0], sizes = [1, 90, 256], strides = [1, 1, 1]} : vector<9x90x256xbf16> to vector<1x90x256xbf16>
    %229 = vector.shape_cast %228 : vector<1x90x256xbf16> to vector<90x256xbf16>
    %cst_46 = arith.constant dense<0.000000e+00> : vector<8x256xf32>
    %230 = tpu.matmul %227, %229, %cst_46 {dimension_numbers = #tpu.dot_dimension_numbers<[1], [0], [0], [1], [0, 0, 1, 1], [], []>} : vector<8x90xbf16>, vector<90x256xbf16>, vector<8x256xf32> -> vector<8x256xf32>
    %231 = arith.addf %224, %230 : vector<8x256xf32>
    %c0_47 = arith.constant 0 : index
    %c0_48 = arith.constant 0 : index
    %232 = vector.load %arg7[%c0_47, %c0_48] : memref<1x256xf32, #tpu.memory_space<vmem>>, vector<1x256xf32>
    %233 = vector.broadcast %232 : vector<1x256xf32> to vector<8x256xf32>
    %234 = arith.addf %231, %233 : vector<8x256xf32>
    %c0_49 = arith.constant 0 : index
    %c0_50 = arith.constant 0 : index
    %235 = vector.load %arg9[%c0_49, %c0_50] : memref<8x256xf32, #tpu.memory_space<vmem>>, vector<8x256xf32>
    tpu.vector_store %arg9[%c0_49, %c0_50], %234 {strides = array<i32>} : memref<8x256xf32, #tpu.memory_space<vmem>>, vector<8x256xf32>,
    %cst_51 = arith.constant 0.000000e+00 : f32
    %236 = vector.broadcast %cst_51 : f32 to vector<8x256xf32>
    %237 = arith.subf %236, %234 : vector<8x256xf32>
    %238 = math.exp %237 : vector<8x256xf32>
    %cst_52 = arith.constant 1.000000e+00 : f32
    %239 = vector.broadcast %cst_52 : f32 to vector<8x256xf32>
    %240 = arith.addf %239, %238 : vector<8x256xf32>
    %241 = tpu.reciprocal %240 {approx = true} : vector<8x256xf32> -> vector<8x256xf32>
    %c0_53 = arith.constant 0 : index
    %c0_54 = arith.constant 0 : index
    %242 = vector.load %arg8[%c0_53, %c0_54] : memref<8x256xf32, #tpu.memory_space<vmem>>, vector<8x256xf32>
    tpu.vector_store %arg8[%c0_53, %c0_54], %241 {strides = array<i32>} : memref<8x256xf32, #tpu.memory_space<vmem>>, vector<8x256xf32>,
    return
  }
  func.func @transform_0(%arg0: i32) -> (i32, i32, i32, i32) {
    %c0_i32 = arith.constant 0 : i32
    %c0_i32_0 = arith.constant 0 : i32
    %c0_i32_1 = arith.constant 0 : i32
    %c0_i32_2 = arith.constant 0 : i32
    return %c0_i32, %c0_i32_0, %arg0, %c0_i32_1 : i32, i32, i32, i32
  }
  func.func @transform_1(%arg0: i32) -> (i32, i32, i32) {
    %c0_i32 = arith.constant 0 : i32
    %c0_i32_0 = arith.constant 0 : i32
    %c0_i32_1 = arith.constant 0 : i32
    %c0_i32_2 = arith.constant 0 : i32
    return %c0_i32, %c0_i32_0, %c0_i32_1 : i32, i32, i32
  }
  func.func @transform_2(%arg0: i32) -> (i32, i32) {
    %c0_i32 = arith.constant 0 : i32
    %c0_i32_0 = arith.constant 0 : i32
    %c0_i32_1 = arith.constant 0 : i32
    return %c0_i32, %c0_i32_0 : i32, i32
  }
  func.func @transform_3(%arg0: i32) -> (i32, i32, i32) {
    %c0_i32 = arith.constant 0 : i32
    %c0_i32_0 = arith.constant 0 : i32
    %c0_i32_1 = arith.constant 0 : i32
    %c0_i32_2 = arith.constant 0 : i32
    return %c0_i32, %c0_i32_0, %c0_i32_1 : i32, i32, i32
  }
  func.func @transform_4(%arg0: i32) -> (i32, i32) {
    %c0_i32 = arith.constant 0 : i32
    %c0_i32_0 = arith.constant 0 : i32
    %c0_i32_1 = arith.constant 0 : i32
    return %c0_i32, %c0_i32_0 : i32, i32
  }
  func.func @transform_5(%arg0: i32) -> (i32, i32, i32) {
    %c0_i32 = arith.constant 0 : i32
    %c0_i32_0 = arith.constant 0 : i32
    %c0_i32_1 = arith.constant 0 : i32
    %c0_i32_2 = arith.constant 0 : i32
    return %c0_i32, %c0_i32_0, %c0_i32_1 : i32, i32, i32
  }
  func.func @transform_6(%arg0: i32) -> (i32, i32) {
    %c0_i32 = arith.constant 0 : i32
    %c0_i32_0 = arith.constant 0 : i32
    %c0_i32_1 = arith.constant 0 : i32
    return %c0_i32, %c0_i32_0 : i32, i32
  }
  func.func @transform_7(%arg0: i32) -> (i32, i32) {
    %c0_i32 = arith.constant 0 : i32
    %c0_i32_0 = arith.constant 0 : i32
    return %arg0, %c0_i32 : i32, i32
  }
  func.func @transform_8(%arg0: i32) -> (i32, i32) {
    %c0_i32 = arith.constant 0 : i32
    %c0_i32_0 = arith.constant 0 : i32
    return %arg0, %c0_i32 : i32, i32
  }
}

</mosaic_0001>

<bundles_post_ra>
// kernel: cnn_module_forward.1
= control target key start
LH: loop header
LB: loop body
LE: loop exit
PB: predicated region body
PF: predicated region fallthrough
CT: control target
= control target key end

     0   :  { %14 = vsyncpa [#allocation4], 0  ;;  %s34343_s0 = inlined_call_operand.vmem [shape: f32[18,18,16,3], index: 0, kind: input, shape index: {}]   ;;  %s34344_s1 = inlined_call_operand.vmem [shape: bf16[9,3,30], index: 1, kind: input, shape index: {}]   ;;  %s34345_s2 = inlined_call_operand.vmem [shape: f32[1,30], index: 2, kind: input, shape index: {}]   ;;  %s34346_s3 = inlined_call_operand.vmem [shape: bf16[9,30,90], index: 3, kind: input, shape index: {}]   ;;  %s34347_s4 = inlined_call_operand.vmem [shape: f32[1,90], index: 4, kind: input, shape index: {}]   ;;  %s34348_s5 = inlined_call_operand.vmem [shape: bf16[9,90,256], index: 5, kind: input, shape index: {}]   ;;  %s34349_s6 = inlined_call_operand.vmem [shape: f32[1,256], index: 6, kind: input, shape index: {}]   ;;  %s34350_s7 = inlined_call_operand.hbm [shape: f32[16,256], index: 7, kind: output, shape index: {0}]   ;;  %s34351_s8 = inlined_call_operand.hbm [shape: f32[16,256], index: 8, kind: output, shape index: {1}]  }
   0x1   :  { %16 = vsyncpa [#allocation4 + $0x1], 0 }
   0x2   :  { %17 = vsyncpa [#allocation6], 0 }
   0x3   :  { %19 = vsyncpa [#allocation6 + $0x1], 0  ;;  %s27105_s27 = smov 0   ;;  %s27107_s28 = smov 0  }
   0x4   :  { %s27109_s29 = smov 0   ;;  %s27111_s30 = smov 0  }
   0x5 LB: > { %s18849_s9 = sadd.s32 4294967295, %s27054_s30   ;;  %s18850_s10 = sadd.s32 4294967294, %s27054_s30   ;;  %s27054_s30 = sphi %s27111_s30, %s36425_s30   ;;  %s27050_s29 = sphi %s27109_s29, %s36424_s29   ;;  %s27046_s28 = sphi %s27107_s28, %s36423_s28   ;;  %s27042_s27 = sphi %s27105_s27, %s36422_s27  }
   0x6   : > { %s27128_s11 = sadd.s32 1, %s27054_s30   ;;  %s32_s12 = sadd.s32 1, %s27050_s29 }
   0x7   : > { %s29_s13 = ssub.s32 %s27054_s30, %s27128_s11  ;;  %p39_p0 = scmp.ne.s32.totalorder %s27050_s29, %s27046_s28 }
   0x8   : > { %p30_p1 = scmp.eq.s32.totalorder %s29_s13, 0  ;;  %p40_p2 = scmp.eq.s32.totalorder %s27054_s30, 0 }
   0x9   : > { %p195_p3 = scmp.eq.s32.totalorder %s18849_s9, 1  ;;  %p200_p4 = scmp.ne.s32.totalorder %s27046_s28, %s27042_s27 }
   0xa   : > { %s27141_s14 = scalar_select %p30_p1, %s27050_s29, %s32_s12  }
   0xb   : > { %p41_p5 = por %p40_p2, %p39_p0  ;;  %p27143_p6 = por %p195_p3, %p39_p0 }
   0xc   : > { %p201_p7 = scmp.eq.s32.totalorder %s18850_s10, 1  ;;  %p18852_p9 = scmp.ge.s32.totalorder %s27054_s30, 2 }
   0xe   : > { %p27147_p8 = por %p201_p7, %p200_p4  ;;  %261 = sbr.rel (%p18852_p9) target bundleno = 187 (0xbb), region = 40 }
  0x15   : > { %264 = sbr.rel (!%p41_p5) target bundleno = 187 (0xbb), region = 44  ;;  %s266_s17 = sand.u32 (%p41_p5), 1, %s27050_s29  }
  0x16   : > { %s18853_s18 = sshll.u32 (%p41_p5), %s27054_s30, 3  ;;  %s26697_s19 = smul.u32 (%p41_p5), 2592, %s266_s17 }
  0x17   : > { %s27159_s22 = scalar_lea.vmem (%p41_p5), %s34343_s0, %s18853_s18 }
  0x18   : > { %v944_v0 = vld [vmem:[%s27159_s22] sm:$0xff] (%p41_p5)  ;;  %v946_v1 = vld [vmem:[%s27159_s22 + $0x10] sm:$0xff] (%p41_p5)  ;;  %s27167_s23 = scalar_lea.vmem (%p41_p5), [#allocation2], %s26697_s19 }
  0x19   : > { %v948_v2 = vld [vmem:[%s27159_s22 + $0x20] sm:$0xff] (%p41_p5)  ;;  %v950_v3 = vld [vmem:[%s27159_s22 + $0x30] sm:$0xff] (%p41_p5)  ;;  %945 = vst [vmem:[%s27167_s23] sm:$0xff] (%p41_p5), %v944_v0  ;;  %947 = vst [vmem:[%s27167_s23 + $0x8] sm:$0xff] (%p41_p5), %v946_v1 }
  0x1a   : > { %v952_v4 = vld [vmem:[%s27159_s22 + $0x40] sm:$0xff] (%p41_p5)  ;;  %v954_v5 = vld [vmem:[%s27159_s22 + $0x50] sm:$0xff] (%p41_p5)  ;;  %949 = vst [vmem:[%s27167_s23 + $0x10] sm:$0xff] (%p41_p5), %v948_v2  ;;  %951 = vst [vmem:[%s27167_s23 + $0x18] sm:$0xff] (%p41_p5), %v950_v3 }
  0x1b   : > { %953 = vst [vmem:[%s27167_s23 + $0x20] sm:$0xff] (%p41_p5), %v952_v4  ;;  %955 = vst [vmem:[%s27167_s23 + $0x28] sm:$0xff] (%p41_p5), %v954_v5  ;;  %v956_v6 = vld [vmem:[%s27159_s22 + $0x60] sm:$0xff] (%p41_p5)  ;;  %v958_v7 = vld [vmem:[%s27159_s22 + $0x70] sm:$0xff] (%p41_p5) }
  0x1c   : > { %v960_v8 = vld [vmem:[%s27159_s22 + $0x80] sm:$0xff]  ;;  %957 = vst [vmem:[%s27167_s23 + $0x30] sm:$0xff] %v956_v6  ;;  %959 = vst [vmem:[%s27167_s23 + $0x38] sm:$0xff] %v958_v7  ;;  %v962_v9 = vld [vmem:[%s27159_s22 + $0x90] sm:$0xff] }
  0x1d   : > { %961 = vst [vmem:[%s27167_s23 + $0x40] sm:$0xff] %v960_v8  ;;  %v964_v10 = vld [vmem:[%s27159_s22 + $0xa0] sm:$0xff]  ;;  %v966_v11 = vld [vmem:[%s27159_s22 + $0xb0] sm:$0xff]  ;;  %963 = vst [vmem:[%s27167_s23 + $0x48] sm:$0xff] %v962_v9 }
  0x1e   : > { %965 = vst [vmem:[%s27167_s23 + $0x50] sm:$0xff] %v964_v10  ;;  %967 = vst [vmem:[%s27167_s23 + $0x58] sm:$0xff] %v966_v11  ;;  %v968_v12 = vld [vmem:[%s27159_s22 + $0xc0] sm:$0xff]  ;;  %v970_v13 = vld [vmem:[%s27159_s22 + $0xd0] sm:$0xff] }
  0x1f   : > { %v972_v14 = vld [vmem:[%s27159_s22 + $0xe0] sm:$0xff]  ;;  %969 = vst [vmem:[%s27167_s23 + $0x60] sm:$0xff] %v968_v12  ;;  %971 = vst [vmem:[%s27167_s23 + $0x68] sm:$0xff] %v970_v13  ;;  %v974_v15 = vld [vmem:[%s27159_s22 + $0xf0] sm:$0xff] }
  0x20   : > { %973 = vst [vmem:[%s27167_s23 + $0x70] sm:$0xff] %v972_v14  ;;  %v976_v16 = vld [vmem:[%s27159_s22 + $0x100] sm:$0xff]  ;;  %v978_v17 = vld [vmem:[%s27159_s22 + $0x110] sm:$0xff]  ;;  %975 = vst [vmem:[%s27167_s23 + $0x78] sm:$0xff] %v974_v15 }
  0x21   : > { %977 = vst [vmem:[%s27167_s23 + $0x80] sm:$0xff] %v976_v16  ;;  %979 = vst [vmem:[%s27167_s23 + $0x88] sm:$0xff] %v978_v17  ;;  %v980_v18 = vld [vmem:[%s27159_s22 + $0x120] sm:$0xff]  ;;  %v982_v19 = vld [vmem:[%s27159_s22 + $0x130] sm:$0xff] }
  0x22   : > { %v984_v20 = vld [vmem:[%s27159_s22 + $0x140] sm:$0xff]  ;;  %981 = vst [vmem:[%s27167_s23 + $0x90] sm:$0xff] %v980_v18  ;;  %983 = vst [vmem:[%s27167_s23 + $0x98] sm:$0xff] %v982_v19  ;;  %v986_v21 = vld [vmem:[%s27159_s22 + $0x150] sm:$0xff] }
  0x23   : > { %985 = vst [vmem:[%s27167_s23 + $0xa0] sm:$0xff] %v984_v20  ;;  %v988_v22 = vld [vmem:[%s27159_s22 + $0x160] sm:$0xff]  ;;  %v990_v23 = vld [vmem:[%s27159_s22 + $0x170] sm:$0xff]  ;;  %987 = vst [vmem:[%s27167_s23 + $0xa8] sm:$0xff] %v986_v21 }
  0x24   : > { %989 = vst [vmem:[%s27167_s23 + $0xb0] sm:$0xff] %v988_v22  ;;  %991 = vst [vmem:[%s27167_s23 + $0xb8] sm:$0xff] %v990_v23  ;;  %v992_v24 = vld [vmem:[%s27159_s22 + $0x180] sm:$0xff]  ;;  %v994_v25 = vld [vmem:[%s27159_s22 + $0x190] sm:$0xff] }
  0x25   : > { %v996_v26 = vld [vmem:[%s27159_s22 + $0x1a0] sm:$0xff]  ;;  %993 = vst [vmem:[%s27167_s23 + $0xc0] sm:$0xff] %v992_v24  ;;  %995 = vst [vmem:[%s27167_s23 + $0xc8] sm:$0xff] %v994_v25  ;;  %v998_v27 = vld [vmem:[%s27159_s22 + $0x1b0] sm:$0xff] }
  0x26   : > { %997 = vst [vmem:[%s27167_s23 + $0xd0] sm:$0xff] %v996_v26  ;;  %v1000_v28 = vld [vmem:[%s27159_s22 + $0x1c0] sm:$0xff]  ;;  %v1002_v29 = vld [vmem:[%s27159_s22 + $0x1d0] sm:$0xff]  ;;  %999 = vst [vmem:[%s27167_s23 + $0xd8] sm:$0xff] %v998_v27 }
  0x27   : > { %1001 = vst [vmem:[%s27167_s23 + $0xe0] sm:$0xff] %v1000_v28  ;;  %1003 = vst [vmem:[%s27167_s23 + $0xe8] sm:$0xff] %v1002_v29  ;;  %v1004_v30 = vld [vmem:[%s27159_s22 + $0x1e0] sm:$0xff]  ;;  %v1006_v31 = vld [vmem:[%s27159_s22 + $0x1f0] sm:$0xff] }
  0x28   : > { %v1008_v32 = vld [vmem:[%s27159_s22 + $0x200] sm:$0xff]  ;;  %1005 = vst [vmem:[%s27167_s23 + $0xf0] sm:$0xff] %v1004_v30  ;;  %1007 = vst [vmem:[%s27167_s23 + $0xf8] sm:$0xff] %v1006_v31  ;;  %v1010_v33 = vld [vmem:[%s27159_s22 + $0x210] sm:$0xff] }
  0x29   : > { %1009 = vst [vmem:[%s27167_s23 + $0x100] sm:$0xff] %v1008_v32  ;;  %v1012_v34 = vld [vmem:[%s27159_s22 + $0x220] sm:$0xff]  ;;  %v1014_v35 = vld [vmem:[%s27159_s22 + $0x230] sm:$0xff]  ;;  %1011 = vst [vmem:[%s27167_s23 + $0x108] sm:$0xff] %v1010_v33 }
  0x2a   : > { %1013 = vst [vmem:[%s27167_s23 + $0x110] sm:$0xff] %v1012_v34  ;;  %1015 = vst [vmem:[%s27167_s23 + $0x118] sm:$0xff] %v1014_v35  ;;  %v1016_v36 = vld [vmem:[%s27159_s22 + $0x240] sm:$0xff]  ;;  %v1018_v37 = vld [vmem:[%s27159_s22 + $0x250] sm:$0xff] }
  0x2b   : > { %v1020_v38 = vld [vmem:[%s27159_s22 + $0x260] sm:$0xff]  ;;  %1017 = vst [vmem:[%s27167_s23 + $0x120] sm:$0xff] %v1016_v36  ;;  %1019 = vst [vmem:[%s27167_s23 + $0x128] sm:$0xff] %v1018_v37  ;;  %v1022_v39 = vld [vmem:[%s27159_s22 + $0x270] sm:$0xff] }
  0x2c   : > { %1021 = vst [vmem:[%s27167_s23 + $0x130] sm:$0xff] %v1020_v38  ;;  %v1024_v40 = vld [vmem:[%s27159_s22 + $0x280] sm:$0xff]  ;;  %v1026_v41 = vld [vmem:[%s27159_s22 + $0x290] sm:$0xff]  ;;  %1023 = vst [vmem:[%s27167_s23 + $0x138] sm:$0xff] %v1022_v39 }
  0x2d   : > { %1025 = vst [vmem:[%s27167_s23 + $0x140] sm:$0xff] %v1024_v40  ;;  %1027 = vst [vmem:[%s27167_s23 + $0x148] sm:$0xff] %v1026_v41  ;;  %v1028_v42 = vld [vmem:[%s27159_s22 + $0x2a0] sm:$0xff]  ;;  %v1030_v43 = vld [vmem:[%s27159_s22 + $0x2b0] sm:$0xff] }
  0x2e   : > { %v1032_v44 = vld [vmem:[%s27159_s22 + $0x2c0] sm:$0xff]  ;;  %1029 = vst [vmem:[%s27167_s23 + $0x150] sm:$0xff] %v1028_v42  ;;  %1031 = vst [vmem:[%s27167_s23 + $0x158] sm:$0xff] %v1030_v43  ;;  %v1034_v45 = vld [vmem:[%s27159_s22 + $0x2d0] sm:$0xff] }
  0x2f   : > { %1033 = vst [vmem:[%s27167_s23 + $0x160] sm:$0xff] %v1032_v44  ;;  %v1036_v46 = vld [vmem:[%s27159_s22 + $0x2e0] sm:$0xff]  ;;  %v1038_v47 = vld [vmem:[%s27159_s22 + $0x2f0] sm:$0xff]  ;;  %1035 = vst [vmem:[%s27167_s23 + $0x168] sm:$0xff] %v1034_v45 }
  0x30   : > { %1037 = vst [vmem:[%s27167_s23 + $0x170] sm:$0xff] %v1036_v46  ;;  %1039 = vst [vmem:[%s27167_s23 + $0x178] sm:$0xff] %v1038_v47  ;;  %v1040_v48 = vld [vmem:[%s27159_s22 + $0x300] sm:$0xff]  ;;  %v1042_v49 = vld [vmem:[%s27159_s22 + $0x310] sm:$0xff] }
  0x31   : > { %v1044_v50 = vld [vmem:[%s27159_s22 + $0x320] sm:$0xff]  ;;  %1041 = vst [vmem:[%s27167_s23 + $0x180] sm:$0xff] %v1040_v48  ;;  %1043 = vst [vmem:[%s27167_s23 + $0x188] sm:$0xff] %v1042_v49  ;;  %v1046_v51 = vld [vmem:[%s27159_s22 + $0x330] sm:$0xff] }
  0x32   : > { %1045 = vst [vmem:[%s27167_s23 + $0x190] sm:$0xff] %v1044_v50  ;;  %v1048_v52 = vld [vmem:[%s27159_s22 + $0x340] sm:$0xff]  ;;  %v1050_v53 = vld [vmem:[%s27159_s22 + $0x350] sm:$0xff]  ;;  %1047 = vst [vmem:[%s27167_s23 + $0x198] sm:$0xff] %v1046_v51 }
  0x33   : > { %1049 = vst [vmem:[%s27167_s23 + $0x1a0] sm:$0xff] %v1048_v52  ;;  %1051 = vst [vmem:[%s27167_s23 + $0x1a8] sm:$0xff] %v1050_v53  ;;  %v1052_v54 = vld [vmem:[%s27159_s22 + $0x360] sm:$0xff]  ;;  %v1054_v55 = vld [vmem:[%s27159_s22 + $0x370] sm:$0xff] }
  0x34   : > { %v1056_v56 = vld [vmem:[%s27159_s22 + $0x380] sm:$0xff]  ;;  %1053 = vst [vmem:[%s27167_s23 + $0x1b0] sm:$0xff] %v1052_v54  ;;  %1055 = vst [vmem:[%s27167_s23 + $0x1b8] sm:$0xff] %v1054_v55  ;;  %v1058_v57 = vld [vmem:[%s27159_s22 + $0x390] sm:$0xff] }
  0x35   : > { %1057 = vst [vmem:[%s27167_s23 + $0x1c0] sm:$0xff] %v1056_v56  ;;  %v1060_v58 = vld [vmem:[%s27159_s22 + $0x3a0] sm:$0xff]  ;;  %v1062_v59 = vld [vmem:[%s27159_s22 + $0x3b0] sm:$0xff]  ;;  %1059 = vst [vmem:[%s27167_s23 + $0x1c8] sm:$0xff] %v1058_v57 }
  0x36   : > { %1061 = vst [vmem:[%s27167_s23 + $0x1d0] sm:$0xff] %v1060_v58  ;;  %1063 = vst [vmem:[%s27167_s23 + $0x1d8] sm:$0xff] %v1062_v59  ;;  %v1064_v60 = vld [vmem:[%s27159_s22 + $0x3c0] sm:$0xff]  ;;  %v1066_v61 = vld [vmem:[%s27159_s22 + $0x3d0] sm:$0xff] }
  0x37   : > { %v1068_v62 = vld [vmem:[%s27159_s22 + $0x3e0] sm:$0xff]  ;;  %1065 = vst [vmem:[%s27167_s23 + $0x1e0] sm:$0xff] %v1064_v60  ;;  %1067 = vst [vmem:[%s27167_s23 + $0x1e8] sm:$0xff] %v1066_v61  ;;  %v1070_v63 = vld [vmem:[%s27159_s22 + $0x3f0] sm:$0xff] }
  0x38   : > { %1069 = vst [vmem:[%s27167_s23 + $0x1f0] sm:$0xff] %v1068_v62  ;;  %v1072_v0 = vld [vmem:[%s27159_s22 + $0x400] sm:$0xff]  ;;  %v1074_v1 = vld [vmem:[%s27159_s22 + $0x410] sm:$0xff]  ;;  %1071 = vst [vmem:[%s27167_s23 + $0x1f8] sm:$0xff] %v1070_v63 }
  0x39   : > { %1073 = vst [vmem:[%s27167_s23 + $0x200] sm:$0xff] %v1072_v0  ;;  %1075 = vst [vmem:[%s27167_s23 + $0x208] sm:$0xff] %v1074_v1  ;;  %v1076_v2 = vld [vmem:[%s27159_s22 + $0x420] sm:$0xff]  ;;  %v1078_v3 = vld [vmem:[%s27159_s22 + $0x430] sm:$0xff] }
  0x3a   : > { %v1080_v4 = vld [vmem:[%s27159_s22 + $0x440] sm:$0xff]  ;;  %1077 = vst [vmem:[%s27167_s23 + $0x210] sm:$0xff] %v1076_v2  ;;  %1079 = vst [vmem:[%s27167_s23 + $0x218] sm:$0xff] %v1078_v3  ;;  %v1082_v5 = vld [vmem:[%s27159_s22 + $0x450] sm:$0xff] }
  0x3b   : > { %1081 = vst [vmem:[%s27167_s23 + $0x220] sm:$0xff] %v1080_v4  ;;  %v1084_v6 = vld [vmem:[%s27159_s22 + $0x460] sm:$0xff]  ;;  %v1086_v7 = vld [vmem:[%s27159_s22 + $0x470] sm:$0xff]  ;;  %1083 = vst [vmem:[%s27167_s23 + $0x228] sm:$0xff] %v1082_v5 }
  0x3c   : > { %1085 = vst [vmem:[%s27167_s23 + $0x230] sm:$0xff] %v1084_v6  ;;  %1087 = vst [vmem:[%s27167_s23 + $0x238] sm:$0xff] %v1086_v7  ;;  %v1088_v8 = vld [vmem:[%s27159_s22 + $0x480] sm:$0xff]  ;;  %v1090_v9 = vld [vmem:[%s27159_s22 + $0x490] sm:$0xff] }
  0x3d   : > { %v1092_v10 = vld [vmem:[%s27159_s22 + $0x4a0] sm:$0xff]  ;;  %1089 = vst [vmem:[%s27167_s23 + $0x240] sm:$0xff] %v1088_v8  ;;  %1091 = vst [vmem:[%s27167_s23 + $0x248] sm:$0xff] %v1090_v9  ;;  %v1094_v11 = vld [vmem:[%s27159_s22 + $0x4b0] sm:$0xff] }
  0x3e   : > { %1093 = vst [vmem:[%s27167_s23 + $0x250] sm:$0xff] %v1092_v10  ;;  %v1096_v12 = vld [vmem:[%s27159_s22 + $0x4c0] sm:$0xff]  ;;  %v1098_v13 = vld [vmem:[%s27159_s22 + $0x4d0] sm:$0xff]  ;;  %1095 = vst [vmem:[%s27167_s23 + $0x258] sm:$0xff] %v1094_v11 }
  0x3f   : > { %1097 = vst [vmem:[%s27167_s23 + $0x260] sm:$0xff] %v1096_v12  ;;  %1099 = vst [vmem:[%s27167_s23 + $0x268] sm:$0xff] %v1098_v13  ;;  %v1100_v14 = vld [vmem:[%s27159_s22 + $0x4e0] sm:$0xff]  ;;  %v1102_v15 = vld [vmem:[%s27159_s22 + $0x4f0] sm:$0xff] }
  0x40   : > { %v1104_v16 = vld [vmem:[%s27159_s22 + $0x500] sm:$0xff]  ;;  %1101 = vst [vmem:[%s27167_s23 + $0x270] sm:$0xff] %v1100_v14  ;;  %1103 = vst [vmem:[%s27167_s23 + $0x278] sm:$0xff] %v1102_v15  ;;  %v1106_v17 = vld [vmem:[%s27159_s22 + $0x510] sm:$0xff] }
  0x41   : > { %1105 = vst [vmem:[%s27167_s23 + $0x280] sm:$0xff] %v1104_v16  ;;  %v1108_v18 = vld [vmem:[%s27159_s22 + $0x520] sm:$0xff]  ;;  %v1110_v19 = vld [vmem:[%s27159_s22 + $0x530] sm:$0xff]  ;;  %1107 = vst [vmem:[%s27167_s23 + $0x288] sm:$0xff] %v1106_v17 }
  0x42   : > { %1109 = vst [vmem:[%s27167_s23 + $0x290] sm:$0xff] %v1108_v18  ;;  %1111 = vst [vmem:[%s27167_s23 + $0x298] sm:$0xff] %v1110_v19  ;;  %v1112_v20 = vld [vmem:[%s27159_s22 + $0x540] sm:$0xff]  ;;  %v1114_v21 = vld [vmem:[%s27159_s22 + $0x550] sm:$0xff] }
  0x43   : > { %v1116_v22 = vld [vmem:[%s27159_s22 + $0x560] sm:$0xff]  ;;  %1113 = vst [vmem:[%s27167_s23 + $0x2a0] sm:$0xff] %v1112_v20  ;;  %1115 = vst [vmem:[%s27167_s23 + $0x2a8] sm:$0xff] %v1114_v21  ;;  %v1118_v23 = vld [vmem:[%s27159_s22 + $0x570] sm:$0xff] }
  0x44   : > { %1117 = vst [vmem:[%s27167_s23 + $0x2b0] sm:$0xff] %v1116_v22  ;;  %v1120_v24 = vld [vmem:[%s27159_s22 + $0x580] sm:$0xff]  ;;  %v1122_v25 = vld [vmem:[%s27159_s22 + $0x590] sm:$0xff]  ;;  %1119 = vst [vmem:[%s27167_s23 + $0x2b8] sm:$0xff] %v1118_v23 }
  0x45   : > { %1121 = vst [vmem:[%s27167_s23 + $0x2c0] sm:$0xff] %v1120_v24  ;;  %1123 = vst [vmem:[%s27167_s23 + $0x2c8] sm:$0xff] %v1122_v25  ;;  %v1124_v26 = vld [vmem:[%s27159_s22 + $0x5a0] sm:$0xff]  ;;  %v1126_v27 = vld [vmem:[%s27159_s22 + $0x5b0] sm:$0xff] }
  0x46   : > { %v1128_v28 = vld [vmem:[%s27159_s22 + $0x5c0] sm:$0xff]  ;;  %1125 = vst [vmem:[%s27167_s23 + $0x2d0] sm:$0xff] %v1124_v26  ;;  %1127 = vst [vmem:[%s27167_s23 + $0x2d8] sm:$0xff] %v1126_v27  ;;  %v1130_v29 = vld [vmem:[%s27159_s22 + $0x5d0] sm:$0xff] }
  0x47   : > { %1129 = vst [vmem:[%s27167_s23 + $0x2e0] sm:$0xff] %v1128_v28  ;;  %v1132_v30 = vld [vmem:[%s27159_s22 + $0x5e0] sm:$0xff]  ;;  %v1134_v31 = vld [vmem:[%s27159_s22 + $0x5f0] sm:$0xff]  ;;  %1131 = vst [vmem:[%s27167_s23 + $0x2e8] sm:$0xff] %v1130_v29 }
  0x48   : > { %1133 = vst [vmem:[%s27167_s23 + $0x2f0] sm:$0xff] %v1132_v30  ;;  %1135 = vst [vmem:[%s27167_s23 + $0x2f8] sm:$0xff] %v1134_v31  ;;  %v1136_v32 = vld [vmem:[%s27159_s22 + $0x600] sm:$0xff]  ;;  %v1138_v33 = vld [vmem:[%s27159_s22 + $0x610] sm:$0xff] }
  0x49   : > { %v1140_v34 = vld [vmem:[%s27159_s22 + $0x620] sm:$0xff]  ;;  %1137 = vst [vmem:[%s27167_s23 + $0x300] sm:$0xff] %v1136_v32  ;;  %1139 = vst [vmem:[%s27167_s23 + $0x308] sm:$0xff] %v1138_v33  ;;  %v1142_v35 = vld [vmem:[%s27159_s22 + $0x630] sm:$0xff] }
  0x4a   : > { %1141 = vst [vmem:[%s27167_s23 + $0x310] sm:$0xff] %v1140_v34  ;;  %v1144_v36 = vld [vmem:[%s27159_s22 + $0x640] sm:$0xff]  ;;  %v1146_v37 = vld [vmem:[%s27159_s22 + $0x650] sm:$0xff]  ;;  %1143 = vst [vmem:[%s27167_s23 + $0x318] sm:$0xff] %v1142_v35 }
  0x4b   : > { %1145 = vst [vmem:[%s27167_s23 + $0x320] sm:$0xff] %v1144_v36  ;;  %1147 = vst [vmem:[%s27167_s23 + $0x328] sm:$0xff] %v1146_v37  ;;  %v1148_v38 = vld [vmem:[%s27159_s22 + $0x660] sm:$0xff]  ;;  %v1150_v39 = vld [vmem:[%s27159_s22 + $0x670] sm:$0xff] }
  0x4c   : > { %v1152_v40 = vld [vmem:[%s27159_s22 + $0x680] sm:$0xff]  ;;  %1149 = vst [vmem:[%s27167_s23 + $0x330] sm:$0xff] %v1148_v38  ;;  %1151 = vst [vmem:[%s27167_s23 + $0x338] sm:$0xff] %v1150_v39  ;;  %v1154_v41 = vld [vmem:[%s27159_s22 + $0x690] sm:$0xff] }
  0x4d   : > { %1153 = vst [vmem:[%s27167_s23 + $0x340] sm:$0xff] %v1152_v40  ;;  %v1156_v42 = vld [vmem:[%s27159_s22 + $0x6a0] sm:$0xff]  ;;  %v1158_v43 = vld [vmem:[%s27159_s22 + $0x6b0] sm:$0xff]  ;;  %1155 = vst [vmem:[%s27167_s23 + $0x348] sm:$0xff] %v1154_v41 }
  0x4e   : > { %1157 = vst [vmem:[%s27167_s23 + $0x350] sm:$0xff] %v1156_v42  ;;  %1159 = vst [vmem:[%s27167_s23 + $0x358] sm:$0xff] %v1158_v43  ;;  %v1160_v44 = vld [vmem:[%s27159_s22 + $0x6c0] sm:$0xff]  ;;  %v1162_v45 = vld [vmem:[%s27159_s22 + $0x6d0] sm:$0xff] }
  0x4f   : > { %v1164_v46 = vld [vmem:[%s27159_s22 + $0x6e0] sm:$0xff]  ;;  %1161 = vst [vmem:[%s27167_s23 + $0x360] sm:$0xff] %v1160_v44  ;;  %1163 = vst [vmem:[%s27167_s23 + $0x368] sm:$0xff] %v1162_v45  ;;  %v1166_v47 = vld [vmem:[%s27159_s22 + $0x6f0] sm:$0xff] }
  0x50   : > { %1165 = vst [vmem:[%s27167_s23 + $0x370] sm:$0xff] %v1164_v46  ;;  %v1168_v48 = vld [vmem:[%s27159_s22 + $0x700] sm:$0xff]  ;;  %v1170_v49 = vld [vmem:[%s27159_s22 + $0x710] sm:$0xff]  ;;  %1167 = vst [vmem:[%s27167_s23 + $0x378] sm:$0xff] %v1166_v47 }
  0x51   : > { %1169 = vst [vmem:[%s27167_s23 + $0x380] sm:$0xff] %v1168_v48  ;;  %1171 = vst [vmem:[%s27167_s23 + $0x388] sm:$0xff] %v1170_v49  ;;  %v1172_v50 = vld [vmem:[%s27159_s22 + $0x720] sm:$0xff]  ;;  %v1174_v51 = vld [vmem:[%s27159_s22 + $0x730] sm:$0xff] }
  0x52   : > { %v1176_v52 = vld [vmem:[%s27159_s22 + $0x740] sm:$0xff]  ;;  %1173 = vst [vmem:[%s27167_s23 + $0x390] sm:$0xff] %v1172_v50  ;;  %1175 = vst [vmem:[%s27167_s23 + $0x398] sm:$0xff] %v1174_v51  ;;  %v1178_v53 = vld [vmem:[%s27159_s22 + $0x750] sm:$0xff] }
  0x53   : > { %1177 = vst [vmem:[%s27167_s23 + $0x3a0] sm:$0xff] %v1176_v52  ;;  %v1180_v54 = vld [vmem:[%s27159_s22 + $0x760] sm:$0xff]  ;;  %v1182_v55 = vld [vmem:[%s27159_s22 + $0x770] sm:$0xff]  ;;  %1179 = vst [vmem:[%s27167_s23 + $0x3a8] sm:$0xff] %v1178_v53 }
  0x54   : > { %1181 = vst [vmem:[%s27167_s23 + $0x3b0] sm:$0xff] %v1180_v54  ;;  %1183 = vst [vmem:[%s27167_s23 + $0x3b8] sm:$0xff] %v1182_v55  ;;  %v1184_v56 = vld [vmem:[%s27159_s22 + $0x780] sm:$0xff]  ;;  %v1186_v57 = vld [vmem:[%s27159_s22 + $0x790] sm:$0xff] }
  0x55   : > { %v1188_v58 = vld [vmem:[%s27159_s22 + $0x7a0] sm:$0xff]  ;;  %1185 = vst [vmem:[%s27167_s23 + $0x3c0] sm:$0xff] %v1184_v56  ;;  %1187 = vst [vmem:[%s27167_s23 + $0x3c8] sm:$0xff] %v1186_v57  ;;  %v1190_v59 = vld [vmem:[%s27159_s22 + $0x7b0] sm:$0xff] }
  0x56   : > { %1189 = vst [vmem:[%s27167_s23 + $0x3d0] sm:$0xff] %v1188_v58  ;;  %v1192_v60 = vld [vmem:[%s27159_s22 + $0x7c0] sm:$0xff]  ;;  %v1194_v61 = vld [vmem:[%s27159_s22 + $0x7d0] sm:$0xff]  ;;  %1191 = vst [vmem:[%s27167_s23 + $0x3d8] sm:$0xff] %v1190_v59 }
  0x57   : > { %1193 = vst [vmem:[%s27167_s23 + $0x3e0] sm:$0xff] %v1192_v60  ;;  %1195 = vst [vmem:[%s27167_s23 + $0x3e8] sm:$0xff] %v1194_v61  ;;  %v1196_v62 = vld [vmem:[%s27159_s22 + $0x7e0] sm:$0xff]  ;;  %v1198_v63 = vld [vmem:[%s27159_s22 + $0x7f0] sm:$0xff] }
  0x58   : > { %v1200_v0 = vld [vmem:[%s27159_s22 + $0x800] sm:$0xff]  ;;  %1197 = vst [vmem:[%s27167_s23 + $0x3f0] sm:$0xff] %v1196_v62  ;;  %1199 = vst [vmem:[%s27167_s23 + $0x3f8] sm:$0xff] %v1198_v63  ;;  %v1202_v1 = vld [vmem:[%s27159_s22 + $0x810] sm:$0xff] }
  0x59   : > { %1201 = vst [vmem:[%s27167_s23 + $0x400] sm:$0xff] %v1200_v0  ;;  %v1204_v2 = vld [vmem:[%s27159_s22 + $0x820] sm:$0xff]  ;;  %v1206_v3 = vld [vmem:[%s27159_s22 + $0x830] sm:$0xff]  ;;  %1203 = vst [vmem:[%s27167_s23 + $0x408] sm:$0xff] %v1202_v1 }
  0x5a   : > { %1205 = vst [vmem:[%s27167_s23 + $0x410] sm:$0xff] %v1204_v2  ;;  %1207 = vst [vmem:[%s27167_s23 + $0x418] sm:$0xff] %v1206_v3  ;;  %v1208_v4 = vld [vmem:[%s27159_s22 + $0x840] sm:$0xff]  ;;  %v1210_v5 = vld [vmem:[%s27159_s22 + $0x850] sm:$0xff] }
  0x5b   : > { %v1212_v6 = vld [vmem:[%s27159_s22 + $0x860] sm:$0xff]  ;;  %1209 = vst [vmem:[%s27167_s23 + $0x420] sm:$0xff] %v1208_v4  ;;  %1211 = vst [vmem:[%s27167_s23 + $0x428] sm:$0xff] %v1210_v5  ;;  %v1214_v7 = vld [vmem:[%s27159_s22 + $0x870] sm:$0xff] }
  0x5c   : > { %1213 = vst [vmem:[%s27167_s23 + $0x430] sm:$0xff] %v1212_v6  ;;  %v1216_v8 = vld [vmem:[%s27159_s22 + $0x880] sm:$0xff]  ;;  %v1218_v9 = vld [vmem:[%s27159_s22 + $0x890] sm:$0xff]  ;;  %1215 = vst [vmem:[%s27167_s23 + $0x438] sm:$0xff] %v1214_v7 }
  0x5d   : > { %1217 = vst [vmem:[%s27167_s23 + $0x440] sm:$0xff] %v1216_v8  ;;  %1219 = vst [vmem:[%s27167_s23 + $0x448] sm:$0xff] %v1218_v9  ;;  %v1220_v10 = vld [vmem:[%s27159_s22 + $0x8a0] sm:$0xff]  ;;  %v1222_v11 = vld [vmem:[%s27159_s22 + $0x8b0] sm:$0xff] }
  0x5e   : > { %v1224_v12 = vld [vmem:[%s27159_s22 + $0x8c0] sm:$0xff]  ;;  %1221 = vst [vmem:[%s27167_s23 + $0x450] sm:$0xff] %v1220_v10  ;;  %1223 = vst [vmem:[%s27167_s23 + $0x458] sm:$0xff] %v1222_v11  ;;  %v1226_v13 = vld [vmem:[%s27159_s22 + $0x8d0] sm:$0xff] }
  0x5f   : > { %1225 = vst [vmem:[%s27167_s23 + $0x460] sm:$0xff] %v1224_v12  ;;  %v1228_v14 = vld [vmem:[%s27159_s22 + $0x8e0] sm:$0xff]  ;;  %v1230_v15 = vld [vmem:[%s27159_s22 + $0x8f0] sm:$0xff]  ;;  %1227 = vst [vmem:[%s27167_s23 + $0x468] sm:$0xff] %v1226_v13 }
  0x60   : > { %1229 = vst [vmem:[%s27167_s23 + $0x470] sm:$0xff] %v1228_v14  ;;  %1231 = vst [vmem:[%s27167_s23 + $0x478] sm:$0xff] %v1230_v15  ;;  %v1232_v16 = vld [vmem:[%s27159_s22 + $0x900] sm:$0xff]  ;;  %v1234_v17 = vld [vmem:[%s27159_s22 + $0x910] sm:$0xff] }
  0x61   : > { %v1236_v18 = vld [vmem:[%s27159_s22 + $0x920] sm:$0xff]  ;;  %1233 = vst [vmem:[%s27167_s23 + $0x480] sm:$0xff] %v1232_v16  ;;  %1235 = vst [vmem:[%s27167_s23 + $0x488] sm:$0xff] %v1234_v17  ;;  %v1238_v19 = vld [vmem:[%s27159_s22 + $0x930] sm:$0xff] }
  0x62   : > { %1237 = vst [vmem:[%s27167_s23 + $0x490] sm:$0xff] %v1236_v18  ;;  %v1240_v20 = vld [vmem:[%s27159_s22 + $0x940] sm:$0xff]  ;;  %v1242_v21 = vld [vmem:[%s27159_s22 + $0x950] sm:$0xff]  ;;  %1239 = vst [vmem:[%s27167_s23 + $0x498] sm:$0xff] %v1238_v19 }
  0x63   : > { %1241 = vst [vmem:[%s27167_s23 + $0x4a0] sm:$0xff] %v1240_v20  ;;  %1243 = vst [vmem:[%s27167_s23 + $0x4a8] sm:$0xff] %v1242_v21  ;;  %v1244_v22 = vld [vmem:[%s27159_s22 + $0x960] sm:$0xff]  ;;  %v1246_v23 = vld [vmem:[%s27159_s22 + $0x970] sm:$0xff] }
  0x64   : > { %v1248_v24 = vld [vmem:[%s27159_s22 + $0x980] sm:$0xff]  ;;  %1245 = vst [vmem:[%s27167_s23 + $0x4b0] sm:$0xff] %v1244_v22  ;;  %1247 = vst [vmem:[%s27167_s23 + $0x4b8] sm:$0xff] %v1246_v23  ;;  %v1250_v25 = vld [vmem:[%s27159_s22 + $0x990] sm:$0xff] }
  0x65   : > { %1249 = vst [vmem:[%s27167_s23 + $0x4c0] sm:$0xff] %v1248_v24  ;;  %v1252_v26 = vld [vmem:[%s27159_s22 + $0x9a0] sm:$0xff]  ;;  %v1254_v27 = vld [vmem:[%s27159_s22 + $0x9b0] sm:$0xff]  ;;  %1251 = vst [vmem:[%s27167_s23 + $0x4c8] sm:$0xff] %v1250_v25 }
  0x66   : > { %1253 = vst [vmem:[%s27167_s23 + $0x4d0] sm:$0xff] %v1252_v26  ;;  %1255 = vst [vmem:[%s27167_s23 + $0x4d8] sm:$0xff] %v1254_v27  ;;  %v1256_v28 = vld [vmem:[%s27159_s22 + $0x9c0] sm:$0xff]  ;;  %v1258_v29 = vld [vmem:[%s27159_s22 + $0x9d0] sm:$0xff] }
  0x67   : > { %v1260_v30 = vld [vmem:[%s27159_s22 + $0x9e0] sm:$0xff]  ;;  %1257 = vst [vmem:[%s27167_s23 + $0x4e0] sm:$0xff] %v1256_v28  ;;  %1259 = vst [vmem:[%s27167_s23 + $0x4e8] sm:$0xff] %v1258_v29  ;;  %v1262_v31 = vld [vmem:[%s27159_s22 + $0x9f0] sm:$0xff] }
  0x68   : > { %1261 = vst [vmem:[%s27167_s23 + $0x4f0] sm:$0xff] %v1260_v30  ;;  %v1264_v32 = vld [vmem:[%s27159_s22 + $0xa00] sm:$0xff]  ;;  %v1266_v33 = vld [vmem:[%s27159_s22 + $0xa10] sm:$0xff]  ;;  %1263 = vst [vmem:[%s27167_s23 + $0x4f8] sm:$0xff] %v1262_v31 }
  0x69   : > { %1265 = vst [vmem:[%s27167_s23 + $0x500] sm:$0xff] %v1264_v32  ;;  %1267 = vst [vmem:[%s27167_s23 + $0x508] sm:$0xff] %v1266_v33  ;;  %v1268_v34 = vld [vmem:[%s27159_s22 + $0xa20] sm:$0xff]  ;;  %v1270_v35 = vld [vmem:[%s27159_s22 + $0xa30] sm:$0xff] }
  0x6a   : > { %v1272_v36 = vld [vmem:[%s27159_s22 + $0xa40] sm:$0xff]  ;;  %1269 = vst [vmem:[%s27167_s23 + $0x510] sm:$0xff] %v1268_v34  ;;  %1271 = vst [vmem:[%s27167_s23 + $0x518] sm:$0xff] %v1270_v35  ;;  %v1274_v37 = vld [vmem:[%s27159_s22 + $0xa50] sm:$0xff] }
  0x6b   : > { %1273 = vst [vmem:[%s27167_s23 + $0x520] sm:$0xff] %v1272_v36  ;;  %v1276_v38 = vld [vmem:[%s27159_s22 + $0xa60] sm:$0xff]  ;;  %v1278_v39 = vld [vmem:[%s27159_s22 + $0xa70] sm:$0xff]  ;;  %1275 = vst [vmem:[%s27167_s23 + $0x528] sm:$0xff] %v1274_v37 }
  0x6c   : > { %1277 = vst [vmem:[%s27167_s23 + $0x530] sm:$0xff] %v1276_v38  ;;  %1279 = vst [vmem:[%s27167_s23 + $0x538] sm:$0xff] %v1278_v39  ;;  %v1280_v40 = vld [vmem:[%s27159_s22 + $0xa80] sm:$0xff]  ;;  %v1282_v41 = vld [vmem:[%s27159_s22 + $0xa90] sm:$0xff] }
  0x6d   : > { %v1284_v42 = vld [vmem:[%s27159_s22 + $0xaa0] sm:$0xff]  ;;  %1281 = vst [vmem:[%s27167_s23 + $0x540] sm:$0xff] %v1280_v40  ;;  %1283 = vst [vmem:[%s27167_s23 + $0x548] sm:$0xff] %v1282_v41  ;;  %v1286_v43 = vld [vmem:[%s27159_s22 + $0xab0] sm:$0xff] }
  0x6e   : > { %1285 = vst [vmem:[%s27167_s23 + $0x550] sm:$0xff] %v1284_v42  ;;  %v1288_v44 = vld [vmem:[%s27159_s22 + $0xac0] sm:$0xff]  ;;  %v1290_v45 = vld [vmem:[%s27159_s22 + $0xad0] sm:$0xff]  ;;  %1287 = vst [vmem:[%s27167_s23 + $0x558] sm:$0xff] %v1286_v43 }
  0x6f   : > { %1289 = vst [vmem:[%s27167_s23 + $0x560] sm:$0xff] %v1288_v44  ;;  %1291 = vst [vmem:[%s27167_s23 + $0x568] sm:$0xff] %v1290_v45  ;;  %v1292_v46 = vld [vmem:[%s27159_s22 + $0xae0] sm:$0xff]  ;;  %v1294_v47 = vld [vmem:[%s27159_s22 + $0xaf0] sm:$0xff] }
  0x70   : > { %v1296_v48 = vld [vmem:[%s27159_s22 + $0xb00] sm:$0xff]  ;;  %1293 = vst [vmem:[%s27167_s23 + $0x570] sm:$0xff] %v1292_v46  ;;  %1295 = vst [vmem:[%s27167_s23 + $0x578] sm:$0xff] %v1294_v47  ;;  %v1298_v49 = vld [vmem:[%s27159_s22 + $0xb10] sm:$0xff] }
  0x71   : > { %1297 = vst [vmem:[%s27167_s23 + $0x580] sm:$0xff] %v1296_v48  ;;  %v1300_v50 = vld [vmem:[%s27159_s22 + $0xb20] sm:$0xff]  ;;  %v1302_v51 = vld [vmem:[%s27159_s22 + $0xb30] sm:$0xff]  ;;  %1299 = vst [vmem:[%s27167_s23 + $0x588] sm:$0xff] %v1298_v49 }
  0x72   : > { %1301 = vst [vmem:[%s27167_s23 + $0x590] sm:$0xff] %v1300_v50  ;;  %1303 = vst [vmem:[%s27167_s23 + $0x598] sm:$0xff] %v1302_v51  ;;  %v1304_v52 = vld [vmem:[%s27159_s22 + $0xb40] sm:$0xff]  ;;  %v1306_v53 = vld [vmem:[%s27159_s22 + $0xb50] sm:$0xff] }
  0x73   : > { %v1308_v54 = vld [vmem:[%s27159_s22 + $0xb60] sm:$0xff]  ;;  %1305 = vst [vmem:[%s27167_s23 + $0x5a0] sm:$0xff] %v1304_v52  ;;  %1307 = vst [vmem:[%s27167_s23 + $0x5a8] sm:$0xff] %v1306_v53  ;;  %v1310_v55 = vld [vmem:[%s27159_s22 + $0xb70] sm:$0xff] }
  0x74   : > { %1309 = vst [vmem:[%s27167_s23 + $0x5b0] sm:$0xff] %v1308_v54  ;;  %v1312_v56 = vld [vmem:[%s27159_s22 + $0xb80] sm:$0xff]  ;;  %v1314_v57 = vld [vmem:[%s27159_s22 + $0xb90] sm:$0xff]  ;;  %1311 = vst [vmem:[%s27167_s23 + $0x5b8] sm:$0xff] %v1310_v55 }
  0x75   : > { %1313 = vst [vmem:[%s27167_s23 + $0x5c0] sm:$0xff] %v1312_v56  ;;  %1315 = vst [vmem:[%s27167_s23 + $0x5c8] sm:$0xff] %v1314_v57  ;;  %v1316_v58 = vld [vmem:[%s27159_s22 + $0xba0] sm:$0xff]  ;;  %v1318_v59 = vld [vmem:[%s27159_s22 + $0xbb0] sm:$0xff] }
  0x76   : > { %v1320_v60 = vld [vmem:[%s27159_s22 + $0xbc0] sm:$0xff]  ;;  %1317 = vst [vmem:[%s27167_s23 + $0x5d0] sm:$0xff] %v1316_v58  ;;  %1319 = vst [vmem:[%s27167_s23 + $0x5d8] sm:$0xff] %v1318_v59  ;;  %v1322_v61 = vld [vmem:[%s27159_s22 + $0xbd0] sm:$0xff] }
  0x77   : > { %1321 = vst [vmem:[%s27167_s23 + $0x5e0] sm:$0xff] %v1320_v60  ;;  %v1324_v62 = vld [vmem:[%s27159_s22 + $0xbe0] sm:$0xff]  ;;  %v1326_v63 = vld [vmem:[%s27159_s22 + $0xbf0] sm:$0xff]  ;;  %1323 = vst [vmem:[%s27167_s23 + $0x5e8] sm:$0xff] %v1322_v61 }
  0x78   : > { %1325 = vst [vmem:[%s27167_s23 + $0x5f0] sm:$0xff] %v1324_v62  ;;  %1327 = vst [vmem:[%s27167_s23 + $0x5f8] sm:$0xff] %v1326_v63  ;;  %v1328_v0 = vld [vmem:[%s27159_s22 + $0xc00] sm:$0xff]  ;;  %v1330_v1 = vld [vmem:[%s27159_s22 + $0xc10] sm:$0xff] }
  0x79   : > { %v1332_v2 = vld [vmem:[%s27159_s22 + $0xc20] sm:$0xff]  ;;  %1329 = vst [vmem:[%s27167_s23 + $0x600] sm:$0xff] %v1328_v0  ;;  %1331 = vst [vmem:[%s27167_s23 + $0x608] sm:$0xff] %v1330_v1  ;;  %v1334_v3 = vld [vmem:[%s27159_s22 + $0xc30] sm:$0xff] }
  0x7a   : > { %1333 = vst [vmem:[%s27167_s23 + $0x610] sm:$0xff] %v1332_v2  ;;  %v1336_v4 = vld [vmem:[%s27159_s22 + $0xc40] sm:$0xff]  ;;  %v1338_v5 = vld [vmem:[%s27159_s22 + $0xc50] sm:$0xff]  ;;  %1335 = vst [vmem:[%s27167_s23 + $0x618] sm:$0xff] %v1334_v3 }
  0x7b   : > { %1337 = vst [vmem:[%s27167_s23 + $0x620] sm:$0xff] %v1336_v4  ;;  %1339 = vst [vmem:[%s27167_s23 + $0x628] sm:$0xff] %v1338_v5  ;;  %v1340_v6 = vld [vmem:[%s27159_s22 + $0xc60] sm:$0xff]  ;;  %v1342_v7 = vld [vmem:[%s27159_s22 + $0xc70] sm:$0xff] }
  0x7c   : > { %v1344_v8 = vld [vmem:[%s27159_s22 + $0xc80] sm:$0xff]  ;;  %1341 = vst [vmem:[%s27167_s23 + $0x630] sm:$0xff] %v1340_v6  ;;  %1343 = vst [vmem:[%s27167_s23 + $0x638] sm:$0xff] %v1342_v7  ;;  %v1346_v9 = vld [vmem:[%s27159_s22 + $0xc90] sm:$0xff] }
  0x7d   : > { %1345 = vst [vmem:[%s27167_s23 + $0x640] sm:$0xff] %v1344_v8  ;;  %v1348_v10 = vld [vmem:[%s27159_s22 + $0xca0] sm:$0xff]  ;;  %v1350_v11 = vld [vmem:[%s27159_s22 + $0xcb0] sm:$0xff]  ;;  %1347 = vst [vmem:[%s27167_s23 + $0x648] sm:$0xff] %v1346_v9 }
  0x7e   : > { %1349 = vst [vmem:[%s27167_s23 + $0x650] sm:$0xff] %v1348_v10  ;;  %1351 = vst [vmem:[%s27167_s23 + $0x658] sm:$0xff] %v1350_v11  ;;  %v1352_v12 = vld [vmem:[%s27159_s22 + $0xcc0] sm:$0xff]  ;;  %v1354_v13 = vld [vmem:[%s27159_s22 + $0xcd0] sm:$0xff] }
  0x7f   : > { %v1356_v14 = vld [vmem:[%s27159_s22 + $0xce0] sm:$0xff]  ;;  %1353 = vst [vmem:[%s27167_s23 + $0x660] sm:$0xff] %v1352_v12  ;;  %1355 = vst [vmem:[%s27167_s23 + $0x668] sm:$0xff] %v1354_v13  ;;  %v1358_v15 = vld [vmem:[%s27159_s22 + $0xcf0] sm:$0xff] }
  0x80   : > { %1357 = vst [vmem:[%s27167_s23 + $0x670] sm:$0xff] %v1356_v14  ;;  %v1360_v16 = vld [vmem:[%s27159_s22 + $0xd00] sm:$0xff]  ;;  %v1362_v17 = vld [vmem:[%s27159_s22 + $0xd10] sm:$0xff]  ;;  %1359 = vst [vmem:[%s27167_s23 + $0x678] sm:$0xff] %v1358_v15 }
  0x81   : > { %1361 = vst [vmem:[%s27167_s23 + $0x680] sm:$0xff] %v1360_v16  ;;  %1363 = vst [vmem:[%s27167_s23 + $0x688] sm:$0xff] %v1362_v17  ;;  %v1364_v18 = vld [vmem:[%s27159_s22 + $0xd20] sm:$0xff]  ;;  %v1366_v19 = vld [vmem:[%s27159_s22 + $0xd30] sm:$0xff] }
  0x82   : > { %v1368_v20 = vld [vmem:[%s27159_s22 + $0xd40] sm:$0xff]  ;;  %1365 = vst [vmem:[%s27167_s23 + $0x690] sm:$0xff] %v1364_v18  ;;  %1367 = vst [vmem:[%s27167_s23 + $0x698] sm:$0xff] %v1366_v19  ;;  %v1370_v21 = vld [vmem:[%s27159_s22 + $0xd50] sm:$0xff] }
  0x83   : > { %1369 = vst [vmem:[%s27167_s23 + $0x6a0] sm:$0xff] %v1368_v20  ;;  %v1372_v22 = vld [vmem:[%s27159_s22 + $0xd60] sm:$0xff]  ;;  %v1374_v23 = vld [vmem:[%s27159_s22 + $0xd70] sm:$0xff]  ;;  %1371 = vst [vmem:[%s27167_s23 + $0x6a8] sm:$0xff] %v1370_v21 }
  0x84   : > { %1373 = vst [vmem:[%s27167_s23 + $0x6b0] sm:$0xff] %v1372_v22  ;;  %1375 = vst [vmem:[%s27167_s23 + $0x6b8] sm:$0xff] %v1374_v23  ;;  %v1376_v24 = vld [vmem:[%s27159_s22 + $0xd80] sm:$0xff]  ;;  %v1378_v25 = vld [vmem:[%s27159_s22 + $0xd90] sm:$0xff] }
  0x85   : > { %v1380_v26 = vld [vmem:[%s27159_s22 + $0xda0] sm:$0xff]  ;;  %1377 = vst [vmem:[%s27167_s23 + $0x6c0] sm:$0xff] %v1376_v24  ;;  %1379 = vst [vmem:[%s27167_s23 + $0x6c8] sm:$0xff] %v1378_v25  ;;  %v1382_v27 = vld [vmem:[%s27159_s22 + $0xdb0] sm:$0xff] }
  0x86   : > { %1381 = vst [vmem:[%s27167_s23 + $0x6d0] sm:$0xff] %v1380_v26  ;;  %v1384_v28 = vld [vmem:[%s27159_s22 + $0xdc0] sm:$0xff]  ;;  %v1386_v29 = vld [vmem:[%s27159_s22 + $0xdd0] sm:$0xff]  ;;  %1383 = vst [vmem:[%s27167_s23 + $0x6d8] sm:$0xff] %v1382_v27 }
  0x87   : > { %1385 = vst [vmem:[%s27167_s23 + $0x6e0] sm:$0xff] %v1384_v28  ;;  %1387 = vst [vmem:[%s27167_s23 + $0x6e8] sm:$0xff] %v1386_v29  ;;  %v1388_v30 = vld [vmem:[%s27159_s22 + $0xde0] sm:$0xff]  ;;  %v1390_v31 = vld [vmem:[%s27159_s22 + $0xdf0] sm:$0xff] }
  0x88   : > { %v1392_v32 = vld [vmem:[%s27159_s22 + $0xe00] sm:$0xff]  ;;  %1389 = vst [vmem:[%s27167_s23 + $0x6f0] sm:$0xff] %v1388_v30  ;;  %1391 = vst [vmem:[%s27167_s23 + $0x6f8] sm:$0xff] %v1390_v31  ;;  %v1394_v33 = vld [vmem:[%s27159_s22 + $0xe10] sm:$0xff] }
  0x89   : > { %1393 = vst [vmem:[%s27167_s23 + $0x700] sm:$0xff] %v1392_v32  ;;  %v1396_v34 = vld [vmem:[%s27159_s22 + $0xe20] sm:$0xff]  ;;  %v1398_v35 = vld [vmem:[%s27159_s22 + $0xe30] sm:$0xff]  ;;  %1395 = vst [vmem:[%s27167_s23 + $0x708] sm:$0xff] %v1394_v33 }
  0x8a   : > { %1397 = vst [vmem:[%s27167_s23 + $0x710] sm:$0xff] %v1396_v34  ;;  %1399 = vst [vmem:[%s27167_s23 + $0x718] sm:$0xff] %v1398_v35  ;;  %v1400_v36 = vld [vmem:[%s27159_s22 + $0xe40] sm:$0xff]  ;;  %v1402_v37 = vld [vmem:[%s27159_s22 + $0xe50] sm:$0xff] }
  0x8b   : > { %v1404_v38 = vld [vmem:[%s27159_s22 + $0xe60] sm:$0xff]  ;;  %1401 = vst [vmem:[%s27167_s23 + $0x720] sm:$0xff] %v1400_v36  ;;  %1403 = vst [vmem:[%s27167_s23 + $0x728] sm:$0xff] %v1402_v37  ;;  %v1406_v39 = vld [vmem:[%s27159_s22 + $0xe70] sm:$0xff] }
  0x8c   : > { %1405 = vst [vmem:[%s27167_s23 + $0x730] sm:$0xff] %v1404_v38  ;;  %v1408_v40 = vld [vmem:[%s27159_s22 + $0xe80] sm:$0xff]  ;;  %v1410_v41 = vld [vmem:[%s27159_s22 + $0xe90] sm:$0xff]  ;;  %1407 = vst [vmem:[%s27167_s23 + $0x738] sm:$0xff] %v1406_v39 }
  0x8d   : > { %1409 = vst [vmem:[%s27167_s23 + $0x740] sm:$0xff] %v1408_v40  ;;  %1411 = vst [vmem:[%s27167_s23 + $0x748] sm:$0xff] %v1410_v41  ;;  %v1412_v42 = vld [vmem:[%s27159_s22 + $0xea0] sm:$0xff]  ;;  %v1414_v43 = vld [vmem:[%s27159_s22 + $0xeb0] sm:$0xff] }
  0x8e   : > { %v1416_v44 = vld [vmem:[%s27159_s22 + $0xec0] sm:$0xff]  ;;  %1413 = vst [vmem:[%s27167_s23 + $0x750] sm:$0xff] %v1412_v42  ;;  %1415 = vst [vmem:[%s27167_s23 + $0x758] sm:$0xff] %v1414_v43  ;;  %v1418_v45 = vld [vmem:[%s27159_s22 + $0xed0] sm:$0xff] }
  0x8f   : > { %1417 = vst [vmem:[%s27167_s23 + $0x760] sm:$0xff] %v1416_v44  ;;  %v1420_v46 = vld [vmem:[%s27159_s22 + $0xee0] sm:$0xff]  ;;  %v1422_v47 = vld [vmem:[%s27159_s22 + $0xef0] sm:$0xff]  ;;  %1419 = vst [vmem:[%s27167_s23 + $0x768] sm:$0xff] %v1418_v45 }
  0x90   : > { %1421 = vst [vmem:[%s27167_s23 + $0x770] sm:$0xff] %v1420_v46  ;;  %1423 = vst [vmem:[%s27167_s23 + $0x778] sm:$0xff] %v1422_v47  ;;  %v1424_v48 = vld [vmem:[%s27159_s22 + $0xf00] sm:$0xff]  ;;  %v1426_v49 = vld [vmem:[%s27159_s22 + $0xf10] sm:$0xff] }
  0x91   : > { %v1428_v50 = vld [vmem:[%s27159_s22 + $0xf20] sm:$0xff]  ;;  %1425 = vst [vmem:[%s27167_s23 + $0x780] sm:$0xff] %v1424_v48  ;;  %1427 = vst [vmem:[%s27167_s23 + $0x788] sm:$0xff] %v1426_v49  ;;  %v1430_v51 = vld [vmem:[%s27159_s22 + $0xf30] sm:$0xff] }
  0x92   : > { %1429 = vst [vmem:[%s27167_s23 + $0x790] sm:$0xff] %v1428_v50  ;;  %v1432_v52 = vld [vmem:[%s27159_s22 + $0xf40] sm:$0xff]  ;;  %v1434_v53 = vld [vmem:[%s27159_s22 + $0xf50] sm:$0xff]  ;;  %1431 = vst [vmem:[%s27167_s23 + $0x798] sm:$0xff] %v1430_v51 }
  0x93   : > { %1433 = vst [vmem:[%s27167_s23 + $0x7a0] sm:$0xff] %v1432_v52  ;;  %1435 = vst [vmem:[%s27167_s23 + $0x7a8] sm:$0xff] %v1434_v53  ;;  %v1436_v54 = vld [vmem:[%s27159_s22 + $0xf60] sm:$0xff]  ;;  %v1438_v55 = vld [vmem:[%s27159_s22 + $0xf70] sm:$0xff] }
  0x94   : > { %v1440_v56 = vld [vmem:[%s27159_s22 + $0xf80] sm:$0xff]  ;;  %1437 = vst [vmem:[%s27167_s23 + $0x7b0] sm:$0xff] %v1436_v54  ;;  %1439 = vst [vmem:[%s27167_s23 + $0x7b8] sm:$0xff] %v1438_v55  ;;  %v1442_v57 = vld [vmem:[%s27159_s22 + $0xf90] sm:$0xff] }
  0x95   : > { %1441 = vst [vmem:[%s27167_s23 + $0x7c0] sm:$0xff] %v1440_v56  ;;  %v1444_v58 = vld [vmem:[%s27159_s22 + $0xfa0] sm:$0xff]  ;;  %v1446_v59 = vld [vmem:[%s27159_s22 + $0xfb0] sm:$0xff]  ;;  %1443 = vst [vmem:[%s27167_s23 + $0x7c8] sm:$0xff] %v1442_v57 }
  0x96   : > { %1445 = vst [vmem:[%s27167_s23 + $0x7d0] sm:$0xff] %v1444_v58  ;;  %1447 = vst [vmem:[%s27167_s23 + $0x7d8] sm:$0xff] %v1446_v59  ;;  %v1448_v60 = vld [vmem:[%s27159_s22 + $0xfc0] sm:$0xff]  ;;  %v1450_v61 = vld [vmem:[%s27159_s22 + $0xfd0] sm:$0xff] }
  0x97   : > { %v1452_v62 = vld [vmem:[%s27159_s22 + $0xfe0] sm:$0xff]  ;;  %1449 = vst [vmem:[%s27167_s23 + $0x7e0] sm:$0xff] %v1448_v60  ;;  %1451 = vst [vmem:[%s27167_s23 + $0x7e8] sm:$0xff] %v1450_v61  ;;  %v1454_v63 = vld [vmem:[%s27159_s22 + $0xff0] sm:$0xff] }
  0x98   : > { %1453 = vst [vmem:[%s27167_s23 + $0x7f0] sm:$0xff] %v1452_v62  ;;  %v1456_v0 = vld [vmem:[%s27159_s22 + $0x1000] sm:$0xff]  ;;  %v1458_v1 = vld [vmem:[%s27159_s22 + $0x1010] sm:$0xff]  ;;  %1455 = vst [vmem:[%s27167_s23 + $0x7f8] sm:$0xff] %v1454_v63 }
  0x99   : > { %1457 = vst [vmem:[%s27167_s23 + $0x800] sm:$0xff] %v1456_v0  ;;  %1459 = vst [vmem:[%s27167_s23 + $0x808] sm:$0xff] %v1458_v1  ;;  %v1460_v2 = vld [vmem:[%s27159_s22 + $0x1020] sm:$0xff]  ;;  %v1462_v3 = vld [vmem:[%s27159_s22 + $0x1030] sm:$0xff] }
  0x9a   : > { %v1464_v4 = vld [vmem:[%s27159_s22 + $0x1040] sm:$0xff]  ;;  %1461 = vst [vmem:[%s27167_s23 + $0x810] sm:$0xff] %v1460_v2  ;;  %1463 = vst [vmem:[%s27167_s23 + $0x818] sm:$0xff] %v1462_v3  ;;  %v1466_v5 = vld [vmem:[%s27159_s22 + $0x1050] sm:$0xff] }
  0x9b   : > { %1465 = vst [vmem:[%s27167_s23 + $0x820] sm:$0xff] %v1464_v4  ;;  %v1468_v6 = vld [vmem:[%s27159_s22 + $0x1060] sm:$0xff]  ;;  %v1470_v7 = vld [vmem:[%s27159_s22 + $0x1070] sm:$0xff]  ;;  %1467 = vst [vmem:[%s27167_s23 + $0x828] sm:$0xff] %v1466_v5 }
  0x9c   : > { %1469 = vst [vmem:[%s27167_s23 + $0x830] sm:$0xff] %v1468_v6  ;;  %1471 = vst [vmem:[%s27167_s23 + $0x838] sm:$0xff] %v1470_v7  ;;  %v1472_v8 = vld [vmem:[%s27159_s22 + $0x1080] sm:$0xff]  ;;  %v1474_v9 = vld [vmem:[%s27159_s22 + $0x1090] sm:$0xff] }
  0x9d   : > { %v1476_v10 = vld [vmem:[%s27159_s22 + $0x10a0] sm:$0xff]  ;;  %1473 = vst [vmem:[%s27167_s23 + $0x840] sm:$0xff] %v1472_v8  ;;  %1475 = vst [vmem:[%s27167_s23 + $0x848] sm:$0xff] %v1474_v9  ;;  %v1478_v11 = vld [vmem:[%s27159_s22 + $0x10b0] sm:$0xff] }
  0x9e   : > { %1477 = vst [vmem:[%s27167_s23 + $0x850] sm:$0xff] %v1476_v10  ;;  %v1480_v12 = vld [vmem:[%s27159_s22 + $0x10c0] sm:$0xff]  ;;  %v1482_v13 = vld [vmem:[%s27159_s22 + $0x10d0] sm:$0xff]  ;;  %1479 = vst [vmem:[%s27167_s23 + $0x858] sm:$0xff] %v1478_v11 }
  0x9f   : > { %1481 = vst [vmem:[%s27167_s23 + $0x860] sm:$0xff] %v1480_v12  ;;  %1483 = vst [vmem:[%s27167_s23 + $0x868] sm:$0xff] %v1482_v13  ;;  %v1484_v14 = vld [vmem:[%s27159_s22 + $0x10e0] sm:$0xff]  ;;  %v1486_v15 = vld [vmem:[%s27159_s22 + $0x10f0] sm:$0xff] }
  0xa0   : > { %v1488_v16 = vld [vmem:[%s27159_s22 + $0x1100] sm:$0xff]  ;;  %1485 = vst [vmem:[%s27167_s23 + $0x870] sm:$0xff] %v1484_v14  ;;  %1487 = vst [vmem:[%s27167_s23 + $0x878] sm:$0xff] %v1486_v15  ;;  %v1490_v17 = vld [vmem:[%s27159_s22 + $0x1110] sm:$0xff] }
  0xa1   : > { %1489 = vst [vmem:[%s27167_s23 + $0x880] sm:$0xff] %v1488_v16  ;;  %v1492_v18 = vld [vmem:[%s27159_s22 + $0x1120] sm:$0xff]  ;;  %v1494_v19 = vld [vmem:[%s27159_s22 + $0x1130] sm:$0xff]  ;;  %1491 = vst [vmem:[%s27167_s23 + $0x888] sm:$0xff] %v1490_v17 }
  0xa2   : > { %1493 = vst [vmem:[%s27167_s23 + $0x890] sm:$0xff] %v1492_v18  ;;  %1495 = vst [vmem:[%s27167_s23 + $0x898] sm:$0xff] %v1494_v19  ;;  %v1496_v20 = vld [vmem:[%s27159_s22 + $0x1140] sm:$0xff]  ;;  %v1498_v21 = vld [vmem:[%s27159_s22 + $0x1150] sm:$0xff] }
  0xa3   : > { %v1500_v22 = vld [vmem:[%s27159_s22 + $0x1160] sm:$0xff]  ;;  %1497 = vst [vmem:[%s27167_s23 + $0x8a0] sm:$0xff] %v1496_v20  ;;  %1499 = vst [vmem:[%s27167_s23 + $0x8a8] sm:$0xff] %v1498_v21  ;;  %v1502_v23 = vld [vmem:[%s27159_s22 + $0x1170] sm:$0xff] }
  0xa4   : > { %1501 = vst [vmem:[%s27167_s23 + $0x8b0] sm:$0xff] %v1500_v22  ;;  %v1504_v24 = vld [vmem:[%s27159_s22 + $0x1180] sm:$0xff]  ;;  %v1506_v25 = vld [vmem:[%s27159_s22 + $0x1190] sm:$0xff]  ;;  %1503 = vst [vmem:[%s27167_s23 + $0x8b8] sm:$0xff] %v1502_v23 }
  0xa5   : > { %1505 = vst [vmem:[%s27167_s23 + $0x8c0] sm:$0xff] %v1504_v24  ;;  %1507 = vst [vmem:[%s27167_s23 + $0x8c8] sm:$0xff] %v1506_v25  ;;  %v1508_v26 = vld [vmem:[%s27159_s22 + $0x11a0] sm:$0xff]  ;;  %v1510_v27 = vld [vmem:[%s27159_s22 + $0x11b0] sm:$0xff] }
  0xa6   : > { %v1512_v28 = vld [vmem:[%s27159_s22 + $0x11c0] sm:$0xff]  ;;  %1509 = vst [vmem:[%s27167_s23 + $0x8d0] sm:$0xff] %v1508_v26  ;;  %1511 = vst [vmem:[%s27167_s23 + $0x8d8] sm:$0xff] %v1510_v27  ;;  %v1514_v29 = vld [vmem:[%s27159_s22 + $0x11d0] sm:$0xff] }
  0xa7   : > { %1513 = vst [vmem:[%s27167_s23 + $0x8e0] sm:$0xff] %v1512_v28  ;;  %v1516_v30 = vld [vmem:[%s27159_s22 + $0x11e0] sm:$0xff]  ;;  %v1518_v31 = vld [vmem:[%s27159_s22 + $0x11f0] sm:$0xff]  ;;  %1515 = vst [vmem:[%s27167_s23 + $0x8e8] sm:$0xff] %v1514_v29 }
  0xa8   : > { %1517 = vst [vmem:[%s27167_s23 + $0x8f0] sm:$0xff] %v1516_v30  ;;  %1519 = vst [vmem:[%s27167_s23 + $0x8f8] sm:$0xff] %v1518_v31  ;;  %v1520_v32 = vld [vmem:[%s27159_s22 + $0x1200] sm:$0xff]  ;;  %v1522_v33 = vld [vmem:[%s27159_s22 + $0x1210] sm:$0xff] }
  0xa9   : > { %v1524_v34 = vld [vmem:[%s27159_s22 + $0x1220] sm:$0xff]  ;;  %1521 = vst [vmem:[%s27167_s23 + $0x900] sm:$0xff] %v1520_v32  ;;  %1523 = vst [vmem:[%s27167_s23 + $0x908] sm:$0xff] %v1522_v33  ;;  %v1526_v35 = vld [vmem:[%s27159_s22 + $0x1230] sm:$0xff] }
  0xaa   : > { %1525 = vst [vmem:[%s27167_s23 + $0x910] sm:$0xff] %v1524_v34  ;;  %v1528_v36 = vld [vmem:[%s27159_s22 + $0x1240] sm:$0xff]  ;;  %v1530_v37 = vld [vmem:[%s27159_s22 + $0x1250] sm:$0xff]  ;;  %1527 = vst [vmem:[%s27167_s23 + $0x918] sm:$0xff] %v1526_v35 }
  0xab   : > { %1529 = vst [vmem:[%s27167_s23 + $0x920] sm:$0xff] %v1528_v36  ;;  %1531 = vst [vmem:[%s27167_s23 + $0x928] sm:$0xff] %v1530_v37  ;;  %v1532_v38 = vld [vmem:[%s27159_s22 + $0x1260] sm:$0xff]  ;;  %v1534_v39 = vld [vmem:[%s27159_s22 + $0x1270] sm:$0xff] }
  0xac   : > { %v1536_v40 = vld [vmem:[%s27159_s22 + $0x1280] sm:$0xff]  ;;  %1533 = vst [vmem:[%s27167_s23 + $0x930] sm:$0xff] %v1532_v38  ;;  %1535 = vst [vmem:[%s27167_s23 + $0x938] sm:$0xff] %v1534_v39  ;;  %v1538_v41 = vld [vmem:[%s27159_s22 + $0x1290] sm:$0xff] }
  0xad   : > { %1537 = vst [vmem:[%s27167_s23 + $0x940] sm:$0xff] %v1536_v40  ;;  %v1540_v42 = vld [vmem:[%s27159_s22 + $0x12a0] sm:$0xff]  ;;  %v1542_v43 = vld [vmem:[%s27159_s22 + $0x12b0] sm:$0xff]  ;;  %1539 = vst [vmem:[%s27167_s23 + $0x948] sm:$0xff] %v1538_v41 }
  0xae   : > { %1541 = vst [vmem:[%s27167_s23 + $0x950] sm:$0xff] %v1540_v42  ;;  %1543 = vst [vmem:[%s27167_s23 + $0x958] sm:$0xff] %v1542_v43  ;;  %v1544_v44 = vld [vmem:[%s27159_s22 + $0x12c0] sm:$0xff]  ;;  %v1546_v45 = vld [vmem:[%s27159_s22 + $0x12d0] sm:$0xff] }
  0xaf   : > { %v1548_v46 = vld [vmem:[%s27159_s22 + $0x12e0] sm:$0xff]  ;;  %1545 = vst [vmem:[%s27167_s23 + $0x960] sm:$0xff] %v1544_v44  ;;  %1547 = vst [vmem:[%s27167_s23 + $0x968] sm:$0xff] %v1546_v45  ;;  %v1550_v47 = vld [vmem:[%s27159_s22 + $0x12f0] sm:$0xff] }
  0xb0   : > { %1549 = vst [vmem:[%s27167_s23 + $0x970] sm:$0xff] %v1548_v46  ;;  %v1552_v48 = vld [vmem:[%s27159_s22 + $0x1300] sm:$0xff]  ;;  %v1554_v49 = vld [vmem:[%s27159_s22 + $0x1310] sm:$0xff]  ;;  %1551 = vst [vmem:[%s27167_s23 + $0x978] sm:$0xff] %v1550_v47 }
  0xb1   : > { %1553 = vst [vmem:[%s27167_s23 + $0x980] sm:$0xff] %v1552_v48  ;;  %1555 = vst [vmem:[%s27167_s23 + $0x988] sm:$0xff] %v1554_v49  ;;  %v1556_v50 = vld [vmem:[%s27159_s22 + $0x1320] sm:$0xff]  ;;  %v1558_v51 = vld [vmem:[%s27159_s22 + $0x1330] sm:$0xff] }
  0xb2   : > { %v1560_v52 = vld [vmem:[%s27159_s22 + $0x1340] sm:$0xff]  ;;  %1557 = vst [vmem:[%s27167_s23 + $0x990] sm:$0xff] %v1556_v50  ;;  %1559 = vst [vmem:[%s27167_s23 + $0x998] sm:$0xff] %v1558_v51  ;;  %v1562_v53 = vld [vmem:[%s27159_s22 + $0x1350] sm:$0xff] }
  0xb3   : > { %1561 = vst [vmem:[%s27167_s23 + $0x9a0] sm:$0xff] %v1560_v52  ;;  %v1564_v54 = vld [vmem:[%s27159_s22 + $0x1360] sm:$0xff]  ;;  %v1566_v55 = vld [vmem:[%s27159_s22 + $0x1370] sm:$0xff]  ;;  %1563 = vst [vmem:[%s27167_s23 + $0x9a8] sm:$0xff] %v1562_v53 }
  0xb4   : > { %1565 = vst [vmem:[%s27167_s23 + $0x9b0] sm:$0xff] %v1564_v54  ;;  %1567 = vst [vmem:[%s27167_s23 + $0x9b8] sm:$0xff] %v1566_v55  ;;  %v1568_v56 = vld [vmem:[%s27159_s22 + $0x1380] sm:$0xff]  ;;  %v1570_v57 = vld [vmem:[%s27159_s22 + $0x1390] sm:$0xff] }
  0xb5   : > { %v1572_v58 = vld [vmem:[%s27159_s22 + $0x13a0] sm:$0xff]  ;;  %1569 = vst [vmem:[%s27167_s23 + $0x9c0] sm:$0xff] %v1568_v56  ;;  %1571 = vst [vmem:[%s27167_s23 + $0x9c8] sm:$0xff] %v1570_v57  ;;  %v1574_v59 = vld [vmem:[%s27159_s22 + $0x13b0] sm:$0xff] }
  0xb6   : > { %1573 = vst [vmem:[%s27167_s23 + $0x9d0] sm:$0xff] %v1572_v58  ;;  %v1576_v60 = vld [vmem:[%s27159_s22 + $0x13c0] sm:$0xff]  ;;  %v1578_v61 = vld [vmem:[%s27159_s22 + $0x13d0] sm:$0xff]  ;;  %1575 = vst [vmem:[%s27167_s23 + $0x9d8] sm:$0xff] %v1574_v59 }
  0xb7   : > { %1577 = vst [vmem:[%s27167_s23 + $0x9e0] sm:$0xff] %v1576_v60  ;;  %1579 = vst [vmem:[%s27167_s23 + $0x9e8] sm:$0xff] %v1578_v61  ;;  %v1580_v62 = vld [vmem:[%s27159_s22 + $0x13e0] sm:$0xff]  ;;  %v1582_v63 = vld [vmem:[%s27159_s22 + $0x13f0] sm:$0xff] }
  0xb8   : > { %v1584_v0 = vld [vmem:[%s27159_s22 + $0x1400] sm:$0xff]  ;;  %1581 = vst [vmem:[%s27167_s23 + $0x9f0] sm:$0xff] %v1580_v62  ;;  %1583 = vst [vmem:[%s27167_s23 + $0x9f8] sm:$0xff] %v1582_v63  ;;  %v1586_v1 = vld [vmem:[%s27159_s22 + $0x1410] sm:$0xff] }
  0xb9   : > { %1585 = vst [vmem:[%s27167_s23 + $0xa00] sm:$0xff] %v1584_v0  ;;  %v1588_v2 = vld [vmem:[%s27159_s22 + $0x1420] sm:$0xff]  ;;  %v1590_v3 = vld [vmem:[%s27159_s22 + $0x1430] sm:$0xff]  ;;  %1587 = vst [vmem:[%s27167_s23 + $0xa08] sm:$0xff] %v1586_v1 }
  0xba   : > { %1589 = vst [vmem:[%s27167_s23 + $0xa10] sm:$0xff] %v1588_v2  ;;  %1591 = vst [vmem:[%s27167_s23 + $0xa18] sm:$0xff] %v1590_v3 }
  0xbb PF: > { %p18854_p10 = scmp.ge.s32.totalorder %s27054_s30, 1  ;;  %p1596_p11 = scmp.lt.s32.totalorder %s27054_s30, 3 }
  0xbd   : > { %p1597_p12 = pnand %p18854_p10, %p1596_p11 }
  0xbf   : > { %1600 = sbr.rel (%p1597_p12) target bundleno = 4242 (0x1092), region = 82 }
  0xc6   : > { %v1967_v4 = vld [vmem:[%s34344_s1 + $0x2] sm:$0x3]  ;;  %vm2617_vm0 = vcmask 1040384   ;;  %vm2618_vm1 = vcmask 1041408   ;;  %s27817_s26 = sand.u32 1, %s27046_s28   ;;  %v27056_v5 = vmov 65535  }
  0xc7   : > { %v2619_v6 = vsel %vm2617_vm0, 4294967295, %v27056_v5  ;;  %v1969_v7 = vld [vmem:[%s34344_s1 + $0x6] sm:$0x3]  ;;  %s26698_s13 = smul.u32 2592, %s27817_s26  ;;  %v1970_v9 = vld [vmem:[%s34344_s1 + $0x8] sm:$0x3] }
  0xc8   : > { %v27823_v8 = vsel %vm2618_vm1, %v2619_v6, 0  ;;  %vm2232_vm2 = vcmask 23552   ;;  %vm15386_vm3 = vcmask 1046528   ;;  %vm15331_vm4 = vcmask 244736   ;;  %s18855_s20 = sshll.u32 %s27817_s26, 4  ;;  %s34259_s21 = sshll.u32 %s18849_s9, 8 }
  0xc9   : > { %34984 = vst [vmem:[#allocation9_spill] sm:$0xff] %v27823_v8  ;;  %v2622_v10 = vand.u32 %v27823_v8, %v1967_v4  ;;  %v27830_v11 = vand.u32 %v27823_v8, %v1969_v7  ;;  %v7886_v12 = vand.u32 %v27823_v8, %v1970_v9  ;;  %s27833_s19 = scalar_lea.vmem [#allocation2], %s26698_s13  ;;  %vm17758_vm5 = vcmask 1044480   ;;  %s1640_s22 = scalar_lea.vmem [#allocation5], %s18855_s20 }
  0xca   : > { %v1643_v13 = vld [vmem:[%s27833_s19 + $0x8] sm:$0xff]  ;;  %v1644_v14 = vld [vmem:[%s27833_s19 + $0x10] sm:$0xff]  ;;  %v1645_v15 = vld [vmem:[%s27833_s19 + $0x18] sm:$0xff]  ;;  %vm17754_vm6 = vcmask 736256   ;;  %s18753_s23 = sshll.u32 %s1640_s22, 4  ;;  %s34267_s25 = scalar_lea.hbm %s34351_s8, %s34259_s21  ;;  %s34269_s23 = int_to_ptr.vmem [resolvable:$true] %s18753_s23 }
  0xcb   : > { %34985 = vst [vmem:[#allocation10_spill] sm:$0xff] %v27830_v11  ;;  %21668 = vmatprep.subr.bf16.mxu1 %v2622_v10  ;;  %22442 = vmatprep.subr.bf16.mxu0 %v27830_v11  ;;  %v1646_v16 = vld [vmem:[%s27833_s19 + $0x20] sm:$0xff]  ;;  %v2104_v17 = vpack.c.bf16 %v1644_v14, %v1643_v13  ;;  %v1660_v18 = vld [vmem:[%s27833_s19 + $0x90] sm:$0xff]  ;;  %v27842_v19 = vpack.c.bf16 %v1645_v15, %v1644_v14  ;;  %v1661_v21 = vld [vmem:[%s27833_s19 + $0x98] sm:$0xff]  ;;  %s18725_s9 = scalar_lea.sflag [#allocation6], %s27817_s26  ;;  %s26960_s10 = scalar_lea.vmem %s34269_s23, 256 }
  0xcc   : > { %21669 = vmatpush3.bf16.msra.mxu1 %v2622_v10  ;;  %22443 = vmatpush3.bf16.msra.mxu0 %v27830_v11  ;;  %v2105_v20 = vpack.c.bf16 %v1646_v16, %v1645_v15  ;;  %v1662_v22 = vld [vmem:[%s27833_s19 + $0xa0] sm:$0xff]  ;;  %v27847_v23 = vld [vmem:[%s27833_s19 + $0xa8] sm:$0xff]  ;;  %v27850_v24 = vpack.c.bf16 %v1661_v21, %v1660_v18  ;;  %v1648_v27 = vld [vmem:[%s27833_s19 + $0x30] sm:$0xff]  ;;  %p26961_p13 = scmp.ne.s32.totalorder %s34269_s23, %s26960_s10  ;;  %s27058_s12 = smov [#allocation5]  }
  0xcd   : > { %34986 = vst [vmem:[#allocation11_spill] sm:$0xff] %v27842_v19  ;;  %21670 = vmatprep.mubr.msk.bf16.mxu1 %vm2232_vm2, %v2104_v17  ;;  %v27853_v25 = vpack.c.bf16 %v27847_v23, %v1662_v22  ;;  %22700 = vmatprep.subr.bf16.mxu0 %v7886_v12  ;;  %v1647_v26 = vld [vmem:[%s27833_s19 + $0x28] sm:$0xff]  ;;  %v1664_v28 = vld [vmem:[%s27833_s19 + $0xb0] sm:$0xff]  ;;  %v1665_v30 = vld [vmem:[%s27833_s19 + $0xb8] sm:$0xff]  ;;  %v27911_v63 = vpack.c.bf16 %v1662_v22, %v1661_v21  ;;  %s26964_s13 = sshll.u32 %s27058_s12, 4  ;;  %s26965_s13 = int_to_ptr.vmem [resolvable:$false] %s26964_s13 }
  0xce   : > { %34987 = vst [vmem:[#allocation12_spill] sm:$0xff] %v27850_v24  ;;  %v2106_v29 = vpack.c.bf16 %v1648_v27, %v1647_v26  ;;  %22444 = vmatprep.mubr.msk.bf16.mxu0 %vm2232_vm2, %v27850_v24  ;;  %v27862_v31 = vpack.c.bf16 %v1665_v30, %v1664_v28  ;;  %v1649_v32 = vld [vmem:[%s27833_s19 + $0x38] sm:$0xff]  ;;  %v1650_v33 = vld [vmem:[%s27833_s19 + $0x40] sm:$0xff]  ;;  %v1667_v35 = vld [vmem:[%s27833_s19 + $0xc8] sm:$0xff]  ;;  %v27929_v6 = vpack.c.bf16 %v1664_v28, %v27847_v23  ;;  %p26962_p0 = pnand %p26961_p13, %p27143_p6  ;;  %s26966_s17 = scalar_lea.vmem %s26965_s13, 512 }
  0xcf   : > { %34988 = vst [vmem:[#allocation13_spill] sm:$0xff] %v27853_v25  ;;  %21671 = vmatmul.mubr.msk.bf16.vlgmr.msra.gmra.mrb[0].mxu1 %vm2232_vm2, %v2105_v20  ;;  %22445 = vmatmul.mubr.msk.bf16.vlgmr.msra.gmra.mrb[0].mxu0 %vm2232_vm2, %v27853_v25  ;;  %v1666_v34 = vld [vmem:[%s27833_s19 + $0xc0] sm:$0xff]  ;;  %v1651_v36 = vld [vmem:[%s27833_s19 + $0x48] sm:$0xff]  ;;  %v1652_v37 = vld [vmem:[%s27833_s19 + $0x50] sm:$0xff]  ;;  %v2107_v40 = vpack.c.bf16 %v1650_v33, %v1649_v32  ;;  %p26967_p2 = scmp.lt.s32.totalorder %s34269_s23, %s26965_s13  ;;  %p26968_p3 = scmp.lt.s32.totalorder %s26966_s17, %s26960_s10 }
  0xd0   : > { %34989 = vst [vmem:[#allocation14_spill] sm:$0xff] %v27862_v31  ;;  %21674 = vmatprep.mubr.msk.bf16.mxu1 %vm2232_vm2, %v2106_v29  ;;  %22701 = vmatpush3.bf16.msra.mxu0 %v7886_v12  ;;  %v1668_v38 = vld [vmem:[%s27833_s19 + $0xd0] sm:$0xff]  ;;  %v1669_v39 = vld [vmem:[%s27833_s19 + $0xd8] sm:$0xff]  ;;  %v27877_v41 = vpack.c.bf16 %v1667_v35, %v1666_v34  ;;  %v2108_v42 = vpack.c.bf16 %v1652_v37, %v1651_v36  ;;  %v1654_v45 = vld [vmem:[%s27833_s19 + $0x60] sm:$0xff]  ;;  %p26963_p1 = pneg %p26962_p0 }
  0xd1   : > { %22448 = vmatprep.mubr.msk.bf16.mxu0 %vm2232_vm2, %v27862_v31  ;;  %v27879_v43 = vpack.c.bf16 %v1669_v39, %v1668_v38  ;;  %v1653_v44 = vld [vmem:[%s27833_s19 + $0x58] sm:$0xff]  ;;  %v1670_v46 = vld [vmem:[%s27833_s19 + $0xe0] sm:$0xff]  ;;  %v1671_v47 = vld [vmem:[%s27833_s19 + $0xe8] sm:$0xff]  ;;  %v27933_v9 = vpack.c.bf16 %v1666_v34, %v1665_v30  ;;  %v27951_v16 = vpack.c.bf16 %v1668_v38, %v1667_v35  ;;  %p26969_p4 = por %p26968_p3, %p26967_p2 }
  0xd2   : > { %34990 = vst [vmem:[#allocation15_spill] sm:$0xff] %v27877_v41  ;;  %v1655_v48 = vld [vmem:[%s27833_s19 + $0x68] sm:$0xff]  ;;  %v1656_v49 = vld [vmem:[%s27833_s19 + $0x70] sm:$0xff]  ;;  %v1673_v51 = vld [vmem:[%s27833_s19 + $0xf8] sm:$0xff]  ;;  %v2109_v52 = vpack.c.bf16 %v1654_v45, %v1653_v44  ;;  %v27895_v53 = vpack.c.bf16 %v1671_v47, %v1670_v46  ;;  %v27956_v18 = vpack.c.bf16 %v1670_v46, %v1669_v39 }
  0xd3   : > { %34991 = vst [vmem:[#allocation16_spill] sm:$0xff] %v27879_v43  ;;  %v1672_v50 = vld [vmem:[%s27833_s19 + $0xf0] sm:$0xff]  ;;  %v2110_v54 = vpack.c.bf16 %v1656_v49, %v1655_v48  ;;  %v1657_v56 = vld [vmem:[%s27833_s19 + $0x78] sm:$0xff]  ;;  %v1658_v57 = vld [vmem:[%s27833_s19 + $0x80] sm:$0xff]  ;;  %p26970_p5 = pnand %p26969_p4, %p26963_p1 }
  0xd4   : > { %34992 = vst [vmem:[#allocation17_spill] sm:$0xff] %v27895_v53  ;;  %v27897_v55 = vpack.c.bf16 %v1673_v51, %v1672_v50  ;;  %v1674_v58 = vld [vmem:[%s27833_s19 + $0x100] sm:$0xff]  ;;  %v1675_v59 = vld [vmem:[%s27833_s19 + $0x108] sm:$0xff]  ;;  %v2111_v62 = vpack.c.bf16 %v1658_v57, %v1657_v56  ;;  %v1680_v2 = vld [vmem:[%s27833_s19 + $0x130] sm:$0xff]  ;;  %v27984_v29 = vpack.c.bf16 %v1672_v50, %v1671_v47 }
  0xd5   : > { %v1678_v60 = vld [vmem:[%s27833_s19 + $0x120] sm:$0xff]  ;;  %v1679_v61 = vld [vmem:[%s27833_s19 + $0x128] sm:$0xff]  ;;  %v27913_v0 = vpack.c.bf16 %v1675_v59, %v1674_v58  ;;  %v1681_v3 = vld [vmem:[%s27833_s19 + $0x138] sm:$0xff]  ;;  %v27990_v32 = vpack.c.bf16 %v1674_v58, %v1673_v51 }
  0xd6   : > { %34993 = vst [vmem:[#allocation18_spill] sm:$0xff] %v27897_v55  ;;  %v27915_v1 = vpack.c.bf16 %v1679_v61, %v1678_v60  ;;  %v1682_v4 = vld [vmem:[%s27833_s19 + $0x140] sm:$0xff]  ;;  %v1683_v5 = vld [vmem:[%s27833_s19 + $0x148] sm:$0xff]  ;;  %v27931_v7 = vpack.c.bf16 %v1681_v3, %v1680_v2  ;;  %v1684_v12 = vld [vmem:[%s27833_s19 + $0x150] sm:$0xff] }
  0xd7   : > { %21675 = vmatmul.mubr.msk.bf16.gmra.mrb[4].mxu1 %vm2232_vm2, %v2107_v40  ;;  %22449 = vmatmul.mubr.msk.bf16.gmra.mrb[4].mxu0 %vm2232_vm2, %v27877_v41  ;;  %34994 = vst [vmem:[#allocation19_spill] sm:$0xff] %v27913_v0  ;;  %v27935_v10 = vpack.c.bf16 %v1683_v5, %v1682_v4  ;;  %v27941_v13 = vld [vmem:[%s27833_s19 + $0x158] sm:$0xff]  ;;  %v1686_v14 = vld [vmem:[%s27833_s19 + $0x160] sm:$0xff]  ;;  %v1687_v15 = vld [vmem:[%s27833_s19 + $0x168] sm:$0xff]  ;;  %v28043_v49 = vpack.c.bf16 %v1682_v4, %v1681_v3 }
  0xd8   : > { %21678 = vmatprep.mubr.msk.bf16.mxu1 %vm2232_vm2, %v2108_v42  ;;  %22452 = vmatprep.mubr.msk.bf16.mxu0 %vm2232_vm2, %v27879_v43  ;;  %34995 = vst [vmem:[#allocation20_spill] sm:$0xff] %v27915_v1  ;;  %34996 = vst [vmem:[#allocation21_spill] sm:$0xff] %v27931_v7  ;;  %v27954_v17 = vpack.c.bf16 %v27941_v13, %v1684_v12  ;;  %v27958_v20 = vpack.c.bf16 %v1687_v15, %v1686_v14  ;;  %v1688_v21 = vld [vmem:[%s27833_s19 + $0x170] sm:$0xff]  ;;  %v27964_v22 = vld [vmem:[%s27833_s19 + $0x178] sm:$0xff] }
  0xd9   : > { %34997 = vst [vmem:[#allocation22_spill] sm:$0xff] %v27935_v10  ;;  %v27971_v23 = vld [vmem:[%s27833_s19 + $0x180] sm:$0xff]  ;;  %v27974_v26 = vld [vmem:[%s27833_s19 + $0x188] sm:$0xff]  ;;  %v27988_v30 = vpack.c.bf16 %v27964_v22, %v1688_v21  ;;  %v1676_v34 = vld [vmem:[%s27833_s19 + $0x110] sm:$0xff]  ;;  %v28018_v42 = vpack.c.bf16 %v1680_v2, %v1679_v61  ;;  %v28049_v51 = vpack.c.bf16 %v1684_v12, %v1683_v5  ;;  %v28096_v4 = vpack.c.bf16 %v1686_v14, %v27941_v13 }
  0xda   : > { %34998 = vst [vmem:[#allocation23_spill] sm:$0xff] %v27954_v17  ;;  %34999 = vst [vmem:[#allocation24_spill] sm:$0xff] %v27958_v20  ;;  %v1971_v27 = vld [vmem:[%s34344_s1 + $0xa] sm:$0x3]  ;;  %v27994_v33 = vpack.c.bf16 %v27974_v26, %v27971_v23  ;;  %v1692_v35 = vld [vmem:[%s27833_s19 + $0x190] sm:$0xff]  ;;  %v28013_v39 = vpack.c.bf16 %v1676_v34, %v1675_v59  ;;  %v28102_v12 = vpack.c.bf16 %v1688_v21, %v1687_v15 }
  0xdb   : > { %v27982_v28 = vand.u32 %v27823_v8, %v1971_v27  ;;  %35000 = vst [vmem:[#allocation25_spill] sm:$0xff] %v27988_v30  ;;  %v28001_v36 = vld [vmem:[%s27833_s19 + $0x198] sm:$0xff]  ;;  %v1696_v37 = vld [vmem:[%s27833_s19 + $0x1b0] sm:$0xff]  ;;  %35003 = vst [vmem:[#allocation28_spill] sm:$0xff] %v28018_v42 }
  0xdc   : > { %35001 = vst [vmem:[#allocation26_spill] sm:$0xff] %v27994_v33  ;;  %v28011_v38 = vld [vmem:[%s27833_s19 + $0x1b8] sm:$0xff]  ;;  %v28016_v40 = vpack.c.bf16 %v28001_v36, %v1692_v35  ;;  %v28026_v45 = vld [vmem:[%s27833_s19 + $0x1c0] sm:$0xff]  ;;  %v28029_v46 = vld [vmem:[%s27833_s19 + $0x1c8] sm:$0xff] }
  0xdd   : > { %22958 = vmatprep.subr.bf16.mxu0 %v27982_v28  ;;  %v28021_v44 = vpack.c.bf16 %v28011_v38, %v1696_v37  ;;  %v28036_v47 = vld [vmem:[%s27833_s19 + $0x1d0] sm:$0xff]  ;;  %v28041_v48 = vld [vmem:[%s27833_s19 + $0x1d8] sm:$0xff]  ;;  %35005 = vst [vmem:[#allocation30_spill] sm:$0xff] %v28043_v49  ;;  %v28047_v50 = vpack.c.bf16 %v28029_v46, %v28026_v45  ;;  %35007 = vst [vmem:[#allocation32_spill] sm:$0xff] %v28049_v51 }
  0xde   : > { %35002 = vst [vmem:[#allocation27_spill] sm:$0xff] %v28016_v40  ;;  %v28061_v56 = vld [vmem:[%s27833_s19 + $0x1e8] sm:$0xff]  ;;  %v28068_v57 = vld [vmem:[%s27833_s19 + $0x1f0] sm:$0xff]  ;;  %v28071_v58 = vld [vmem:[%s27833_s19 + $0x1f8] sm:$0xff] }
  0xdf   : > { %21679 = vmatmul.mubr.msk.bf16.gmra.mrb[8].mxu1 %vm2232_vm2, %v2109_v52  ;;  %22453 = vmatmul.mubr.msk.bf16.gmra.mrb[8].mxu0 %vm2232_vm2, %v27895_v53  ;;  %35004 = vst [vmem:[#allocation29_spill] sm:$0xff] %v28021_v44  ;;  %35006 = vst [vmem:[#allocation31_spill] sm:$0xff] %v28047_v50  ;;  %v28053_v52 = vpack.c.bf16 %v28041_v48, %v28036_v47  ;;  %v28074_v59 = vld [vmem:[%s27833_s19 + $0x380] sm:$0xff]  ;;  %v28077_v60 = vld [vmem:[%s27833_s19 + $0x388] sm:$0xff]  ;;  %v28106_v27 = vpack.c.bf16 %v28071_v58, %v28068_v57 }
  0xe0   : > { %21682 = vmatprep.mubr.msk.bf16.mxu1 %vm2232_vm2, %v2110_v54  ;;  %22456 = vmatprep.mubr.msk.bf16.mxu0 %vm2232_vm2, %v27897_v55  ;;  %v28058_v54 = vld [vmem:[%s27833_s19 + $0x1e0] sm:$0xff]  ;;  %v28082_v61 = vld [vmem:[%s27833_s19 + $0x390] sm:$0xff]  ;;  %v28089_v2 = vld [vmem:[%s27833_s19 + $0x398] sm:$0xff]  ;;  %35011 = vst [vmem:[#allocation36_spill] sm:$0xff] %v28096_v4  ;;  %v28304_v41 = vpack.c.bf16 %v28068_v57, %v28061_v56 }
  0xe1   : > { %35008 = vst [vmem:[#allocation33_spill] sm:$0xff] %v28053_v52  ;;  %v28093_v3 = vpack.c.bf16 %v28089_v2, %v28082_v61  ;;  %v28100_v5 = vpack.c.bf16 %v28061_v56, %v28058_v54  ;;  %35013 = vst [vmem:[#allocation38_spill] sm:$0xff] %v28102_v12  ;;  %v28111_v34 = vld [vmem:[%s27833_s19 + $0x200] sm:$0xff]  ;;  %v28114_v37 = vld [vmem:[%s27833_s19 + $0x208] sm:$0xff] }
  0xe2   : > { %35014 = vst [vmem:[#allocation39_spill] sm:$0xff] %v28106_v27  ;;  %v28121_v13 = vld [vmem:[%s27833_s19 + $0x210] sm:$0xff]  ;;  %v28124_v14 = vld [vmem:[%s27833_s19 + $0x218] sm:$0xff]  ;;  %v28127_v15 = vld [vmem:[%s27833_s19 + $0x3a0] sm:$0xff]  ;;  %v28312_v31 = vpack.c.bf16 %v28111_v34, %v28071_v58 }
  0xe3   : > { %35010 = vst [vmem:[#allocation35_spill] sm:$0xff] %v28093_v3  ;;  %35012 = vst [vmem:[#allocation37_spill] sm:$0xff] %v28100_v5  ;;  %v28130_v21 = vld [vmem:[%s27833_s19 + $0x3a8] sm:$0xff]  ;;  %v28135_v11 = vld [vmem:[%s27833_s19 + $0x3b0] sm:$0xff] }
  0xe4   : > { %v28139_v3 = vpack.c.bf16 %v28130_v21, %v28127_v15  ;;  %v28290_v55 = vld [vmem:[%s27833_s19 + $0x428] sm:$0xff]  ;;  %v28293_v53 = vld [vmem:[%s27833_s19 + $0x280] sm:$0xff]  ;;  %35034 = vst [vmem:[#allocation59_spill] sm:$0xff] %v28304_v41  ;;  %35036 = vst [vmem:[#allocation61_spill] sm:$0xff] %v28312_v31 }
  0xe5   : > { %v28296_v43 = vld [vmem:[%s27833_s19 + $0x288] sm:$0xff]  ;;  %v28325_v56 = vld [vmem:[%s27833_s19 + $0x290] sm:$0xff]  ;;  %v28331_v58 = vld [vmem:[%s27833_s19 + $0x438] sm:$0xff] }
  0xe6   : > { %35015 = vst [vmem:[#allocation40_spill] sm:$0xff] %v28139_v3  ;;  %v28157_v3 = vpack.c.bf16 %v1692_v35, %v27974_v26  ;;  %v28177_v26 = vld [vmem:[%s27833_s19 + $0x3c8] sm:$0xff]  ;;  %v28316_v25 = vpack.c.bf16 %v28296_v43, %v28293_v53  ;;  %v28328_v57 = vld [vmem:[%s27833_s19 + $0x430] sm:$0xff]  ;;  %35039 = vst [vmem:[#allocation64_spill] sm:$0xff] %v28331_v58 }
  0xe7   : > { %21683 = vmatmul.mubr.msk.bf16.gmra.mrb[12].mxu1 %vm2232_vm2, %v2111_v62  ;;  %22457 = vmatmul.mubr.msk.bf16.gmra.mrb[12].mxu0 %vm2232_vm2, %v27913_v0  ;;  %v28086_v62 = vpack.c.bf16 %v28077_v60, %v28074_v59  ;;  %v28182_v35 = vld [vmem:[%s27833_s19 + $0x228] sm:$0xff]  ;;  %35038 = vst [vmem:[#allocation63_spill] sm:$0xff] %v28328_v57  ;;  %v28349_v19 = vld [vmem:[%s27833_s19 + $0x2a0] sm:$0xff] }
  0xe8   : > { %21686 = vmatprep.mubr.msk.bf16.mxu1 %vm2232_vm2, %v27911_v63  ;;  %22460 = vmatprep.mubr.msk.bf16.mxu0 %vm2232_vm2, %v27915_v1  ;;  %35019 = vst [vmem:[#allocation44_spill] sm:$0xff] %v28157_v3  ;;  %v28256_v1 = vpack.c.bf16 %v28058_v54, %v28041_v48  ;;  %v28280_v48 = vld [vmem:[%s27833_s19 + $0x278] sm:$0xff]  ;;  %v28283_v54 = vld [vmem:[%s27833_s19 + $0x420] sm:$0xff]  ;;  %35037 = vst [vmem:[#allocation62_spill] sm:$0xff] %v28316_v25 }
  0xe9   : > { %35009 = vst [vmem:[#allocation34_spill] sm:$0xff] %v28086_v62  ;;  %v28142_v62 = vld [vmem:[%s27833_s19 + $0x3b8] sm:$0xff]  ;;  %v28346_v24 = vld [vmem:[%s27833_s19 + $0x448] sm:$0xff] }
  0xea   : > { %35030 = vst [vmem:[#allocation55_spill] sm:$0xff] %v28256_v1  ;;  %35042 = vst [vmem:[#allocation67_spill] sm:$0xff] %v28346_v24  ;;  %v28352_v8 = vld [vmem:[%s27833_s19 + $0x2a8] sm:$0xff] }
  0xef   : > { %21687 = vmatmul.mubr.msk.bf16.gmra.mrb[16].mxu1 %vm2232_vm2, %v27929_v6  ;;  %22461 = vmatmul.mubr.msk.bf16.gmra.mrb[16].mxu0 %vm2232_vm2, %v27931_v7 }
  0xf0   : > { %21690 = vmatprep.mubr.msk.bf16.mxu1 %vm2232_vm2, %v27933_v9  ;;  %22464 = vmatprep.mubr.msk.bf16.mxu0 %vm2232_vm2, %v27935_v10 }
  0xf7   : > { %21691 = vmatmul.mubr.msk.bf16.gmra.mrb[20].mxu1 %vm2232_vm2, %v27951_v16  ;;  %22465 = vmatmul.mubr.msk.bf16.gmra.mrb[20].mxu0 %vm2232_vm2, %v27954_v17 }
  0xf8   : > { %21694 = vmatprep.mubr.msk.bf16.mxu1 %vm2232_vm2, %v27956_v18  ;;  %22468 = vmatprep.mubr.msk.bf16.mxu0 %vm2232_vm2, %v27958_v20 }
  0xff   : > { %21695 = vmatmul.mubr.msk.bf16.gmra.mrb[24].mxu1 %vm2232_vm2, %v27984_v29  ;;  %22469 = vmatmul.mubr.msk.bf16.gmra.mrb[24].mxu0 %vm2232_vm2, %v27988_v30  ;;  %v28196_v30 = vld [vmem:[%s27833_s19 + $0x248] sm:$0xff] }
 0x100   : > { %21698 = vmatprep.mubr.msk.bf16.mxu1 %vm2232_vm2, %v27990_v32  ;;  %22472 = vmatprep.mubr.msk.bf16.mxu0 %vm2232_vm2, %v27994_v33  ;;  %v1714_v33 = vld [vmem:[%s27833_s19 + $0x240] sm:$0xff] }
 0x101   : > { %v28214_v10 = vpack.c.bf16 %v28196_v30, %v1714_v33  ;;  %v28231_v33 = vld [vmem:[%s27833_s19 + $0x400] sm:$0xff] }
 0x103   : > { %35026 = vst [vmem:[#allocation51_spill] sm:$0xff] %v28214_v10 }
 0x107   : > { %21699 = vmatmul.mubr.msk.bf16.gmra.mrb[28].mxu1 %vm2232_vm2, %v28013_v39  ;;  %22473 = vmatmul.mubr.msk.bf16.gmra.mrb[28].mxu0 %vm2232_vm2, %v28016_v40  ;;  %v28192_v40 = vld [vmem:[%s27833_s19 + $0x3d8] sm:$0xff] }
 0x108   : > { %21702 = vmatprep.mubr.msk.bf16.mxu1 %vm2232_vm2, %v28018_v42  ;;  %22476 = vmatprep.mubr.msk.bf16.mxu0 %vm2232_vm2, %v28021_v44  ;;  %v28185_v44 = vld [vmem:[%s27833_s19 + $0x3d0] sm:$0xff] }
 0x10f   : > { %21703 = vmatmul.mubr.msk.bf16.gmra.mrb[32].mxu1 %vm2232_vm2, %v28043_v49  ;;  %22477 = vmatmul.mubr.msk.bf16.gmra.mrb[32].mxu0 %vm2232_vm2, %v28047_v50  ;;  %v28161_v50 = vpack.c.bf16 %v28124_v14, %v28121_v13 }
 0x110   : > { %21706 = vmatprep.mubr.msk.bf16.mxu1 %vm2232_vm2, %v28049_v51  ;;  %22480 = vmatprep.mubr.msk.bf16.mxu0 %vm2232_vm2, %v28053_v52  ;;  %v28150_v52 = vpack.c.bf16 %v27971_v23, %v27964_v22  ;;  %v28171_v22 = vld [vmem:[%s27833_s19 + $0x220] sm:$0xff] }
 0x111   : > { %35020 = vst [vmem:[#allocation45_spill] sm:$0xff] %v28161_v50  ;;  %v28174_v23 = vld [vmem:[%s27833_s19 + $0x3c0] sm:$0xff]  ;;  %v28207_v17 = vpack.c.bf16 %v28182_v35, %v28171_v22 }
 0x112   : > { %35017 = vst [vmem:[#allocation42_spill] sm:$0xff] %v28150_v52 }
 0x113   : > { %35024 = vst [vmem:[#allocation49_spill] sm:$0xff] %v28207_v17 }
 0x117   : > { %21707 = vmatmul.mubr.msk.bf16.gmra.mrb[36].mxu1 %vm2232_vm2, %v28096_v4  ;;  %22481 = vmatmul.mubr.msk.bf16.gmra.mrb[36].mxu0 %vm2232_vm2, %v28100_v5  ;;  %v28146_v5 = vpack.c.bf16 %v28142_v62, %v28135_v11 }
 0x118   : > { %21710 = vmatprep.mubr.msk.bf16.mxu1 %vm2232_vm2, %v28102_v12  ;;  %22484 = vmatprep.mubr.msk.bf16.mxu0 %vm2232_vm2, %v28106_v27  ;;  %v28154_v27 = vpack.c.bf16 %v28114_v37, %v28111_v34  ;;  %v28336_v34 = vld [vmem:[%s27833_s19 + $0x298] sm:$0xff] }
 0x119   : > { %35016 = vst [vmem:[#allocation41_spill] sm:$0xff] %v28146_v5  ;;  %v1694_v5 = vld [vmem:[%s27833_s19 + $0x1a0] sm:$0xff] }
 0x11a   : > { %35018 = vst [vmem:[#allocation43_spill] sm:$0xff] %v28154_v27  ;;  %v28203_v20 = vpack.c.bf16 %v1694_v5, %v28001_v36  ;;  %v28223_v36 = vld [vmem:[%s27833_s19 + $0x250] sm:$0xff]  ;;  %v28237_v5 = vld [vmem:[%s27833_s19 + $0x260] sm:$0xff] }
 0x11c   : > { %35023 = vst [vmem:[#allocation48_spill] sm:$0xff] %v28203_v20 }
 0x11f   : > { %21711 = vmatmul.mubr.msk.bf16.gmra.mrb[40].mxu1 %vm2232_vm2, %v28150_v52  ;;  %22485 = vmatmul.mubr.msk.bf16.gmra.mrb[40].mxu0 %vm2232_vm2, %v28154_v27  ;;  %v28189_v27 = vpack.c.bf16 %v28177_v26, %v28174_v23 }
 0x120   : > { %21714 = vmatprep.mubr.msk.bf16.mxu1 %vm2232_vm2, %v28157_v3  ;;  %22488 = vmatprep.mubr.msk.bf16.mxu0 %vm2232_vm2, %v28161_v50  ;;  %v28200_v50 = vpack.c.bf16 %v28192_v40, %v28185_v44 }
 0x121   : > { %35021 = vst [vmem:[#allocation46_spill] sm:$0xff] %v28189_v27  ;;  %v28211_v27 = vpack.c.bf16 %v28026_v45, %v28011_v38  ;;  %v28228_v38 = vld [vmem:[%s27833_s19 + $0x258] sm:$0xff]  ;;  %v28234_v45 = vld [vmem:[%s27833_s19 + $0x408] sm:$0xff] }
 0x122   : > { %35022 = vst [vmem:[#allocation47_spill] sm:$0xff] %v28200_v50  ;;  %v28240_v50 = vld [vmem:[%s27833_s19 + $0x268] sm:$0xff]  ;;  %v28252_v7 = vpack.c.bf16 %v28228_v38, %v28223_v36 }
 0x123   : > { %35025 = vst [vmem:[#allocation50_spill] sm:$0xff] %v28211_v27  ;;  %v28260_v0 = vpack.c.bf16 %v28240_v50, %v28237_v5 }
 0x124   : > { %35029 = vst [vmem:[#allocation54_spill] sm:$0xff] %v28252_v7 }
 0x125   : > { %35031 = vst [vmem:[#allocation56_spill] sm:$0xff] %v28260_v0 }
 0x127   : > { %21715 = vmatmul.mubr.msk.bf16.gmra.mrb[44].mxu1 %vm2232_vm2, %v28203_v20  ;;  %22489 = vmatmul.mubr.msk.bf16.gmra.mrb[44].mxu0 %vm2232_vm2, %v28207_v17  ;;  %v28244_v17 = vpack.c.bf16 %v28234_v45, %v28231_v33 }
 0x128   : > { %21718 = vmatprep.mubr.msk.bf16.mxu1 %vm2232_vm2, %v28211_v27  ;;  %22492 = vmatprep.mubr.msk.bf16.mxu0 %vm2232_vm2, %v28214_v10  ;;  %v28248_v10 = vpack.c.bf16 %v28036_v47, %v28029_v46  ;;  %v28269_v46 = vld [vmem:[%s27833_s19 + $0x270] sm:$0xff] }
 0x129   : > { %35027 = vst [vmem:[#allocation52_spill] sm:$0xff] %v28244_v17  ;;  %v28272_v47 = vld [vmem:[%s27833_s19 + $0x410] sm:$0xff]  ;;  %v28275_v17 = vld [vmem:[%s27833_s19 + $0x418] sm:$0xff] }
 0x12a   : > { %35028 = vst [vmem:[#allocation53_spill] sm:$0xff] %v28248_v10 }
 0x12f   : > { %21719 = vmatmul.mubr.msk.bf16.gmra.mrb[48].mxu1 %vm2232_vm2, %v28248_v10  ;;  %22493 = vmatmul.mubr.msk.bf16.gmra.mrb[48].mxu0 %vm2232_vm2, %v28252_v7  ;;  %v28287_v7 = vpack.c.bf16 %v28275_v17, %v28272_v47  ;;  %v28407_v10 = vld [vmem:[%s27833_s19 + $0x2d8] sm:$0xff] }
 0x130   : > { %21722 = vmatprep.mubr.msk.bf16.mxu1 %vm2232_vm2, %v28256_v1  ;;  %22496 = vmatprep.mubr.msk.bf16.mxu0 %vm2232_vm2, %v28260_v0  ;;  %v28300_v0 = vpack.c.bf16 %v28290_v55, %v28283_v54  ;;  %v28372_v1 = vpack.c.bf16 %v28352_v8, %v28349_v19 }
 0x131   : > { %35032 = vst [vmem:[#allocation57_spill] sm:$0xff] %v28287_v7  ;;  %v28308_v7 = vpack.c.bf16 %v28280_v48, %v28269_v46 }
 0x132   : > { %35033 = vst [vmem:[#allocation58_spill] sm:$0xff] %v28300_v0  ;;  %v28339_v0 = vld [vmem:[%s27833_s19 + $0x440] sm:$0xff]  ;;  %35047 = vst [vmem:[#allocation72_spill] sm:$0xff] %v28372_v1 }
 0x133   : > { %35035 = vst [vmem:[#allocation60_spill] sm:$0xff] %v28308_v7  ;;  %35040 = vst [vmem:[#allocation65_spill] sm:$0xff] %v28339_v0 }
 0x137   : > { %21723 = vmatmul.mubr.msk.bf16.gmra.mrb[52].mxu1 %vm2232_vm2, %v28304_v41  ;;  %22497 = vmatmul.mubr.msk.bf16.gmra.mrb[52].mxu0 %vm2232_vm2, %v28308_v7  ;;  %v28343_v7 = vpack.c.bf16 %v28331_v58, %v28328_v57  ;;  %v28368_v41 = vpack.c.bf16 %v28171_v22, %v28124_v14  ;;  %v28388_v14 = vld [vmem:[%s27833_s19 + $0x458] sm:$0xff] }
 0x138   : > { %21726 = vmatprep.mubr.msk.bf16.mxu1 %vm2232_vm2, %v28312_v31  ;;  %22500 = vmatprep.mubr.msk.bf16.mxu0 %vm2232_vm2, %v28316_v25  ;;  %v28356_v25 = vpack.c.bf16 %v28346_v24, %v28339_v0  ;;  %v28360_v31 = vpack.c.bf16 %v28121_v13, %v28114_v37  ;;  %v28382_v37 = vld [vmem:[%s27833_s19 + $0x2b0] sm:$0xff]  ;;  %35049 = vst [vmem:[#allocation74_spill] sm:$0xff] %v28388_v14  ;;  %v28393_v22 = vld [vmem:[%s27833_s19 + $0x2b8] sm:$0xff] }
 0x139   : > { %35041 = vst [vmem:[#allocation66_spill] sm:$0xff] %v28343_v7  ;;  %v28364_v7 = vpack.c.bf16 %v28336_v34, %v28325_v56  ;;  %35046 = vst [vmem:[#allocation71_spill] sm:$0xff] %v28368_v41  ;;  %v28385_v13 = vld [vmem:[%s27833_s19 + $0x450] sm:$0xff]  ;;  %v28418_v58 = vpack.c.bf16 %v28393_v22, %v28382_v37 }
 0x13a   : > { %35043 = vst [vmem:[#allocation68_spill] sm:$0xff] %v28356_v25  ;;  %35044 = vst [vmem:[#allocation69_spill] sm:$0xff] %v28360_v31  ;;  %v1712_v25 = vld [vmem:[%s27833_s19 + $0x230] sm:$0xff] }
 0x13b   : > { %35045 = vst [vmem:[#allocation70_spill] sm:$0xff] %v28364_v7  ;;  %35048 = vst [vmem:[#allocation73_spill] sm:$0xff] %v28385_v13  ;;  %v1732_v24 = vld [vmem:[%s27833_s19 + $0x2d0] sm:$0xff]  ;;  %v28414_v0 = vpack.c.bf16 %v1712_v25, %v28182_v35  ;;  %v28434_v25 = vld [vmem:[%s27833_s19 + $0x2e0] sm:$0xff] }
 0x13c   : > { %35055 = vst [vmem:[#allocation80_spill] sm:$0xff] %v28418_v58  ;;  %v28445_v35 = vld [vmem:[%s27833_s19 + $0x498] sm:$0xff]  ;;  %v28616_v57 = vpack.c.bf16 %v28434_v25, %v28407_v10 }
 0x13d   : > { %35054 = vst [vmem:[#allocation79_spill] sm:$0xff] %v28414_v0  ;;  %35059 = vst [vmem:[#allocation84_spill] sm:$0xff] %v28445_v35 }
 0x13e   : > { %35090 = vst [vmem:[#allocation115_spill] sm:$0xff] %v28616_v57 }
 0x13f   : > { %21727 = vmatmul.mubr.msk.bf16.gmra.mrb[56].mxu1 %vm2232_vm2, %v28360_v31  ;;  %22501 = vmatmul.mubr.msk.bf16.gmra.mrb[56].mxu0 %vm2232_vm2, %v28364_v7  ;;  %v28396_v31 = vld [vmem:[%s27833_s19 + $0x460] sm:$0xff]  ;;  %v28400_v7 = vpack.c.bf16 %v28388_v14, %v28385_v13  ;;  %v28425_v14 = vpack.c.bf16 %v28407_v10, %v1732_v24  ;;  %v28442_v24 = vld [vmem:[%s27833_s19 + $0x490] sm:$0xff]  ;;  %v1753_v10 = vld [vmem:[%s27833_s19 + $0x378] sm:$0xff] }
 0x140   : > { %21730 = vmatprep.mubr.msk.bf16.mxu1 %vm2232_vm2, %v28368_v41  ;;  %22504 = vmatprep.mubr.msk.bf16.mxu0 %vm2232_vm2, %v28372_v1  ;;  %35050 = vst [vmem:[#allocation75_spill] sm:$0xff] %v28396_v31  ;;  %v28403_v41 = vld [vmem:[%s27833_s19 + $0x468] sm:$0xff]  ;;  %35058 = vst [vmem:[#allocation83_spill] sm:$0xff] %v28442_v24 }
 0x141   : > { %35051 = vst [vmem:[#allocation76_spill] sm:$0xff] %v28400_v7  ;;  %35052 = vst [vmem:[#allocation77_spill] sm:$0xff] %v28403_v41  ;;  %v28411_v1 = vpack.c.bf16 %v28403_v41, %v28396_v31  ;;  %v28422_v7 = vpack.c.bf16 %v28223_v36, %v28196_v30  ;;  %v28439_v30 = vld [vmem:[%s27833_s19 + $0x2e8] sm:$0xff]  ;;  %v28448_v36 = vld [vmem:[%s27833_s19 + $0x2f0] sm:$0xff] }
 0x142   : > { %35057 = vst [vmem:[#allocation82_spill] sm:$0xff] %v28425_v14 }
 0x143   : > { %35053 = vst [vmem:[#allocation78_spill] sm:$0xff] %v28411_v1  ;;  %35056 = vst [vmem:[#allocation81_spill] sm:$0xff] %v28422_v7  ;;  %v28451_v1 = vld [vmem:[%s27833_s19 + $0x2f8] sm:$0xff] }
 0x144   : > { %v28471_v41 = vpack.c.bf16 %v28451_v1, %v28448_v36 }
 0x146   : > { %35064 = vst [vmem:[#allocation89_spill] sm:$0xff] %v28471_v41 }
 0x147   : > { %21731 = vmatmul.mubr.msk.bf16.gmra.mrb[60].mxu1 %vm2232_vm2, %v28414_v0  ;;  %22505 = vmatmul.mubr.msk.bf16.gmra.mrb[60].mxu0 %vm2232_vm2, %v28418_v58  ;;  %v28455_v58 = vpack.c.bf16 %v28445_v35, %v28442_v24  ;;  %v28467_v0 = vpack.c.bf16 %v28269_v46, %v28240_v50  ;;  %v28491_v50 = vld [vmem:[%s27833_s19 + $0x308] sm:$0xff]  ;;  %v28494_v46 = vld [vmem:[%s27833_s19 + $0x4b0] sm:$0xff]  ;;  %v28507_v35 = vld [vmem:[%s27833_s19 + $0x318] sm:$0xff]  ;;  %v28515_v24 = vpack.c.bf16 %v28293_v53, %v28280_v48 }
 0x148   : > { %21734 = vmatprep.mubr.msk.bf16.mxu1 %vm2232_vm2, %v28422_v7  ;;  %22508 = vmatprep.mubr.msk.bf16.mxu0 %vm2232_vm2, %v28425_v14  ;;  %v28459_v14 = vpack.c.bf16 %v28237_v5, %v28228_v38  ;;  %v28463_v7 = vpack.c.bf16 %v28439_v30, %v28434_v25  ;;  %v28480_v38 = vld [vmem:[%s27833_s19 + $0x300] sm:$0xff]  ;;  %35067 = vst [vmem:[#allocation92_spill] sm:$0xff] %v28494_v46 }
 0x149   : > { %35060 = vst [vmem:[#allocation85_spill] sm:$0xff] %v28455_v58  ;;  %35063 = vst [vmem:[#allocation88_spill] sm:$0xff] %v28467_v0  ;;  %v28483_v5 = vld [vmem:[%s27833_s19 + $0x4a0] sm:$0xff]  ;;  %v28486_v58 = vld [vmem:[%s27833_s19 + $0x4a8] sm:$0xff] }
 0x14a   : > { %35061 = vst [vmem:[#allocation86_spill] sm:$0xff] %v28459_v14  ;;  %35062 = vst [vmem:[#allocation87_spill] sm:$0xff] %v28463_v7  ;;  %v1742_v53 = vld [vmem:[%s27833_s19 + $0x320] sm:$0xff] }
 0x14b   : > { %35065 = vst [vmem:[#allocation90_spill] sm:$0xff] %v28483_v5  ;;  %35066 = vst [vmem:[#allocation91_spill] sm:$0xff] %v28486_v58  ;;  %v28537_v48 = vld [vmem:[%s27833_s19 + $0x4c0] sm:$0xff] }
 0x14c   : > { %35071 = vst [vmem:[#allocation96_spill] sm:$0xff] %v28515_v24  ;;  %35075 = vst [vmem:[#allocation100_spill] sm:$0xff] %v28537_v48  ;;  %v28631_v25 = vld [vmem:[%s27833_s19 + $0x520] sm:$0xff] }
 0x14f   : > { %21735 = vmatmul.mubr.msk.bf16.gmra.mrb[64].mxu1 %vm2232_vm2, %v28459_v14  ;;  %22509 = vmatmul.mubr.msk.bf16.gmra.mrb[64].mxu0 %vm2232_vm2, %v28463_v7  ;;  %v28498_v7 = vpack.c.bf16 %v28486_v58, %v28483_v5  ;;  %v28504_v14 = vld [vmem:[%s27833_s19 + $0x310] sm:$0xff]  ;;  %v28523_v58 = vpack.c.bf16 %v28325_v56, %v28296_v43  ;;  %v28545_v43 = vld [vmem:[%s27833_s19 + $0x328] sm:$0xff] }
 0x150   : > { %21738 = vmatprep.mubr.msk.bf16.mxu1 %vm2232_vm2, %v28467_v0  ;;  %22512 = vmatprep.mubr.msk.bf16.mxu0 %vm2232_vm2, %v28471_v41  ;;  %v28501_v0 = vld [vmem:[%s27833_s19 + $0x4b8] sm:$0xff]  ;;  %v28527_v5 = vpack.c.bf16 %v28507_v35, %v28504_v14  ;;  %v28548_v56 = vld [vmem:[%s27833_s19 + $0x4d0] sm:$0xff]  ;;  %v28568_v31 = vpack.c.bf16 %v28545_v43, %v1742_v53 }
 0x151   : > { %35068 = vst [vmem:[#allocation93_spill] sm:$0xff] %v28498_v7  ;;  %35069 = vst [vmem:[#allocation94_spill] sm:$0xff] %v28501_v0  ;;  %v28511_v41 = vpack.c.bf16 %v28501_v0, %v28494_v46  ;;  %v28519_v7 = vpack.c.bf16 %v28491_v50, %v28480_v38  ;;  %v1745_v0 = vld [vmem:[%s27833_s19 + $0x338] sm:$0xff]  ;;  %v28565_v46 = vpack.c.bf16 %v28349_v19, %v28336_v34  ;;  %v1746_v19 = vld [vmem:[%s27833_s19 + $0x340] sm:$0xff] }
 0x152   : > { %35073 = vst [vmem:[#allocation98_spill] sm:$0xff] %v28523_v58  ;;  %35074 = vst [vmem:[#allocation99_spill] sm:$0xff] %v28527_v5  ;;  %v28585_v34 = vld [vmem:[%s27833_s19 + $0x4e0] sm:$0xff] }
 0x153   : > { %35070 = vst [vmem:[#allocation95_spill] sm:$0xff] %v28511_v41  ;;  %35072 = vst [vmem:[#allocation97_spill] sm:$0xff] %v28519_v7  ;;  %v28540_v41 = vld [vmem:[%s27833_s19 + $0x4c8] sm:$0xff] }
 0x154   : > { %35076 = vst [vmem:[#allocation101_spill] sm:$0xff] %v28540_v41  ;;  %35077 = vst [vmem:[#allocation102_spill] sm:$0xff] %v28548_v56 }
 0x155   : > { %35081 = vst [vmem:[#allocation106_spill] sm:$0xff] %v28565_v46  ;;  %35082 = vst [vmem:[#allocation107_spill] sm:$0xff] %v28568_v31 }
 0x157   : > { %21739 = vmatmul.mubr.msk.bf16.gmra.mrb[68].mxu1 %vm2232_vm2, %v28515_v24  ;;  %22513 = vmatmul.mubr.msk.bf16.gmra.mrb[68].mxu0 %vm2232_vm2, %v28519_v7  ;;  %v28552_v7 = vpack.c.bf16 %v28540_v41, %v28537_v48  ;;  %v1744_v24 = vld [vmem:[%s27833_s19 + $0x330] sm:$0xff] }
 0x158   : > { %21742 = vmatprep.mubr.msk.bf16.mxu1 %vm2232_vm2, %v28523_v58  ;;  %22516 = vmatprep.mubr.msk.bf16.mxu0 %vm2232_vm2, %v28527_v5  ;;  %v28555_v58 = vld [vmem:[%s27833_s19 + $0x4d8] sm:$0xff]  ;;  %v28574_v41 = vpack.c.bf16 %v1745_v0, %v1744_v24 }
 0x159   : > { %35078 = vst [vmem:[#allocation103_spill] sm:$0xff] %v28552_v7  ;;  %35079 = vst [vmem:[#allocation104_spill] sm:$0xff] %v28555_v58  ;;  %v28561_v5 = vpack.c.bf16 %v28555_v58, %v28548_v56  ;;  %v28572_v7 = vpack.c.bf16 %v28382_v37, %v28352_v8  ;;  %v28588_v58 = vld [vmem:[%s27833_s19 + $0x4e8] sm:$0xff]  ;;  %v28594_v37 = vld [vmem:[%s27833_s19 + $0x4f0] sm:$0xff] }
 0x15a   : > { %35084 = vst [vmem:[#allocation109_spill] sm:$0xff] %v28574_v41  ;;  %35085 = vst [vmem:[#allocation110_spill] sm:$0xff] %v28588_v58  ;;  %v1747_v8 = vld [vmem:[%s27833_s19 + $0x348] sm:$0xff] }
 0x15b   : > { %35080 = vst [vmem:[#allocation105_spill] sm:$0xff] %v28561_v5  ;;  %35083 = vst [vmem:[#allocation108_spill] sm:$0xff] %v28572_v7  ;;  %v1730_v5 = vld [vmem:[%s27833_s19 + $0x2c0] sm:$0xff]  ;;  %v1751_v56 = vld [vmem:[%s27833_s19 + $0x368] sm:$0xff]  ;;  %v28612_v13 = vpack.c.bf16 %v1747_v8, %v1746_v19 }
 0x15d   : > { %35089 = vst [vmem:[#allocation114_spill] sm:$0xff] %v28612_v13 }
 0x15f   : > { %21743 = vmatmul.mubr.msk.bf16.gmra.mrb[72].mxu1 %vm2232_vm2, %v28565_v46  ;;  %22517 = vmatmul.mubr.msk.bf16.gmra.mrb[72].mxu0 %vm2232_vm2, %v28568_v31  ;;  %v28598_v31 = vpack.c.bf16 %v28588_v58, %v28585_v34  ;;  %v1750_v46 = vld [vmem:[%s27833_s19 + $0x360] sm:$0xff] }
 0x160   : > { %21746 = vmatprep.mubr.msk.bf16.mxu1 %vm2232_vm2, %v28572_v7  ;;  %22520 = vmatprep.mubr.msk.bf16.mxu0 %vm2232_vm2, %v28574_v41  ;;  %v28601_v7 = vld [vmem:[%s27833_s19 + $0x4f8] sm:$0xff]  ;;  %v28610_v41 = vpack.c.bf16 %v1730_v5, %v28393_v22  ;;  %v28618_v58 = vpack.c.bf16 %v1751_v56, %v1750_v46  ;;  %v1752_v22 = vld [vmem:[%s27833_s19 + $0x370] sm:$0xff]  ;;  %v28634_v5 = vld [vmem:[%s27833_s19 + $0x528] sm:$0xff] }
 0x161   : > { %35086 = vst [vmem:[#allocation111_spill] sm:$0xff] %v28598_v31  ;;  %v28607_v48 = vpack.c.bf16 %v28601_v7, %v28594_v37  ;;  %v28638_v46 = vpack.c.bf16 %v28634_v5, %v28631_v25  ;;  %v28644_v31 = vpack.c.bf16 %v1753_v10, %v1752_v22 }
 0x162   : > { %35088 = vst [vmem:[#allocation113_spill] sm:$0xff] %v28610_v41  ;;  %35091 = vst [vmem:[#allocation116_spill] sm:$0xff] %v28618_v58 }
 0x163   : > { %35087 = vst [vmem:[#allocation112_spill] sm:$0xff] %v28607_v48  ;;  %35092 = vst [vmem:[#allocation117_spill] sm:$0xff] %v28638_v46  ;;  %v28642_v48 = vpack.c.bf16 %v28448_v36, %v28439_v30  ;;  %v28657_v46 = vld [vmem:[%s27833_s19 + $0x530] sm:$0xff]  ;;  %v28660_v30 = vld [vmem:[%s27833_s19 + $0x538] sm:$0xff] }
 0x164   : > { %35094 = vst [vmem:[#allocation119_spill] sm:$0xff] %v28644_v31  ;;  %v28669_v36 = vpack.c.bf16 %v28660_v30, %v28657_v46 }
 0x165   : > { %35093 = vst [vmem:[#allocation118_spill] sm:$0xff] %v28642_v48 }
 0x166   : > { %35096 = vst [vmem:[#allocation121_spill] sm:$0xff] %v28669_v36  ;;  %v28750_v36 = vpack.c.bf16 %v1752_v22, %v1751_v56  ;;  %v28771_v22 = vpack.c.bf16 %v28074_v59, %v1753_v10  ;;  %v28787_v59 = vld [vmem:[%s27833_s19 + $0x5c8] sm:$0xff]  ;;  %v28799_v10 = vld [vmem:[%s27833_s19 + $0x5d8] sm:$0xff] }
 0x167   : > { %21747 = vmatmul.mubr.msk.bf16.gmra.mrb[76].mxu1 %vm2232_vm2, %v28610_v41  ;;  %22521 = vmatmul.mubr.msk.bf16.gmra.mrb[76].mxu0 %vm2232_vm2, %v28612_v13  ;;  %v28648_v13 = vpack.c.bf16 %v28480_v38, %v28451_v1  ;;  %v28665_v1 = vld [vmem:[%s27833_s19 + $0x540] sm:$0xff]  ;;  %v28672_v38 = vld [vmem:[%s27833_s19 + $0x548] sm:$0xff] }
 0x168   : > { %21750 = vmatprep.mubr.msk.bf16.mxu1 %vm2232_vm2, %v28616_v57  ;;  %22524 = vmatprep.mubr.msk.bf16.mxu0 %vm2232_vm2, %v28618_v58  ;;  %v28680_v58 = vpack.c.bf16 %v28504_v14, %v28491_v50  ;;  %v28701_v14 = vld [vmem:[%s27833_s19 + $0x560] sm:$0xff]  ;;  %35107 = vst [vmem:[#allocation132_spill] sm:$0xff] %v28750_v36  ;;  %35109 = vst [vmem:[#allocation134_spill] sm:$0xff] %v28771_v22 }
 0x169   : > { %35095 = vst [vmem:[#allocation120_spill] sm:$0xff] %v28648_v13 }
 0x16a   : > { %35098 = vst [vmem:[#allocation123_spill] sm:$0xff] %v28680_v58 }
 0x16f   : > { %21751 = vmatmul.mubr.msk.bf16.gmra.mrb[80].mxu1 %vm2232_vm2, %v28642_v48  ;;  %22525 = vmatmul.mubr.msk.bf16.gmra.mrb[80].mxu0 %vm2232_vm2, %v28644_v31  ;;  %v28676_v31 = vpack.c.bf16 %v28672_v38, %v28665_v1 }
 0x170   : > { %21754 = vmatprep.mubr.msk.bf16.mxu1 %vm2232_vm2, %v28648_v13  ;;  %22702 = vmatprep.mubr.msk.bf16.mxu0 %vm2232_vm2, %v27911_v63  ;;  %v28683_v13 = vpack.c.bf16 %v1742_v53, %v28507_v35  ;;  %v28692_v63 = vld [vmem:[%s27833_s19 + $0x550] sm:$0xff]  ;;  %v28708_v35 = vld [vmem:[%s27833_s19 + $0x568] sm:$0xff]  ;;  %v28715_v53 = vpack.c.bf16 %v1744_v24, %v28545_v43 }
 0x171   : > { %35097 = vst [vmem:[#allocation122_spill] sm:$0xff] %v28676_v31  ;;  %v28695_v31 = vld [vmem:[%s27833_s19 + $0x558] sm:$0xff]  ;;  %v28712_v50 = vpack.c.bf16 %v28708_v35, %v28701_v14 }
 0x172   : > { %35099 = vst [vmem:[#allocation124_spill] sm:$0xff] %v28683_v13  ;;  %35102 = vst [vmem:[#allocation127_spill] sm:$0xff] %v28715_v53 }
 0x173   : > { %35101 = vst [vmem:[#allocation126_spill] sm:$0xff] %v28712_v50  ;;  %v28730_v50 = vld [vmem:[%s27833_s19 + $0x578] sm:$0xff] }
 0x177   : > { %21755 = vmatmul.mubr.msk.bf16.gmra.mrb[84].mxu1 %vm2232_vm2, %v28680_v58  ;;  %22703 = vmatmul.mubr.msk.bf16.vlgmr.msra.gmra.mrb[0].mxu0 %vm2232_vm2, %v27929_v6  ;;  %v28705_v6 = vpack.c.bf16 %v28695_v31, %v28692_v63 }
 0x178   : > { %21758 = vmatprep.mubr.msk.bf16.mxu1 %vm2232_vm2, %v28683_v13  ;;  %22959 = vmatpush3.bf16.msra.mxu0 %v27982_v28  ;;  %v28717_v28 = vpack.c.bf16 %v1746_v19, %v1745_v0  ;;  %v28735_v0 = vld [vmem:[%s27833_s19 + $0x580] sm:$0xff] }
 0x179   : > { %22706 = vmatprep.mubr.msk.bf16.mxu0 %vm2232_vm2, %v27933_v9  ;;  %35100 = vst [vmem:[#allocation125_spill] sm:$0xff] %v28705_v6  ;;  %v1748_v9 = vld [vmem:[%s27833_s19 + $0x350] sm:$0xff] }
 0x17a   : > { %35103 = vst [vmem:[#allocation128_spill] sm:$0xff] %v28717_v28  ;;  %v28727_v6 = vld [vmem:[%s27833_s19 + $0x570] sm:$0xff]  ;;  %v28748_v19 = vpack.c.bf16 %v1748_v9, %v1747_v8  ;;  %v28764_v8 = vld [vmem:[%s27833_s19 + $0x5b8] sm:$0xff]  ;;  %v28807_v9 = vpack.c.bf16 %v28127_v15, %v28089_v2  ;;  %v28823_v2 = vld [vmem:[%s27833_s19 + $0x5e8] sm:$0xff] }
 0x17b   : > { %v28739_v24 = vpack.c.bf16 %v28730_v50, %v28727_v6 }
 0x17c   : > { %35106 = vst [vmem:[#allocation131_spill] sm:$0xff] %v28748_v19  ;;  %35113 = vst [vmem:[#allocation138_spill] sm:$0xff] %v28807_v9 }
 0x17d   : > { %35104 = vst [vmem:[#allocation129_spill] sm:$0xff] %v28739_v24  ;;  %v35132_v24 = vld [vmem:[#allocation64_spill] sm:$0xff] }
 0x17f   : > { %21759 = vmatmul.mubr.msk.bf16.gmra.mrb[88].mxu1 %vm2232_vm2, %v28715_v53  ;;  %22707 = vmatmul.mubr.msk.bf16.gmra.mrb[4].mxu0 %vm2232_vm2, %v27951_v16  ;;  %v28742_v16 = vld [vmem:[%s27833_s19 + $0x588] sm:$0xff] }
 0x180   : > { %21762 = vmatprep.mubr.msk.bf16.mxu1 %vm2232_vm2, %v28717_v28  ;;  %22710 = vmatprep.mubr.msk.bf16.mxu0 %vm2232_vm2, %v27956_v18  ;;  %v28746_v43 = vpack.c.bf16 %v28742_v16, %v28735_v0  ;;  %v28761_v18 = vld [vmem:[%s27833_s19 + $0x5b0] sm:$0xff] }
 0x181   : > { %v28768_v56 = vpack.c.bf16 %v28764_v8, %v28761_v18 }
 0x182   : > { %35105 = vst [vmem:[#allocation130_spill] sm:$0xff] %v28746_v43 }
 0x183   : > { %35108 = vst [vmem:[#allocation133_spill] sm:$0xff] %v28768_v56  ;;  %v28811_v56 = vpack.c.bf16 %v28135_v11, %v28130_v21  ;;  %v28828_v11 = vld [vmem:[%s27833_s19 + $0x5f0] sm:$0xff]  ;;  %v28835_v21 = vld [vmem:[%s27833_s19 + $0x5f8] sm:$0xff] }
 0x185   : > { %35114 = vst [vmem:[#allocation139_spill] sm:$0xff] %v28811_v56 }
 0x187   : > { %21763 = vmatmul.mubr.msk.bf16.gmra.mrb[92].mxu1 %vm2232_vm2, %v28748_v19  ;;  %22711 = vmatmul.mubr.msk.bf16.gmra.mrb[8].mxu0 %vm2232_vm2, %v27984_v29  ;;  %v28775_v29 = vpack.c.bf16 %v28082_v61, %v28077_v60  ;;  %v28792_v60 = vld [vmem:[%s27833_s19 + $0x5d0] sm:$0xff] }
 0x188   : > { %21766 = vmatprep.mubr.msk.bf16.mxu1 %vm2232_vm2, %v28750_v36  ;;  %22714 = vmatprep.mubr.msk.bf16.mxu0 %vm2232_vm2, %v27990_v32  ;;  %v28784_v32 = vld [vmem:[%s27833_s19 + $0x5c0] sm:$0xff] }
 0x189   : > { %35110 = vst [vmem:[#allocation135_spill] sm:$0xff] %v28775_v29  ;;  %v28796_v61 = vpack.c.bf16 %v28787_v59, %v28784_v32 }
 0x18b   : > { %35111 = vst [vmem:[#allocation136_spill] sm:$0xff] %v28796_v61 }
 0x18f   : > { %21767 = vmatmul.mubr.msk.bf16.gmra.mrb[96].mxu1 %vm2232_vm2, %v28771_v22  ;;  %22715 = vmatmul.mubr.msk.bf16.gmra.mrb[12].mxu0 %vm2232_vm2, %v28013_v39  ;;  %v28803_v39 = vpack.c.bf16 %v28799_v10, %v28792_v60 }
 0x190   : > { %21770 = vmatprep.mubr.msk.bf16.mxu1 %vm2232_vm2, %v28775_v29  ;;  %22718 = vmatprep.mubr.msk.bf16.mxu0 %vm2232_vm2, %v28018_v42  ;;  %v28820_v42 = vld [vmem:[%s27833_s19 + $0x5e0] sm:$0xff] }
 0x191   : > { %35112 = vst [vmem:[#allocation137_spill] sm:$0xff] %v28803_v39  ;;  %v28832_v15 = vpack.c.bf16 %v28823_v2, %v28820_v42  ;;  %v28843_v39 = vpack.c.bf16 %v28174_v23, %v28142_v62  ;;  %v28860_v62 = vld [vmem:[%s27833_s19 + $0x608] sm:$0xff]  ;;  %v28868_v23 = vld [vmem:[%s27833_s19 + $0x610] sm:$0xff] }
 0x193   : > { %35115 = vst [vmem:[#allocation140_spill] sm:$0xff] %v28832_v15  ;;  %35117 = vst [vmem:[#allocation142_spill] sm:$0xff] %v28843_v39  ;;  %v1766_v15 = vld [vmem:[%s27833_s19 + $0x3e0] sm:$0xff] }
 0x194   : > { %v28882_v43 = vpack.c.bf16 %v1766_v15, %v28192_v40  ;;  %v28897_v40 = vld [vmem:[%s27833_s19 + $0x640] sm:$0xff]  ;;  %v28900_v15 = vld [vmem:[%s27833_s19 + $0x648] sm:$0xff] }
 0x196   : > { %35122 = vst [vmem:[#allocation147_spill] sm:$0xff] %v28882_v43 }
 0x197   : > { %21771 = vmatmul.mubr.msk.bf16.gmra.mrb[100].mxu1 %vm2232_vm2, %v28807_v9  ;;  %22719 = vmatmul.mubr.msk.bf16.gmra.mrb[16].mxu0 %vm2232_vm2, %v28043_v49  ;;  %v28839_v49 = vpack.c.bf16 %v28835_v21, %v28828_v11 }
 0x198   : > { %21774 = vmatprep.mubr.msk.bf16.mxu1 %vm2232_vm2, %v28811_v56  ;;  %22722 = vmatprep.mubr.msk.bf16.mxu0 %vm2232_vm2, %v28049_v51  ;;  %v28847_v51 = vpack.c.bf16 %v28185_v44, %v28177_v26  ;;  %v28865_v44 = vld [vmem:[%s27833_s19 + $0x3f8] sm:$0xff] }
 0x199   : > { %35116 = vst [vmem:[#allocation141_spill] sm:$0xff] %v28839_v49  ;;  %v28857_v49 = vld [vmem:[%s27833_s19 + $0x600] sm:$0xff]  ;;  %35119 = vst [vmem:[#allocation144_spill] sm:$0xff] %v28865_v44 }
 0x19a   : > { %35118 = vst [vmem:[#allocation143_spill] sm:$0xff] %v28847_v51  ;;  %v28872_v26 = vpack.c.bf16 %v28860_v62, %v28857_v49 }
 0x19c   : > { %35120 = vst [vmem:[#allocation145_spill] sm:$0xff] %v28872_v26 }
 0x19f   : > { %21775 = vmatmul.mubr.msk.bf16.gmra.mrb[104].mxu1 %vm2232_vm2, %v28843_v39  ;;  %22723 = vmatmul.mubr.msk.bf16.gmra.mrb[20].mxu0 %vm2232_vm2, %v28096_v4  ;;  %v28875_v4 = vld [vmem:[%s27833_s19 + $0x618] sm:$0xff] }
 0x1a0   : > { %21778 = vmatprep.mubr.msk.bf16.mxu1 %vm2232_vm2, %v28847_v51  ;;  %22726 = vmatprep.mubr.msk.bf16.mxu0 %vm2232_vm2, %v28102_v12  ;;  %v28879_v61 = vpack.c.bf16 %v28875_v4, %v28868_v23  ;;  %v28886_v12 = vpack.c.bf16 %v28231_v33, %v28865_v44  ;;  %v28904_v33 = vpack.c.bf16 %v28900_v15, %v28897_v40  ;;  %v35133_v44 = vld [vmem:[#allocation65_spill] sm:$0xff] }
 0x1a2   : > { %35121 = vst [vmem:[#allocation146_spill] sm:$0xff] %v28879_v61  ;;  %35123 = vst [vmem:[#allocation148_spill] sm:$0xff] %v28886_v12  ;;  %v28908_v61 = vpack.c.bf16 %v28272_v47, %v28234_v45  ;;  %v28924_v45 = vld [vmem:[%s27833_s19 + $0x658] sm:$0xff] }
 0x1a3   : > { %35124 = vst [vmem:[#allocation149_spill] sm:$0xff] %v28904_v33  ;;  %v35130_v33 = vld [vmem:[#allocation63_spill] sm:$0xff] }
 0x1a4   : > { %35125 = vst [vmem:[#allocation150_spill] sm:$0xff] %v28908_v61  ;;  %v28944_v26 = vpack.c.bf16 %v35130_v33, %v28290_v55  ;;  %v28960_v55 = vld [vmem:[%s27833_s19 + $0x678] sm:$0xff]  ;;  %v35138_v33 = vld [vmem:[#allocation55_spill] sm:$0xff] }
 0x1a5   : > { %35137 = vst [vmem:[#allocation155_spill] sm:$0xff] %v28960_v55 }
 0x1a6   : > { %35131 = vst [vmem:[#allocation63_spill] sm:$0xff] %v28944_v26 }
 0x1a7   : > { %21779 = vmatmul.mubr.msk.bf16.gmra.mrb[108].mxu1 %vm2232_vm2, %v28882_v43  ;;  %22727 = vmatmul.mubr.msk.bf16.gmra.mrb[24].mxu0 %vm2232_vm2, %v28150_v52  ;;  %v28912_v52 = vpack.c.bf16 %v28283_v54, %v28275_v17  ;;  %v28929_v17 = vld [vmem:[%s27833_s19 + $0x660] sm:$0xff]  ;;  %v28936_v54 = vld [vmem:[%s27833_s19 + $0x668] sm:$0xff]  ;;  %v35149_v43 = vld [vmem:[#allocation59_spill] sm:$0xff] }
 0x1a8   : > { %21782 = vmatprep.mubr.msk.bf16.mxu1 %vm2232_vm2, %v28886_v12  ;;  %22730 = vmatprep.mubr.msk.bf16.mxu0 %vm2232_vm2, %v28157_v3  ;;  %v28921_v3 = vld [vmem:[%s27833_s19 + $0x650] sm:$0xff]  ;;  %35128 = vst [vmem:[#allocation153_spill] sm:$0xff] %v28936_v54 }
 0x1a9   : > { %35126 = vst [vmem:[#allocation151_spill] sm:$0xff] %v28912_v52  ;;  %v28933_v47 = vpack.c.bf16 %v28924_v45, %v28921_v3  ;;  %v35147_v12 = vld [vmem:[#allocation75_spill] sm:$0xff] }
 0x1ab   : > { %35127 = vst [vmem:[#allocation152_spill] sm:$0xff] %v28933_v47 }
 0x1af   : > { %21783 = vmatmul.mubr.msk.bf16.gmra.mrb[112].mxu1 %vm2232_vm2, %v28908_v61  ;;  %22731 = vmatmul.mubr.msk.bf16.gmra.mrb[28].mxu0 %vm2232_vm2, %v28203_v20  ;;  %v28940_v20 = vpack.c.bf16 %v28936_v54, %v28929_v17  ;;  %v35146_v54 = vld [vmem:[#allocation74_spill] sm:$0xff] }
 0x1b0   : > { %21786 = vmatprep.mubr.msk.bf16.mxu1 %vm2232_vm2, %v28912_v52  ;;  %22734 = vmatprep.mubr.msk.bf16.mxu0 %vm2232_vm2, %v28211_v27  ;;  %v28948_v52 = vpack.c.bf16 %v35133_v44, %v35132_v24  ;;  %v35135_v27 = vld [vmem:[#allocation53_spill] sm:$0xff] }
 0x1b1   : > { %35129 = vst [vmem:[#allocation154_spill] sm:$0xff] %v28940_v20  ;;  %v28957_v20 = vld [vmem:[%s27833_s19 + $0x670] sm:$0xff]  ;;  %v28965_v24 = vld [vmem:[%s27833_s19 + $0x680] sm:$0xff] }
 0x1b2   : > { %35134 = vst [vmem:[#allocation64_spill] sm:$0xff] %v28948_v52  ;;  %35136 = vst [vmem:[#allocation65_spill] sm:$0xff] %v28957_v20  ;;  %v28969_v44 = vpack.c.bf16 %v28960_v55, %v28957_v20 }
 0x1b3   : > { %35139 = vst [vmem:[#allocation156_spill] sm:$0xff] %v28965_v24 }
 0x1b4   : > { %35140 = vst [vmem:[#allocation157_spill] sm:$0xff] %v28969_v44  ;;  %v1784_v44 = vld [vmem:[%s27833_s19 + $0x470] sm:$0xff] }
 0x1b7   : > { %21787 = vmatmul.mubr.msk.bf16.gmra.mrb[116].mxu1 %vm2232_vm2, %v28944_v26  ;;  %22735 = vmatmul.mubr.msk.bf16.gmra.mrb[32].mxu0 %vm2232_vm2, %v35135_v27  ;;  %v28972_v27 = vld [vmem:[%s27833_s19 + $0x688] sm:$0xff]  ;;  %v35144_v26 = vld [vmem:[#allocation73_spill] sm:$0xff] }
 0x1b8   : > { %21790 = vmatprep.mubr.msk.bf16.mxu1 %vm2232_vm2, %v28948_v52  ;;  %22738 = vmatprep.mubr.msk.bf16.mxu0 %vm2232_vm2, %v35138_v33  ;;  %35141 = vst [vmem:[#allocation158_spill] sm:$0xff] %v28972_v27  ;;  %v28976_v47 = vpack.c.bf16 %v28972_v27, %v28965_v24  ;;  %v35143_v52 = vld [vmem:[#allocation67_spill] sm:$0xff]  ;;  %v28984_v33 = vpack.c.bf16 %v35147_v12, %v35146_v54  ;;  %v29002_v12 = vld [vmem:[%s27833_s19 + $0x488] sm:$0xff]  ;;  %v29005_v54 = vld [vmem:[%s27833_s19 + $0x6a0] sm:$0xff] }
 0x1b9   : > { %v28980_v61 = vpack.c.bf16 %v35144_v26, %v35143_v52  ;;  %v28997_v52 = vld [vmem:[%s27833_s19 + $0x698] sm:$0xff]  ;;  %v35152_v26 = vld [vmem:[#allocation61_spill] sm:$0xff]  ;;  %35153 = vst [vmem:[#allocation160_spill] sm:$0xff] %v29002_v12  ;;  %35154 = vst [vmem:[#allocation161_spill] sm:$0xff] %v29005_v54 }
 0x1ba   : > { %35142 = vst [vmem:[#allocation159_spill] sm:$0xff] %v28976_v47  ;;  %35148 = vst [vmem:[#allocation73_spill] sm:$0xff] %v28984_v33  ;;  %v28994_v47 = vld [vmem:[%s27833_s19 + $0x690] sm:$0xff]  ;;  %v35158_v27 = vld [vmem:[#allocation77_spill] sm:$0xff] }
 0x1bb   : > { %35145 = vst [vmem:[#allocation67_spill] sm:$0xff] %v28980_v61  ;;  %35150 = vst [vmem:[#allocation74_spill] sm:$0xff] %v28994_v47  ;;  %v29019_v24 = vpack.c.bf16 %v1784_v44, %v35158_v27  ;;  %v29034_v27 = vld [vmem:[%s27833_s19 + $0x6d0] sm:$0xff]  ;;  %v29037_v44 = vld [vmem:[%s27833_s19 + $0x6d8] sm:$0xff] }
 0x1bc   : > { %35151 = vst [vmem:[#allocation75_spill] sm:$0xff] %v28997_v52  ;;  %35164 = vst [vmem:[#allocation165_spill] sm:$0xff] %v29034_v27 }
 0x1bd   : > { %35159 = vst [vmem:[#allocation77_spill] sm:$0xff] %v29019_v24  ;;  %35165 = vst [vmem:[#allocation166_spill] sm:$0xff] %v29037_v44 }
 0x1bf   : > { %21791 = vmatmul.mubr.msk.bf16.gmra.mrb[120].mxu1 %vm2232_vm2, %v28980_v61  ;;  %22739 = vmatmul.mubr.msk.bf16.gmra.mrb[36].mxu0 %vm2232_vm2, %v35149_v43  ;;  %v29009_v43 = vpack.c.bf16 %v28997_v52, %v28994_v47  ;;  %v29012_v61 = vld [vmem:[%s27833_s19 + $0x6a8] sm:$0xff] }
 0x1c0   : > { %21794 = vmatprep.mubr.msk.bf16.mxu1 %vm2232_vm2, %v28984_v33  ;;  %22742 = vmatprep.mubr.msk.bf16.mxu0 %vm2232_vm2, %v35152_v26  ;;  %35156 = vst [vmem:[#allocation163_spill] sm:$0xff] %v29012_v61  ;;  %v29016_v33 = vpack.c.bf16 %v29012_v61, %v29005_v54  ;;  %v35160_v26 = vld [vmem:[#allocation83_spill] sm:$0xff]  ;;  %v35171_v54 = vld [vmem:[#allocation92_spill] sm:$0xff]  ;;  %v35183_v47 = vld [vmem:[#allocation102_spill] sm:$0xff] }
 0x1c1   : > { %35155 = vst [vmem:[#allocation162_spill] sm:$0xff] %v29009_v43  ;;  %v29023_v55 = vpack.c.bf16 %v35160_v26, %v29002_v12  ;;  %v35162_v43 = vld [vmem:[#allocation69_spill] sm:$0xff]  ;;  %v29041_v26 = vpack.c.bf16 %v29037_v44, %v29034_v27  ;;  %v35167_v12 = vld [vmem:[#allocation84_spill] sm:$0xff] }
 0x1c2   : > { %35157 = vst [vmem:[#allocation164_spill] sm:$0xff] %v29016_v33  ;;  %v35163_v33 = vld [vmem:[#allocation71_spill] sm:$0xff]  ;;  %v35182_v27 = vld [vmem:[#allocation101_spill] sm:$0xff] }
 0x1c3   : > { %35161 = vst [vmem:[#allocation83_spill] sm:$0xff] %v29023_v55  ;;  %35166 = vst [vmem:[#allocation167_spill] sm:$0xff] %v29041_v26  ;;  %v29058_v26 = vld [vmem:[%s27833_s19 + $0x6e0] sm:$0xff]  ;;  %v29085_v20 = vpack.c.bf16 %v35183_v47, %v35182_v27  ;;  %v29102_v47 = vld [vmem:[%s27833_s19 + $0x710] sm:$0xff] }
 0x1c7   : > { %21795 = vmatmul.mubr.msk.bf16.gmra.mrb[124].mxu1 %vm2232_vm2, %v29019_v24  ;;  %22743 = vmatmul.mubr.msk.bf16.gmra.mrb[40].mxu0 %vm2232_vm2, %v35162_v43  ;;  %v35168_v24 = vld [vmem:[#allocation90_spill] sm:$0xff]  ;;  %v35170_v43 = vld [vmem:[#allocation91_spill] sm:$0xff] }
 0x1c8   : > { %21798 = vmatprep.mubr.msk.bf16.mxu1 %vm2232_vm2, %v29023_v55  ;;  %22746 = vmatprep.mubr.msk.bf16.mxu0 %vm2232_vm2, %v35163_v33  ;;  %v29045_v61 = vpack.c.bf16 %v35168_v24, %v35167_v12  ;;  %v29049_v52 = vpack.c.bf16 %v35171_v54, %v35170_v43  ;;  %v35173_v33 = vld [vmem:[#allocation79_spill] sm:$0xff]  ;;  %v29061_v24 = vld [vmem:[%s27833_s19 + $0x6e8] sm:$0xff]  ;;  %v35174_v12 = vld [vmem:[#allocation81_spill] sm:$0xff] }
 0x1c9   : > { %v29066_v43 = vld [vmem:[%s27833_s19 + $0x6f0] sm:$0xff]  ;;  %v29070_v54 = vpack.c.bf16 %v29061_v24, %v29058_v26  ;;  %v35180_v55 = vld [vmem:[#allocation100_spill] sm:$0xff] }
 0x1ca   : > { %35169 = vst [vmem:[#allocation84_spill] sm:$0xff] %v29045_v61  ;;  %35172 = vst [vmem:[#allocation90_spill] sm:$0xff] %v29049_v52 }
 0x1cb   : > { %35175 = vst [vmem:[#allocation91_spill] sm:$0xff] %v29066_v43  ;;  %35176 = vst [vmem:[#allocation92_spill] sm:$0xff] %v29070_v54 }
 0x1cc   : > { %35184 = vst [vmem:[#allocation100_spill] sm:$0xff] %v29085_v20 }
 0x1cf   : > { %21799 = vmatmul.mubr.msk.bf16.gmra.mrb[128].mxu1 %vm2232_vm2, %v29045_v61  ;;  %22747 = vmatmul.mubr.msk.bf16.gmra.mrb[44].mxu0 %vm2232_vm2, %v35173_v33  ;;  %v29073_v61 = vld [vmem:[%s27833_s19 + $0x6f8] sm:$0xff] }
 0x1d0   : > { %21802 = vmatprep.mubr.msk.bf16.mxu1 %vm2232_vm2, %v29049_v52  ;;  %22750 = vmatprep.mubr.msk.bf16.mxu0 %vm2232_vm2, %v35174_v12  ;;  %35177 = vst [vmem:[#allocation168_spill] sm:$0xff] %v29073_v61  ;;  %v29077_v33 = vpack.c.bf16 %v29073_v61, %v29066_v43  ;;  %v35179_v52 = vld [vmem:[#allocation94_spill] sm:$0xff]  ;;  %v35194_v43 = vld [vmem:[#allocation96_spill] sm:$0xff] }
 0x1d1   : > { %v29081_v44 = vpack.c.bf16 %v35180_v55, %v35179_v52  ;;  %v35185_v12 = vld [vmem:[#allocation86_spill] sm:$0xff]  ;;  %v35186_v52 = vld [vmem:[#allocation88_spill] sm:$0xff] }
 0x1d2   : > { %35178 = vst [vmem:[#allocation169_spill] sm:$0xff] %v29077_v33  ;;  %v29094_v33 = vld [vmem:[%s27833_s19 + $0x700] sm:$0xff]  ;;  %v29097_v55 = vld [vmem:[%s27833_s19 + $0x708] sm:$0xff] }
 0x1d3   : > { %35181 = vst [vmem:[#allocation94_spill] sm:$0xff] %v29081_v44  ;;  %v29106_v27 = vpack.c.bf16 %v29097_v55, %v29094_v33  ;;  %v35192_v61 = vld [vmem:[#allocation110_spill] sm:$0xff] }
 0x1d5   : > { %35187 = vst [vmem:[#allocation101_spill] sm:$0xff] %v29106_v27  ;;  %v1802_v27 = vld [vmem:[%s27833_s19 + $0x500] sm:$0xff] }
 0x1d7   : > { %21803 = vmatmul.mubr.msk.bf16.gmra.mrb[132].mxu1 %vm2232_vm2, %v29081_v44  ;;  %22751 = vmatmul.mubr.msk.bf16.gmra.mrb[48].mxu0 %vm2232_vm2, %v35185_v12  ;;  %v29109_v12 = vld [vmem:[%s27833_s19 + $0x718] sm:$0xff] }
 0x1d8   : > { %21806 = vmatprep.mubr.msk.bf16.mxu1 %vm2232_vm2, %v29085_v20  ;;  %22754 = vmatprep.mubr.msk.bf16.mxu0 %vm2232_vm2, %v35186_v52  ;;  %35188 = vst [vmem:[#allocation102_spill] sm:$0xff] %v29109_v12  ;;  %v29113_v54 = vpack.c.bf16 %v29109_v12, %v29102_v47  ;;  %v35190_v20 = vld [vmem:[#allocation104_spill] sm:$0xff]  ;;  %v29121_v52 = vpack.c.bf16 %v28594_v37, %v35192_v61  ;;  %v29142_v61 = vld [vmem:[%s27833_s19 + $0x730] sm:$0xff] }
 0x1d9   : > { %v29117_v44 = vpack.c.bf16 %v28585_v34, %v35190_v20  ;;  %v29134_v20 = vld [vmem:[%s27833_s19 + $0x728] sm:$0xff]  ;;  %v29139_v37 = vld [vmem:[%s27833_s19 + $0x518] sm:$0xff]  ;;  %v29156_v12 = vpack.c.bf16 %v1802_v27, %v28601_v7  ;;  %v29171_v7 = vld [vmem:[%s27833_s19 + $0x760] sm:$0xff] }
 0x1da   : > { %35189 = vst [vmem:[#allocation170_spill] sm:$0xff] %v29113_v54  ;;  %35193 = vst [vmem:[#allocation110_spill] sm:$0xff] %v29121_v52  ;;  %v29131_v54 = vld [vmem:[%s27833_s19 + $0x720] sm:$0xff]  ;;  %v35195_v34 = vld [vmem:[#allocation98_spill] sm:$0xff] }
 0x1db   : > { %35191 = vst [vmem:[#allocation104_spill] sm:$0xff] %v29117_v44  ;;  %35196 = vst [vmem:[#allocation171_spill] sm:$0xff] %v29139_v37  ;;  %v29174_v27 = vld [vmem:[%s27833_s19 + $0x768] sm:$0xff] }
 0x1dc   : > { %35199 = vst [vmem:[#allocation174_spill] sm:$0xff] %v29156_v12 }
 0x1df   : > { %21807 = vmatmul.mubr.msk.bf16.gmra.mrb[136].mxu1 %vm2232_vm2, %v29117_v44  ;;  %22755 = vmatmul.mubr.msk.bf16.gmra.mrb[52].mxu0 %vm2232_vm2, %v35194_v43  ;;  %v29146_v43 = vpack.c.bf16 %v29134_v20, %v29131_v54  ;;  %v29149_v44 = vld [vmem:[%s27833_s19 + $0x738] sm:$0xff] }
 0x1e0   : > { %21810 = vmatprep.mubr.msk.bf16.mxu1 %vm2232_vm2, %v29121_v52  ;;  %22758 = vmatprep.mubr.msk.bf16.mxu0 %vm2232_vm2, %v35195_v34  ;;  %v29153_v52 = vpack.c.bf16 %v29149_v44, %v29142_v61  ;;  %v29160_v34 = vpack.c.bf16 %v28631_v25, %v29139_v37  ;;  %v29178_v25 = vpack.c.bf16 %v29174_v27, %v29171_v7 }
 0x1e1   : > { %35197 = vst [vmem:[#allocation172_spill] sm:$0xff] %v29146_v43  ;;  %v35201_v43 = vld [vmem:[#allocation106_spill] sm:$0xff]  ;;  %v29182_v37 = vpack.c.bf16 %v28657_v46, %v28634_v5  ;;  %v29198_v5 = vld [vmem:[%s27833_s19 + $0x778] sm:$0xff]  ;;  %v29203_v46 = vld [vmem:[%s27833_s19 + $0x780] sm:$0xff] }
 0x1e2   : > { %35198 = vst [vmem:[#allocation173_spill] sm:$0xff] %v29153_v52  ;;  %35200 = vst [vmem:[#allocation175_spill] sm:$0xff] %v29160_v34  ;;  %v35202_v52 = vld [vmem:[#allocation108_spill] sm:$0xff] }
 0x1e3   : > { %35203 = vst [vmem:[#allocation176_spill] sm:$0xff] %v29178_v25  ;;  %35204 = vst [vmem:[#allocation177_spill] sm:$0xff] %v29182_v37  ;;  %v29218_v25 = vpack.c.bf16 %v28692_v63, %v28672_v38  ;;  %v29234_v38 = vld [vmem:[%s27833_s19 + $0x798] sm:$0xff] }
 0x1e4   : > { %v35210_v63 = vld [vmem:[#allocation120_spill] sm:$0xff] }
 0x1e5   : > { %35208 = vst [vmem:[#allocation181_spill] sm:$0xff] %v29218_v25 }
 0x1e7   : > { %21811 = vmatmul.mubr.msk.bf16.gmra.mrb[140].mxu1 %vm2232_vm2, %v29156_v12  ;;  %22759 = vmatmul.mubr.msk.bf16.gmra.mrb[56].mxu0 %vm2232_vm2, %v35201_v43  ;;  %v29186_v43 = vpack.c.bf16 %v28665_v1, %v28660_v30  ;;  %v29210_v1 = vld [vmem:[%s27833_s19 + $0x788] sm:$0xff] }
 0x1e8   : > { %21814 = vmatprep.mubr.msk.bf16.mxu1 %vm2232_vm2, %v29160_v34  ;;  %22762 = vmatprep.mubr.msk.bf16.mxu0 %vm2232_vm2, %v35202_v52  ;;  %v29195_v52 = vld [vmem:[%s27833_s19 + $0x770] sm:$0xff] }
 0x1e9   : > { %35205 = vst [vmem:[#allocation178_spill] sm:$0xff] %v29186_v43  ;;  %v29207_v30 = vpack.c.bf16 %v29198_v5, %v29195_v52 }
 0x1eb   : > { %35206 = vst [vmem:[#allocation179_spill] sm:$0xff] %v29207_v30  ;;  %v29254_v30 = vpack.c.bf16 %v28727_v6, %v28708_v35  ;;  %v29271_v6 = vld [vmem:[%s27833_s19 + $0x7b8] sm:$0xff]  ;;  %v29276_v35 = vld [vmem:[%s27833_s19 + $0x5a8] sm:$0xff] }
 0x1ec   : > { %35215 = vst [vmem:[#allocation187_spill] sm:$0xff] %v29276_v35 }
 0x1ed   : > { %35213 = vst [vmem:[#allocation185_spill] sm:$0xff] %v29254_v30 }
 0x1ef   : > { %21815 = vmatmul.mubr.msk.bf16.gmra.mrb[144].mxu1 %vm2232_vm2, %v29182_v37  ;;  %22763 = vmatmul.mubr.msk.bf16.gmra.mrb[60].mxu0 %vm2232_vm2, %v28610_v41  ;;  %v29214_v41 = vpack.c.bf16 %v29210_v1, %v29203_v46 }
 0x1f0   : > { %21818 = vmatprep.mubr.msk.bf16.mxu1 %vm2232_vm2, %v29186_v43  ;;  %22766 = vmatprep.mubr.msk.bf16.mxu0 %vm2232_vm2, %v28616_v57  ;;  %v29222_v43 = vpack.c.bf16 %v28701_v14, %v28695_v31  ;;  %v29231_v57 = vld [vmem:[%s27833_s19 + $0x790] sm:$0xff]  ;;  %v29239_v31 = vld [vmem:[%s27833_s19 + $0x7a0] sm:$0xff] }
 0x1f1   : > { %35207 = vst [vmem:[#allocation180_spill] sm:$0xff] %v29214_v41  ;;  %v29243_v14 = vpack.c.bf16 %v29234_v38, %v29231_v57 }
 0x1f2   : > { %35209 = vst [vmem:[#allocation182_spill] sm:$0xff] %v29222_v43 }
 0x1f3   : > { %35211 = vst [vmem:[#allocation183_spill] sm:$0xff] %v29243_v14  ;;  %v1820_v14 = vld [vmem:[%s27833_s19 + $0x590] sm:$0xff] }
 0x1f7   : > { %21819 = vmatmul.mubr.msk.bf16.gmra.mrb[148].mxu1 %vm2232_vm2, %v29218_v25  ;;  %22767 = vmatmul.mubr.msk.bf16.gmra.mrb[64].mxu0 %vm2232_vm2, %v28642_v48  ;;  %v29246_v48 = vld [vmem:[%s27833_s19 + $0x7a8] sm:$0xff] }
 0x1f8   : > { %21822 = vmatprep.mubr.msk.bf16.mxu1 %vm2232_vm2, %v29222_v43  ;;  %22770 = vmatprep.mubr.msk.bf16.mxu0 %vm2232_vm2, %v35210_v63  ;;  %v29250_v41 = vpack.c.bf16 %v29246_v48, %v29239_v31  ;;  %v29258_v63 = vpack.c.bf16 %v28735_v0, %v28730_v50  ;;  %v29279_v50 = vld [vmem:[%s27833_s19 + $0x7c0] sm:$0xff] }
 0x1fa   : > { %35212 = vst [vmem:[#allocation184_spill] sm:$0xff] %v29250_v41  ;;  %35214 = vst [vmem:[#allocation186_spill] sm:$0xff] %v29258_v63  ;;  %v29268_v41 = vld [vmem:[%s27833_s19 + $0x7b0] sm:$0xff] }
 0x1fb   : > { %v29283_v0 = vpack.c.bf16 %v29271_v6, %v29268_v41 }
 0x1fd   : > { %35216 = vst [vmem:[#allocation188_spill] sm:$0xff] %v29283_v0  ;;  %v29359_v0 = vpack.c.bf16 %v28828_v11, %v28823_v2  ;;  %v29383_v11 = vld [vmem:[%s27833_s19 + $0x838] sm:$0xff] }
 0x1ff   : > { %21823 = vmatmul.mubr.msk.bf16.gmra.mrb[152].mxu1 %vm2232_vm2, %v29254_v30  ;;  %22771 = vmatmul.mubr.msk.bf16.gmra.mrb[68].mxu0 %vm2232_vm2, %v28680_v58  ;;  %v29286_v58 = vld [vmem:[%s27833_s19 + $0x7c8] sm:$0xff]  ;;  %v29293_v30 = vpack.c.bf16 %v1820_v14, %v28742_v16  ;;  %v29308_v16 = vld [vmem:[%s27833_s19 + $0x7f0] sm:$0xff]  ;;  %v29311_v14 = vld [vmem:[%s27833_s19 + $0x7f8] sm:$0xff]  ;;  %35226 = vst [vmem:[#allocation198_spill] sm:$0xff] %v29359_v0 }
 0x200   : > { %21826 = vmatprep.mubr.msk.bf16.mxu1 %vm2232_vm2, %v29258_v63  ;;  %22774 = vmatprep.mubr.msk.bf16.mxu0 %vm2232_vm2, %v28683_v13  ;;  %v29290_v63 = vpack.c.bf16 %v29286_v58, %v29279_v50  ;;  %v29297_v13 = vpack.c.bf16 %v28761_v18, %v29276_v35  ;;  %v29315_v18 = vpack.c.bf16 %v29311_v14, %v29308_v16 }
 0x201   : > { %35218 = vst [vmem:[#allocation190_spill] sm:$0xff] %v29293_v30 }
 0x202   : > { %35217 = vst [vmem:[#allocation189_spill] sm:$0xff] %v29290_v63  ;;  %35219 = vst [vmem:[#allocation191_spill] sm:$0xff] %v29297_v13  ;;  %v29319_v63 = vpack.c.bf16 %v28784_v32, %v28764_v8  ;;  %v29335_v8 = vld [vmem:[%s27833_s19 + $0x808] sm:$0xff]  ;;  %v29340_v32 = vld [vmem:[%s27833_s19 + $0x810] sm:$0xff] }
 0x203   : > { %35220 = vst [vmem:[#allocation192_spill] sm:$0xff] %v29315_v18  ;;  %v29355_v18 = vpack.c.bf16 %v28820_v42, %v28799_v10  ;;  %v29371_v42 = vld [vmem:[%s27833_s19 + $0x828] sm:$0xff]  ;;  %v29376_v10 = vld [vmem:[%s27833_s19 + $0x830] sm:$0xff] }
 0x204   : > { %35221 = vst [vmem:[#allocation193_spill] sm:$0xff] %v29319_v63 }
 0x205   : > { %35225 = vst [vmem:[#allocation197_spill] sm:$0xff] %v29355_v18 }
 0x207   : > { %21827 = vmatmul.mubr.msk.bf16.gmra.mrb[156].mxu1 %vm2232_vm2, %v29293_v30  ;;  %22775 = vmatmul.mubr.msk.bf16.gmra.mrb[72].mxu0 %vm2232_vm2, %v28715_v53  ;;  %v29323_v53 = vpack.c.bf16 %v28792_v60, %v28787_v59  ;;  %v29347_v60 = vld [vmem:[%s27833_s19 + $0x818] sm:$0xff] }
 0x208   : > { %21830 = vmatprep.mubr.msk.bf16.mxu1 %vm2232_vm2, %v29297_v13  ;;  %22778 = vmatprep.mubr.msk.bf16.mxu0 %vm2232_vm2, %v28717_v28  ;;  %v29332_v28 = vld [vmem:[%s27833_s19 + $0x800] sm:$0xff] }
 0x209   : > { %35222 = vst [vmem:[#allocation194_spill] sm:$0xff] %v29323_v53  ;;  %v29344_v59 = vpack.c.bf16 %v29335_v8, %v29332_v28 }
 0x20b   : > { %35223 = vst [vmem:[#allocation195_spill] sm:$0xff] %v29344_v59 }
 0x20f   : > { %21831 = vmatmul.mubr.msk.bf16.gmra.mrb[160].mxu1 %vm2232_vm2, %v29319_v63  ;;  %22779 = vmatmul.mubr.msk.bf16.gmra.mrb[76].mxu0 %vm2232_vm2, %v28748_v19  ;;  %v29351_v19 = vpack.c.bf16 %v29347_v60, %v29340_v32 }
 0x210   : > { %21834 = vmatprep.mubr.msk.bf16.mxu1 %vm2232_vm2, %v29323_v53  ;;  %22782 = vmatprep.mubr.msk.bf16.mxu0 %vm2232_vm2, %v28750_v36  ;;  %v29368_v36 = vld [vmem:[%s27833_s19 + $0x820] sm:$0xff] }
 0x211   : > { %35224 = vst [vmem:[#allocation196_spill] sm:$0xff] %v29351_v19  ;;  %v29380_v2 = vpack.c.bf16 %v29371_v42, %v29368_v36  ;;  %v29391_v19 = vpack.c.bf16 %v28857_v49, %v28835_v21  ;;  %v29410_v49 = vld [vmem:[%s27833_s19 + $0x848] sm:$0xff]  ;;  %v29415_v21 = vld [vmem:[%s27833_s19 + $0x638] sm:$0xff] }
 0x212   : > { %35232 = vst [vmem:[#allocation204_spill] sm:$0xff] %v29415_v21 }
 0x213   : > { %35227 = vst [vmem:[#allocation199_spill] sm:$0xff] %v29380_v2  ;;  %35229 = vst [vmem:[#allocation201_spill] sm:$0xff] %v29391_v19  ;;  %v29404_v2 = vld [vmem:[%s27833_s19 + $0x620] sm:$0xff] }
 0x214   : > { %35231 = vst [vmem:[#allocation203_spill] sm:$0xff] %v29404_v2  ;;  %v29433_v35 = vpack.c.bf16 %v29404_v2, %v28875_v4  ;;  %v29448_v4 = vld [vmem:[%s27833_s19 + $0x880] sm:$0xff]  ;;  %v29451_v2 = vld [vmem:[%s27833_s19 + $0x888] sm:$0xff] }
 0x215   : > { %35237 = vst [vmem:[#allocation209_spill] sm:$0xff] %v29451_v2 }
 0x216   : > { %35235 = vst [vmem:[#allocation207_spill] sm:$0xff] %v29433_v35 }
 0x217   : > { %21835 = vmatmul.mubr.msk.bf16.gmra.mrb[164].mxu1 %vm2232_vm2, %v29355_v18  ;;  %22783 = vmatmul.mubr.msk.bf16.gmra.mrb[80].mxu0 %vm2232_vm2, %v28771_v22  ;;  %v29387_v22 = vpack.c.bf16 %v29383_v11, %v29376_v10 }
 0x218   : > { %21838 = vmatprep.mubr.msk.bf16.mxu1 %vm2232_vm2, %v29359_v0  ;;  %22786 = vmatprep.mubr.msk.bf16.mxu0 %vm2232_vm2, %v28775_v29  ;;  %v29395_v29 = vpack.c.bf16 %v28868_v23, %v28860_v62  ;;  %v29418_v62 = vld [vmem:[%s27833_s19 + $0x850] sm:$0xff] }
 0x219   : > { %35228 = vst [vmem:[#allocation200_spill] sm:$0xff] %v29387_v22  ;;  %v29407_v22 = vld [vmem:[%s27833_s19 + $0x840] sm:$0xff] }
 0x21a   : > { %35230 = vst [vmem:[#allocation202_spill] sm:$0xff] %v29395_v29  ;;  %v29422_v23 = vpack.c.bf16 %v29410_v49, %v29407_v22 }
 0x21c   : > { %35233 = vst [vmem:[#allocation205_spill] sm:$0xff] %v29422_v23  ;;  %v29487_v23 = vld [vmem:[%s27833_s19 + $0x8a8] sm:$0xff] }
 0x21d   : > { %35247 = vst [vmem:[#allocation217_spill] sm:$0xff] %v29487_v23 }
 0x21f   : > { %21839 = vmatmul.mubr.msk.bf16.gmra.mrb[168].mxu1 %vm2232_vm2, %v29391_v19  ;;  %22787 = vmatmul.mubr.msk.bf16.gmra.mrb[84].mxu0 %vm2232_vm2, %v28807_v9  ;;  %v29425_v9 = vld [vmem:[%s27833_s19 + $0x858] sm:$0xff] }
 0x220   : > { %21842 = vmatprep.mubr.msk.bf16.mxu1 %vm2232_vm2, %v29395_v29  ;;  %22790 = vmatprep.mubr.msk.bf16.mxu0 %vm2232_vm2, %v28811_v56  ;;  %v29429_v59 = vpack.c.bf16 %v29425_v9, %v29418_v62  ;;  %v29437_v56 = vpack.c.bf16 %v28897_v40, %v29415_v21  ;;  %v29455_v40 = vpack.c.bf16 %v29451_v2, %v29448_v4  ;;  %v35249_v21 = vld [vmem:[#allocation153_spill] sm:$0xff] }
 0x222   : > { %35234 = vst [vmem:[#allocation206_spill] sm:$0xff] %v29429_v59  ;;  %35236 = vst [vmem:[#allocation208_spill] sm:$0xff] %v29437_v56  ;;  %v29459_v59 = vpack.c.bf16 %v28921_v3, %v28900_v15  ;;  %v29475_v3 = vld [vmem:[%s27833_s19 + $0x898] sm:$0xff] }
 0x223   : > { %35238 = vst [vmem:[#allocation210_spill] sm:$0xff] %v29455_v40  ;;  %v29472_v40 = vld [vmem:[%s27833_s19 + $0x890] sm:$0xff]  ;;  %35243 = vst [vmem:[#allocation214_spill] sm:$0xff] %v29475_v3  ;;  %v35244_v15 = vld [vmem:[#allocation148_spill] sm:$0xff] }
 0x224   : > { %35239 = vst [vmem:[#allocation211_spill] sm:$0xff] %v29459_v59  ;;  %35242 = vst [vmem:[#allocation213_spill] sm:$0xff] %v29472_v40 }
 0x227   : > { %21843 = vmatmul.mubr.msk.bf16.gmra.mrb[172].mxu1 %vm2232_vm2, %v29433_v35  ;;  %22791 = vmatmul.mubr.msk.bf16.gmra.mrb[88].mxu0 %vm2232_vm2, %v28843_v39  ;;  %v29463_v39 = vpack.c.bf16 %v28929_v17, %v28924_v45  ;;  %v29480_v45 = vld [vmem:[%s27833_s19 + $0x8a0] sm:$0xff]  ;;  %v29484_v17 = vpack.c.bf16 %v29475_v3, %v29472_v40  ;;  %v35253_v35 = vld [vmem:[#allocation156_spill] sm:$0xff]  ;;  %v35269_v40 = vld [vmem:[#allocation63_spill] sm:$0xff] }
 0x228   : > { %21846 = vmatprep.mubr.msk.bf16.mxu1 %vm2232_vm2, %v29437_v56  ;;  %22794 = vmatprep.mubr.msk.bf16.mxu0 %vm2232_vm2, %v28847_v51  ;;  %v35241_v51 = vld [vmem:[#allocation147_spill] sm:$0xff]  ;;  %35245 = vst [vmem:[#allocation215_spill] sm:$0xff] %v29480_v45  ;;  %v35267_v3 = vld [vmem:[#allocation161_spill] sm:$0xff] }
 0x229   : > { %35240 = vst [vmem:[#allocation212_spill] sm:$0xff] %v29463_v39  ;;  %35246 = vst [vmem:[#allocation216_spill] sm:$0xff] %v29484_v17  ;;  %v35252_v56 = vld [vmem:[#allocation155_spill] sm:$0xff] }
 0x22a   : > { %v29499_v2 = vpack.c.bf16 %v35253_v35, %v35252_v56  ;;  %v29516_v56 = vld [vmem:[%s27833_s19 + $0x8c0] sm:$0xff] }
 0x22b   : > { %35259 = vst [vmem:[#allocation219_spill] sm:$0xff] %v29516_v56 }
 0x22f   : > { %21847 = vmatmul.mubr.msk.bf16.gmra.mrb[176].mxu1 %vm2232_vm2, %v29459_v59  ;;  %22795 = vmatmul.mubr.msk.bf16.gmra.mrb[92].mxu0 %vm2232_vm2, %v35241_v51  ;;  %v29491_v51 = vpack.c.bf16 %v29487_v23, %v29480_v45  ;;  %v35266_v45 = vld [vmem:[#allocation75_spill] sm:$0xff] }
 0x230   : > { %21850 = vmatprep.mubr.msk.bf16.mxu1 %vm2232_vm2, %v29463_v39  ;;  %22798 = vmatprep.mubr.msk.bf16.mxu0 %vm2232_vm2, %v35244_v15  ;;  %v35250_v39 = vld [vmem:[#allocation65_spill] sm:$0xff]  ;;  %v35255_v15 = vld [vmem:[#allocation150_spill] sm:$0xff] }
 0x231   : > { %35248 = vst [vmem:[#allocation218_spill] sm:$0xff] %v29491_v51  ;;  %v29495_v59 = vpack.c.bf16 %v35250_v39, %v35249_v21  ;;  %35254 = vst [vmem:[#allocation65_spill] sm:$0xff] %v29499_v2  ;;  %v29508_v51 = vld [vmem:[%s27833_s19 + $0x8b0] sm:$0xff]  ;;  %v29511_v39 = vld [vmem:[%s27833_s19 + $0x8b8] sm:$0xff] }
 0x232   : > { %35256 = vst [vmem:[#allocation155_spill] sm:$0xff] %v29508_v51  ;;  %35257 = vst [vmem:[#allocation156_spill] sm:$0xff] %v29511_v39  ;;  %v35258_v21 = vld [vmem:[#allocation151_spill] sm:$0xff]  ;;  %v29520_v35 = vpack.c.bf16 %v29511_v39, %v29508_v51 }
 0x233   : > { %35251 = vst [vmem:[#allocation153_spill] sm:$0xff] %v29495_v59  ;;  %v35279_v51 = vld [vmem:[#allocation67_spill] sm:$0xff] }
 0x234   : > { %35260 = vst [vmem:[#allocation220_spill] sm:$0xff] %v29520_v35  ;;  %v29544_v35 = vld [vmem:[%s27833_s19 + $0x6b0] sm:$0xff] }
 0x235   : > { %35270 = vst [vmem:[#allocation75_spill] sm:$0xff] %v29544_v35 }
 0x237   : > { %21851 = vmatmul.mubr.msk.bf16.gmra.mrb[180].mxu1 %vm2232_vm2, %v29495_v59  ;;  %22799 = vmatmul.mubr.msk.bf16.gmra.mrb[96].mxu0 %vm2232_vm2, %v35255_v15  ;;  %v29523_v15 = vld [vmem:[%s27833_s19 + $0x8c8] sm:$0xff] }
 0x238   : > { %21854 = vmatprep.mubr.msk.bf16.mxu1 %vm2232_vm2, %v29499_v2  ;;  %22802 = vmatprep.mubr.msk.bf16.mxu0 %vm2232_vm2, %v35258_v21  ;;  %35261 = vst [vmem:[#allocation221_spill] sm:$0xff] %v29523_v15  ;;  %v29527_v17 = vpack.c.bf16 %v29523_v15, %v29516_v56  ;;  %v35263_v2 = vld [vmem:[#allocation158_spill] sm:$0xff]  ;;  %v29535_v21 = vpack.c.bf16 %v35267_v3, %v35266_v45  ;;  %v29550_v15 = vld [vmem:[%s27833_s19 + $0x8d8] sm:$0xff]  ;;  %v29558_v3 = vld [vmem:[%s27833_s19 + $0x8e0] sm:$0xff] }
 0x239   : > { %v35264_v59 = vld [vmem:[#allocation74_spill] sm:$0xff] }
 0x23a   : > { %35262 = vst [vmem:[#allocation222_spill] sm:$0xff] %v29527_v17  ;;  %v29531_v23 = vpack.c.bf16 %v35264_v59, %v35263_v2  ;;  %35268 = vst [vmem:[#allocation74_spill] sm:$0xff] %v29535_v21  ;;  %v29547_v17 = vld [vmem:[%s27833_s19 + $0x8d0] sm:$0xff]  ;;  %v35271_v59 = vld [vmem:[#allocation64_spill] sm:$0xff] }
 0x23b   : > { %v29555_v2 = vld [vmem:[%s27833_s19 + $0x6c8] sm:$0xff]  ;;  %v29562_v45 = vpack.c.bf16 %v29550_v15, %v29547_v17 }
 0x23c   : > { %35265 = vst [vmem:[#allocation158_spill] sm:$0xff] %v29531_v23  ;;  %35272 = vst [vmem:[#allocation161_spill] sm:$0xff] %v29555_v2 }
 0x23d   : > { %35273 = vst [vmem:[#allocation223_spill] sm:$0xff] %v29562_v45  ;;  %v35280_v45 = vld [vmem:[#allocation73_spill] sm:$0xff] }
 0x23f   : > { %21855 = vmatmul.mubr.msk.bf16.gmra.mrb[184].mxu1 %vm2232_vm2, %v29531_v23  ;;  %22803 = vmatmul.mubr.msk.bf16.gmra.mrb[100].mxu0 %vm2232_vm2, %v35269_v40  ;;  %v29565_v40 = vld [vmem:[%s27833_s19 + $0x8e8] sm:$0xff]  ;;  %v35275_v23 = vld [vmem:[#allocation163_spill] sm:$0xff] }
 0x240   : > { %21858 = vmatprep.mubr.msk.bf16.mxu1 %vm2232_vm2, %v29535_v21  ;;  %22806 = vmatprep.mubr.msk.bf16.mxu0 %vm2232_vm2, %v35271_v59  ;;  %v29569_v21 = vpack.c.bf16 %v29565_v40, %v29558_v3  ;;  %v29573_v56 = vpack.c.bf16 %v29544_v35, %v35275_v23  ;;  %v35277_v59 = vld [vmem:[#allocation165_spill] sm:$0xff] }
 0x241   : > { %v29577_v39 = vpack.c.bf16 %v35277_v59, %v29555_v2  ;;  %v35281_v23 = vld [vmem:[#allocation9_spill] sm:$0xff]  ;;  %v35282_v59 = vld [vmem:[#allocation166_spill] sm:$0xff] }
 0x242   : > { %35274 = vst [vmem:[#allocation224_spill] sm:$0xff] %v29569_v21  ;;  %35276 = vst [vmem:[#allocation163_spill] sm:$0xff] %v29573_v56  ;;  %v1966_v21 = vld [vmem:[%s34344_s1] sm:$0x3]  ;;  %v29593_v2 = vpack.c.bf16 %v29058_v26, %v35282_v59  ;;  %v35288_v26 = vld [vmem:[#allocation168_spill] sm:$0xff] }
 0x243   : > { %35278 = vst [vmem:[#allocation165_spill] sm:$0xff] %v29577_v39  ;;  %v4066_v35 = vand.u32 %v35281_v23, %v1966_v21  ;;  %v35287_v21 = vld [vmem:[#allocation83_spill] sm:$0xff]  ;;  %v29609_v59 = vpack.c.bf16 %v29094_v33, %v35288_v26  ;;  %v29638_v26 = vld [vmem:[%s27833_s19 + $0x740] sm:$0xff] }
 0x244   : > { %35283 = vst [vmem:[#allocation166_spill] sm:$0xff] %v29593_v2 }
 0x245   : > { %21926 = vmatprep.subr.bf16.mxu1 %v4066_v35  ;;  %35289 = vst [vmem:[#allocation168_spill] sm:$0xff] %v29609_v59 }
 0x246   : > { %21927 = vmatpush3.bf16.msra.mxu1 %v4066_v35  ;;  %v35292_v35 = vld [vmem:[#allocation90_spill] sm:$0xff] }
 0x247   : > { %21859 = vmatmul.mubr.msk.bf16.gmra.mrb[188].mxu1 %vm2232_vm2, %v29573_v56  ;;  %22807 = vmatmul.mubr.msk.bf16.gmra.mrb[104].mxu0 %vm2232_vm2, %v35279_v51  ;;  %v35284_v56 = vld [vmem:[#allocation91_spill] sm:$0xff] }
 0x248   : > { %21862 = vmatprep.mubr.msk.bf16.mxu1 %vm2232_vm2, %v29577_v39  ;;  %22810 = vmatprep.mubr.msk.bf16.mxu0 %vm2232_vm2, %v35280_v45  ;;  %v29597_v51 = vpack.c.bf16 %v35284_v56, %v29061_v24  ;;  %v35286_v39 = vld [vmem:[#allocation77_spill] sm:$0xff]  ;;  %v29613_v24 = vpack.c.bf16 %v29102_v47, %v29097_v55  ;;  %v35291_v56 = vld [vmem:[#allocation84_spill] sm:$0xff]  ;;  %v29629_v55 = vpack.c.bf16 %v29142_v61, %v29134_v20  ;;  %v35296_v47 = vld [vmem:[#allocation94_spill] sm:$0xff] }
 0x249   : > { %v29647_v20 = vpack.c.bf16 %v29638_v26, %v29149_v44  ;;  %v29663_v44 = vpack.c.bf16 %v29195_v52, %v29174_v27  ;;  %v29679_v52 = vpack.c.bf16 %v29231_v57, %v29210_v1  ;;  %v29683_v27 = vpack.c.bf16 %v29239_v31, %v29234_v38  ;;  %v29708_v1 = vld [vmem:[%s27833_s19 + $0x7d0] sm:$0xff]  ;;  %v35311_v31 = vld [vmem:[#allocation185_spill] sm:$0xff]  ;;  %v30124_v45 = vld [vmem:[%s27833_s19 + $0x978] sm:$0xff] }
 0x24a   : > { %35285 = vst [vmem:[#allocation91_spill] sm:$0xff] %v29597_v51  ;;  %35290 = vst [vmem:[#allocation225_spill] sm:$0xff] %v29613_v24  ;;  %v29695_v57 = vpack.c.bf16 %v29268_v41, %v29246_v48  ;;  %v29713_v41 = vld [vmem:[%s27833_s19 + $0x7e8] sm:$0xff]  ;;  %v29717_v48 = vpack.c.bf16 %v29708_v1, %v29286_v58  ;;  %v29733_v58 = vpack.c.bf16 %v29332_v28, %v29311_v14 }
 0x24b   : > { %35295 = vst [vmem:[#allocation226_spill] sm:$0xff] %v29629_v55  ;;  %35298 = vst [vmem:[#allocation227_spill] sm:$0xff] %v29647_v20  ;;  %v29721_v38 = vpack.c.bf16 %v29308_v16, %v29713_v41  ;;  %v29749_v28 = vpack.c.bf16 %v29368_v36, %v29347_v60  ;;  %v29753_v16 = vpack.c.bf16 %v29376_v10, %v29371_v42  ;;  %v35322_v42 = vld [vmem:[#allocation209_spill] sm:$0xff] }
 0x24c   : > { %35302 = vst [vmem:[#allocation229_spill] sm:$0xff] %v29663_v44  ;;  %35304 = vst [vmem:[#allocation231_spill] sm:$0xff] %v29679_v52  ;;  %v29765_v36 = vpack.c.bf16 %v29407_v22, %v29383_v11  ;;  %v29769_v14 = vpack.c.bf16 %v29418_v62, %v29410_v49  ;;  %v29783_v22 = vld [vmem:[%s27833_s19 + $0x878] sm:$0xff]  ;;  %v35323_v10 = vld [vmem:[#allocation213_spill] sm:$0xff] }
 0x24d   : > { %35305 = vst [vmem:[#allocation232_spill] sm:$0xff] %v29683_v27  ;;  %35307 = vst [vmem:[#allocation233_spill] sm:$0xff] %v29695_v57  ;;  %v29791_v60 = vpack.c.bf16 %v29448_v4, %v29783_v22  ;;  %v35325_v11 = vld [vmem:[#allocation214_spill] sm:$0xff]  ;;  %v35326_v49 = vld [vmem:[#allocation215_spill] sm:$0xff] }
 0x24e   : > { %35309 = vst [vmem:[#allocation235_spill] sm:$0xff] %v29717_v48  ;;  %35310 = vst [vmem:[#allocation236_spill] sm:$0xff] %v29721_v38  ;;  %v29807_v62 = vpack.c.bf16 %v35326_v49, %v35325_v11  ;;  %v35328_v4 = vld [vmem:[#allocation207_spill] sm:$0xff]  ;;  %v35333_v11 = vld [vmem:[#allocation156_spill] sm:$0xff] }
 0x24f   : > { %21863 = vmatmul.mubr.msk.bf16.gmra.mrb[192].mxu1 %vm2232_vm2, %v29593_v2  ;;  %22811 = vmatmul.mubr.msk.bf16.gmra.mrb[108].mxu0 %vm2232_vm2, %v35286_v39  ;;  %35313 = vst [vmem:[#allocation237_spill] sm:$0xff] %v29733_v58  ;;  %35315 = vst [vmem:[#allocation239_spill] sm:$0xff] %v29749_v28  ;;  %v35334_v49 = vld [vmem:[#allocation219_spill] sm:$0xff]  ;;  %v35401_v39 = vld [vmem:[#allocation80_spill] sm:$0xff] }
 0x250   : > { %21866 = vmatprep.mubr.msk.bf16.mxu1 %vm2232_vm2, %v29597_v51  ;;  %22814 = vmatprep.mubr.msk.bf16.mxu0 %vm2232_vm2, %v35287_v21  ;;  %v35293_v21 = vld [vmem:[#allocation102_spill] sm:$0xff]  ;;  %35316 = vst [vmem:[#allocation240_spill] sm:$0xff] %v29753_v16  ;;  %35317 = vst [vmem:[#allocation241_spill] sm:$0xff] %v29765_v36 }
 0x251   : > { %v29625_v33 = vpack.c.bf16 %v29131_v54, %v35293_v21  ;;  %v29643_v54 = vld [vmem:[%s27833_s19 + $0x758] sm:$0xff]  ;;  %35318 = vst [vmem:[#allocation242_spill] sm:$0xff] %v29769_v14  ;;  %35321 = vst [vmem:[#allocation245_spill] sm:$0xff] %v29791_v60 }
 0x252   : > { %v29651_v61 = vpack.c.bf16 %v29171_v7, %v29643_v54  ;;  %v35300_v21 = vld [vmem:[#allocation104_spill] sm:$0xff]  ;;  %v29667_v7 = vpack.c.bf16 %v29203_v46, %v29198_v5  ;;  %v35306_v5 = vld [vmem:[#allocation178_spill] sm:$0xff]  ;;  %v29699_v46 = vpack.c.bf16 %v29279_v50, %v29271_v6  ;;  %v29737_v50 = vpack.c.bf16 %v29340_v32, %v29335_v8  ;;  %v29778_v8 = vld [vmem:[%s27833_s19 + $0x860] sm:$0xff]  ;;  %35327 = vst [vmem:[#allocation213_spill] sm:$0xff] %v29807_v62 }
 0x253   : > { %35294 = vst [vmem:[#allocation102_spill] sm:$0xff] %v29625_v33  ;;  %v35312_v6 = vld [vmem:[#allocation186_spill] sm:$0xff]  ;;  %35319 = vst [vmem:[#allocation243_spill] sm:$0xff] %v29778_v8  ;;  %v29787_v32 = vpack.c.bf16 %v29778_v8, %v29425_v9  ;;  %v29803_v9 = vpack.c.bf16 %v35323_v10, %v35322_v42  ;;  %v35330_v42 = vld [vmem:[#allocation217_spill] sm:$0xff] }
 0x254   : > { %35299 = vst [vmem:[#allocation228_spill] sm:$0xff] %v29651_v61  ;;  %35303 = vst [vmem:[#allocation230_spill] sm:$0xff] %v29667_v7  ;;  %v35331_v10 = vld [vmem:[#allocation155_spill] sm:$0xff]  ;;  %v1786_v8 = vld [vmem:[%s27833_s19 + $0x480] sm:$0xff] }
 0x255   : > { %35308 = vst [vmem:[#allocation234_spill] sm:$0xff] %v29699_v46  ;;  %35314 = vst [vmem:[#allocation238_spill] sm:$0xff] %v29737_v50 }
 0x256   : > { %35320 = vst [vmem:[#allocation244_spill] sm:$0xff] %v29787_v32  ;;  %35324 = vst [vmem:[#allocation209_spill] sm:$0xff] %v29803_v9 }
 0x257   : > { %21867 = vmatmul.mubr.msk.bf16.gmra.mrb[196].mxu1 %vm2232_vm2, %v29609_v59  ;;  %22815 = vmatmul.mubr.msk.bf16.gmra.mrb[112].mxu0 %vm2232_vm2, %v35291_v56  ;;  %35403 = vst [vmem:[#allocation256_spill] sm:$0xff] %v30124_v45 }
 0x258   : > { %21870 = vmatprep.mubr.msk.bf16.mxu1 %vm2232_vm2, %v29613_v24  ;;  %22818 = vmatprep.mubr.msk.bf16.mxu0 %vm2232_vm2, %v35292_v35  ;;  %v35297_v35 = vld [vmem:[#allocation100_spill] sm:$0xff] }
 0x25f   : > { %21871 = vmatmul.mubr.msk.bf16.gmra.mrb[200].mxu1 %vm2232_vm2, %v29625_v33  ;;  %22819 = vmatmul.mubr.msk.bf16.gmra.mrb[116].mxu0 %vm2232_vm2, %v35296_v47  ;;  %v30105_v47 = vld [vmem:[%s27833_s19 + $0x970] sm:$0xff] }
 0x260   : > { %21874 = vmatprep.mubr.msk.bf16.mxu1 %vm2232_vm2, %v29629_v55  ;;  %22822 = vmatprep.mubr.msk.bf16.mxu0 %vm2232_vm2, %v35297_v35  ;;  %v35301_v35 = vld [vmem:[#allocation110_spill] sm:$0xff]  ;;  %35398 = vst [vmem:[#allocation253_spill] sm:$0xff] %v30105_v47 }
 0x267   : > { %21875 = vmatmul.mubr.msk.bf16.gmra.mrb[204].mxu1 %vm2232_vm2, %v29647_v20  ;;  %22823 = vmatmul.mubr.msk.bf16.gmra.mrb[120].mxu0 %vm2232_vm2, %v35300_v21  ;;  %v30102_v21 = vld [vmem:[%s27833_s19 + $0x968] sm:$0xff] }
 0x268   : > { %21878 = vmatprep.mubr.msk.bf16.mxu1 %vm2232_vm2, %v29651_v61  ;;  %22826 = vmatprep.mubr.msk.bf16.mxu0 %vm2232_vm2, %v35301_v35  ;;  %v30099_v35 = vld [vmem:[%s27833_s19 + $0x960] sm:$0xff]  ;;  %35397 = vst [vmem:[#allocation252_spill] sm:$0xff] %v30102_v21 }
 0x269   : > { %35396 = vst [vmem:[#allocation251_spill] sm:$0xff] %v30099_v35 }
 0x26f   : > { %21879 = vmatmul.mubr.msk.bf16.gmra.mrb[208].mxu1 %vm2232_vm2, %v29663_v44  ;;  %22827 = vmatmul.mubr.msk.bf16.gmra.mrb[124].mxu0 %vm2232_vm2, %v29156_v12  ;;  %v30096_v12 = vld [vmem:[%s27833_s19 + $0x958] sm:$0xff] }
 0x270   : > { %21882 = vmatprep.mubr.msk.bf16.mxu1 %vm2232_vm2, %v29667_v7  ;;  %22830 = vmatprep.mubr.msk.bf16.mxu0 %vm2232_vm2, %v29160_v34  ;;  %v35393_v34 = vld [vmem:[#allocation70_spill] sm:$0xff]  ;;  %35395 = vst [vmem:[#allocation250_spill] sm:$0xff] %v30096_v12  ;;  %v30109_v56 = vpack.c.bf16 %v30099_v35, %v30096_v12  ;;  %v35414_v12 = vld [vmem:[#allocation119_spill] sm:$0xff] }
 0x272   : > { %35399 = vst [vmem:[#allocation254_spill] sm:$0xff] %v30109_v56 }
 0x277   : > { %21883 = vmatmul.mubr.msk.bf16.gmra.mrb[212].mxu1 %vm2232_vm2, %v29679_v52  ;;  %22831 = vmatmul.mubr.msk.bf16.gmra.mrb[128].mxu0 %vm2232_vm2, %v29182_v37 }
 0x278   : > { %21886 = vmatprep.mubr.msk.bf16.mxu1 %vm2232_vm2, %v29683_v27  ;;  %22834 = vmatprep.mubr.msk.bf16.mxu0 %vm2232_vm2, %v35306_v5  ;;  %v30077_v5 = vld [vmem:[%s27833_s19 + $0x950] sm:$0xff] }
 0x279   : > { %35390 = vst [vmem:[#allocation247_spill] sm:$0xff] %v30077_v5 }
 0x27f   : > { %21887 = vmatmul.mubr.msk.bf16.gmra.mrb[216].mxu1 %vm2232_vm2, %v29695_v57  ;;  %22835 = vmatmul.mubr.msk.bf16.gmra.mrb[132].mxu0 %vm2232_vm2, %v29218_v25  ;;  %v30074_v25 = vld [vmem:[%s27833_s19 + $0x948] sm:$0xff] }
 0x280   : > { %21890 = vmatprep.mubr.msk.bf16.mxu1 %vm2232_vm2, %v29699_v46  ;;  %22838 = vmatprep.mubr.msk.bf16.mxu0 %vm2232_vm2, %v29222_v43  ;;  %v30071_v43 = vld [vmem:[%s27833_s19 + $0x940] sm:$0xff]  ;;  %35389 = vst [vmem:[#allocation246_spill] sm:$0xff] %v30074_v25 }
 0x287   : > { %21891 = vmatmul.mubr.msk.bf16.gmra.mrb[220].mxu1 %vm2232_vm2, %v29717_v48  ;;  %22839 = vmatmul.mubr.msk.bf16.gmra.mrb[136].mxu0 %vm2232_vm2, %v35311_v31  ;;  %v30068_v31 = vld [vmem:[%s27833_s19 + $0x938] sm:$0xff] }
 0x288   : > { %21894 = vmatprep.mubr.msk.bf16.mxu1 %vm2232_vm2, %v29721_v38  ;;  %22842 = vmatprep.mubr.msk.bf16.mxu0 %vm2232_vm2, %v35312_v6  ;;  %v35385_v6 = vld [vmem:[#allocation60_spill] sm:$0xff]  ;;  %v30081_v37 = vpack.c.bf16 %v30071_v43, %v30068_v31 }
 0x28a   : > { %35391 = vst [vmem:[#allocation248_spill] sm:$0xff] %v30081_v37 }
 0x28f   : > { %21895 = vmatmul.mubr.msk.bf16.gmra.mrb[224].mxu1 %vm2232_vm2, %v29733_v58  ;;  %22843 = vmatmul.mubr.msk.bf16.gmra.mrb[140].mxu0 %vm2232_vm2, %v29293_v30 }
 0x290   : > { %21898 = vmatprep.mubr.msk.bf16.mxu1 %vm2232_vm2, %v29737_v50  ;;  %22846 = vmatprep.mubr.msk.bf16.mxu0 %vm2232_vm2, %v29297_v13 }
 0x297   : > { %21899 = vmatmul.mubr.msk.bf16.gmra.mrb[228].mxu1 %vm2232_vm2, %v29749_v28  ;;  %22847 = vmatmul.mubr.msk.bf16.gmra.mrb[144].mxu0 %vm2232_vm2, %v29319_v63  ;;  %v35347_v63 = vld [vmem:[#allocation11_spill] sm:$0xff] }
 0x298   : > { %21902 = vmatprep.mubr.msk.bf16.mxu1 %vm2232_vm2, %v29753_v16  ;;  %22850 = vmatprep.mubr.msk.bf16.mxu0 %vm2232_vm2, %v29323_v53  ;;  %v26935_v53 = vld [vmem:[%s27833_s19 + $0x28] sm:$0xff] }
 0x29f   : > { %21903 = vmatmul.mubr.msk.bf16.gmra.mrb[232].mxu1 %vm2232_vm2, %v29765_v36  ;;  %22851 = vmatmul.mubr.msk.bf16.gmra.mrb[148].mxu0 %vm2232_vm2, %v29355_v18  ;;  %v35336_v18 = vld [vmem:[#allocation211_spill] sm:$0xff] }
 0x2a0   : > { %21906 = vmatprep.mubr.msk.bf16.mxu1 %vm2232_vm2, %v29769_v14  ;;  %22854 = vmatprep.mubr.msk.bf16.mxu0 %vm2232_vm2, %v29359_v0  ;;  %v29823_v0 = vpack.c.bf16 %v35334_v49, %v35333_v11  ;;  %v35341_v11 = vld [vmem:[#allocation153_spill] sm:$0xff]  ;;  %v29848_v49 = vld [vmem:[%s27833_s19 + $0x8f0] sm:$0xff] }
 0x2a1   : > { %35342 = vst [vmem:[#allocation156_spill] sm:$0xff] %v29848_v49 }
 0x2a2   : > { %35335 = vst [vmem:[#allocation215_spill] sm:$0xff] %v29823_v0 }
 0x2a7   : > { %21907 = vmatmul.mubr.msk.bf16.gmra.mrb[236].mxu1 %vm2232_vm2, %v29787_v32  ;;  %22855 = vmatmul.mubr.msk.bf16.gmra.mrb[152].mxu0 %vm2232_vm2, %v29391_v19  ;;  %v29819_v19 = vpack.c.bf16 %v35331_v10, %v35330_v42  ;;  %v29839_v10 = vpack.c.bf16 %v29558_v3, %v29550_v15  ;;  %v26933_v15 = vld [vmem:[%s27833_s19 + $0x8] sm:$0xff] }
 0x2a8   : > { %21910 = vmatprep.mubr.msk.bf16.mxu1 %vm2232_vm2, %v29791_v60  ;;  %22858 = vmatprep.mubr.msk.bf16.mxu0 %vm2232_vm2, %v29395_v29  ;;  %v35329_v29 = vld [vmem:[#allocation208_spill] sm:$0xff]  ;;  %v35345_v3 = vld [vmem:[#allocation158_spill] sm:$0xff] }
 0x2a9   : > { %35332 = vst [vmem:[#allocation214_spill] sm:$0xff] %v29819_v19  ;;  %35340 = vst [vmem:[#allocation155_spill] sm:$0xff] %v29839_v10 }
 0x2af   : > { %21911 = vmatmul.mubr.msk.bf16.gmra.mrb[240].mxu1 %vm2232_vm2, %v29803_v9  ;;  %22859 = vmatmul.mubr.msk.bf16.gmra.mrb[156].mxu0 %vm2232_vm2, %v35328_v4  ;;  %v35337_v4 = vld [vmem:[#allocation212_spill] sm:$0xff] }
 0x2b0   : > { %21914 = vmatprep.mubr.msk.bf16.mxu1 %vm2232_vm2, %v29807_v62  ;;  %22862 = vmatprep.mubr.msk.bf16.mxu0 %vm2232_vm2, %v35329_v29  ;;  %v35338_v29 = vld [vmem:[#allocation221_spill] sm:$0xff] }
 0x2b1   : > { %v29835_v42 = vpack.c.bf16 %v29547_v17, %v35338_v29  ;;  %v29855_v29 = vpack.c.bf16 %v29848_v49, %v29565_v40  ;;  %v35424_v49 = vld [vmem:[#allocation52_spill] sm:$0xff] }
 0x2b3   : > { %35339 = vst [vmem:[#allocation217_spill] sm:$0xff] %v29835_v42  ;;  %35344 = vst [vmem:[#allocation219_spill] sm:$0xff] %v29855_v29 }
 0x2b7   : > { %21915 = vmatmul.mubr.msk.bf16.gmra.mrb[244].mxu1 %vm2232_vm2, %v29819_v19  ;;  %22863 = vmatmul.mubr.msk.bf16.gmra.mrb[160].mxu0 %vm2232_vm2, %v35336_v18  ;;  %v35343_v18 = vld [vmem:[#allocation65_spill] sm:$0xff] }
 0x2b8   : > { %21918 = vmatprep.mubr.msk.bf16.mxu1 %vm2232_vm2, %v29823_v0  ;;  %22866 = vmatprep.mubr.msk.bf16.mxu0 %vm2232_vm2, %v35337_v4  ;;  %v1642_v4 = vld [vmem:[%s27833_s19] sm:$0xff] }
 0x2b9   : > { %v1976_v17 = vpack.c.bf16 %v26933_v15, %v1642_v4  ;;  %v35348_v4 = vld [vmem:[#allocation163_spill] sm:$0xff]  ;;  %v35349_v15 = vld [vmem:[#allocation165_spill] sm:$0xff] }
 0x2bf   : > { %21919 = vmatmul.mubr.msk.bf16.gmra.mrb[248].mxu1 %vm2232_vm2, %v29835_v42  ;;  %22867 = vmatmul.mubr.msk.bf16.gmra.mrb[164].mxu0 %vm2232_vm2, %v35341_v11  ;;  %v35346_v11 = vld [vmem:[#allocation74_spill] sm:$0xff] }
 0x2c0   : > { %21922 = vmatprep.mubr.msk.bf16.mxu1 %vm2232_vm2, %v29839_v10  ;;  %22870 = vmatprep.mubr.msk.bf16.mxu0 %vm2232_vm2, %v35343_v18  ;;  %v26934_v18 = vld [vmem:[%s27833_s19 + $0x20] sm:$0xff] }
 0x2c1   : > { %v29867_v40 = vpack.c.bf16 %v26935_v53, %v26934_v18  ;;  %v26938_v53 = vld [vmem:[%s27833_s19 + $0x40] sm:$0xff]  ;;  %v26939_v18 = vld [vmem:[%s27833_s19 + $0x48] sm:$0xff] }
 0x2c2   : > { %v29883_v13 = vpack.c.bf16 %v26939_v18, %v26938_v53  ;;  %v26943_v53 = vld [vmem:[%s27833_s19 + $0x68] sm:$0xff] }
 0x2c7   : > { %21923 = vmatmul.mubr.msk.bf16.gmra.mrb[252].mxu1 %vm2232_vm2, %v29855_v29  ;;  %22871 = vmatmul.mubr.msk.bf16.gmra.mrb[168].mxu0 %vm2232_vm2, %v35345_v3 }
 0x2c8   : > { %21928 = vmatprep.mubr.msk.bf16.mxu1 %vm2232_vm2, %v1976_v17  ;;  %22874 = vmatprep.mubr.msk.bf16.mxu0 %vm2232_vm2, %v35346_v11  ;;  %v26936_v17 = vld [vmem:[%s27833_s19 + $0x30] sm:$0xff]  ;;  %v26937_v11 = vld [vmem:[%s27833_s19 + $0x38] sm:$0xff] }
 0x2c9   : > { %v29879_v3 = vpack.c.bf16 %v26937_v11, %v26936_v17  ;;  %v26940_v11 = vld [vmem:[%s27833_s19 + $0x50] sm:$0xff]  ;;  %v26941_v17 = vld [vmem:[%s27833_s19 + $0x58] sm:$0xff] }
 0x2cf   : > { %21929 = vmatmul.mubr.msk.bf16.vlgmr.msra.gmra.mrb[0].mxu1 %vm2232_vm2, %v35347_v63  ;;  %22875 = vmatmul.mubr.msk.bf16.gmra.mrb[172].mxu0 %vm2232_vm2, %v35348_v4  ;;  %v26942_v4 = vld [vmem:[%s27833_s19 + $0x60] sm:$0xff] }
 0x2d0   : > { %21932 = vmatprep.mubr.msk.bf16.mxu1 %vm2232_vm2, %v29867_v40  ;;  %22878 = vmatprep.mubr.msk.bf16.mxu0 %vm2232_vm2, %v35349_v15  ;;  %v29895_v15 = vpack.c.bf16 %v26941_v17, %v26940_v11  ;;  %v29899_v18 = vpack.c.bf16 %v26943_v53, %v26942_v4  ;;  %v35350_v4 = vld [vmem:[#allocation12_spill] sm:$0xff]  ;;  %v35351_v17 = vld [vmem:[#allocation13_spill] sm:$0xff] }
 0x2d1   : > { %v35354_v53 = vld [vmem:[#allocation16_spill] sm:$0xff] }
 0x2d7   : > { %21933 = vmatmul.mubr.msk.bf16.gmra.mrb[4].mxu1 %vm2232_vm2, %v29879_v3  ;;  %22879 = vmatmul.mubr.msk.bf16.gmra.mrb[176].mxu0 %vm2232_vm2, %v29593_v2  ;;  %v26945_v2 = vld [vmem:[%s27833_s19 + $0x78] sm:$0xff] }
 0x2d8   : > { %21936 = vmatprep.mubr.msk.bf16.mxu1 %vm2232_vm2, %v29883_v13  ;;  %22882 = vmatprep.mubr.msk.bf16.mxu0 %vm2232_vm2, %v29597_v51  ;;  %v26944_v51 = vld [vmem:[%s27833_s19 + $0x70] sm:$0xff] }
 0x2d9   : > { %v29911_v11 = vpack.c.bf16 %v26945_v2, %v26944_v51  ;;  %v35352_v51 = vld [vmem:[#allocation14_spill] sm:$0xff]  ;;  %v35353_v2 = vld [vmem:[#allocation15_spill] sm:$0xff] }
 0x2df   : > { %21937 = vmatmul.mubr.msk.bf16.gmra.mrb[8].mxu1 %vm2232_vm2, %v29895_v15  ;;  %22883 = vmatmul.mubr.msk.bf16.gmra.mrb[180].mxu0 %vm2232_vm2, %v29609_v59  ;;  %v30049_v59 = vld [vmem:[%s27833_s19 + $0x930] sm:$0xff] }
 0x2e0   : > { %21940 = vmatprep.mubr.msk.bf16.mxu1 %vm2232_vm2, %v29899_v18  ;;  %22886 = vmatprep.mubr.msk.bf16.mxu0 %vm2232_vm2, %v29613_v24  ;;  %v30043_v24 = vld [vmem:[%s27833_s19 + $0x920] sm:$0xff]  ;;  %35382 = vst [vmem:[#allocation15_spill] sm:$0xff] %v30049_v59 }
 0x2e1   : > { %35380 = vst [vmem:[#allocation13_spill] sm:$0xff] %v30043_v24 }
 0x2e7   : > { %21941 = vmatmul.mubr.msk.bf16.gmra.mrb[12].mxu1 %vm2232_vm2, %v29911_v11  ;;  %22887 = vmatmul.mubr.msk.bf16.gmra.mrb[184].mxu0 %vm2232_vm2, %v29625_v33 }
 0x2e8   : > { %21944 = vmatprep.mubr.msk.bf16.mxu1 %vm2232_vm2, %v35350_v4  ;;  %22890 = vmatprep.mubr.msk.bf16.mxu0 %vm2232_vm2, %v29629_v55  ;;  %v1972_v4 = vld [vmem:[%s34344_s1 + $0xc] sm:$0x3]  ;;  %v35357_v55 = vld [vmem:[#allocation19_spill] sm:$0xff] }
 0x2e9   : > { %35388 = vst [vmem:[#allocation19_spill] sm:$0xff] %v30071_v43  ;;  %v1768_v43 = vld [vmem:[%s27833_s19 + $0x3f0] sm:$0xff] }
 0x2ef   : > { %21945 = vmatmul.mubr.msk.bf16.gmra.mrb[16].mxu1 %vm2232_vm2, %v35351_v17  ;;  %22891 = vmatmul.mubr.msk.bf16.gmra.mrb[188].mxu0 %vm2232_vm2, %v29647_v20  ;;  %v29941_v20 = vand.u32 %v35281_v23, %v1972_v4  ;;  %v35358_v4 = vld [vmem:[#allocation20_spill] sm:$0xff] }
 0x2f0   : > { %21948 = vmatprep.mubr.msk.bf16.mxu1 %vm2232_vm2, %v35352_v51  ;;  %22894 = vmatprep.mubr.msk.bf16.mxu0 %vm2232_vm2, %v29651_v61  ;;  %v35355_v61 = vld [vmem:[#allocation17_spill] sm:$0xff] }
 0x2f1   : > { %23216 = vmatprep.subr.bf16.mxu0 %v29941_v20 }
 0x2f7   : > { %21949 = vmatmul.mubr.msk.bf16.gmra.mrb[20].mxu1 %vm2232_vm2, %v35353_v2  ;;  %22895 = vmatmul.mubr.msk.bf16.gmra.mrb[192].mxu0 %vm2232_vm2, %v29663_v44  ;;  %v35356_v44 = vld [vmem:[#allocation18_spill] sm:$0xff] }
 0x2f8   : > { %21952 = vmatprep.mubr.msk.bf16.mxu1 %vm2232_vm2, %v35354_v53  ;;  %22898 = vmatprep.mubr.msk.bf16.mxu0 %vm2232_vm2, %v29667_v7  ;;  %v35359_v7 = vld [vmem:[#allocation21_spill] sm:$0xff]  ;;  %35387 = vst [vmem:[#allocation18_spill] sm:$0xff] %v30068_v31  ;;  %v35420_v31 = vld [vmem:[#allocation144_spill] sm:$0xff] }
 0x2ff   : > { %21953 = vmatmul.mubr.msk.bf16.gmra.mrb[24].mxu1 %vm2232_vm2, %v35355_v61  ;;  %22899 = vmatmul.mubr.msk.bf16.gmra.mrb[196].mxu0 %vm2232_vm2, %v29679_v52  ;;  %v35360_v52 = vld [vmem:[#allocation22_spill] sm:$0xff] }
 0x300   : > { %21956 = vmatprep.mubr.msk.bf16.mxu1 %vm2232_vm2, %v35356_v44  ;;  %22902 = vmatprep.mubr.msk.bf16.mxu0 %vm2232_vm2, %v29683_v27  ;;  %v35361_v27 = vld [vmem:[#allocation23_spill] sm:$0xff] }
 0x307   : > { %21957 = vmatmul.mubr.msk.bf16.gmra.mrb[28].mxu1 %vm2232_vm2, %v35357_v55  ;;  %22903 = vmatmul.mubr.msk.bf16.gmra.mrb[200].mxu0 %vm2232_vm2, %v29695_v57  ;;  %v35362_v57 = vld [vmem:[#allocation24_spill] sm:$0xff] }
 0x308   : > { %21960 = vmatprep.mubr.msk.bf16.mxu1 %vm2232_vm2, %v35358_v4  ;;  %22906 = vmatprep.mubr.msk.bf16.mxu0 %vm2232_vm2, %v29699_v46  ;;  %v35363_v46 = vld [vmem:[#allocation25_spill] sm:$0xff]  ;;  %v35406_v4 = vld [vmem:[#allocation87_spill] sm:$0xff] }
 0x30f   : > { %21961 = vmatmul.mubr.msk.bf16.gmra.mrb[32].mxu1 %vm2232_vm2, %v35359_v7  ;;  %22907 = vmatmul.mubr.msk.bf16.gmra.mrb[204].mxu0 %vm2232_vm2, %v29717_v48  ;;  %v35364_v48 = vld [vmem:[#allocation26_spill] sm:$0xff] }
 0x310   : > { %21964 = vmatprep.mubr.msk.bf16.mxu1 %vm2232_vm2, %v35360_v52  ;;  %22910 = vmatprep.mubr.msk.bf16.mxu0 %vm2232_vm2, %v29721_v38  ;;  %v35365_v38 = vld [vmem:[#allocation27_spill] sm:$0xff] }
 0x317   : > { %21965 = vmatmul.mubr.msk.bf16.gmra.mrb[36].mxu1 %vm2232_vm2, %v35361_v27  ;;  %22911 = vmatmul.mubr.msk.bf16.gmra.mrb[208].mxu0 %vm2232_vm2, %v29733_v58  ;;  %v35366_v58 = vld [vmem:[#allocation29_spill] sm:$0xff] }
 0x318   : > { %21968 = vmatprep.mubr.msk.bf16.mxu1 %vm2232_vm2, %v35362_v57  ;;  %22914 = vmatprep.mubr.msk.bf16.mxu0 %vm2232_vm2, %v29737_v50  ;;  %v35367_v50 = vld [vmem:[#allocation31_spill] sm:$0xff] }
 0x31f   : > { %21969 = vmatmul.mubr.msk.bf16.gmra.mrb[40].mxu1 %vm2232_vm2, %v35363_v46  ;;  %22915 = vmatmul.mubr.msk.bf16.gmra.mrb[212].mxu0 %vm2232_vm2, %v29749_v28  ;;  %v30026_v28 = vld [vmem:[%s27833_s19 + $0x910] sm:$0xff] }
 0x320   : > { %21972 = vmatprep.mubr.msk.bf16.mxu1 %vm2232_vm2, %v35364_v48  ;;  %22918 = vmatprep.mubr.msk.bf16.mxu0 %vm2232_vm2, %v29753_v16  ;;  %v35368_v16 = vld [vmem:[#allocation33_spill] sm:$0xff]  ;;  %35375 = vst [vmem:[#allocation221_spill] sm:$0xff] %v30026_v28 }
 0x327   : > { %21973 = vmatmul.mubr.msk.bf16.gmra.mrb[44].mxu1 %vm2232_vm2, %v35365_v38  ;;  %22919 = vmatmul.mubr.msk.bf16.gmra.mrb[216].mxu0 %vm2232_vm2, %v29765_v36  ;;  %v35369_v36 = vld [vmem:[#allocation37_spill] sm:$0xff] }
 0x328   : > { %21976 = vmatprep.mubr.msk.bf16.mxu1 %vm2232_vm2, %v35366_v58  ;;  %22922 = vmatprep.mubr.msk.bf16.mxu0 %vm2232_vm2, %v29769_v14  ;;  %v35370_v14 = vld [vmem:[#allocation39_spill] sm:$0xff] }
 0x32f   : > { %21977 = vmatmul.mubr.msk.bf16.gmra.mrb[48].mxu1 %vm2232_vm2, %v35367_v50  ;;  %22923 = vmatmul.mubr.msk.bf16.gmra.mrb[220].mxu0 %vm2232_vm2, %v29787_v32  ;;  %v35371_v32 = vld [vmem:[#allocation43_spill] sm:$0xff] }
 0x330   : > { %21980 = vmatprep.mubr.msk.bf16.mxu1 %vm2232_vm2, %v35368_v16  ;;  %22926 = vmatprep.mubr.msk.bf16.mxu0 %vm2232_vm2, %v29791_v60  ;;  %v35372_v60 = vld [vmem:[#allocation45_spill] sm:$0xff] }
 0x337   : > { %21981 = vmatmul.mubr.msk.bf16.gmra.mrb[52].mxu1 %vm2232_vm2, %v35369_v36  ;;  %22927 = vmatmul.mubr.msk.bf16.gmra.mrb[224].mxu0 %vm2232_vm2, %v29803_v9  ;;  %v35373_v9 = vld [vmem:[#allocation49_spill] sm:$0xff] }
 0x338   : > { %21984 = vmatprep.mubr.msk.bf16.mxu1 %vm2232_vm2, %v35370_v14  ;;  %22930 = vmatprep.mubr.msk.bf16.mxu0 %vm2232_vm2, %v29807_v62  ;;  %v35374_v62 = vld [vmem:[#allocation51_spill] sm:$0xff] }
 0x33f   : > { %21985 = vmatmul.mubr.msk.bf16.gmra.mrb[56].mxu1 %vm2232_vm2, %v35371_v32  ;;  %22931 = vmatmul.mubr.msk.bf16.gmra.mrb[228].mxu0 %vm2232_vm2, %v29819_v19  ;;  %v1931_v19 = vld [vmem:[%s27833_s19 + $0x908] sm:$0xff] }
 0x340   : > { %21988 = vmatprep.mubr.msk.bf16.mxu1 %vm2232_vm2, %v35372_v60  ;;  %22934 = vmatprep.mubr.msk.bf16.mxu0 %vm2232_vm2, %v29823_v0  ;;  %v30029_v33 = vpack.c.bf16 %v30026_v28, %v1931_v19  ;;  %v35377_v0 = vld [vmem:[#allocation54_spill] sm:$0xff] }
 0x341   : > { %v30046_v19 = vld [vmem:[%s27833_s19 + $0x928] sm:$0xff] }
 0x342   : > { %35376 = vst [vmem:[#allocation11_spill] sm:$0xff] %v30029_v33  ;;  %35381 = vst [vmem:[#allocation14_spill] sm:$0xff] %v30046_v19 }
 0x347   : > { %21989 = vmatmul.mubr.msk.bf16.gmra.mrb[60].mxu1 %vm2232_vm2, %v35373_v9  ;;  %22935 = vmatmul.mubr.msk.bf16.gmra.mrb[232].mxu0 %vm2232_vm2, %v29835_v42  ;;  %v35378_v42 = vld [vmem:[#allocation56_spill] sm:$0xff] }
 0x348   : > { %21992 = vmatprep.mubr.msk.bf16.mxu1 %vm2232_vm2, %v35374_v62  ;;  %22938 = vmatprep.mubr.msk.bf16.mxu0 %vm2232_vm2, %v29839_v10  ;;  %v30040_v10 = vld [vmem:[%s27833_s19 + $0x918] sm:$0xff]  ;;  %v30127_v62 = vld [vmem:[%s27833_s19 + $0x980] sm:$0xff] }
 0x349   : > { %35379 = vst [vmem:[#allocation12_spill] sm:$0xff] %v30040_v10  ;;  %v30053_v30 = vpack.c.bf16 %v30043_v24, %v30040_v10  ;;  %35404 = vst [vmem:[#allocation257_spill] sm:$0xff] %v30127_v62  ;;  %v30131_v58 = vpack.c.bf16 %v30127_v62, %v30124_v45  ;;  %v35411_v62 = vld [vmem:[#allocation109_spill] sm:$0xff]  ;;  %v35412_v45 = vld [vmem:[#allocation114_spill] sm:$0xff] }
 0x34a   : > { %v1695_v24 = vld [vmem:[%s27833_s19 + $0x1a8] sm:$0xff]  ;;  %v26947_v10 = vld [vmem:[%s27833_s19 + $0x1a0] sm:$0xff] }
 0x34b   : > { %35383 = vst [vmem:[#allocation16_spill] sm:$0xff] %v30053_v30  ;;  %35405 = vst [vmem:[#allocation258_spill] sm:$0xff] %v30131_v58  ;;  %v30208_v28 = vpack.c.bf16 %v1695_v24, %v26947_v10  ;;  %v35427_v24 = vld [vmem:[#allocation66_spill] sm:$0xff]  ;;  %v35428_v10 = vld [vmem:[#allocation68_spill] sm:$0xff] }
 0x34d   : > { %35423 = vst [vmem:[#allocation259_spill] sm:$0xff] %v30208_v28 }
 0x34f   : > { %21993 = vmatmul.mubr.msk.bf16.gmra.mrb[64].mxu1 %vm2232_vm2, %v35377_v0  ;;  %22939 = vmatmul.mubr.msk.bf16.gmra.mrb[236].mxu0 %vm2232_vm2, %v29855_v29  ;;  %v30057_v29 = vpack.c.bf16 %v30049_v59, %v30046_v19  ;;  %v30196_v59 = vpack.c.bf16 %v35420_v31, %v1768_v43  ;;  %v35422_v19 = vld [vmem:[#allocation47_spill] sm:$0xff]  ;;  %v35425_v43 = vld [vmem:[#allocation57_spill] sm:$0xff]  ;;  %v35426_v31 = vld [vmem:[#allocation58_spill] sm:$0xff] }
 0x350   : > { %21996 = vmatprep.mubr.msk.bf16.mxu1 %vm2232_vm2, %v35378_v42  ;;  %22942 = vmatprep.mubr.msk.bf16.mxu0 %vm2232_vm2, %v30029_v33  ;;  %v35386_v33 = vld [vmem:[#allocation62_spill] sm:$0xff] }
 0x351   : > { %35384 = vst [vmem:[#allocation17_spill] sm:$0xff] %v30057_v29  ;;  %35421 = vst [vmem:[#allocation144_spill] sm:$0xff] %v30196_v59 }
 0x357   : > { %21997 = vmatmul.mubr.msk.bf16.gmra.mrb[68].mxu1 %vm2232_vm2, %v35385_v6  ;;  %22943 = vmatmul.mubr.msk.bf16.gmra.mrb[240].mxu0 %vm2232_vm2, %v30053_v30  ;;  %v30085_v30 = vpack.c.bf16 %v30077_v5, %v30074_v25  ;;  %v35415_v5 = vld [vmem:[#allocation34_spill] sm:$0xff] }
 0x358   : > { %22000 = vmatprep.mubr.msk.bf16.mxu1 %vm2232_vm2, %v35386_v33  ;;  %22946 = vmatprep.mubr.msk.bf16.mxu0 %vm2232_vm2, %v30057_v29  ;;  %v35394_v29 = vld [vmem:[#allocation72_spill] sm:$0xff]  ;;  %v35419_v25 = vld [vmem:[#allocation46_spill] sm:$0xff] }
 0x359   : > { %35392 = vst [vmem:[#allocation249_spill] sm:$0xff] %v30085_v30 }
 0x35f   : > { %22001 = vmatmul.mubr.msk.bf16.gmra.mrb[72].mxu1 %vm2232_vm2, %v35393_v34  ;;  %22947 = vmatmul.mubr.msk.bf16.gmra.mrb[244].mxu0 %vm2232_vm2, %v30081_v37  ;;  %v30113_v37 = vpack.c.bf16 %v30105_v47, %v30102_v21  ;;  %v1677_v47 = vld [vmem:[%s27833_s19 + $0x118] sm:$0xff]  ;;  %v26946_v21 = vld [vmem:[%s27833_s19 + $0x110] sm:$0xff] }
 0x360   : > { %22004 = vmatprep.mubr.msk.bf16.mxu1 %vm2232_vm2, %v35394_v29  ;;  %22950 = vmatprep.mubr.msk.bf16.mxu0 %vm2232_vm2, %v30085_v30  ;;  %v35402_v30 = vld [vmem:[#allocation82_spill] sm:$0xff]  ;;  %v30168_v35 = vpack.c.bf16 %v1677_v47, %v26946_v21  ;;  %v35417_v47 = vld [vmem:[#allocation40_spill] sm:$0xff]  ;;  %v35418_v21 = vld [vmem:[#allocation41_spill] sm:$0xff] }
 0x361   : > { %35400 = vst [vmem:[#allocation255_spill] sm:$0xff] %v30113_v37 }
 0x367   : > { %22005 = vmatmul.mubr.msk.bf16.gmra.mrb[76].mxu1 %vm2232_vm2, %v35401_v39  ;;  %22951 = vmatmul.mubr.msk.bf16.gmra.mrb[248].mxu0 %vm2232_vm2, %v30109_v56  ;;  %v35407_v56 = vld [vmem:[#allocation89_spill] sm:$0xff] }
 0x368   : > { %22008 = vmatprep.mubr.msk.bf16.mxu1 %vm2232_vm2, %v35402_v30  ;;  %22954 = vmatprep.mubr.msk.bf16.mxu0 %vm2232_vm2, %v30113_v37  ;;  %v35408_v37 = vld [vmem:[#allocation97_spill] sm:$0xff]  ;;  %v35409_v30 = vld [vmem:[#allocation99_spill] sm:$0xff] }
 0x36f   : > { %22009 = vmatmul.mubr.msk.bf16.gmra.mrb[80].mxu1 %vm2232_vm2, %v35406_v4  ;;  %22955 = vmatmul.mubr.msk.bf16.gmra.mrb[252].mxu0 %vm2232_vm2, %v30131_v58  ;;  %v35410_v58 = vld [vmem:[#allocation107_spill] sm:$0xff] }
 0x370   : > { %22012 = vmatprep.mubr.msk.bf16.mxu1 %vm2232_vm2, %v35407_v56  ;;  %22960 = vmatprep.mubr.msk.bf16.mxu0 %vm2232_vm2, %v35351_v17 }
 0x377   : > { %22013 = vmatmul.mubr.msk.bf16.gmra.mrb[84].mxu1 %vm2232_vm2, %v35408_v37  ;;  %22961 = vmatmul.mubr.msk.bf16.vlgmr.msra.gmra.mrb[0].mxu0 %vm2232_vm2, %v35352_v51 }
 0x378   : > { %22016 = vmatprep.mubr.msk.bf16.mxu1 %vm2232_vm2, %v35409_v30  ;;  %23217 = vmatpush3.bf16.msra.mxu0 %v29941_v20  ;;  %v35413_v20 = vld [vmem:[#allocation116_spill] sm:$0xff] }
 0x379   : > { %22964 = vmatprep.mubr.msk.bf16.mxu0 %vm2232_vm2, %v35353_v2 }
 0x37f   : > { %22017 = vmatmul.mubr.msk.bf16.gmra.mrb[88].mxu1 %vm2232_vm2, %v35410_v58  ;;  %22965 = vmatmul.mubr.msk.bf16.gmra.mrb[4].mxu0 %vm2232_vm2, %v35354_v53 }
 0x380   : > { %22020 = vmatprep.mubr.msk.bf16.mxu1 %vm2232_vm2, %v35411_v62  ;;  %22968 = vmatprep.mubr.msk.bf16.mxu0 %vm2232_vm2, %v35355_v61 }
 0x387   : > { %22021 = vmatmul.mubr.msk.bf16.gmra.mrb[92].mxu1 %vm2232_vm2, %v35412_v45  ;;  %22969 = vmatmul.mubr.msk.bf16.gmra.mrb[8].mxu0 %vm2232_vm2, %v35356_v44 }
 0x388   : > { %22024 = vmatprep.mubr.msk.bf16.mxu1 %vm2232_vm2, %v35413_v20  ;;  %22972 = vmatprep.mubr.msk.bf16.mxu0 %vm2232_vm2, %v35357_v55  ;;  %v35416_v20 = vld [vmem:[#allocation35_spill] sm:$0xff] }
 0x38f   : > { %22025 = vmatmul.mubr.msk.bf16.gmra.mrb[96].mxu1 %vm2232_vm2, %v35414_v12  ;;  %22973 = vmatmul.mubr.msk.bf16.gmra.mrb[12].mxu0 %vm2232_vm2, %v30168_v35 }
 0x390   : > { %22028 = vmatprep.mubr.msk.bf16.mxu1 %vm2232_vm2, %v35415_v5  ;;  %22976 = vmatprep.mubr.msk.bf16.mxu0 %vm2232_vm2, %v35359_v7 }
 0x397   : > { %22029 = vmatmul.mubr.msk.bf16.gmra.mrb[100].mxu1 %vm2232_vm2, %v35416_v20  ;;  %22977 = vmatmul.mubr.msk.bf16.gmra.mrb[16].mxu0 %vm2232_vm2, %v35360_v52 }
 0x398   : > { %22032 = vmatprep.mubr.msk.bf16.mxu1 %vm2232_vm2, %v35417_v47  ;;  %22980 = vmatprep.mubr.msk.bf16.mxu0 %vm2232_vm2, %v35361_v27 }
 0x39f   : > { %22033 = vmatmul.mubr.msk.bf16.gmra.mrb[104].mxu1 %vm2232_vm2, %v35418_v21  ;;  %22981 = vmatmul.mubr.msk.bf16.gmra.mrb[20].mxu0 %vm2232_vm2, %v35362_v57 }
 0x3a0   : > { %22036 = vmatprep.mubr.msk.bf16.mxu1 %vm2232_vm2, %v35419_v25  ;;  %22984 = vmatprep.mubr.msk.bf16.mxu0 %vm2232_vm2, %v35363_v46 }
 0x3a7   : > { %22037 = vmatmul.mubr.msk.bf16.gmra.mrb[108].mxu1 %vm2232_vm2, %v35422_v19  ;;  %22985 = vmatmul.mubr.msk.bf16.gmra.mrb[24].mxu0 %vm2232_vm2, %v35364_v48 }
 0x3a8   : > { %22040 = vmatprep.mubr.msk.bf16.mxu1 %vm2232_vm2, %v30196_v59  ;;  %22988 = vmatprep.mubr.msk.bf16.mxu0 %vm2232_vm2, %v35365_v38  ;;  %v35429_v59 = vld [vmem:[#allocation76_spill] sm:$0xff]  ;;  %v35434_v38 = vld [vmem:[#allocation85_spill] sm:$0xff] }
 0x3af   : > { %22041 = vmatmul.mubr.msk.bf16.gmra.mrb[112].mxu1 %vm2232_vm2, %v35424_v49  ;;  %22989 = vmatmul.mubr.msk.bf16.gmra.mrb[28].mxu0 %vm2232_vm2, %v30208_v28  ;;  %v35432_v28 = vld [vmem:[#allocation78_spill] sm:$0xff] }
 0x3b0   : > { %22044 = vmatprep.mubr.msk.bf16.mxu1 %vm2232_vm2, %v35425_v43  ;;  %22992 = vmatprep.mubr.msk.bf16.mxu0 %vm2232_vm2, %v35367_v50 }
 0x3b7   : > { %22045 = vmatmul.mubr.msk.bf16.gmra.mrb[116].mxu1 %vm2232_vm2, %v35426_v31  ;;  %22993 = vmatmul.mubr.msk.bf16.gmra.mrb[32].mxu0 %vm2232_vm2, %v35368_v16  ;;  %v35430_v16 = vld [vmem:[#allocation160_spill] sm:$0xff] }
 0x3b8   : > { %22048 = vmatprep.mubr.msk.bf16.mxu1 %vm2232_vm2, %v35427_v24  ;;  %22996 = vmatprep.mubr.msk.bf16.mxu0 %vm2232_vm2, %v35369_v36  ;;  %v30236_v50 = vpack.c.bf16 %v35430_v16, %v1786_v8  ;;  %v26948_v36 = vld [vmem:[%s27833_s19 + $0x230] sm:$0xff]  ;;  %v35435_v16 = vld [vmem:[#allocation93_spill] sm:$0xff] }
 0x3b9   : > { %v35436_v8 = vld [vmem:[#allocation95_spill] sm:$0xff] }
 0x3ba   : > { %35431 = vst [vmem:[#allocation160_spill] sm:$0xff] %v30236_v50 }
 0x3bf   : > { %22049 = vmatmul.mubr.msk.bf16.gmra.mrb[120].mxu1 %vm2232_vm2, %v35428_v10  ;;  %22997 = vmatmul.mubr.msk.bf16.gmra.mrb[36].mxu0 %vm2232_vm2, %v35370_v14  ;;  %v1713_v14 = vld [vmem:[%s27833_s19 + $0x238] sm:$0xff] }
 0x3c0   : > { %22052 = vmatprep.mubr.msk.bf16.mxu1 %vm2232_vm2, %v35429_v59  ;;  %23000 = vmatprep.mubr.msk.bf16.mxu0 %vm2232_vm2, %v35371_v32  ;;  %v30248_v32 = vpack.c.bf16 %v1713_v14, %v26948_v36  ;;  %v35437_v36 = vld [vmem:[#allocation103_spill] sm:$0xff]  ;;  %v35438_v14 = vld [vmem:[#allocation105_spill] sm:$0xff] }
 0x3c2   : > { %35433 = vst [vmem:[#allocation260_spill] sm:$0xff] %v30248_v32 }
 0x3c7   : > { %22053 = vmatmul.mubr.msk.bf16.gmra.mrb[124].mxu1 %vm2232_vm2, %v35432_v28  ;;  %23001 = vmatmul.mubr.msk.bf16.gmra.mrb[40].mxu0 %vm2232_vm2, %v35372_v60  ;;  %v35444_v60 = vld [vmem:[#allocation117_spill] sm:$0xff] }
 0x3c8   : > { %22056 = vmatprep.mubr.msk.bf16.mxu1 %vm2232_vm2, %v30236_v50  ;;  %23004 = vmatprep.mubr.msk.bf16.mxu0 %vm2232_vm2, %v35373_v9  ;;  %v35439_v50 = vld [vmem:[#allocation111_spill] sm:$0xff]  ;;  %v35442_v9 = vld [vmem:[#allocation112_spill] sm:$0xff] }
 0x3cf   : > { %22057 = vmatmul.mubr.msk.bf16.gmra.mrb[128].mxu1 %vm2232_vm2, %v35434_v38  ;;  %23005 = vmatmul.mubr.msk.bf16.gmra.mrb[44].mxu0 %vm2232_vm2, %v30248_v32 }
 0x3d0   : > { %22060 = vmatprep.mubr.msk.bf16.mxu1 %vm2232_vm2, %v35435_v16  ;;  %23008 = vmatprep.mubr.msk.bf16.mxu0 %vm2232_vm2, %v35377_v0  ;;  %v1804_v0 = vld [vmem:[%s27833_s19 + $0x510] sm:$0xff] }
 0x3d7   : > { %22061 = vmatmul.mubr.msk.bf16.gmra.mrb[132].mxu1 %vm2232_vm2, %v35436_v8  ;;  %23009 = vmatmul.mubr.msk.bf16.gmra.mrb[48].mxu0 %vm2232_vm2, %v35378_v42  ;;  %v35440_v42 = vld [vmem:[#allocation171_spill] sm:$0xff] }
 0x3d8   : > { %22064 = vmatprep.mubr.msk.bf16.mxu1 %vm2232_vm2, %v35437_v36  ;;  %23012 = vmatprep.mubr.msk.bf16.mxu0 %vm2232_vm2, %v35385_v6  ;;  %v30276_v32 = vpack.c.bf16 %v35440_v42, %v1804_v0  ;;  %v26949_v6 = vld [vmem:[%s27833_s19 + $0x2c0] sm:$0xff]  ;;  %v35446_v42 = vld [vmem:[#allocation122_spill] sm:$0xff] }
 0x3d9   : > { %v35445_v0 = vld [vmem:[#allocation121_spill] sm:$0xff] }
 0x3da   : > { %35441 = vst [vmem:[#allocation171_spill] sm:$0xff] %v30276_v32 }
 0x3df   : > { %22065 = vmatmul.mubr.msk.bf16.gmra.mrb[136].mxu1 %vm2232_vm2, %v35438_v14  ;;  %23013 = vmatmul.mubr.msk.bf16.gmra.mrb[52].mxu0 %vm2232_vm2, %v35386_v33  ;;  %v1731_v33 = vld [vmem:[%s27833_s19 + $0x2c8] sm:$0xff] }
 0x3e0   : > { %22068 = vmatprep.mubr.msk.bf16.mxu1 %vm2232_vm2, %v35439_v50  ;;  %23016 = vmatprep.mubr.msk.bf16.mxu0 %vm2232_vm2, %v35393_v34  ;;  %v30288_v34 = vpack.c.bf16 %v1731_v33, %v26949_v6  ;;  %v35447_v33 = vld [vmem:[#allocation125_spill] sm:$0xff]  ;;  %v35448_v6 = vld [vmem:[#allocation126_spill] sm:$0xff] }
 0x3e2   : > { %35443 = vst [vmem:[#allocation261_spill] sm:$0xff] %v30288_v34 }
 0x3e7   : > { %22069 = vmatmul.mubr.msk.bf16.gmra.mrb[140].mxu1 %vm2232_vm2, %v35442_v9  ;;  %23017 = vmatmul.mubr.msk.bf16.gmra.mrb[56].mxu0 %vm2232_vm2, %v35394_v29  ;;  %v35454_v29 = vld [vmem:[#allocation133_spill] sm:$0xff] }
 0x3e8   : > { %22072 = vmatprep.mubr.msk.bf16.mxu1 %vm2232_vm2, %v30276_v32  ;;  %23020 = vmatprep.mubr.msk.bf16.mxu0 %vm2232_vm2, %v35401_v39  ;;  %v35449_v32 = vld [vmem:[#allocation129_spill] sm:$0xff]  ;;  %v35452_v39 = vld [vmem:[#allocation130_spill] sm:$0xff] }
 0x3ef   : > { %22073 = vmatmul.mubr.msk.bf16.gmra.mrb[144].mxu1 %vm2232_vm2, %v35444_v60  ;;  %23021 = vmatmul.mubr.msk.bf16.gmra.mrb[60].mxu0 %vm2232_vm2, %v30288_v34 }
 0x3f0   : > { %22076 = vmatprep.mubr.msk.bf16.mxu1 %vm2232_vm2, %v35445_v0  ;;  %23024 = vmatprep.mubr.msk.bf16.mxu0 %vm2232_vm2, %v35406_v4  ;;  %v1822_v4 = vld [vmem:[%s27833_s19 + $0x5a0] sm:$0xff] }
 0x3f7   : > { %22077 = vmatmul.mubr.msk.bf16.gmra.mrb[148].mxu1 %vm2232_vm2, %v35446_v42  ;;  %23025 = vmatmul.mubr.msk.bf16.gmra.mrb[64].mxu0 %vm2232_vm2, %v35407_v56  ;;  %v35450_v56 = vld [vmem:[#allocation187_spill] sm:$0xff] }
 0x3f8   : > { %22080 = vmatprep.mubr.msk.bf16.mxu1 %vm2232_vm2, %v35447_v33  ;;  %23028 = vmatprep.mubr.msk.bf16.mxu0 %vm2232_vm2, %v35408_v37  ;;  %v30316_v34 = vpack.c.bf16 %v35450_v56, %v1822_v4  ;;  %v26950_v37 = vld [vmem:[%s27833_s19 + $0x350] sm:$0xff]  ;;  %v35455_v56 = vld [vmem:[#allocation136_spill] sm:$0xff]  ;;  %v35456_v4 = vld [vmem:[#allocation137_spill] sm:$0xff] }
 0x3fa   : > { %35451 = vst [vmem:[#allocation187_spill] sm:$0xff] %v30316_v34 }
 0x3ff   : > { %22081 = vmatmul.mubr.msk.bf16.gmra.mrb[152].mxu1 %vm2232_vm2, %v35448_v6  ;;  %23029 = vmatmul.mubr.msk.bf16.gmra.mrb[68].mxu0 %vm2232_vm2, %v35409_v30  ;;  %v1749_v30 = vld [vmem:[%s27833_s19 + $0x358] sm:$0xff] }
 0x400   : > { %22084 = vmatprep.mubr.msk.bf16.mxu1 %vm2232_vm2, %v35449_v32  ;;  %23032 = vmatprep.mubr.msk.bf16.mxu0 %vm2232_vm2, %v35410_v58  ;;  %v30328_v58 = vpack.c.bf16 %v1749_v30, %v26950_v37  ;;  %v35457_v37 = vld [vmem:[#allocation140_spill] sm:$0xff]  ;;  %v35458_v30 = vld [vmem:[#allocation141_spill] sm:$0xff] }
 0x402   : > { %35453 = vst [vmem:[#allocation262_spill] sm:$0xff] %v30328_v58 }
 0x407   : > { %22085 = vmatmul.mubr.msk.bf16.gmra.mrb[156].mxu1 %vm2232_vm2, %v35452_v39  ;;  %23033 = vmatmul.mubr.msk.bf16.gmra.mrb[72].mxu0 %vm2232_vm2, %v35411_v62  ;;  %v35464_v62 = vld [vmem:[#allocation149_spill] sm:$0xff] }
 0x408   : > { %22088 = vmatprep.mubr.msk.bf16.mxu1 %vm2232_vm2, %v30316_v34  ;;  %23036 = vmatprep.mubr.msk.bf16.mxu0 %vm2232_vm2, %v35412_v45  ;;  %v35459_v34 = vld [vmem:[#allocation145_spill] sm:$0xff]  ;;  %v35462_v45 = vld [vmem:[#allocation146_spill] sm:$0xff] }
 0x40f   : > { %22089 = vmatmul.mubr.msk.bf16.gmra.mrb[160].mxu1 %vm2232_vm2, %v35454_v29  ;;  %23037 = vmatmul.mubr.msk.bf16.gmra.mrb[76].mxu0 %vm2232_vm2, %v30328_v58 }
 0x410   : > { %22092 = vmatprep.mubr.msk.bf16.mxu1 %vm2232_vm2, %v35455_v56  ;;  %23040 = vmatprep.mubr.msk.bf16.mxu0 %vm2232_vm2, %v35414_v12  ;;  %v1840_v12 = vld [vmem:[%s27833_s19 + $0x630] sm:$0xff] }
 0x417   : > { %22093 = vmatmul.mubr.msk.bf16.gmra.mrb[164].mxu1 %vm2232_vm2, %v35456_v4  ;;  %23041 = vmatmul.mubr.msk.bf16.gmra.mrb[80].mxu0 %vm2232_vm2, %v35415_v5  ;;  %v35460_v5 = vld [vmem:[#allocation204_spill] sm:$0xff] }
 0x418   : > { %22096 = vmatprep.mubr.msk.bf16.mxu1 %vm2232_vm2, %v35457_v37  ;;  %23044 = vmatprep.mubr.msk.bf16.mxu0 %vm2232_vm2, %v35416_v20  ;;  %v30356_v58 = vpack.c.bf16 %v35460_v5, %v1840_v12  ;;  %v26951_v20 = vld [vmem:[%s27833_s19 + $0x3e0] sm:$0xff]  ;;  %v35465_v12 = vld [vmem:[#allocation152_spill] sm:$0xff]  ;;  %v35466_v5 = vld [vmem:[#allocation154_spill] sm:$0xff] }
 0x41a   : > { %35461 = vst [vmem:[#allocation204_spill] sm:$0xff] %v30356_v58 }
 0x41f   : > { %22097 = vmatmul.mubr.msk.bf16.gmra.mrb[168].mxu1 %vm2232_vm2, %v35458_v30  ;;  %23045 = vmatmul.mubr.msk.bf16.gmra.mrb[84].mxu0 %vm2232_vm2, %v35417_v47  ;;  %v1767_v47 = vld [vmem:[%s27833_s19 + $0x3e8] sm:$0xff] }
 0x420   : > { %22100 = vmatprep.mubr.msk.bf16.mxu1 %vm2232_vm2, %v35459_v34  ;;  %23048 = vmatprep.mubr.msk.bf16.mxu0 %vm2232_vm2, %v35418_v21  ;;  %v30368_v21 = vpack.c.bf16 %v1767_v47, %v26951_v20  ;;  %v35467_v20 = vld [vmem:[#allocation157_spill] sm:$0xff]  ;;  %v35468_v47 = vld [vmem:[#allocation159_spill] sm:$0xff] }
 0x422   : > { %35463 = vst [vmem:[#allocation263_spill] sm:$0xff] %v30368_v21 }
 0x427   : > { %22101 = vmatmul.mubr.msk.bf16.gmra.mrb[172].mxu1 %vm2232_vm2, %v35462_v45  ;;  %23049 = vmatmul.mubr.msk.bf16.gmra.mrb[88].mxu0 %vm2232_vm2, %v35419_v25  ;;  %v35475_v25 = vld [vmem:[#allocation167_spill] sm:$0xff] }
 0x428   : > { %22104 = vmatprep.mubr.msk.bf16.mxu1 %vm2232_vm2, %v30356_v58  ;;  %23052 = vmatprep.mubr.msk.bf16.mxu0 %vm2232_vm2, %v35422_v19  ;;  %v35469_v58 = vld [vmem:[#allocation162_spill] sm:$0xff]  ;;  %v35472_v19 = vld [vmem:[#allocation164_spill] sm:$0xff] }
 0x42f   : > { %22105 = vmatmul.mubr.msk.bf16.gmra.mrb[176].mxu1 %vm2232_vm2, %v35464_v62  ;;  %23053 = vmatmul.mubr.msk.bf16.gmra.mrb[92].mxu0 %vm2232_vm2, %v30368_v21 }
 0x430   : > { %22108 = vmatprep.mubr.msk.bf16.mxu1 %vm2232_vm2, %v35465_v12  ;;  %23056 = vmatprep.mubr.msk.bf16.mxu0 %vm2232_vm2, %v35424_v49  ;;  %v35470_v49 = vld [vmem:[#allocation161_spill] sm:$0xff] }
 0x437   : > { %22109 = vmatmul.mubr.msk.bf16.gmra.mrb[180].mxu1 %vm2232_vm2, %v35466_v5  ;;  %23057 = vmatmul.mubr.msk.bf16.gmra.mrb[96].mxu0 %vm2232_vm2, %v35425_v43  ;;  %v1858_v43 = vld [vmem:[%s27833_s19 + $0x6c0] sm:$0xff] }
 0x438   : > { %22112 = vmatprep.mubr.msk.bf16.mxu1 %vm2232_vm2, %v35467_v20  ;;  %23060 = vmatprep.mubr.msk.bf16.mxu0 %vm2232_vm2, %v35426_v31  ;;  %v30396_v21 = vpack.c.bf16 %v35470_v49, %v1858_v43  ;;  %v26952_v43 = vld [vmem:[%s27833_s19 + $0x470] sm:$0xff] }
 0x43a   : > { %35471 = vst [vmem:[#allocation161_spill] sm:$0xff] %v30396_v21 }
 0x43f   : > { %22113 = vmatmul.mubr.msk.bf16.gmra.mrb[184].mxu1 %vm2232_vm2, %v35468_v47  ;;  %23061 = vmatmul.mubr.msk.bf16.gmra.mrb[100].mxu0 %vm2232_vm2, %v35427_v24  ;;  %v1968_v24 = vld [vmem:[%s34344_s1 + $0x4] sm:$0x3] }
 0x440   : > { %22116 = vmatprep.mubr.msk.bf16.mxu1 %vm2232_vm2, %v35469_v58  ;;  %23064 = vmatprep.mubr.msk.bf16.mxu0 %vm2232_vm2, %v35428_v10  ;;  %v1785_v10 = vld [vmem:[%s27833_s19 + $0x478] sm:$0xff]  ;;  %v5190_v49 = vand.u32 %v35281_v23, %v1968_v24  ;;  %v35477_v24 = vld [vmem:[#allocation169_spill] sm:$0xff] }
 0x441   : > { %v30412_v31 = vpack.c.bf16 %v1785_v10, %v26952_v43  ;;  %v35478_v10 = vld [vmem:[#allocation101_spill] sm:$0xff]  ;;  %v35480_v43 = vld [vmem:[#allocation172_spill] sm:$0xff] }
 0x442   : > { %22184 = vmatprep.subr.bf16.mxu1 %v5190_v49 }
 0x443   : > { %35473 = vst [vmem:[#allocation264_spill] sm:$0xff] %v30412_v31  ;;  %22185 = vmatpush3.bf16.msra.mxu1 %v5190_v49  ;;  %v35479_v49 = vld [vmem:[#allocation170_spill] sm:$0xff] }
 0x447   : > { %22117 = vmatmul.mubr.msk.bf16.gmra.mrb[188].mxu1 %vm2232_vm2, %v35472_v19  ;;  %23065 = vmatmul.mubr.msk.bf16.gmra.mrb[104].mxu0 %vm2232_vm2, %v35429_v59  ;;  %v35474_v59 = vld [vmem:[#allocation10_spill] sm:$0xff] }
 0x448   : > { %22120 = vmatprep.mubr.msk.bf16.mxu1 %vm2232_vm2, %v30396_v21  ;;  %23068 = vmatprep.mubr.msk.bf16.mxu0 %vm2232_vm2, %v35432_v28  ;;  %v35476_v21 = vld [vmem:[#allocation92_spill] sm:$0xff] }
 0x449   : > { %24350 = vmatprep.subr.bf16.mxu1 %v35474_v59  ;;  %v35484_v28 = vld [vmem:[#allocation176_spill] sm:$0xff] }
 0x44f   : > { %22121 = vmatmul.mubr.msk.bf16.gmra.mrb[192].mxu1 %vm2232_vm2, %v35475_v25  ;;  %23069 = vmatmul.mubr.msk.bf16.gmra.mrb[108].mxu0 %vm2232_vm2, %v30412_v31  ;;  %v35482_v31 = vld [vmem:[#allocation173_spill] sm:$0xff] }
 0x450   : > { %22124 = vmatprep.mubr.msk.bf16.mxu1 %vm2232_vm2, %v35476_v21  ;;  %23072 = vmatprep.mubr.msk.bf16.mxu0 %vm2232_vm2, %v35434_v38  ;;  %v1876_v38 = vld [vmem:[%s27833_s19 + $0x750] sm:$0xff] }
 0x457   : > { %22125 = vmatmul.mubr.msk.bf16.gmra.mrb[196].mxu1 %vm2232_vm2, %v35477_v24  ;;  %23073 = vmatmul.mubr.msk.bf16.gmra.mrb[112].mxu0 %vm2232_vm2, %v35435_v16  ;;  %v30441_v16 = vpack.c.bf16 %v29643_v54, %v1876_v38  ;;  %v35485_v54 = vld [vmem:[#allocation179_spill] sm:$0xff]  ;;  %v35486_v38 = vld [vmem:[#allocation180_spill] sm:$0xff] }
 0x458   : > { %22128 = vmatprep.mubr.msk.bf16.mxu1 %vm2232_vm2, %v35478_v10  ;;  %23076 = vmatprep.mubr.msk.bf16.mxu0 %vm2232_vm2, %v35436_v8  ;;  %v26953_v8 = vld [vmem:[%s27833_s19 + $0x500] sm:$0xff] }
 0x459   : > { %35481 = vst [vmem:[#allocation10_spill] sm:$0xff] %v30441_v16 }
 0x45f   : > { %22129 = vmatmul.mubr.msk.bf16.gmra.mrb[200].mxu1 %vm2232_vm2, %v35479_v49  ;;  %23077 = vmatmul.mubr.msk.bf16.gmra.mrb[116].mxu0 %vm2232_vm2, %v35437_v36  ;;  %v1803_v36 = vld [vmem:[%s27833_s19 + $0x508] sm:$0xff] }
 0x460   : > { %22132 = vmatprep.mubr.msk.bf16.mxu1 %vm2232_vm2, %v35480_v43  ;;  %23080 = vmatprep.mubr.msk.bf16.mxu0 %vm2232_vm2, %v35438_v14  ;;  %v30453_v14 = vpack.c.bf16 %v1803_v36, %v26953_v8  ;;  %v35487_v8 = vld [vmem:[#allocation183_spill] sm:$0xff]  ;;  %v35488_v36 = vld [vmem:[#allocation184_spill] sm:$0xff] }
 0x462   : > { %35483 = vst [vmem:[#allocation167_spill] sm:$0xff] %v30453_v14 }
 0x467   : > { %22133 = vmatmul.mubr.msk.bf16.gmra.mrb[204].mxu1 %vm2232_vm2, %v35482_v31  ;;  %23081 = vmatmul.mubr.msk.bf16.gmra.mrb[120].mxu0 %vm2232_vm2, %v35439_v50 }
 0x468   : > { %22136 = vmatprep.mubr.msk.bf16.mxu1 %vm2232_vm2, %v30441_v16  ;;  %23084 = vmatprep.mubr.msk.bf16.mxu0 %vm2232_vm2, %v35442_v9  ;;  %v35489_v16 = vld [vmem:[#allocation188_spill] sm:$0xff] }
 0x469   : > { %v35493_v9 = vld [vmem:[#allocation192_spill] sm:$0xff] }
 0x46f   : > { %22137 = vmatmul.mubr.msk.bf16.gmra.mrb[208].mxu1 %vm2232_vm2, %v35484_v28  ;;  %23085 = vmatmul.mubr.msk.bf16.gmra.mrb[124].mxu0 %vm2232_vm2, %v30453_v14  ;;  %v35491_v14 = vld [vmem:[#allocation189_spill] sm:$0xff] }
 0x470   : > { %22140 = vmatprep.mubr.msk.bf16.mxu1 %vm2232_vm2, %v35485_v54  ;;  %23088 = vmatprep.mubr.msk.bf16.mxu0 %vm2232_vm2, %v35444_v60  ;;  %v1894_v60 = vld [vmem:[%s27833_s19 + $0x7e0] sm:$0xff] }
 0x477   : > { %22141 = vmatmul.mubr.msk.bf16.gmra.mrb[212].mxu1 %vm2232_vm2, %v35486_v38  ;;  %23089 = vmatmul.mubr.msk.bf16.gmra.mrb[128].mxu0 %vm2232_vm2, %v35445_v0  ;;  %v30481_v0 = vpack.c.bf16 %v29713_v41, %v1894_v60  ;;  %v35494_v41 = vld [vmem:[#allocation195_spill] sm:$0xff]  ;;  %v35495_v60 = vld [vmem:[#allocation196_spill] sm:$0xff] }
 0x478   : > { %22144 = vmatprep.mubr.msk.bf16.mxu1 %vm2232_vm2, %v35487_v8  ;;  %23092 = vmatprep.mubr.msk.bf16.mxu0 %vm2232_vm2, %v35446_v42  ;;  %v26954_v42 = vld [vmem:[%s27833_s19 + $0x590] sm:$0xff] }
 0x479   : > { %35490 = vst [vmem:[#allocation92_spill] sm:$0xff] %v30481_v0 }
 0x47f   : > { %22145 = vmatmul.mubr.msk.bf16.gmra.mrb[216].mxu1 %vm2232_vm2, %v35488_v36  ;;  %23093 = vmatmul.mubr.msk.bf16.gmra.mrb[132].mxu0 %vm2232_vm2, %v35447_v33  ;;  %v1821_v33 = vld [vmem:[%s27833_s19 + $0x598] sm:$0xff] }
 0x480   : > { %22148 = vmatprep.mubr.msk.bf16.mxu1 %vm2232_vm2, %v35489_v16  ;;  %23096 = vmatprep.mubr.msk.bf16.mxu0 %vm2232_vm2, %v35448_v6  ;;  %v30493_v6 = vpack.c.bf16 %v1821_v33, %v26954_v42  ;;  %v35496_v42 = vld [vmem:[#allocation199_spill] sm:$0xff]  ;;  %v35497_v33 = vld [vmem:[#allocation200_spill] sm:$0xff] }
 0x482   : > { %35492 = vst [vmem:[#allocation169_spill] sm:$0xff] %v30493_v6 }
 0x487   : > { %22149 = vmatmul.mubr.msk.bf16.gmra.mrb[220].mxu1 %vm2232_vm2, %v35491_v14  ;;  %23097 = vmatmul.mubr.msk.bf16.gmra.mrb[136].mxu0 %vm2232_vm2, %v35449_v32 }
 0x488   : > { %22152 = vmatprep.mubr.msk.bf16.mxu1 %vm2232_vm2, %v30481_v0  ;;  %23100 = vmatprep.mubr.msk.bf16.mxu0 %vm2232_vm2, %v35452_v39  ;;  %v35498_v0 = vld [vmem:[#allocation205_spill] sm:$0xff] }
 0x48f   : > { %22153 = vmatmul.mubr.msk.bf16.gmra.mrb[224].mxu1 %vm2232_vm2, %v35493_v9  ;;  %23101 = vmatmul.mubr.msk.bf16.gmra.mrb[140].mxu0 %vm2232_vm2, %v30493_v6  ;;  %v35500_v6 = vld [vmem:[#allocation206_spill] sm:$0xff] }
 0x490   : > { %22156 = vmatprep.mubr.msk.bf16.mxu1 %vm2232_vm2, %v35494_v41  ;;  %23104 = vmatprep.mubr.msk.bf16.mxu0 %vm2232_vm2, %v35454_v29  ;;  %v1912_v29 = vld [vmem:[%s27833_s19 + $0x870] sm:$0xff] }
 0x497   : > { %22157 = vmatmul.mubr.msk.bf16.gmra.mrb[228].mxu1 %vm2232_vm2, %v35495_v60  ;;  %23105 = vmatmul.mubr.msk.bf16.gmra.mrb[144].mxu0 %vm2232_vm2, %v35455_v56  ;;  %v30521_v56 = vpack.c.bf16 %v29783_v22, %v1912_v29  ;;  %v35504_v22 = vld [vmem:[#allocation216_spill] sm:$0xff]  ;;  %v35505_v29 = vld [vmem:[#allocation218_spill] sm:$0xff] }
 0x498   : > { %22160 = vmatprep.mubr.msk.bf16.mxu1 %vm2232_vm2, %v35496_v42  ;;  %23108 = vmatprep.mubr.msk.bf16.mxu0 %vm2232_vm2, %v35456_v4  ;;  %v35501_v4 = vld [vmem:[#allocation203_spill] sm:$0xff] }
 0x499   : > { %35499 = vst [vmem:[#allocation173_spill] sm:$0xff] %v30521_v56 }
 0x49f   : > { %22161 = vmatmul.mubr.msk.bf16.gmra.mrb[232].mxu1 %vm2232_vm2, %v35497_v33  ;;  %23109 = vmatmul.mubr.msk.bf16.gmra.mrb[148].mxu0 %vm2232_vm2, %v35457_v37  ;;  %v1839_v37 = vld [vmem:[%s27833_s19 + $0x628] sm:$0xff] }
 0x4a0   : > { %22164 = vmatprep.mubr.msk.bf16.mxu1 %vm2232_vm2, %v35498_v0  ;;  %23112 = vmatprep.mubr.msk.bf16.mxu0 %vm2232_vm2, %v35458_v30  ;;  %v30533_v39 = vpack.c.bf16 %v1839_v37, %v35501_v4  ;;  %v35503_v30 = vld [vmem:[#allocation210_spill] sm:$0xff]  ;;  %v35506_v4 = vld [vmem:[#allocation220_spill] sm:$0xff] }
 0x4a1   : > { %v35507_v37 = vld [vmem:[#allocation222_spill] sm:$0xff] }
 0x4a2   : > { %35502 = vst [vmem:[#allocation176_spill] sm:$0xff] %v30533_v39 }
 0x4a7   : > { %22165 = vmatmul.mubr.msk.bf16.gmra.mrb[236].mxu1 %vm2232_vm2, %v35500_v6  ;;  %23113 = vmatmul.mubr.msk.bf16.gmra.mrb[152].mxu0 %vm2232_vm2, %v35459_v34 }
 0x4a8   : > { %22168 = vmatprep.mubr.msk.bf16.mxu1 %vm2232_vm2, %v30521_v56  ;;  %23116 = vmatprep.mubr.msk.bf16.mxu0 %vm2232_vm2, %v35462_v45  ;;  %v35508_v56 = vld [vmem:[#allocation223_spill] sm:$0xff] }
 0x4af   : > { %22169 = vmatmul.mubr.msk.bf16.gmra.mrb[240].mxu1 %vm2232_vm2, %v35503_v30  ;;  %23117 = vmatmul.mubr.msk.bf16.gmra.mrb[156].mxu0 %vm2232_vm2, %v30533_v39 }
 0x4b0   : > { %22172 = vmatprep.mubr.msk.bf16.mxu1 %vm2232_vm2, %v35504_v22  ;;  %23120 = vmatprep.mubr.msk.bf16.mxu0 %vm2232_vm2, %v35464_v62  ;;  %v35509_v62 = vld [vmem:[#allocation224_spill] sm:$0xff] }
 0x4b7   : > { %22173 = vmatmul.mubr.msk.bf16.gmra.mrb[244].mxu1 %vm2232_vm2, %v35505_v29  ;;  %23121 = vmatmul.mubr.msk.bf16.gmra.mrb[160].mxu0 %vm2232_vm2, %v35465_v12 }
 0x4b8   : > { %22176 = vmatprep.mubr.msk.bf16.mxu1 %vm2232_vm2, %v35506_v4  ;;  %23124 = vmatprep.mubr.msk.bf16.mxu0 %vm2232_vm2, %v35466_v5  ;;  %v35510_v5 = vld [vmem:[#allocation75_spill] sm:$0xff] }
 0x4bf   : > { %22177 = vmatmul.mubr.msk.bf16.gmra.mrb[248].mxu1 %vm2232_vm2, %v35507_v37  ;;  %23125 = vmatmul.mubr.msk.bf16.gmra.mrb[164].mxu0 %vm2232_vm2, %v35467_v20  ;;  %v1857_v20 = vld [vmem:[%s27833_s19 + $0x6b8] sm:$0xff] }
 0x4c0   : > { %22180 = vmatprep.mubr.msk.bf16.mxu1 %vm2232_vm2, %v35508_v56  ;;  %23128 = vmatprep.mubr.msk.bf16.mxu0 %vm2232_vm2, %v35468_v47  ;;  %v30569_v12 = vpack.c.bf16 %v1857_v20, %v35510_v5  ;;  %v35522_v5 = vld [vmem:[#allocation43_spill] sm:$0xff]  ;;  %v35523_v20 = vld [vmem:[#allocation45_spill] sm:$0xff] }
 0x4c2   : > { %35511 = vst [vmem:[#allocation179_spill] sm:$0xff] %v30569_v12 }
 0x4c7   : > { %22181 = vmatmul.mubr.msk.bf16.gmra.mrb[252].mxu1 %vm2232_vm2, %v35509_v62  ;;  %23129 = vmatmul.mubr.msk.bf16.gmra.mrb[168].mxu0 %vm2232_vm2, %v35469_v58 }
 0x4c8   : > { %22186 = vmatprep.mubr.msk.bf16.mxu1 %vm2232_vm2, %v35347_v63  ;;  %23132 = vmatprep.mubr.msk.bf16.mxu0 %vm2232_vm2, %v35472_v19  ;;  %v1659_v63 = vld [vmem:[%s27833_s19 + $0x88] sm:$0xff] }
 0x4cf   : > { %22187 = vmatmul.mubr.msk.bf16.vlgmr.msra.gmra.mrb[0].mxu1 %vm2232_vm2, %v29867_v40  ;;  %23133 = vmatmul.mubr.msk.bf16.gmra.mrb[172].mxu0 %vm2232_vm2, %v30569_v12 }
 0x4d0   : > { %22190 = vmatprep.mubr.msk.bf16.mxu1 %vm2232_vm2, %v29879_v3  ;;  %23136 = vmatprep.mubr.msk.bf16.mxu0 %vm2232_vm2, %v35475_v25  ;;  %v1875_v3 = vld [vmem:[%s27833_s19 + $0x748] sm:$0xff] }
 0x4d1   : > { %24351 = vmatpush3.bf16.msra.mxu1 %v35474_v59  ;;  %v30607_v40 = vpack.c.bf16 %v1875_v3, %v29638_v26  ;;  %v1973_v26 = vld [vmem:[%s34344_s1 + $0xe] sm:$0x3]  ;;  %v1929_v3 = vld [vmem:[%s27833_s19 + $0x8f8] sm:$0xff] }
 0x4d3   : > { %35512 = vst [vmem:[#allocation180_spill] sm:$0xff] %v30607_v40 }
 0x4d7   : > { %22191 = vmatmul.mubr.msk.bf16.gmra.mrb[4].mxu1 %vm2232_vm2, %v29883_v13  ;;  %23137 = vmatmul.mubr.msk.bf16.gmra.mrb[176].mxu0 %vm2232_vm2, %v35476_v21  ;;  %v26955_v13 = vld [vmem:[%s27833_s19 + $0x80] sm:$0xff] }
 0x4d8   : > { %22194 = vmatprep.mubr.msk.bf16.mxu1 %vm2232_vm2, %v29895_v15  ;;  %23140 = vmatprep.mubr.msk.bf16.mxu0 %vm2232_vm2, %v35477_v24  ;;  %v5125_v59 = vpack.c.bf16 %v1659_v63, %v26955_v13  ;;  %v30629_v15 = vand.u32 %v35281_v23, %v1973_v26  ;;  %v35524_v63 = vld [vmem:[#allocation49_spill] sm:$0xff]  ;;  %v35525_v13 = vld [vmem:[#allocation260_spill] sm:$0xff] }
 0x4d9   : > { %v35527_v26 = vld [vmem:[#allocation156_spill] sm:$0xff] }
 0x4da   : > { %23474 = vmatprep.subr.bf16.mxu0 %v30629_v15  ;;  %v35532_v23 = vld [vmem:[#allocation56_spill] sm:$0xff] }
 0x4df   : > { %22195 = vmatmul.mubr.msk.bf16.gmra.mrb[8].mxu1 %vm2232_vm2, %v29899_v18  ;;  %23141 = vmatmul.mubr.msk.bf16.gmra.mrb[180].mxu0 %vm2232_vm2, %v35478_v10  ;;  %v1911_v18 = vld [vmem:[%s27833_s19 + $0x868] sm:$0xff] }
 0x4e0   : > { %22198 = vmatprep.mubr.msk.bf16.mxu1 %vm2232_vm2, %v29911_v11  ;;  %23144 = vmatprep.mubr.msk.bf16.mxu0 %vm2232_vm2, %v35479_v49  ;;  %v35517_v11 = vld [vmem:[#allocation243_spill] sm:$0xff] }
 0x4e7   : > { %22199 = vmatmul.mubr.msk.bf16.gmra.mrb[12].mxu1 %vm2232_vm2, %v5125_v59  ;;  %23145 = vmatmul.mubr.msk.bf16.gmra.mrb[184].mxu0 %vm2232_vm2, %v35480_v43  ;;  %v35526_v59 = vld [vmem:[#allocation54_spill] sm:$0xff] }
 0x4e8   : > { %22202 = vmatprep.mubr.msk.bf16.mxu1 %vm2232_vm2, %v35351_v17  ;;  %23148 = vmatprep.mubr.msk.bf16.mxu0 %vm2232_vm2, %v35482_v31  ;;  %v30686_v17 = vpack.c.bf16 %v1911_v18, %v35517_v11  ;;  %v35529_v18 = vld [vmem:[#allocation221_spill] sm:$0xff]  ;;  %v35530_v11 = vld [vmem:[#allocation12_spill] sm:$0xff] }
 0x4ea   : > { %35518 = vst [vmem:[#allocation184_spill] sm:$0xff] %v30686_v17 }
 0x4ef   : > { %22203 = vmatmul.mubr.msk.bf16.gmra.mrb[16].mxu1 %vm2232_vm2, %v35352_v51  ;;  %23149 = vmatmul.mubr.msk.bf16.gmra.mrb[188].mxu0 %vm2232_vm2, %v30607_v40  ;;  %v35519_v51 = vld [vmem:[#allocation33_spill] sm:$0xff] }
 0x4f0   : > { %22206 = vmatprep.mubr.msk.bf16.mxu1 %vm2232_vm2, %v35353_v2  ;;  %23152 = vmatprep.mubr.msk.bf16.mxu0 %vm2232_vm2, %v35484_v28  ;;  %v35520_v2 = vld [vmem:[#allocation37_spill] sm:$0xff] }
 0x4f7   : > { %22207 = vmatmul.mubr.msk.bf16.gmra.mrb[20].mxu1 %vm2232_vm2, %v35354_v53  ;;  %23153 = vmatmul.mubr.msk.bf16.gmra.mrb[192].mxu0 %vm2232_vm2, %v35485_v54  ;;  %v35521_v53 = vld [vmem:[#allocation39_spill] sm:$0xff] }
 0x4f8   : > { %22210 = vmatprep.mubr.msk.bf16.mxu1 %vm2232_vm2, %v35355_v61  ;;  %23156 = vmatprep.mubr.msk.bf16.mxu0 %vm2232_vm2, %v35486_v38  ;;  %v1893_v61 = vld [vmem:[%s27833_s19 + $0x7d8] sm:$0xff] }
 0x4ff   : > { %22211 = vmatmul.mubr.msk.bf16.gmra.mrb[24].mxu1 %vm2232_vm2, %v35356_v44  ;;  %23157 = vmatmul.mubr.msk.bf16.gmra.mrb[196].mxu0 %vm2232_vm2, %v35487_v8  ;;  %v30650_v44 = vpack.c.bf16 %v1893_v61, %v29708_v1  ;;  %v35516_v1 = vld [vmem:[#allocation31_spill] sm:$0xff]  ;;  %v30722_v61 = vpack.c.bf16 %v1929_v3, %v35527_v26 }
 0x500   : > { %22214 = vmatprep.mubr.msk.bf16.mxu1 %vm2232_vm2, %v35357_v55  ;;  %23160 = vmatprep.mubr.msk.bf16.mxu0 %vm2232_vm2, %v35488_v36  ;;  %v35515_v55 = vld [vmem:[#allocation259_spill] sm:$0xff] }
 0x501   : > { %35513 = vst [vmem:[#allocation183_spill] sm:$0xff] %v30650_v44  ;;  %35528 = vst [vmem:[#allocation188_spill] sm:$0xff] %v30722_v61  ;;  %v35537_v26 = vld [vmem:[#allocation15_spill] sm:$0xff] }
 0x507   : > { %22215 = vmatmul.mubr.msk.bf16.gmra.mrb[28].mxu1 %vm2232_vm2, %v30168_v35  ;;  %23161 = vmatmul.mubr.msk.bf16.gmra.mrb[200].mxu0 %vm2232_vm2, %v35489_v16  ;;  %v35514_v35 = vld [vmem:[#allocation27_spill] sm:$0xff] }
 0x508   : > { %22218 = vmatprep.mubr.msk.bf16.mxu1 %vm2232_vm2, %v35359_v7  ;;  %23164 = vmatprep.mubr.msk.bf16.mxu0 %vm2232_vm2, %v35491_v14 }
 0x50f   : > { %22219 = vmatmul.mubr.msk.bf16.gmra.mrb[32].mxu1 %vm2232_vm2, %v35360_v52  ;;  %23165 = vmatmul.mubr.msk.bf16.gmra.mrb[204].mxu0 %vm2232_vm2, %v30650_v44 }
 0x510   : > { %22222 = vmatprep.mubr.msk.bf16.mxu1 %vm2232_vm2, %v35361_v27  ;;  %23168 = vmatprep.mubr.msk.bf16.mxu0 %vm2232_vm2, %v35493_v9 }
 0x517   : > { %22223 = vmatmul.mubr.msk.bf16.gmra.mrb[36].mxu1 %vm2232_vm2, %v35362_v57  ;;  %23169 = vmatmul.mubr.msk.bf16.gmra.mrb[208].mxu0 %vm2232_vm2, %v35494_v41 }
 0x518   : > { %22226 = vmatprep.mubr.msk.bf16.mxu1 %vm2232_vm2, %v35363_v46  ;;  %23172 = vmatprep.mubr.msk.bf16.mxu0 %vm2232_vm2, %v35495_v60 }
 0x51f   : > { %22227 = vmatmul.mubr.msk.bf16.gmra.mrb[40].mxu1 %vm2232_vm2, %v35364_v48  ;;  %23173 = vmatmul.mubr.msk.bf16.gmra.mrb[212].mxu0 %vm2232_vm2, %v35496_v42 }
 0x520   : > { %22230 = vmatprep.mubr.msk.bf16.mxu1 %vm2232_vm2, %v35514_v35  ;;  %23176 = vmatprep.mubr.msk.bf16.mxu0 %vm2232_vm2, %v35497_v33 }
 0x527   : > { %22231 = vmatmul.mubr.msk.bf16.gmra.mrb[44].mxu1 %vm2232_vm2, %v35515_v55  ;;  %23177 = vmatmul.mubr.msk.bf16.gmra.mrb[216].mxu0 %vm2232_vm2, %v35498_v0  ;;  %v30726_v55 = vpack.c.bf16 %v35530_v11, %v35529_v18  ;;  %v35540_v11 = vld [vmem:[#allocation62_spill] sm:$0xff] }
 0x528   : > { %22234 = vmatprep.mubr.msk.bf16.mxu1 %vm2232_vm2, %v35516_v1  ;;  %23180 = vmatprep.mubr.msk.bf16.mxu0 %vm2232_vm2, %v35500_v6 }
 0x529   : > { %35531 = vst [vmem:[#allocation189_spill] sm:$0xff] %v30726_v55 }
 0x52f   : > { %22235 = vmatmul.mubr.msk.bf16.gmra.mrb[48].mxu1 %vm2232_vm2, %v35519_v51  ;;  %23181 = vmatmul.mubr.msk.bf16.gmra.mrb[220].mxu0 %vm2232_vm2, %v30686_v17  ;;  %v35558_v17 = vld [vmem:[#allocation257_spill] sm:$0xff] }
 0x530   : > { %22238 = vmatprep.mubr.msk.bf16.mxu1 %vm2232_vm2, %v35520_v2  ;;  %23184 = vmatprep.mubr.msk.bf16.mxu0 %vm2232_vm2, %v35503_v30  ;;  %v35554_v30 = vld [vmem:[#allocation256_spill] sm:$0xff] }
 0x537   : > { %22239 = vmatmul.mubr.msk.bf16.gmra.mrb[52].mxu1 %vm2232_vm2, %v35521_v53  ;;  %23185 = vmatmul.mubr.msk.bf16.gmra.mrb[224].mxu0 %vm2232_vm2, %v35504_v22  ;;  %v35551_v22 = vld [vmem:[#allocation252_spill] sm:$0xff] }
 0x538   : > { %22242 = vmatprep.mubr.msk.bf16.mxu1 %vm2232_vm2, %v35522_v5  ;;  %23188 = vmatprep.mubr.msk.bf16.mxu0 %vm2232_vm2, %v35505_v29  ;;  %v35548_v29 = vld [vmem:[#allocation72_spill] sm:$0xff] }
 0x53f   : > { %22243 = vmatmul.mubr.msk.bf16.gmra.mrb[56].mxu1 %vm2232_vm2, %v35523_v20  ;;  %23189 = vmatmul.mubr.msk.bf16.gmra.mrb[228].mxu0 %vm2232_vm2, %v35506_v4  ;;  %v35545_v4 = vld [vmem:[#allocation247_spill] sm:$0xff] }
 0x540   : > { %22246 = vmatprep.mubr.msk.bf16.mxu1 %vm2232_vm2, %v35524_v63  ;;  %23192 = vmatprep.mubr.msk.bf16.mxu0 %vm2232_vm2, %v35507_v37  ;;  %v35538_v37 = vld [vmem:[#allocation18_spill] sm:$0xff] }
 0x541   : > { %v30742_v18 = vpack.c.bf16 %v35538_v37, %v35537_v26  ;;  %v35546_v37 = vld [vmem:[#allocation250_spill] sm:$0xff] }
 0x542   : > { %v30758_v26 = vpack.c.bf16 %v35546_v37, %v35545_v4  ;;  %v35556_v37 = vld [vmem:[#allocation261_spill] sm:$0xff] }
 0x543   : > { %35539 = vst [vmem:[#allocation195_spill] sm:$0xff] %v30742_v18 }
 0x544   : > { %35547 = vst [vmem:[#allocation199_spill] sm:$0xff] %v30758_v26 }
 0x547   : > { %22247 = vmatmul.mubr.msk.bf16.gmra.mrb[60].mxu1 %vm2232_vm2, %v35525_v13  ;;  %23193 = vmatmul.mubr.msk.bf16.gmra.mrb[232].mxu0 %vm2232_vm2, %v35508_v56  ;;  %v35533_v13 = vld [vmem:[#allocation60_spill] sm:$0xff]  ;;  %v35535_v56 = vld [vmem:[#allocation14_spill] sm:$0xff] }
 0x548   : > { %22250 = vmatprep.mubr.msk.bf16.mxu1 %vm2232_vm2, %v35526_v59  ;;  %23196 = vmatprep.mubr.msk.bf16.mxu0 %vm2232_vm2, %v35509_v62  ;;  %v35534_v62 = vld [vmem:[#allocation13_spill] sm:$0xff] }
 0x549   : > { %v30738_v3 = vpack.c.bf16 %v35535_v56, %v35534_v62  ;;  %v35543_v62 = vld [vmem:[#allocation246_spill] sm:$0xff] }
 0x54b   : > { %35536 = vst [vmem:[#allocation192_spill] sm:$0xff] %v30738_v3 }
 0x54f   : > { %22251 = vmatmul.mubr.msk.bf16.gmra.mrb[64].mxu1 %vm2232_vm2, %v35532_v23  ;;  %23197 = vmatmul.mubr.msk.bf16.gmra.mrb[236].mxu0 %vm2232_vm2, %v30722_v61  ;;  %v35541_v61 = vld [vmem:[#allocation70_spill] sm:$0xff] }
 0x550   : > { %22254 = vmatprep.mubr.msk.bf16.mxu1 %vm2232_vm2, %v35533_v13  ;;  %23200 = vmatprep.mubr.msk.bf16.mxu0 %vm2232_vm2, %v30726_v55  ;;  %v35542_v55 = vld [vmem:[#allocation19_spill] sm:$0xff] }
 0x551   : > { %v30754_v56 = vpack.c.bf16 %v35543_v62, %v35542_v55  ;;  %v35553_v62 = vld [vmem:[#allocation253_spill] sm:$0xff] }
 0x552   : > { %v30774_v4 = vpack.c.bf16 %v35554_v30, %v35553_v62  ;;  %v35561_v30 = vld [vmem:[#allocation97_spill] sm:$0xff]  ;;  %v35562_v62 = vld [vmem:[#allocation20_spill] sm:$0xff] }
 0x553   : > { %35544 = vst [vmem:[#allocation196_spill] sm:$0xff] %v30754_v56 }
 0x554   : > { %35555 = vst [vmem:[#allocation205_spill] sm:$0xff] %v30774_v4 }
 0x557   : > { %22255 = vmatmul.mubr.msk.bf16.gmra.mrb[68].mxu1 %vm2232_vm2, %v35540_v11  ;;  %23201 = vmatmul.mubr.msk.bf16.gmra.mrb[240].mxu0 %vm2232_vm2, %v30738_v3  ;;  %v35549_v3 = vld [vmem:[#allocation80_spill] sm:$0xff] }
 0x558   : > { %22258 = vmatprep.mubr.msk.bf16.mxu1 %vm2232_vm2, %v35541_v61  ;;  %23204 = vmatprep.mubr.msk.bf16.mxu0 %vm2232_vm2, %v30742_v18  ;;  %v35550_v18 = vld [vmem:[#allocation251_spill] sm:$0xff] }
 0x559   : > { %v30770_v55 = vpack.c.bf16 %v35551_v22, %v35550_v18  ;;  %v35560_v18 = vld [vmem:[#allocation89_spill] sm:$0xff] }
 0x55b   : > { %35552 = vst [vmem:[#allocation200_spill] sm:$0xff] %v30770_v55 }
 0x55f   : > { %22259 = vmatmul.mubr.msk.bf16.gmra.mrb[72].mxu1 %vm2232_vm2, %v35548_v29  ;;  %23205 = vmatmul.mubr.msk.bf16.gmra.mrb[244].mxu0 %vm2232_vm2, %v30754_v56  ;;  %v35557_v56 = vld [vmem:[#allocation87_spill] sm:$0xff] }
 0x560   : > { %22262 = vmatprep.mubr.msk.bf16.mxu1 %vm2232_vm2, %v35549_v3  ;;  %23208 = vmatprep.mubr.msk.bf16.mxu0 %vm2232_vm2, %v30758_v26  ;;  %v1947_v26 = vld [vmem:[%s27833_s19 + $0x988] sm:$0xff] }
 0x561   : > { %v30786_v22 = vpack.c.bf16 %v1947_v26, %v35558_v17  ;;  %v35564_v17 = vld [vmem:[#allocation107_spill] sm:$0xff]  ;;  %v35565_v26 = vld [vmem:[#allocation109_spill] sm:$0xff] }
 0x563   : > { %35559 = vst [vmem:[#allocation206_spill] sm:$0xff] %v30786_v22 }
 0x567   : > { %22263 = vmatmul.mubr.msk.bf16.gmra.mrb[76].mxu1 %vm2232_vm2, %v35556_v37  ;;  %23209 = vmatmul.mubr.msk.bf16.gmra.mrb[248].mxu0 %vm2232_vm2, %v30770_v55  ;;  %v35563_v37 = vld [vmem:[#allocation99_spill] sm:$0xff] }
 0x568   : > { %22266 = vmatprep.mubr.msk.bf16.mxu1 %vm2232_vm2, %v35557_v56  ;;  %23212 = vmatprep.mubr.msk.bf16.mxu0 %vm2232_vm2, %v30774_v4 }
 0x56f   : > { %22267 = vmatmul.mubr.msk.bf16.gmra.mrb[80].mxu1 %vm2232_vm2, %v35560_v18  ;;  %23213 = vmatmul.mubr.msk.bf16.gmra.mrb[252].mxu0 %vm2232_vm2, %v30786_v22  ;;  %v35567_v22 = vld [vmem:[#allocation262_spill] sm:$0xff] }
 0x570   : > { %22270 = vmatprep.mubr.msk.bf16.mxu1 %vm2232_vm2, %v35561_v30  ;;  %23218 = vmatprep.mubr.msk.bf16.mxu0 %vm2232_vm2, %v35562_v62  ;;  %v35566_v62 = vld [vmem:[#allocation114_spill] sm:$0xff] }
 0x577   : > { %22271 = vmatmul.mubr.msk.bf16.gmra.mrb[84].mxu1 %vm2232_vm2, %v35563_v37  ;;  %23219 = vmatmul.mubr.msk.bf16.vlgmr.msra.gmra.mrb[0].mxu0 %vm2232_vm2, %v35359_v7 }
 0x578   : > { %22274 = vmatprep.mubr.msk.bf16.mxu1 %vm2232_vm2, %v35564_v17  ;;  %23475 = vmatpush3.bf16.msra.mxu0 %v30629_v15  ;;  %v35568_v15 = vld [vmem:[#allocation119_spill] sm:$0xff] }
 0x579   : > { %23222 = vmatprep.mubr.msk.bf16.mxu0 %vm2232_vm2, %v35360_v52  ;;  %v35569_v52 = vld [vmem:[#allocation34_spill] sm:$0xff] }
 0x57f   : > { %22275 = vmatmul.mubr.msk.bf16.gmra.mrb[88].mxu1 %vm2232_vm2, %v35565_v26  ;;  %23223 = vmatmul.mubr.msk.bf16.gmra.mrb[4].mxu0 %vm2232_vm2, %v35361_v27  ;;  %v35570_v27 = vld [vmem:[#allocation35_spill] sm:$0xff] }
 0x580   : > { %22278 = vmatprep.mubr.msk.bf16.mxu1 %vm2232_vm2, %v35566_v62  ;;  %23226 = vmatprep.mubr.msk.bf16.mxu0 %vm2232_vm2, %v35362_v57  ;;  %v35571_v57 = vld [vmem:[#allocation29_spill] sm:$0xff] }
 0x587   : > { %22279 = vmatmul.mubr.msk.bf16.gmra.mrb[92].mxu1 %vm2232_vm2, %v35567_v22  ;;  %23227 = vmatmul.mubr.msk.bf16.gmra.mrb[8].mxu0 %vm2232_vm2, %v35363_v46  ;;  %v35572_v22 = vld [vmem:[#allocation40_spill] sm:$0xff]  ;;  %v35573_v46 = vld [vmem:[#allocation41_spill] sm:$0xff] }
 0x588   : > { %22282 = vmatprep.mubr.msk.bf16.mxu1 %vm2232_vm2, %v35568_v15  ;;  %23230 = vmatprep.mubr.msk.bf16.mxu0 %vm2232_vm2, %v35364_v48  ;;  %v35574_v48 = vld [vmem:[#allocation46_spill] sm:$0xff] }
 0x58f   : > { %22283 = vmatmul.mubr.msk.bf16.gmra.mrb[96].mxu1 %vm2232_vm2, %v35569_v52  ;;  %23231 = vmatmul.mubr.msk.bf16.gmra.mrb[12].mxu0 %vm2232_vm2, %v35514_v35  ;;  %v35575_v35 = vld [vmem:[#allocation47_spill] sm:$0xff] }
 0x590   : > { %22286 = vmatprep.mubr.msk.bf16.mxu1 %vm2232_vm2, %v35570_v27  ;;  %23234 = vmatprep.mubr.msk.bf16.mxu0 %vm2232_vm2, %v35571_v57 }
 0x597   : > { %22287 = vmatmul.mubr.msk.bf16.gmra.mrb[100].mxu1 %vm2232_vm2, %v35572_v22  ;;  %23235 = vmatmul.mubr.msk.bf16.gmra.mrb[16].mxu0 %vm2232_vm2, %v35516_v1 }
 0x598   : > { %22290 = vmatprep.mubr.msk.bf16.mxu1 %vm2232_vm2, %v35573_v46  ;;  %23238 = vmatprep.mubr.msk.bf16.mxu0 %vm2232_vm2, %v35519_v51  ;;  %v35580_v51 = vld [vmem:[#allocation263_spill] sm:$0xff] }
 0x59f   : > { %22291 = vmatmul.mubr.msk.bf16.gmra.mrb[104].mxu1 %vm2232_vm2, %v35574_v48  ;;  %23239 = vmatmul.mubr.msk.bf16.gmra.mrb[20].mxu0 %vm2232_vm2, %v35520_v2  ;;  %v35581_v2 = vld [vmem:[#allocation52_spill] sm:$0xff] }
 0x5a0   : > { %22294 = vmatprep.mubr.msk.bf16.mxu1 %vm2232_vm2, %v35575_v35  ;;  %23242 = vmatprep.mubr.msk.bf16.mxu0 %vm2232_vm2, %v35521_v53 }
 0x5a2   : > { %v30845_v57 = vpop.f32.mrb[0].mxu1 }
 0x5a3   : > { %35576 = vst [vmem:[#allocation203_spill] sm:$0xff] %v30845_v57  ;;  %v30847_v1 = vpop.f32.mrb[1].mxu1 }
 0x5a4   : > { %35577 = vst [vmem:[#allocation75_spill] sm:$0xff] %v30847_v1  ;;  %v30849_v7 = vpop.f32.mrb[2].mxu1 }
 0x5a5   : > { %35578 = vst [vmem:[#allocation243_spill] sm:$0xff] %v30849_v7  ;;  %v30851_v4 = vpop.f32.mrb[3].mxu1 }
 0x5a6   : > { %35579 = vst [vmem:[#allocation156_spill] sm:$0xff] %v30851_v4  ;;  %v35586_v4 = vld [vmem:[#allocation57_spill] sm:$0xff] }
 0x5a7   : > { %22295 = vmatmul.mubr.msk.bf16.gmra.mrb[108].mxu1 %vm2232_vm2, %v35580_v51  ;;  %23243 = vmatmul.mubr.msk.bf16.gmra.mrb[24].mxu0 %vm2232_vm2, %v35522_v5  ;;  %v35587_v51 = vld [vmem:[#allocation58_spill] sm:$0xff]  ;;  %v35588_v5 = vld [vmem:[#allocation51_spill] sm:$0xff] }
 0x5a8   : > { %22298 = vmatprep.mubr.msk.bf16.mxu1 %vm2232_vm2, %v35581_v2  ;;  %23246 = vmatprep.mubr.msk.bf16.mxu0 %vm2232_vm2, %v35523_v20 }
 0x5aa   : > { %v30861_v53 = vpop.f32.mrb[4].mxu1 }
 0x5ab   : > { %35582 = vst [vmem:[#allocation221_spill] sm:$0xff] %v30861_v53  ;;  %v30863_v57 = vpop.f32.mrb[5].mxu1 }
 0x5ac   : > { %35583 = vst [vmem:[#allocation12_spill] sm:$0xff] %v30863_v57  ;;  %v30865_v1 = vpop.f32.mrb[6].mxu1 }
 0x5ad   : > { %35584 = vst [vmem:[#allocation13_spill] sm:$0xff] %v30865_v1  ;;  %v30867_v7 = vpop.f32.mrb[7].mxu1 }
 0x5ae   : > { %35585 = vst [vmem:[#allocation14_spill] sm:$0xff] %v30867_v7  ;;  %v35593_v7 = vld [vmem:[#allocation66_spill] sm:$0xff] }
 0x5af   : > { %22299 = vmatmul.mubr.msk.bf16.gmra.mrb[112].mxu1 %vm2232_vm2, %v35586_v4  ;;  %23247 = vmatmul.mubr.msk.bf16.gmra.mrb[28].mxu0 %vm2232_vm2, %v35524_v63  ;;  %v35594_v63 = vld [vmem:[#allocation68_spill] sm:$0xff] }
 0x5b0   : > { %22302 = vmatprep.mubr.msk.bf16.mxu1 %vm2232_vm2, %v35587_v51  ;;  %23250 = vmatprep.mubr.msk.bf16.mxu0 %vm2232_vm2, %v35588_v5 }
 0x5b2   : > { %v30877_v20 = vpop.f32.mrb[8].mxu1 }
 0x5b3   : > { %35589 = vst [vmem:[#allocation15_spill] sm:$0xff] %v30877_v20  ;;  %v30879_v53 = vpop.f32.mrb[9].mxu1 }
 0x5b4   : > { %35590 = vst [vmem:[#allocation18_spill] sm:$0xff] %v30879_v53  ;;  %v30881_v57 = vpop.f32.mrb[10].mxu1 }
 0x5b5   : > { %35591 = vst [vmem:[#allocation19_spill] sm:$0xff] %v30881_v57  ;;  %v30883_v1 = vpop.f32.mrb[11].mxu1 }
 0x5b6   : > { %35592 = vst [vmem:[#allocation246_spill] sm:$0xff] %v30883_v1  ;;  %v35599_v1 = vld [vmem:[#allocation76_spill] sm:$0xff] }
 0x5b7   : > { %22303 = vmatmul.mubr.msk.bf16.gmra.mrb[116].mxu1 %vm2232_vm2, %v35593_v7  ;;  %23251 = vmatmul.mubr.msk.bf16.gmra.mrb[32].mxu0 %vm2232_vm2, %v35526_v59  ;;  %v35600_v59 = vld [vmem:[#allocation78_spill] sm:$0xff] }
 0x5b8   : > { %22306 = vmatprep.mubr.msk.bf16.mxu1 %vm2232_vm2, %v35594_v63  ;;  %23254 = vmatprep.mubr.msk.bf16.mxu0 %vm2232_vm2, %v35532_v23 }
 0x5ba   : > { %v30893_v5 = vpop.f32.mrb[12].mxu1 }
 0x5bb   : > { %35595 = vst [vmem:[#allocation247_spill] sm:$0xff] %v30893_v5  ;;  %v30895_v20 = vpop.f32.mrb[13].mxu1 }
 0x5bc   : > { %35596 = vst [vmem:[#allocation250_spill] sm:$0xff] %v30895_v20  ;;  %v30897_v53 = vpop.f32.mrb[14].mxu1 }
 0x5bd   : > { %35597 = vst [vmem:[#allocation251_spill] sm:$0xff] %v30897_v53  ;;  %v30899_v57 = vpop.f32.mrb[15].mxu1 }
 0x5be   : > { %35598 = vst [vmem:[#allocation252_spill] sm:$0xff] %v30899_v57  ;;  %v35605_v57 = vld [vmem:[#allocation264_spill] sm:$0xff] }
 0x5bf   : > { %22307 = vmatmul.mubr.msk.bf16.gmra.mrb[120].mxu1 %vm2232_vm2, %v35599_v1  ;;  %23255 = vmatmul.mubr.msk.bf16.gmra.mrb[36].mxu0 %vm2232_vm2, %v35533_v13  ;;  %v35606_v13 = vld [vmem:[#allocation85_spill] sm:$0xff] }
 0x5c0   : > { %22310 = vmatprep.mubr.msk.bf16.mxu1 %vm2232_vm2, %v35600_v59  ;;  %23258 = vmatprep.mubr.msk.bf16.mxu0 %vm2232_vm2, %v35540_v11 }
 0x5c2   : > { %v30909_v23 = vpop.f32.mrb[16].mxu1 }
 0x5c3   : > { %35601 = vst [vmem:[#allocation253_spill] sm:$0xff] %v30909_v23  ;;  %v30911_v5 = vpop.f32.mrb[17].mxu1 }
 0x5c4   : > { %35602 = vst [vmem:[#allocation256_spill] sm:$0xff] %v30911_v5  ;;  %v30913_v20 = vpop.f32.mrb[18].mxu1 }
 0x5c5   : > { %35603 = vst [vmem:[#allocation257_spill] sm:$0xff] %v30913_v20  ;;  %v30915_v53 = vpop.f32.mrb[19].mxu1 }
 0x5c6   : > { %35604 = vst [vmem:[#allocation20_spill] sm:$0xff] %v30915_v53  ;;  %v35611_v53 = vld [vmem:[#allocation93_spill] sm:$0xff] }
 0x5c7   : > { %22311 = vmatmul.mubr.msk.bf16.gmra.mrb[124].mxu1 %vm2232_vm2, %v35605_v57  ;;  %23259 = vmatmul.mubr.msk.bf16.gmra.mrb[40].mxu0 %vm2232_vm2, %v35541_v61  ;;  %v35612_v57 = vld [vmem:[#allocation95_spill] sm:$0xff]  ;;  %v35613_v61 = vld [vmem:[#allocation82_spill] sm:$0xff] }
 0x5c8   : > { %22314 = vmatprep.mubr.msk.bf16.mxu1 %vm2232_vm2, %v35606_v13  ;;  %23262 = vmatprep.mubr.msk.bf16.mxu0 %vm2232_vm2, %v35548_v29 }
 0x5ca   : > { %v30925_v11 = vpop.f32.mrb[20].mxu1 }
 0x5cb   : > { %35607 = vst [vmem:[#allocation29_spill] sm:$0xff] %v30925_v11  ;;  %v30927_v23 = vpop.f32.mrb[21].mxu1 }
 0x5cc   : > { %35608 = vst [vmem:[#allocation51_spill] sm:$0xff] %v30927_v23  ;;  %v30929_v5 = vpop.f32.mrb[22].mxu1 }
 0x5cd   : > { %35609 = vst [vmem:[#allocation78_spill] sm:$0xff] %v30929_v5  ;;  %v30931_v20 = vpop.f32.mrb[23].mxu1 }
 0x5ce   : > { %35610 = vst [vmem:[#allocation265_spill] sm:$0xff] %v30931_v20  ;;  %v35618_v20 = vld [vmem:[#allocation103_spill] sm:$0xff] }
 0x5cf   : > { %22315 = vmatmul.mubr.msk.bf16.gmra.mrb[128].mxu1 %vm2232_vm2, %v35611_v53  ;;  %23263 = vmatmul.mubr.msk.bf16.gmra.mrb[44].mxu0 %vm2232_vm2, %v35549_v3  ;;  %v35619_v3 = vld [vmem:[#allocation105_spill] sm:$0xff] }
 0x5d0   : > { %22318 = vmatprep.mubr.msk.bf16.mxu1 %vm2232_vm2, %v35612_v57  ;;  %23266 = vmatprep.mubr.msk.bf16.mxu0 %vm2232_vm2, %v35613_v61 }
 0x5d2   : > { %v30941_v29 = vpop.f32.mrb[24].mxu1 }
 0x5d3   : > { %35614 = vst [vmem:[#allocation82_spill] sm:$0xff] %v30941_v29  ;;  %v30943_v11 = vpop.f32.mrb[25].mxu1 }
 0x5d4   : > { %35615 = vst [vmem:[#allocation266_spill] sm:$0xff] %v30943_v11  ;;  %v30945_v23 = vpop.f32.mrb[26].mxu1 }
 0x5d5   : > { %35616 = vst [vmem:[#allocation267_spill] sm:$0xff] %v30945_v23  ;;  %v30947_v5 = vpop.f32.mrb[27].mxu1 }
 0x5d6   : > { %35617 = vst [vmem:[#allocation268_spill] sm:$0xff] %v30947_v5  ;;  %v35624_v5 = vld [vmem:[#allocation112_spill] sm:$0xff] }
 0x5d7   : > { %22319 = vmatmul.mubr.msk.bf16.gmra.mrb[132].mxu1 %vm2232_vm2, %v35618_v20  ;;  %23267 = vmatmul.mubr.msk.bf16.gmra.mrb[48].mxu0 %vm2232_vm2, %v35557_v56  ;;  %v35654_v56 = vld [vmem:[#allocation133_spill] sm:$0xff] }
 0x5d8   : > { %22322 = vmatprep.mubr.msk.bf16.mxu1 %vm2232_vm2, %v35619_v3  ;;  %23270 = vmatprep.mubr.msk.bf16.mxu0 %vm2232_vm2, %v35560_v18 }
 0x5da   : > { %v30957_v61 = vpop.f32.mrb[28].mxu1 }
 0x5db   : > { %35620 = vst [vmem:[#allocation269_spill] sm:$0xff] %v30957_v61  ;;  %v30959_v29 = vpop.f32.mrb[29].mxu1 }
 0x5dc   : > { %35621 = vst [vmem:[#allocation270_spill] sm:$0xff] %v30959_v29  ;;  %v30961_v11 = vpop.f32.mrb[30].mxu1 }
 0x5dd   : > { %35622 = vst [vmem:[#allocation271_spill] sm:$0xff] %v30961_v11  ;;  %v30963_v23 = vpop.f32.mrb[31].mxu1 }
 0x5de   : > { %35623 = vst [vmem:[#allocation272_spill] sm:$0xff] %v30963_v23  ;;  %v35629_v23 = vld [vmem:[#allocation167_spill] sm:$0xff] }
 0x5df   : > { %22323 = vmatmul.mubr.msk.bf16.gmra.mrb[136].mxu1 %vm2232_vm2, %v35439_v50  ;;  %23271 = vmatmul.mubr.msk.bf16.gmra.mrb[52].mxu0 %vm2232_vm2, %v35561_v30  ;;  %v35630_v30 = vld [vmem:[#allocation117_spill] sm:$0xff] }
 0x5e0   : > { %22326 = vmatprep.mubr.msk.bf16.mxu1 %vm2232_vm2, %v35624_v5  ;;  %23274 = vmatprep.mubr.msk.bf16.mxu0 %vm2232_vm2, %v35563_v37 }
 0x5e2   : > { %v30973_v18 = vpop.f32.mrb[32].mxu1 }
 0x5e3   : > { %35625 = vst [vmem:[#allocation273_spill] sm:$0xff] %v30973_v18  ;;  %v30975_v61 = vpop.f32.mrb[33].mxu1 }
 0x5e4   : > { %35626 = vst [vmem:[#allocation274_spill] sm:$0xff] %v30975_v61  ;;  %v30977_v29 = vpop.f32.mrb[34].mxu1 }
 0x5e5   : > { %35627 = vst [vmem:[#allocation275_spill] sm:$0xff] %v30977_v29  ;;  %v30979_v11 = vpop.f32.mrb[35].mxu1 }
 0x5e6   : > { %35628 = vst [vmem:[#allocation276_spill] sm:$0xff] %v30979_v11  ;;  %v35635_v11 = vld [vmem:[#allocation121_spill] sm:$0xff] }
 0x5e7   : > { %22327 = vmatmul.mubr.msk.bf16.gmra.mrb[140].mxu1 %vm2232_vm2, %v35629_v23  ;;  %23275 = vmatmul.mubr.msk.bf16.gmra.mrb[56].mxu0 %vm2232_vm2, %v35564_v17  ;;  %v35636_v23 = vld [vmem:[#allocation122_spill] sm:$0xff]  ;;  %v35637_v17 = vld [vmem:[#allocation116_spill] sm:$0xff] }
 0x5e8   : > { %22330 = vmatprep.mubr.msk.bf16.mxu1 %vm2232_vm2, %v35630_v30  ;;  %23278 = vmatprep.mubr.msk.bf16.mxu0 %vm2232_vm2, %v35565_v26 }
 0x5ea   : > { %v30989_v37 = vpop.f32.mrb[36].mxu1 }
 0x5eb   : > { %35631 = vst [vmem:[#allocation277_spill] sm:$0xff] %v30989_v37  ;;  %v30991_v18 = vpop.f32.mrb[37].mxu1 }
 0x5ec   : > { %35632 = vst [vmem:[#allocation278_spill] sm:$0xff] %v30991_v18  ;;  %v30993_v61 = vpop.f32.mrb[38].mxu1 }
 0x5ed   : > { %35633 = vst [vmem:[#allocation279_spill] sm:$0xff] %v30993_v61  ;;  %v30995_v29 = vpop.f32.mrb[39].mxu1 }
 0x5ee   : > { %35634 = vst [vmem:[#allocation280_spill] sm:$0xff] %v30995_v29  ;;  %v35642_v29 = vld [vmem:[#allocation125_spill] sm:$0xff] }
 0x5ef   : > { %22331 = vmatmul.mubr.msk.bf16.gmra.mrb[144].mxu1 %vm2232_vm2, %v35635_v11  ;;  %23279 = vmatmul.mubr.msk.bf16.gmra.mrb[60].mxu0 %vm2232_vm2, %v35566_v62  ;;  %v35643_v62 = vld [vmem:[#allocation126_spill] sm:$0xff] }
 0x5f0   : > { %22334 = vmatprep.mubr.msk.bf16.mxu1 %vm2232_vm2, %v35636_v23  ;;  %23282 = vmatprep.mubr.msk.bf16.mxu0 %vm2232_vm2, %v35637_v17 }
 0x5f2   : > { %v31005_v26 = vpop.f32.mrb[40].mxu1 }
 0x5f3   : > { %35638 = vst [vmem:[#allocation116_spill] sm:$0xff] %v31005_v26  ;;  %v31007_v37 = vpop.f32.mrb[41].mxu1 }
 0x5f4   : > { %35639 = vst [vmem:[#allocation281_spill] sm:$0xff] %v31007_v37  ;;  %v31009_v18 = vpop.f32.mrb[42].mxu1 }
 0x5f5   : > { %35640 = vst [vmem:[#allocation282_spill] sm:$0xff] %v31009_v18  ;;  %v31011_v61 = vpop.f32.mrb[43].mxu1 }
 0x5f6   : > { %35641 = vst [vmem:[#allocation283_spill] sm:$0xff] %v31011_v61  ;;  %v35648_v61 = vld [vmem:[#allocation130_spill] sm:$0xff] }
 0x5f7   : > { %22335 = vmatmul.mubr.msk.bf16.gmra.mrb[148].mxu1 %vm2232_vm2, %v35642_v29  ;;  %23283 = vmatmul.mubr.msk.bf16.gmra.mrb[64].mxu0 %vm2232_vm2, %v35568_v15 }
 0x5f8   : > { %22338 = vmatprep.mubr.msk.bf16.mxu1 %vm2232_vm2, %v35643_v62  ;;  %23286 = vmatprep.mubr.msk.bf16.mxu0 %vm2232_vm2, %v35569_v52 }
 0x5fa   : > { %v31021_v17 = vpop.f32.mrb[44].mxu1 }
 0x5fb   : > { %35644 = vst [vmem:[#allocation284_spill] sm:$0xff] %v31021_v17  ;;  %v31023_v26 = vpop.f32.mrb[45].mxu1 }
 0x5fc   : > { %35645 = vst [vmem:[#allocation285_spill] sm:$0xff] %v31023_v26  ;;  %v31025_v37 = vpop.f32.mrb[46].mxu1 }
 0x5fd   : > { %35646 = vst [vmem:[#allocation286_spill] sm:$0xff] %v31025_v37  ;;  %v31027_v18 = vpop.f32.mrb[47].mxu1 }
 0x5fe   : > { %35647 = vst [vmem:[#allocation287_spill] sm:$0xff] %v31027_v18  ;;  %v35653_v18 = vld [vmem:[#allocation169_spill] sm:$0xff] }
 0x5ff   : > { %22339 = vmatmul.mubr.msk.bf16.gmra.mrb[152].mxu1 %vm2232_vm2, %v35449_v32  ;;  %23287 = vmatmul.mubr.msk.bf16.gmra.mrb[68].mxu0 %vm2232_vm2, %v35570_v27 }
 0x600   : > { %22342 = vmatprep.mubr.msk.bf16.mxu1 %vm2232_vm2, %v35648_v61  ;;  %23290 = vmatprep.mubr.msk.bf16.mxu0 %vm2232_vm2, %v35572_v22 }
 0x602   : > { %v31037_v15 = vpop.f32.mrb[48].mxu1 }
 0x603   : > { %35649 = vst [vmem:[#allocation288_spill] sm:$0xff] %v31037_v15  ;;  %v31039_v17 = vpop.f32.mrb[49].mxu1 }
 0x604   : > { %35650 = vst [vmem:[#allocation289_spill] sm:$0xff] %v31039_v17  ;;  %v31041_v26 = vpop.f32.mrb[50].mxu1 }
 0x605   : > { %35651 = vst [vmem:[#allocation290_spill] sm:$0xff] %v31041_v26  ;;  %v31043_v37 = vpop.f32.mrb[51].mxu1 }
 0x606   : > { %35652 = vst [vmem:[#allocation291_spill] sm:$0xff] %v31043_v37  ;;  %v35659_v37 = vld [vmem:[#allocation136_spill] sm:$0xff] }
 0x607   : > { %22343 = vmatmul.mubr.msk.bf16.gmra.mrb[156].mxu1 %vm2232_vm2, %v35653_v18  ;;  %23291 = vmatmul.mubr.msk.bf16.gmra.mrb[72].mxu0 %vm2232_vm2, %v35573_v46  ;;  %v35660_v18 = vld [vmem:[#allocation137_spill] sm:$0xff]  ;;  %v35661_v46 = vld [vmem:[#allocation144_spill] sm:$0xff] }
 0x608   : > { %22346 = vmatprep.mubr.msk.bf16.mxu1 %vm2232_vm2, %v35654_v56  ;;  %23294 = vmatprep.mubr.msk.bf16.mxu0 %vm2232_vm2, %v35574_v48 }
 0x60a   : > { %v31053_v55 = vpop.f32.mrb[52].mxu1 }
 0x60b   : > { %35655 = vst [vmem:[#allocation292_spill] sm:$0xff] %v31053_v55  ;;  %v31055_v15 = vpop.f32.mrb[53].mxu1 }
 0x60c   : > { %35656 = vst [vmem:[#allocation293_spill] sm:$0xff] %v31055_v15  ;;  %v31057_v17 = vpop.f32.mrb[54].mxu1 }
 0x60d   : > { %35657 = vst [vmem:[#allocation294_spill] sm:$0xff] %v31057_v17  ;;  %v31059_v26 = vpop.f32.mrb[55].mxu1 }
 0x60e   : > { %35658 = vst [vmem:[#allocation295_spill] sm:$0xff] %v31059_v26  ;;  %v35666_v26 = vld [vmem:[#allocation140_spill] sm:$0xff] }
 0x60f   : > { %22347 = vmatmul.mubr.msk.bf16.gmra.mrb[160].mxu1 %vm2232_vm2, %v35659_v37  ;;  %23295 = vmatmul.mubr.msk.bf16.gmra.mrb[76].mxu0 %vm2232_vm2, %v35575_v35  ;;  %v35667_v35 = vld [vmem:[#allocation141_spill] sm:$0xff] }
 0x610   : > { %22350 = vmatprep.mubr.msk.bf16.mxu1 %vm2232_vm2, %v35660_v18  ;;  %23298 = vmatprep.mubr.msk.bf16.mxu0 %vm2232_vm2, %v35661_v46 }
 0x612   : > { %v31069_v48 = vpop.f32.mrb[56].mxu1 }
 0x613   : > { %35662 = vst [vmem:[#allocation296_spill] sm:$0xff] %v31069_v48  ;;  %v31071_v55 = vpop.f32.mrb[57].mxu1 }
 0x614   : > { %35663 = vst [vmem:[#allocation297_spill] sm:$0xff] %v31071_v55  ;;  %v31073_v15 = vpop.f32.mrb[58].mxu1 }
 0x615   : > { %35664 = vst [vmem:[#allocation298_spill] sm:$0xff] %v31073_v15  ;;  %v31075_v17 = vpop.f32.mrb[59].mxu1 }
 0x616   : > { %35665 = vst [vmem:[#allocation299_spill] sm:$0xff] %v31075_v17 }
 0x617   : > { %22351 = vmatmul.mubr.msk.bf16.gmra.mrb[164].mxu1 %vm2232_vm2, %v35666_v26  ;;  %23299 = vmatmul.mubr.msk.bf16.gmra.mrb[80].mxu0 %vm2232_vm2, %v35581_v2 }
 0x618   : > { %22354 = vmatprep.mubr.msk.bf16.mxu1 %vm2232_vm2, %v35667_v35  ;;  %23302 = vmatprep.mubr.msk.bf16.mxu0 %vm2232_vm2, %v35586_v4 }
 0x61a   : > { %v31085_v46 = vpop.f32.mrb[60].mxu1 }
 0x61b   : > { %35668 = vst [vmem:[#allocation300_spill] sm:$0xff] %v31085_v46  ;;  %v31087_v48 = vpop.f32.mrb[61].mxu1 }
 0x61c   : > { %35669 = vst [vmem:[#allocation301_spill] sm:$0xff] %v31087_v48  ;;  %v31089_v55 = vpop.f32.mrb[62].mxu1 }
 0x61d   : > { %35670 = vst [vmem:[#allocation302_spill] sm:$0xff] %v31089_v55  ;;  %v31091_v15 = vpop.f32.mrb[63].mxu1 }
 0x61e   : > { %35671 = vst [vmem:[#allocation303_spill] sm:$0xff] %v31091_v15  ;;  %v35676_v15 = vld [vmem:[#allocation149_spill] sm:$0xff] }
 0x61f   : > { %22355 = vmatmul.mubr.msk.bf16.gmra.mrb[168].mxu1 %vm2232_vm2, %v35459_v34  ;;  %23303 = vmatmul.mubr.msk.bf16.gmra.mrb[84].mxu0 %vm2232_vm2, %v35587_v51 }
 0x620   : > { %22358 = vmatprep.mubr.msk.bf16.mxu1 %vm2232_vm2, %v35462_v45  ;;  %23306 = vmatprep.mubr.msk.bf16.mxu0 %vm2232_vm2, %v35593_v7 }
 0x622   : > { %v31101_v17 = vpop.f32.mrb[64].mxu1 }
 0x623   : > { %35672 = vst [vmem:[#allocation304_spill] sm:$0xff] %v31101_v17  ;;  %v31103_v46 = vpop.f32.mrb[65].mxu1 }
 0x624   : > { %35673 = vst [vmem:[#allocation305_spill] sm:$0xff] %v31103_v46  ;;  %v31105_v48 = vpop.f32.mrb[66].mxu1 }
 0x625   : > { %35674 = vst [vmem:[#allocation306_spill] sm:$0xff] %v31105_v48  ;;  %v31107_v55 = vpop.f32.mrb[67].mxu1 }
 0x626   : > { %35675 = vst [vmem:[#allocation307_spill] sm:$0xff] %v31107_v55  ;;  %v35681_v55 = vld [vmem:[#allocation152_spill] sm:$0xff] }
 0x627   : > { %22359 = vmatmul.mubr.msk.bf16.gmra.mrb[172].mxu1 %vm2232_vm2, %v30533_v39  ;;  %23307 = vmatmul.mubr.msk.bf16.gmra.mrb[88].mxu0 %vm2232_vm2, %v35594_v63  ;;  %v35682_v39 = vld [vmem:[#allocation154_spill] sm:$0xff]  ;;  %v35683_v63 = vld [vmem:[#allocation160_spill] sm:$0xff] }
 0x628   : > { %22362 = vmatprep.mubr.msk.bf16.mxu1 %vm2232_vm2, %v35676_v15  ;;  %23310 = vmatprep.mubr.msk.bf16.mxu0 %vm2232_vm2, %v35599_v1 }
 0x62a   : > { %v31117_v7 = vpop.f32.mrb[68].mxu1 }
 0x62b   : > { %35677 = vst [vmem:[#allocation308_spill] sm:$0xff] %v31117_v7  ;;  %v31119_v17 = vpop.f32.mrb[69].mxu1 }
 0x62c   : > { %35678 = vst [vmem:[#allocation309_spill] sm:$0xff] %v31119_v17  ;;  %v31121_v46 = vpop.f32.mrb[70].mxu1 }
 0x62d   : > { %35679 = vst [vmem:[#allocation310_spill] sm:$0xff] %v31121_v46  ;;  %v31123_v48 = vpop.f32.mrb[71].mxu1 }
 0x62e   : > { %35680 = vst [vmem:[#allocation311_spill] sm:$0xff] %v31123_v48  ;;  %v35688_v48 = vld [vmem:[#allocation157_spill] sm:$0xff] }
 0x62f   : > { %22363 = vmatmul.mubr.msk.bf16.gmra.mrb[176].mxu1 %vm2232_vm2, %v35681_v55  ;;  %23311 = vmatmul.mubr.msk.bf16.gmra.mrb[92].mxu0 %vm2232_vm2, %v35600_v59 }
 0x630   : > { %22366 = vmatprep.mubr.msk.bf16.mxu1 %vm2232_vm2, %v35682_v39  ;;  %23314 = vmatprep.mubr.msk.bf16.mxu0 %vm2232_vm2, %v35683_v63 }
 0x632   : > { %v31133_v1 = vpop.f32.mrb[72].mxu1 }
 0x633   : > { %35684 = vst [vmem:[#allocation312_spill] sm:$0xff] %v31133_v1  ;;  %v31135_v7 = vpop.f32.mrb[73].mxu1 }
 0x634   : > { %35685 = vst [vmem:[#allocation313_spill] sm:$0xff] %v31135_v7  ;;  %v31137_v17 = vpop.f32.mrb[74].mxu1 }
 0x635   : > { %35686 = vst [vmem:[#allocation314_spill] sm:$0xff] %v31137_v17  ;;  %v31139_v46 = vpop.f32.mrb[75].mxu1 }
 0x636   : > { %35687 = vst [vmem:[#allocation315_spill] sm:$0xff] %v31139_v46 }
 0x637   : > { %22367 = vmatmul.mubr.msk.bf16.gmra.mrb[180].mxu1 %vm2232_vm2, %v35688_v48  ;;  %23315 = vmatmul.mubr.msk.bf16.gmra.mrb[96].mxu0 %vm2232_vm2, %v35606_v13 }
 0x638   : > { %22370 = vmatprep.mubr.msk.bf16.mxu1 %vm2232_vm2, %v35468_v47  ;;  %23318 = vmatprep.mubr.msk.bf16.mxu0 %vm2232_vm2, %v35611_v53 }
 0x63a   : > { %v31149_v63 = vpop.f32.mrb[76].mxu1 }
 0x63b   : > { %35689 = vst [vmem:[#allocation316_spill] sm:$0xff] %v31149_v63  ;;  %v31151_v1 = vpop.f32.mrb[77].mxu1 }
 0x63c   : > { %35690 = vst [vmem:[#allocation317_spill] sm:$0xff] %v31151_v1  ;;  %v31153_v7 = vpop.f32.mrb[78].mxu1 }
 0x63d   : > { %35691 = vst [vmem:[#allocation318_spill] sm:$0xff] %v31153_v7  ;;  %v31155_v17 = vpop.f32.mrb[79].mxu1 }
 0x63e   : > { %35692 = vst [vmem:[#allocation319_spill] sm:$0xff] %v31155_v17  ;;  %v35702_v17 = vld [vmem:[#allocation216_spill] sm:$0xff] }
 0x63f   : > { %22371 = vmatmul.mubr.msk.bf16.gmra.mrb[184].mxu1 %vm2232_vm2, %v35469_v58  ;;  %23319 = vmatmul.mubr.msk.bf16.gmra.mrb[100].mxu0 %vm2232_vm2, %v35612_v57 }
 0x640   : > { %22374 = vmatprep.mubr.msk.bf16.mxu1 %vm2232_vm2, %v35472_v19  ;;  %23322 = vmatprep.mubr.msk.bf16.mxu0 %vm2232_vm2, %v35618_v20 }
 0x642   : > { %v31165_v46 = vpop.f32.mrb[80].mxu1 }
 0x643   : > { %35693 = vst [vmem:[#allocation320_spill] sm:$0xff] %v31165_v46  ;;  %v31167_v63 = vpop.f32.mrb[81].mxu1  ;;  %v35701_v46 = vld [vmem:[#allocation210_spill] sm:$0xff] }
 0x644   : > { %35694 = vst [vmem:[#allocation321_spill] sm:$0xff] %v31167_v63  ;;  %v31169_v1 = vpop.f32.mrb[82].mxu1  ;;  %v35699_v63 = vld [vmem:[#allocation204_spill] sm:$0xff] }
 0x645   : > { %35695 = vst [vmem:[#allocation322_spill] sm:$0xff] %v31169_v1  ;;  %v31171_v7 = vpop.f32.mrb[83].mxu1  ;;  %v35698_v1 = vld [vmem:[#allocation187_spill] sm:$0xff] }
 0x646   : > { %35696 = vst [vmem:[#allocation323_spill] sm:$0xff] %v31171_v7  ;;  %v35697_v7 = vld [vmem:[#allocation171_spill] sm:$0xff] }
 0x647   : > { %22375 = vmatmul.mubr.msk.bf16.gmra.mrb[188].mxu1 %vm2232_vm2, %v30569_v12  ;;  %23323 = vmatmul.mubr.msk.bf16.gmra.mrb[104].mxu0 %vm2232_vm2, %v35619_v3  ;;  %v35704_v12 = vld [vmem:[#allocation161_spill] sm:$0xff] }
 0x648   : > { %22378 = vmatprep.mubr.msk.bf16.mxu1 %vm2232_vm2, %v35475_v25  ;;  %23326 = vmatprep.mubr.msk.bf16.mxu0 %vm2232_vm2, %v35439_v50 }
 0x64f   : > { %22379 = vmatmul.mubr.msk.bf16.gmra.mrb[192].mxu1 %vm2232_vm2, %v35476_v21  ;;  %23327 = vmatmul.mubr.msk.bf16.gmra.mrb[108].mxu0 %vm2232_vm2, %v35624_v5 }
 0x650   : > { %22382 = vmatprep.mubr.msk.bf16.mxu1 %vm2232_vm2, %v35477_v24  ;;  %23330 = vmatprep.mubr.msk.bf16.mxu0 %vm2232_vm2, %v35697_v7 }
 0x657   : > { %22383 = vmatmul.mubr.msk.bf16.gmra.mrb[196].mxu1 %vm2232_vm2, %v35478_v10  ;;  %23331 = vmatmul.mubr.msk.bf16.gmra.mrb[112].mxu0 %vm2232_vm2, %v35630_v30 }
 0x658   : > { %22386 = vmatprep.mubr.msk.bf16.mxu1 %vm2232_vm2, %v35479_v49  ;;  %23334 = vmatprep.mubr.msk.bf16.mxu0 %vm2232_vm2, %v35635_v11 }
 0x65f   : > { %22387 = vmatmul.mubr.msk.bf16.gmra.mrb[200].mxu1 %vm2232_vm2, %v35480_v43  ;;  %23335 = vmatmul.mubr.msk.bf16.gmra.mrb[116].mxu0 %vm2232_vm2, %v35636_v23 }
 0x660   : > { %22390 = vmatprep.mubr.msk.bf16.mxu1 %vm2232_vm2, %v35482_v31  ;;  %23338 = vmatprep.mubr.msk.bf16.mxu0 %vm2232_vm2, %v35642_v29 }
 0x667   : > { %22391 = vmatmul.mubr.msk.bf16.gmra.mrb[204].mxu1 %vm2232_vm2, %v30607_v40  ;;  %23339 = vmatmul.mubr.msk.bf16.gmra.mrb[120].mxu0 %vm2232_vm2, %v35643_v62  ;;  %v35703_v40 = vld [vmem:[#allocation218_spill] sm:$0xff] }
 0x668   : > { %22394 = vmatprep.mubr.msk.bf16.mxu1 %vm2232_vm2, %v35484_v28  ;;  %23342 = vmatprep.mubr.msk.bf16.mxu0 %vm2232_vm2, %v35449_v32 }
 0x66f   : > { %22395 = vmatmul.mubr.msk.bf16.gmra.mrb[208].mxu1 %vm2232_vm2, %v35485_v54  ;;  %23343 = vmatmul.mubr.msk.bf16.gmra.mrb[124].mxu0 %vm2232_vm2, %v35648_v61 }
 0x670   : > { %22398 = vmatprep.mubr.msk.bf16.mxu1 %vm2232_vm2, %v35486_v38  ;;  %23346 = vmatprep.mubr.msk.bf16.mxu0 %vm2232_vm2, %v35698_v1 }
 0x677   : > { %22399 = vmatmul.mubr.msk.bf16.gmra.mrb[212].mxu1 %vm2232_vm2, %v35487_v8  ;;  %23347 = vmatmul.mubr.msk.bf16.gmra.mrb[128].mxu0 %vm2232_vm2, %v35654_v56 }
 0x678   : > { %22402 = vmatprep.mubr.msk.bf16.mxu1 %vm2232_vm2, %v35488_v36  ;;  %23350 = vmatprep.mubr.msk.bf16.mxu0 %vm2232_vm2, %v35659_v37 }
 0x67f   : > { %22403 = vmatmul.mubr.msk.bf16.gmra.mrb[216].mxu1 %vm2232_vm2, %v35489_v16  ;;  %23351 = vmatmul.mubr.msk.bf16.gmra.mrb[132].mxu0 %vm2232_vm2, %v35660_v18 }
 0x680   : > { %22406 = vmatprep.mubr.msk.bf16.mxu1 %vm2232_vm2, %v35491_v14  ;;  %23354 = vmatprep.mubr.msk.bf16.mxu0 %vm2232_vm2, %v35666_v26 }
 0x687   : > { %22407 = vmatmul.mubr.msk.bf16.gmra.mrb[220].mxu1 %vm2232_vm2, %v30650_v44  ;;  %23355 = vmatmul.mubr.msk.bf16.gmra.mrb[136].mxu0 %vm2232_vm2, %v35667_v35  ;;  %v35700_v44 = vld [vmem:[#allocation184_spill] sm:$0xff] }
 0x688   : > { %22410 = vmatprep.mubr.msk.bf16.mxu1 %vm2232_vm2, %v35493_v9  ;;  %23358 = vmatprep.mubr.msk.bf16.mxu0 %vm2232_vm2, %v35459_v34 }
 0x68f   : > { %22411 = vmatmul.mubr.msk.bf16.gmra.mrb[224].mxu1 %vm2232_vm2, %v35494_v41  ;;  %23359 = vmatmul.mubr.msk.bf16.gmra.mrb[140].mxu0 %vm2232_vm2, %v35462_v45 }
 0x690   : > { %22414 = vmatprep.mubr.msk.bf16.mxu1 %vm2232_vm2, %v35495_v60  ;;  %23362 = vmatprep.mubr.msk.bf16.mxu0 %vm2232_vm2, %v35699_v63 }
 0x697   : > { %22415 = vmatmul.mubr.msk.bf16.gmra.mrb[228].mxu1 %vm2232_vm2, %v35496_v42  ;;  %23363 = vmatmul.mubr.msk.bf16.gmra.mrb[144].mxu0 %vm2232_vm2, %v35676_v15 }
 0x698   : > { %22418 = vmatprep.mubr.msk.bf16.mxu1 %vm2232_vm2, %v35497_v33  ;;  %23366 = vmatprep.mubr.msk.bf16.mxu0 %vm2232_vm2, %v35681_v55 }
 0x69f   : > { %22419 = vmatmul.mubr.msk.bf16.gmra.mrb[232].mxu1 %vm2232_vm2, %v35498_v0  ;;  %23367 = vmatmul.mubr.msk.bf16.gmra.mrb[148].mxu0 %vm2232_vm2, %v35682_v39 }
 0x6a0   : > { %22422 = vmatprep.mubr.msk.bf16.mxu1 %vm2232_vm2, %v35500_v6  ;;  %23370 = vmatprep.mubr.msk.bf16.mxu0 %vm2232_vm2, %v35688_v48 }
 0x6a7   : > { %22423 = vmatmul.mubr.msk.bf16.gmra.mrb[236].mxu1 %vm2232_vm2, %v35700_v44  ;;  %23371 = vmatmul.mubr.msk.bf16.gmra.mrb[152].mxu0 %vm2232_vm2, %v35468_v47  ;;  %v35705_v44 = vld [vmem:[#allocation220_spill] sm:$0xff]  ;;  %v35706_v47 = vld [vmem:[#allocation222_spill] sm:$0xff] }
 0x6a8   : > { %22426 = vmatprep.mubr.msk.bf16.mxu1 %vm2232_vm2, %v35701_v46  ;;  %23374 = vmatprep.mubr.msk.bf16.mxu0 %vm2232_vm2, %v35469_v58  ;;  %v35707_v58 = vld [vmem:[#allocation223_spill] sm:$0xff] }
 0x6af   : > { %22427 = vmatmul.mubr.msk.bf16.gmra.mrb[240].mxu1 %vm2232_vm2, %v35702_v17  ;;  %23375 = vmatmul.mubr.msk.bf16.gmra.mrb[156].mxu0 %vm2232_vm2, %v35472_v19  ;;  %v35708_v19 = vld [vmem:[#allocation224_spill] sm:$0xff] }
 0x6b0   : > { %22430 = vmatprep.mubr.msk.bf16.mxu1 %vm2232_vm2, %v35703_v40  ;;  %23378 = vmatprep.mubr.msk.bf16.mxu0 %vm2232_vm2, %v35704_v12  ;;  %v35709_v12 = vld [vmem:[#allocation188_spill] sm:$0xff] }
 0x6b7   : > { %22431 = vmatmul.mubr.msk.bf16.gmra.mrb[244].mxu1 %vm2232_vm2, %v35705_v44  ;;  %23379 = vmatmul.mubr.msk.bf16.gmra.mrb[160].mxu0 %vm2232_vm2, %v35475_v25 }
 0x6b8   : > { %22434 = vmatprep.mubr.msk.bf16.mxu1 %vm2232_vm2, %v35706_v47  ;;  %23382 = vmatprep.mubr.msk.bf16.mxu0 %vm2232_vm2, %v35476_v21 }
 0x6bf   : > { %22435 = vmatmul.mubr.msk.bf16.gmra.mrb[248].mxu1 %vm2232_vm2, %v35707_v58  ;;  %23383 = vmatmul.mubr.msk.bf16.gmra.mrb[164].mxu0 %vm2232_vm2, %v35477_v24 }
 0x6c0   : > { %22438 = vmatprep.mubr.msk.bf16.mxu1 %vm2232_vm2, %v35708_v19  ;;  %23386 = vmatprep.mubr.msk.bf16.mxu0 %vm2232_vm2, %v35478_v10  ;;  %v35710_v10 = vld [vmem:[#allocation10_spill] sm:$0xff] }
 0x6c7   : > { %22439 = vmatmul.mubr.msk.bf16.gmra.mrb[252].mxu1 %vm2232_vm2, %v35709_v12  ;;  %23387 = vmatmul.mubr.msk.bf16.gmra.mrb[168].mxu0 %vm2232_vm2, %v35479_v49  ;;  %v35711_v12 = vld [vmem:[#allocation41_spill] sm:$0xff] }
 0x6c8   : > { %22528 = vmatprep.mubr.msk.bf16.mxu1 %vm2232_vm2, %v35569_v52  ;;  %23390 = vmatprep.mubr.msk.bf16.mxu0 %vm2232_vm2, %v35480_v43  ;;  %v35712_v52 = vld [vmem:[#allocation46_spill] sm:$0xff] }
 0x6cf   : > { %22529 = vmatmul.mubr.msk.bf16.vlgmr.msra.gmra.mrb[84].mxu1 %vm2232_vm2, %v35570_v27  ;;  %23391 = vmatmul.mubr.msk.bf16.gmra.mrb[172].mxu0 %vm2232_vm2, %v35482_v31  ;;  %v35713_v27 = vld [vmem:[#allocation47_spill] sm:$0xff] }
 0x6d0   : > { %22532 = vmatprep.mubr.msk.bf16.mxu1 %vm2232_vm2, %v35572_v22  ;;  %23394 = vmatprep.mubr.msk.bf16.mxu0 %vm2232_vm2, %v35710_v10  ;;  %v35714_v22 = vld [vmem:[#allocation144_spill] sm:$0xff] }
 0x6d7   : > { %22533 = vmatmul.mubr.msk.bf16.gmra.mrb[88].mxu1 %vm2232_vm2, %v35711_v12  ;;  %23395 = vmatmul.mubr.msk.bf16.gmra.mrb[176].mxu0 %vm2232_vm2, %v35484_v28 }
 0x6d8   : > { %22536 = vmatprep.mubr.msk.bf16.mxu1 %vm2232_vm2, %v35712_v52  ;;  %23398 = vmatprep.mubr.msk.bf16.mxu0 %vm2232_vm2, %v35485_v54 }
 0x6df   : > { %22537 = vmatmul.mubr.msk.bf16.gmra.mrb[92].mxu1 %vm2232_vm2, %v35713_v27  ;;  %23399 = vmatmul.mubr.msk.bf16.gmra.mrb[180].mxu0 %vm2232_vm2, %v35486_v38  ;;  %v35716_v27 = vld [vmem:[#allocation92_spill] sm:$0xff] }
 0x6e0   : > { %22540 = vmatprep.mubr.msk.bf16.mxu1 %vm2232_vm2, %v35714_v22  ;;  %23402 = vmatprep.mubr.msk.bf16.mxu0 %vm2232_vm2, %v35487_v8  ;;  %v35715_v22 = vld [vmem:[#allocation66_spill] sm:$0xff] }
 0x6e7   : > { %22541 = vmatmul.mubr.msk.bf16.gmra.mrb[96].mxu1 %vm2232_vm2, %v35581_v2  ;;  %23403 = vmatmul.mubr.msk.bf16.gmra.mrb[184].mxu0 %vm2232_vm2, %v35488_v36  ;;  %v35717_v2 = vld [vmem:[#allocation68_spill] sm:$0xff] }
 0x6e8   : > { %22544 = vmatprep.mubr.msk.bf16.mxu1 %vm2232_vm2, %v35586_v4  ;;  %23406 = vmatprep.mubr.msk.bf16.mxu0 %vm2232_vm2, %v35489_v16  ;;  %v35718_v4 = vld [vmem:[#allocation76_spill] sm:$0xff] }
 0x6ef   : > { %22545 = vmatmul.mubr.msk.bf16.gmra.mrb[100].mxu1 %vm2232_vm2, %v35587_v51  ;;  %23407 = vmatmul.mubr.msk.bf16.gmra.mrb[188].mxu0 %vm2232_vm2, %v35491_v14  ;;  %v1974_v51 = vld [vmem:[%s34344_s1 + $0x10] sm:$0x3] }
 0x6f0   : > { %22548 = vmatprep.mubr.msk.bf16.mxu1 %vm2232_vm2, %v35715_v22  ;;  %23410 = vmatprep.mubr.msk.bf16.mxu0 %vm2232_vm2, %v35716_v27  ;;  %v35719_v22 = vld [vmem:[#allocation9_spill] sm:$0xff] }
 0x6f1   : > { %v31361_v52 = vand.u32 %v35719_v22, %v1974_v51  ;;  %v35721_v51 = vld [vmem:[#allocation173_spill] sm:$0xff]  ;;  %v26956_v22 = vld [vmem:[%s27833_s19 + $0x908] sm:$0xff] }
 0x6f3   : > { %23732 = vmatprep.subr.bf16.mxu0 %v31361_v52 }
 0x6f7   : > { %22549 = vmatmul.mubr.msk.bf16.gmra.mrb[104].mxu1 %vm2232_vm2, %v35717_v2  ;;  %23411 = vmatmul.mubr.msk.bf16.gmra.mrb[192].mxu0 %vm2232_vm2, %v35493_v9  ;;  %v35720_v2 = vld [vmem:[#allocation160_spill] sm:$0xff] }
 0x6f8   : > { %22552 = vmatprep.mubr.msk.bf16.mxu1 %vm2232_vm2, %v35718_v4  ;;  %23414 = vmatprep.mubr.msk.bf16.mxu0 %vm2232_vm2, %v35494_v41 }
 0x6ff   : > { %22553 = vmatmul.mubr.msk.bf16.gmra.mrb[108].mxu1 %vm2232_vm2, %v35600_v59  ;;  %23415 = vmatmul.mubr.msk.bf16.gmra.mrb[196].mxu0 %vm2232_vm2, %v35495_v60 }
 0x700   : > { %22556 = vmatprep.mubr.msk.bf16.mxu1 %vm2232_vm2, %v35720_v2  ;;  %23418 = vmatprep.mubr.msk.bf16.mxu0 %vm2232_vm2, %v35496_v42  ;;  %v1930_v2 = vld [vmem:[%s27833_s19 + $0x900] sm:$0xff] }
 0x707   : > { %22557 = vmatmul.mubr.msk.bf16.gmra.mrb[112].mxu1 %vm2232_vm2, %v35606_v13  ;;  %23419 = vmatmul.mubr.msk.bf16.gmra.mrb[200].mxu0 %vm2232_vm2, %v35497_v33 }
 0x708   : > { %22560 = vmatprep.mubr.msk.bf16.mxu1 %vm2232_vm2, %v35611_v53  ;;  %23422 = vmatprep.mubr.msk.bf16.mxu0 %vm2232_vm2, %v35498_v0  ;;  %v31526_v53 = vld [vmem:[%s27833_s19 + $0x9f8] sm:$0xff] }
 0x70f   : > { %22561 = vmatmul.mubr.msk.bf16.gmra.mrb[116].mxu1 %vm2232_vm2, %v35612_v57  ;;  %23423 = vmatmul.mubr.msk.bf16.gmra.mrb[204].mxu0 %vm2232_vm2, %v35500_v6  ;;  %v31523_v57 = vld [vmem:[%s27833_s19 + $0x9f0] sm:$0xff] }
 0x710   : > { %22564 = vmatprep.mubr.msk.bf16.mxu1 %vm2232_vm2, %v35618_v20  ;;  %23426 = vmatprep.mubr.msk.bf16.mxu0 %vm2232_vm2, %v35721_v51  ;;  %v31498_v20 = vld [vmem:[%s27833_s19 + $0x9d8] sm:$0xff] }
 0x717   : > { %22565 = vmatmul.mubr.msk.bf16.gmra.mrb[120].mxu1 %vm2232_vm2, %v35619_v3  ;;  %23427 = vmatmul.mubr.msk.bf16.gmra.mrb[208].mxu0 %vm2232_vm2, %v35701_v46  ;;  %v31495_v3 = vld [vmem:[%s27833_s19 + $0x9d0] sm:$0xff] }
 0x718   : > { %22568 = vmatprep.mubr.msk.bf16.mxu1 %vm2232_vm2, %v35439_v50  ;;  %23430 = vmatprep.mubr.msk.bf16.mxu0 %vm2232_vm2, %v35702_v17 }
 0x71f   : > { %22569 = vmatmul.mubr.msk.bf16.gmra.mrb[124].mxu1 %vm2232_vm2, %v35624_v5  ;;  %23431 = vmatmul.mubr.msk.bf16.gmra.mrb[212].mxu0 %vm2232_vm2, %v35703_v40  ;;  %v31414_v5 = vpack.c.bf16 %v26956_v22, %v1930_v2  ;;  %v35723_v2 = vld [vmem:[#allocation192_spill] sm:$0xff]  ;;  %v35724_v22 = vld [vmem:[#allocation195_spill] sm:$0xff] }
 0x720   : > { %22572 = vmatprep.mubr.msk.bf16.mxu1 %vm2232_vm2, %v35697_v7  ;;  %23434 = vmatprep.mubr.msk.bf16.mxu0 %vm2232_vm2, %v35705_v44  ;;  %v35722_v7 = vld [vmem:[#allocation189_spill] sm:$0xff] }
 0x727   : > { %22573 = vmatmul.mubr.msk.bf16.gmra.mrb[128].mxu1 %vm2232_vm2, %v35630_v30  ;;  %23435 = vmatmul.mubr.msk.bf16.gmra.mrb[216].mxu0 %vm2232_vm2, %v35706_v47  ;;  %v31467_v30 = vld [vmem:[%s27833_s19 + $0x9b0] sm:$0xff] }
 0x728   : > { %22576 = vmatprep.mubr.msk.bf16.mxu1 %vm2232_vm2, %v35635_v11  ;;  %23438 = vmatprep.mubr.msk.bf16.mxu0 %vm2232_vm2, %v35707_v58  ;;  %v31464_v11 = vld [vmem:[%s27833_s19 + $0x9a8] sm:$0xff] }
 0x72f   : > { %22577 = vmatmul.mubr.msk.bf16.gmra.mrb[132].mxu1 %vm2232_vm2, %v35636_v23  ;;  %23439 = vmatmul.mubr.msk.bf16.gmra.mrb[220].mxu0 %vm2232_vm2, %v35708_v19  ;;  %v31450_v23 = vld [vmem:[%s27833_s19 + $0x998] sm:$0xff] }
 0x730   : > { %22580 = vmatprep.mubr.msk.bf16.mxu1 %vm2232_vm2, %v35642_v29  ;;  %23442 = vmatprep.mubr.msk.bf16.mxu0 %vm2232_vm2, %v31414_v5  ;;  %v1948_v29 = vld [vmem:[%s27833_s19 + $0x990] sm:$0xff] }
 0x737   : > { %22581 = vmatmul.mubr.msk.bf16.gmra.mrb[136].mxu1 %vm2232_vm2, %v35643_v62  ;;  %23443 = vmatmul.mubr.msk.bf16.gmra.mrb[224].mxu0 %vm2232_vm2, %v35722_v7  ;;  %v35725_v62 = vld [vmem:[#allocation196_spill] sm:$0xff] }
 0x738   : > { %22584 = vmatprep.mubr.msk.bf16.mxu1 %vm2232_vm2, %v35449_v32  ;;  %23446 = vmatprep.mubr.msk.bf16.mxu0 %vm2232_vm2, %v35723_v2  ;;  %v35726_v32 = vld [vmem:[#allocation199_spill] sm:$0xff] }
 0x73f   : > { %22585 = vmatmul.mubr.msk.bf16.gmra.mrb[140].mxu1 %vm2232_vm2, %v35648_v61  ;;  %23447 = vmatmul.mubr.msk.bf16.gmra.mrb[228].mxu0 %vm2232_vm2, %v35724_v22  ;;  %v35727_v61 = vld [vmem:[#allocation200_spill] sm:$0xff] }
 0x740   : > { %22588 = vmatprep.mubr.msk.bf16.mxu1 %vm2232_vm2, %v35698_v1  ;;  %23450 = vmatprep.mubr.msk.bf16.mxu0 %vm2232_vm2, %v35725_v62  ;;  %v10521_v1 = vpack.c.bf16 %v31450_v23, %v1948_v29  ;;  %v31470_v29 = vld [vmem:[%s27833_s19 + $0x9b8] sm:$0xff] }
 0x741   : > { %v31478_v50 = vpack.c.bf16 %v31470_v29, %v31467_v30 }
 0x743   : > { %35730 = vst [vmem:[#allocation187_spill] sm:$0xff] %v31478_v50 }
 0x747   : > { %22589 = vmatmul.mubr.msk.bf16.gmra.mrb[144].mxu1 %vm2232_vm2, %v35654_v56  ;;  %23451 = vmatmul.mubr.msk.bf16.gmra.mrb[232].mxu0 %vm2232_vm2, %v35726_v32  ;;  %v35728_v56 = vld [vmem:[#allocation205_spill] sm:$0xff] }
 0x748   : > { %22592 = vmatprep.mubr.msk.bf16.mxu1 %vm2232_vm2, %v35659_v37  ;;  %23454 = vmatprep.mubr.msk.bf16.mxu0 %vm2232_vm2, %v35727_v61  ;;  %v31461_v37 = vld [vmem:[%s27833_s19 + $0x9a0] sm:$0xff] }
 0x74f   : > { %22593 = vmatmul.mubr.msk.bf16.gmra.mrb[148].mxu1 %vm2232_vm2, %v35660_v18  ;;  %23455 = vmatmul.mubr.msk.bf16.gmra.mrb[236].mxu0 %vm2232_vm2, %v35728_v56  ;;  %v31474_v18 = vpack.c.bf16 %v31464_v11, %v31461_v37 }
 0x750   : > { %22596 = vmatprep.mubr.msk.bf16.mxu1 %vm2232_vm2, %v35666_v26  ;;  %23458 = vmatprep.mubr.msk.bf16.mxu0 %vm2232_vm2, %v10521_v1  ;;  %v31489_v1 = vld [vmem:[%s27833_s19 + $0x9c0] sm:$0xff]  ;;  %v31492_v26 = vld [vmem:[%s27833_s19 + $0x9c8] sm:$0xff] }
 0x751   : > { %35729 = vst [vmem:[#allocation171_spill] sm:$0xff] %v31474_v18 }
 0x757   : > { %22597 = vmatmul.mubr.msk.bf16.gmra.mrb[152].mxu1 %vm2232_vm2, %v35667_v35  ;;  %23459 = vmatmul.mubr.msk.bf16.gmra.mrb[240].mxu0 %vm2232_vm2, %v31474_v18  ;;  %v31502_v35 = vpack.c.bf16 %v31492_v26, %v31489_v1  ;;  %v31506_v18 = vpack.c.bf16 %v31498_v20, %v31495_v3 }
 0x758   : > { %22600 = vmatprep.mubr.msk.bf16.mxu1 %vm2232_vm2, %v35459_v34  ;;  %23462 = vmatprep.mubr.msk.bf16.mxu0 %vm2232_vm2, %v31478_v50  ;;  %v31517_v50 = vld [vmem:[%s27833_s19 + $0x9e0] sm:$0xff]  ;;  %v31520_v34 = vld [vmem:[%s27833_s19 + $0x9e8] sm:$0xff] }
 0x759   : > { %35731 = vst [vmem:[#allocation204_spill] sm:$0xff] %v31502_v35  ;;  %35732 = vst [vmem:[#allocation210_spill] sm:$0xff] %v31506_v18 }
 0x75f   : > { %22601 = vmatmul.mubr.msk.bf16.gmra.mrb[156].mxu1 %vm2232_vm2, %v35462_v45  ;;  %23463 = vmatmul.mubr.msk.bf16.gmra.mrb[244].mxu0 %vm2232_vm2, %v31502_v35  ;;  %v31530_v45 = vpack.c.bf16 %v31520_v34, %v31517_v50  ;;  %v31534_v35 = vpack.c.bf16 %v31526_v53, %v31523_v57 }
 0x760   : > { %22604 = vmatprep.mubr.msk.bf16.mxu1 %vm2232_vm2, %v35699_v63  ;;  %23466 = vmatprep.mubr.msk.bf16.mxu0 %vm2232_vm2, %v31506_v18  ;;  %v31545_v63 = vld [vmem:[%s27833_s19 + $0xa00] sm:$0xff]  ;;  %v31548_v18 = vld [vmem:[%s27833_s19 + $0xa08] sm:$0xff] }
 0x761   : > { %35733 = vst [vmem:[#allocation216_spill] sm:$0xff] %v31530_v45  ;;  %35734 = vst [vmem:[#allocation10_spill] sm:$0xff] %v31534_v35  ;;  %v31552_v13 = vpack.c.bf16 %v31548_v18, %v31545_v63 }
 0x763   : > { %35735 = vst [vmem:[#allocation41_spill] sm:$0xff] %v31552_v13 }
 0x767   : > { %22605 = vmatmul.mubr.msk.bf16.gmra.mrb[160].mxu1 %vm2232_vm2, %v35676_v15  ;;  %23467 = vmatmul.mubr.msk.bf16.gmra.mrb[248].mxu0 %vm2232_vm2, %v31530_v45  ;;  %v35736_v45 = vld [vmem:[#allocation28_spill] sm:$0xff]  ;;  %v35739_v15 = vld [vmem:[#allocation162_spill] sm:$0xff] }
 0x768   : > { %22608 = vmatprep.mubr.msk.bf16.mxu1 %vm2232_vm2, %v35681_v55  ;;  %23470 = vmatprep.mubr.msk.bf16.mxu0 %vm2232_vm2, %v31534_v35  ;;  %v35737_v35 = vld [vmem:[#allocation159_spill] sm:$0xff]  ;;  %v35738_v55 = vld [vmem:[#allocation30_spill] sm:$0xff] }
 0x76f   : > { %22609 = vmatmul.mubr.msk.bf16.gmra.mrb[164].mxu1 %vm2232_vm2, %v35682_v39  ;;  %23471 = vmatmul.mubr.msk.bf16.gmra.mrb[252].mxu0 %vm2232_vm2, %v31552_v13  ;;  %v35740_v39 = vld [vmem:[#allocation32_spill] sm:$0xff] }
 0x770   : > { %22612 = vmatprep.mubr.msk.bf16.mxu1 %vm2232_vm2, %v35688_v48  ;;  %23476 = vmatprep.mubr.msk.bf16.mxu0 %vm2232_vm2, %v35736_v45  ;;  %v35741_v13 = vld [vmem:[#allocation164_spill] sm:$0xff]  ;;  %v35743_v45 = vld [vmem:[#allocation161_spill] sm:$0xff] }
 0x771   : > { %v35742_v48 = vld [vmem:[#allocation36_spill] sm:$0xff] }
 0x777   : > { %22613 = vmatmul.mubr.msk.bf16.gmra.mrb[168].mxu1 %vm2232_vm2, %v35737_v35  ;;  %23477 = vmatmul.mubr.msk.bf16.vlgmr.msra.gmra.mrb[0].mxu0 %vm2232_vm2, %v35738_v55  ;;  %v35744_v35 = vld [vmem:[#allocation38_spill] sm:$0xff] }
 0x778   : > { %22616 = vmatprep.mubr.msk.bf16.mxu1 %vm2232_vm2, %v35739_v15  ;;  %23733 = vmatpush3.bf16.msra.mxu0 %v31361_v52  ;;  %v35745_v55 = vld [vmem:[#allocation42_spill] sm:$0xff]  ;;  %v35747_v52 = vld [vmem:[#allocation48_spill] sm:$0xff] }
 0x779   : > { %23480 = vmatprep.mubr.msk.bf16.mxu0 %vm2232_vm2, %v35740_v39  ;;  %v35746_v39 = vld [vmem:[#allocation44_spill] sm:$0xff] }
 0x77f   : > { %22617 = vmatmul.mubr.msk.bf16.gmra.mrb[172].mxu1 %vm2232_vm2, %v35741_v13  ;;  %23481 = vmatmul.mubr.msk.bf16.gmra.mrb[4].mxu0 %vm2232_vm2, %v35742_v48  ;;  %v35748_v48 = vld [vmem:[#allocation101_spill] sm:$0xff] }
 0x780   : > { %22620 = vmatprep.mubr.msk.bf16.mxu1 %vm2232_vm2, %v35743_v45  ;;  %23484 = vmatprep.mubr.msk.bf16.mxu0 %vm2232_vm2, %v35744_v35  ;;  %v35749_v35 = vld [vmem:[#allocation50_spill] sm:$0xff]  ;;  %v35750_v45 = vld [vmem:[#allocation53_spill] sm:$0xff] }
 0x787   : > { %22621 = vmatmul.mubr.msk.bf16.gmra.mrb[176].mxu1 %vm2232_vm2, %v35475_v25  ;;  %23485 = vmatmul.mubr.msk.bf16.gmra.mrb[8].mxu0 %vm2232_vm2, %v35745_v55  ;;  %v35751_v55 = vld [vmem:[#allocation55_spill] sm:$0xff] }
 0x788   : > { %22624 = vmatprep.mubr.msk.bf16.mxu1 %vm2232_vm2, %v35476_v21  ;;  %23488 = vmatprep.mubr.msk.bf16.mxu0 %vm2232_vm2, %v35746_v39  ;;  %v35752_v39 = vld [vmem:[#allocation59_spill] sm:$0xff] }
 0x78f   : > { %22625 = vmatmul.mubr.msk.bf16.gmra.mrb[180].mxu1 %vm2232_vm2, %v35477_v24  ;;  %23489 = vmatmul.mubr.msk.bf16.gmra.mrb[12].mxu0 %vm2232_vm2, %v35747_v52  ;;  %v35753_v52 = vld [vmem:[#allocation61_spill] sm:$0xff] }
 0x790   : > { %22628 = vmatprep.mubr.msk.bf16.mxu1 %vm2232_vm2, %v35748_v48  ;;  %23492 = vmatprep.mubr.msk.bf16.mxu0 %vm2232_vm2, %v35749_v35 }
 0x797   : > { %22629 = vmatmul.mubr.msk.bf16.gmra.mrb[184].mxu1 %vm2232_vm2, %v35479_v49  ;;  %23493 = vmatmul.mubr.msk.bf16.gmra.mrb[16].mxu0 %vm2232_vm2, %v35750_v45 }
 0x798   : > { %22632 = vmatprep.mubr.msk.bf16.mxu1 %vm2232_vm2, %v35480_v43  ;;  %23496 = vmatprep.mubr.msk.bf16.mxu0 %vm2232_vm2, %v35751_v55  ;;  %v35757_v55 = vld [vmem:[#allocation69_spill] sm:$0xff] }
 0x79f   : > { %22633 = vmatmul.mubr.msk.bf16.gmra.mrb[188].mxu1 %vm2232_vm2, %v35482_v31  ;;  %23497 = vmatmul.mubr.msk.bf16.gmra.mrb[20].mxu0 %vm2232_vm2, %v35752_v39 }
 0x7a0   : > { %22636 = vmatprep.mubr.msk.bf16.mxu1 %vm2232_vm2, %v35710_v10  ;;  %23500 = vmatprep.mubr.msk.bf16.mxu0 %vm2232_vm2, %v35753_v52  ;;  %v35758_v10 = vld [vmem:[#allocation71_spill] sm:$0xff] }
 0x7a2   : > { %v31611_v35 = vpop.f32.mrb[84].mxu1 }
 0x7a3   : > { %v31613_v45 = vpop.f32.mrb[85].mxu1 }
 0x7a4   : > { %35754 = vst [vmem:[#allocation144_spill] sm:$0xff] %v31613_v45  ;;  %v31615_v43 = vpop.f32.mrb[86].mxu1 }
 0x7a5   : > { %35755 = vst [vmem:[#allocation92_spill] sm:$0xff] %v31615_v43  ;;  %v31617_v49 = vpop.f32.mrb[87].mxu1 }
 0x7a6   : > { %35756 = vst [vmem:[#allocation76_spill] sm:$0xff] %v31617_v49  ;;  %v35763_v49 = vld [vmem:[#allocation79_spill] sm:$0xff] }
 0x7a7   : > { %22637 = vmatmul.mubr.msk.bf16.gmra.mrb[192].mxu1 %vm2232_vm2, %v35484_v28  ;;  %23501 = vmatmul.mubr.msk.bf16.gmra.mrb[24].mxu0 %vm2232_vm2, %v35757_v55  ;;  %v35764_v55 = vld [vmem:[#allocation81_spill] sm:$0xff] }
 0x7a8   : > { %22640 = vmatprep.mubr.msk.bf16.mxu1 %vm2232_vm2, %v35485_v54  ;;  %23504 = vmatprep.mubr.msk.bf16.mxu0 %vm2232_vm2, %v35758_v10 }
 0x7aa   : > { %v31627_v39 = vpop.f32.mrb[88].mxu1 }
 0x7ab   : > { %35759 = vst [vmem:[#allocation9_spill] sm:$0xff] %v31627_v39  ;;  %v31629_v52 = vpop.f32.mrb[89].mxu1 }
 0x7ac   : > { %35760 = vst [vmem:[#allocation160_spill] sm:$0xff] %v31629_v52  ;;  %v31631_v45 = vpop.f32.mrb[90].mxu1 }
 0x7ad   : > { %35761 = vst [vmem:[#allocation173_spill] sm:$0xff] %v31631_v45  ;;  %v31633_v43 = vpop.f32.mrb[91].mxu1 }
 0x7ae   : > { %35762 = vst [vmem:[#allocation28_spill] sm:$0xff] %v31633_v43  ;;  %v35769_v43 = vld [vmem:[#allocation86_spill] sm:$0xff] }
 0x7af   : > { %22641 = vmatmul.mubr.msk.bf16.gmra.mrb[196].mxu1 %vm2232_vm2, %v35486_v38  ;;  %23505 = vmatmul.mubr.msk.bf16.gmra.mrb[28].mxu0 %vm2232_vm2, %v35763_v49  ;;  %v35770_v49 = vld [vmem:[#allocation88_spill] sm:$0xff] }
 0x7b0   : > { %22644 = vmatprep.mubr.msk.bf16.mxu1 %vm2232_vm2, %v35487_v8  ;;  %23508 = vmatprep.mubr.msk.bf16.mxu0 %vm2232_vm2, %v35764_v55 }
 0x7b2   : > { %v31643_v10 = vpop.f32.mrb[92].mxu1 }
 0x7b3   : > { %35765 = vst [vmem:[#allocation30_spill] sm:$0xff] %v31643_v10  ;;  %v31645_v39 = vpop.f32.mrb[93].mxu1 }
 0x7b4   : > { %35766 = vst [vmem:[#allocation162_spill] sm:$0xff] %v31645_v39  ;;  %v31647_v52 = vpop.f32.mrb[94].mxu1 }
 0x7b5   : > { %35767 = vst [vmem:[#allocation32_spill] sm:$0xff] %v31647_v52  ;;  %v31649_v45 = vpop.f32.mrb[95].mxu1 }
 0x7b6   : > { %35768 = vst [vmem:[#allocation164_spill] sm:$0xff] %v31649_v45  ;;  %v35775_v45 = vld [vmem:[#allocation96_spill] sm:$0xff] }
 0x7b7   : > { %22645 = vmatmul.mubr.msk.bf16.gmra.mrb[200].mxu1 %vm2232_vm2, %v35488_v36  ;;  %23509 = vmatmul.mubr.msk.bf16.gmra.mrb[32].mxu0 %vm2232_vm2, %v35769_v43  ;;  %v35776_v43 = vld [vmem:[#allocation98_spill] sm:$0xff] }
 0x7b8   : > { %22648 = vmatprep.mubr.msk.bf16.mxu1 %vm2232_vm2, %v35489_v16  ;;  %23512 = vmatprep.mubr.msk.bf16.mxu0 %vm2232_vm2, %v35770_v49 }
 0x7ba   : > { %v31659_v55 = vpop.f32.mrb[96].mxu1 }
 0x7bb   : > { %35771 = vst [vmem:[#allocation36_spill] sm:$0xff] %v31659_v55  ;;  %v31661_v10 = vpop.f32.mrb[97].mxu1 }
 0x7bc   : > { %35772 = vst [vmem:[#allocation161_spill] sm:$0xff] %v31661_v10  ;;  %v31663_v39 = vpop.f32.mrb[98].mxu1 }
 0x7bd   : > { %35773 = vst [vmem:[#allocation38_spill] sm:$0xff] %v31663_v39  ;;  %v31665_v52 = vpop.f32.mrb[99].mxu1 }
 0x7be   : > { %35774 = vst [vmem:[#allocation42_spill] sm:$0xff] %v31665_v52  ;;  %v35780_v52 = vld [vmem:[#allocation106_spill] sm:$0xff] }
 0x7bf   : > { %22649 = vmatmul.mubr.msk.bf16.gmra.mrb[204].mxu1 %vm2232_vm2, %v35491_v14  ;;  %23513 = vmatmul.mubr.msk.bf16.gmra.mrb[36].mxu0 %vm2232_vm2, %v35775_v45 }
 0x7c0   : > { %22652 = vmatprep.mubr.msk.bf16.mxu1 %vm2232_vm2, %v35716_v27  ;;  %23516 = vmatprep.mubr.msk.bf16.mxu0 %vm2232_vm2, %v35776_v43  ;;  %v35781_v27 = vld [vmem:[#allocation108_spill] sm:$0xff] }
 0x7c2   : > { %v31675_v49 = vpop.f32.mrb[100].mxu1 }
 0x7c3   : > { %v31677_v55 = vpop.f32.mrb[101].mxu1 }
 0x7c4   : > { %35777 = vst [vmem:[#allocation44_spill] sm:$0xff] %v31677_v55  ;;  %v31679_v10 = vpop.f32.mrb[102].mxu1 }
 0x7c5   : > { %35778 = vst [vmem:[#allocation48_spill] sm:$0xff] %v31679_v10  ;;  %v31681_v39 = vpop.f32.mrb[103].mxu1 }
 0x7c6   : > { %35779 = vst [vmem:[#allocation101_spill] sm:$0xff] %v31681_v39  ;;  %v35786_v39 = vld [vmem:[#allocation113_spill] sm:$0xff] }
 0x7c7   : > { %22653 = vmatmul.mubr.msk.bf16.gmra.mrb[208].mxu1 %vm2232_vm2, %v35493_v9  ;;  %23517 = vmatmul.mubr.msk.bf16.gmra.mrb[40].mxu0 %vm2232_vm2, %v35780_v52  ;;  %v35787_v52 = vld [vmem:[#allocation115_spill] sm:$0xff] }
 0x7c8   : > { %22656 = vmatprep.mubr.msk.bf16.mxu1 %vm2232_vm2, %v35494_v41  ;;  %23520 = vmatprep.mubr.msk.bf16.mxu0 %vm2232_vm2, %v35781_v27 }
 0x7ca   : > { %v31691_v45 = vpop.f32.mrb[104].mxu1 }
 0x7cb   : > { %35782 = vst [vmem:[#allocation50_spill] sm:$0xff] %v31691_v45  ;;  %v31693_v43 = vpop.f32.mrb[105].mxu1 }
 0x7cc   : > { %35783 = vst [vmem:[#allocation53_spill] sm:$0xff] %v31693_v43  ;;  %v31695_v55 = vpop.f32.mrb[106].mxu1 }
 0x7cd   : > { %35784 = vst [vmem:[#allocation55_spill] sm:$0xff] %v31695_v55  ;;  %v31697_v10 = vpop.f32.mrb[107].mxu1 }
 0x7ce   : > { %35785 = vst [vmem:[#allocation59_spill] sm:$0xff] %v31697_v10  ;;  %v35792_v10 = vld [vmem:[#allocation118_spill] sm:$0xff] }
 0x7cf   : > { %22657 = vmatmul.mubr.msk.bf16.gmra.mrb[212].mxu1 %vm2232_vm2, %v35495_v60  ;;  %23521 = vmatmul.mubr.msk.bf16.gmra.mrb[44].mxu0 %vm2232_vm2, %v35786_v39  ;;  %v35793_v39 = vld [vmem:[#allocation120_spill] sm:$0xff] }
 0x7d0   : > { %22660 = vmatprep.mubr.msk.bf16.mxu1 %vm2232_vm2, %v35496_v42  ;;  %23524 = vmatprep.mubr.msk.bf16.mxu0 %vm2232_vm2, %v35787_v52 }
 0x7d2   : > { %v31707_v27 = vpop.f32.mrb[108].mxu1 }
 0x7d3   : > { %35788 = vst [vmem:[#allocation61_spill] sm:$0xff] %v31707_v27  ;;  %v31709_v45 = vpop.f32.mrb[109].mxu1 }
 0x7d4   : > { %35789 = vst [vmem:[#allocation69_spill] sm:$0xff] %v31709_v45  ;;  %v31711_v43 = vpop.f32.mrb[110].mxu1 }
 0x7d5   : > { %35790 = vst [vmem:[#allocation71_spill] sm:$0xff] %v31711_v43  ;;  %v31713_v55 = vpop.f32.mrb[111].mxu1 }
 0x7d6   : > { %35791 = vst [vmem:[#allocation79_spill] sm:$0xff] %v31713_v55  ;;  %v35798_v55 = vld [vmem:[#allocation123_spill] sm:$0xff] }
 0x7d7   : > { %22661 = vmatmul.mubr.msk.bf16.gmra.mrb[216].mxu1 %vm2232_vm2, %v35497_v33  ;;  %23525 = vmatmul.mubr.msk.bf16.gmra.mrb[48].mxu0 %vm2232_vm2, %v35792_v10  ;;  %v35799_v10 = vld [vmem:[#allocation124_spill] sm:$0xff] }
 0x7d8   : > { %22664 = vmatprep.mubr.msk.bf16.mxu1 %vm2232_vm2, %v35498_v0  ;;  %23528 = vmatprep.mubr.msk.bf16.mxu0 %vm2232_vm2, %v35793_v39 }
 0x7da   : > { %v31723_v52 = vpop.f32.mrb[112].mxu1 }
 0x7db   : > { %35794 = vst [vmem:[#allocation81_spill] sm:$0xff] %v31723_v52  ;;  %v31725_v27 = vpop.f32.mrb[113].mxu1 }
 0x7dc   : > { %35795 = vst [vmem:[#allocation86_spill] sm:$0xff] %v31725_v27  ;;  %v31727_v45 = vpop.f32.mrb[114].mxu1 }
 0x7dd   : > { %35796 = vst [vmem:[#allocation88_spill] sm:$0xff] %v31727_v45  ;;  %v31729_v43 = vpop.f32.mrb[115].mxu1 }
 0x7de   : > { %35797 = vst [vmem:[#allocation96_spill] sm:$0xff] %v31729_v43  ;;  %v35804_v43 = vld [vmem:[#allocation127_spill] sm:$0xff] }
 0x7df   : > { %22665 = vmatmul.mubr.msk.bf16.gmra.mrb[220].mxu1 %vm2232_vm2, %v35500_v6  ;;  %23529 = vmatmul.mubr.msk.bf16.gmra.mrb[52].mxu0 %vm2232_vm2, %v35798_v55 }
 0x7e0   : > { %22668 = vmatprep.mubr.msk.bf16.mxu1 %vm2232_vm2, %v35721_v51  ;;  %23532 = vmatprep.mubr.msk.bf16.mxu0 %vm2232_vm2, %v35799_v10  ;;  %v35805_v51 = vld [vmem:[#allocation128_spill] sm:$0xff] }
 0x7e2   : > { %v31739_v39 = vpop.f32.mrb[116].mxu1 }
 0x7e3   : > { %35800 = vst [vmem:[#allocation98_spill] sm:$0xff] %v31739_v39  ;;  %v31741_v52 = vpop.f32.mrb[117].mxu1 }
 0x7e4   : > { %35801 = vst [vmem:[#allocation106_spill] sm:$0xff] %v31741_v52  ;;  %v31743_v27 = vpop.f32.mrb[118].mxu1 }
 0x7e5   : > { %35802 = vst [vmem:[#allocation108_spill] sm:$0xff] %v31743_v27  ;;  %v31745_v45 = vpop.f32.mrb[119].mxu1 }
 0x7e6   : > { %35803 = vst [vmem:[#allocation113_spill] sm:$0xff] %v31745_v45  ;;  %v35810_v45 = vld [vmem:[#allocation131_spill] sm:$0xff] }
 0x7e7   : > { %22669 = vmatmul.mubr.msk.bf16.gmra.mrb[224].mxu1 %vm2232_vm2, %v35701_v46  ;;  %23533 = vmatmul.mubr.msk.bf16.gmra.mrb[56].mxu0 %vm2232_vm2, %v35804_v43  ;;  %v35811_v43 = vld [vmem:[#allocation132_spill] sm:$0xff] }
 0x7e8   : > { %22672 = vmatprep.mubr.msk.bf16.mxu1 %vm2232_vm2, %v35702_v17  ;;  %23536 = vmatprep.mubr.msk.bf16.mxu0 %vm2232_vm2, %v35805_v51 }
 0x7ea   : > { %v31755_v55 = vpop.f32.mrb[120].mxu1 }
 0x7eb   : > { %35806 = vst [vmem:[#allocation115_spill] sm:$0xff] %v31755_v55  ;;  %v31757_v10 = vpop.f32.mrb[121].mxu1 }
 0x7ec   : > { %35807 = vst [vmem:[#allocation118_spill] sm:$0xff] %v31757_v10  ;;  %v31759_v52 = vpop.f32.mrb[122].mxu1 }
 0x7ed   : > { %35808 = vst [vmem:[#allocation120_spill] sm:$0xff] %v31759_v52  ;;  %v31761_v27 = vpop.f32.mrb[123].mxu1 }
 0x7ee   : > { %35809 = vst [vmem:[#allocation123_spill] sm:$0xff] %v31761_v27  ;;  %v35816_v27 = vld [vmem:[#allocation134_spill] sm:$0xff] }
 0x7ef   : > { %22673 = vmatmul.mubr.msk.bf16.gmra.mrb[228].mxu1 %vm2232_vm2, %v35703_v40  ;;  %23537 = vmatmul.mubr.msk.bf16.gmra.mrb[60].mxu0 %vm2232_vm2, %v35810_v45  ;;  %v35817_v45 = vld [vmem:[#allocation135_spill] sm:$0xff] }
 0x7f0   : > { %22676 = vmatprep.mubr.msk.bf16.mxu1 %vm2232_vm2, %v35705_v44  ;;  %23540 = vmatprep.mubr.msk.bf16.mxu0 %vm2232_vm2, %v35811_v43 }
 0x7f2   : > { %v31771_v51 = vpop.f32.mrb[124].mxu1 }
 0x7f3   : > { %35812 = vst [vmem:[#allocation124_spill] sm:$0xff] %v31771_v51  ;;  %v31773_v55 = vpop.f32.mrb[125].mxu1 }
 0x7f4   : > { %35813 = vst [vmem:[#allocation127_spill] sm:$0xff] %v31773_v55  ;;  %v31775_v10 = vpop.f32.mrb[126].mxu1 }
 0x7f5   : > { %35814 = vst [vmem:[#allocation128_spill] sm:$0xff] %v31775_v10  ;;  %v31777_v52 = vpop.f32.mrb[127].mxu1 }
 0x7f6   : > { %35815 = vst [vmem:[#allocation131_spill] sm:$0xff] %v31777_v52  ;;  %v35822_v52 = vld [vmem:[#allocation138_spill] sm:$0xff] }
 0x7f7   : > { %22677 = vmatmul.mubr.msk.bf16.gmra.mrb[232].mxu1 %vm2232_vm2, %v35706_v47  ;;  %23541 = vmatmul.mubr.msk.bf16.gmra.mrb[64].mxu0 %vm2232_vm2, %v35816_v27  ;;  %v35823_v27 = vld [vmem:[#allocation139_spill] sm:$0xff] }
 0x7f8   : > { %22680 = vmatprep.mubr.msk.bf16.mxu1 %vm2232_vm2, %v35707_v58  ;;  %23544 = vmatprep.mubr.msk.bf16.mxu0 %vm2232_vm2, %v35817_v45 }
 0x7fa   : > { %v31787_v43 = vpop.f32.mrb[128].mxu1 }
 0x7fb   : > { %35818 = vst [vmem:[#allocation132_spill] sm:$0xff] %v31787_v43  ;;  %v31789_v51 = vpop.f32.mrb[129].mxu1 }
 0x7fc   : > { %35819 = vst [vmem:[#allocation134_spill] sm:$0xff] %v31789_v51  ;;  %v31791_v55 = vpop.f32.mrb[130].mxu1 }
 0x7fd   : > { %35820 = vst [vmem:[#allocation135_spill] sm:$0xff] %v31791_v55  ;;  %v31793_v10 = vpop.f32.mrb[131].mxu1 }
 0x7fe   : > { %35821 = vst [vmem:[#allocation324_spill] sm:$0xff] %v31793_v10  ;;  %v35828_v10 = vld [vmem:[#allocation142_spill] sm:$0xff] }
 0x7ff   : > { %22681 = vmatmul.mubr.msk.bf16.gmra.mrb[236].mxu1 %vm2232_vm2, %v35708_v19  ;;  %23545 = vmatmul.mubr.msk.bf16.gmra.mrb[68].mxu0 %vm2232_vm2, %v35822_v52  ;;  %v36111_v19 = vld [vmem:[#allocation169_spill] sm:$0xff] }
 0x800   : > { %22684 = vmatprep.mubr.msk.bf16.mxu1 %vm2232_vm2, %v31414_v5  ;;  %23548 = vmatprep.mubr.msk.bf16.mxu0 %vm2232_vm2, %v35823_v27  ;;  %v35829_v5 = vld [vmem:[#allocation143_spill] sm:$0xff] }
 0x802   : > { %v31803_v45 = vpop.f32.mrb[132].mxu1 }
 0x803   : > { %35824 = vst [vmem:[#allocation138_spill] sm:$0xff] %v31803_v45  ;;  %v31805_v43 = vpop.f32.mrb[133].mxu1 }
 0x804   : > { %35825 = vst [vmem:[#allocation139_spill] sm:$0xff] %v31805_v43  ;;  %v31807_v51 = vpop.f32.mrb[134].mxu1 }
 0x805   : > { %35826 = vst [vmem:[#allocation325_spill] sm:$0xff] %v31807_v51  ;;  %v31809_v55 = vpop.f32.mrb[135].mxu1 }
 0x806   : > { %35827 = vst [vmem:[#allocation326_spill] sm:$0xff] %v31809_v55  ;;  %v35834_v55 = vld [vmem:[#allocation147_spill] sm:$0xff] }
 0x807   : > { %22685 = vmatmul.mubr.msk.bf16.gmra.mrb[240].mxu1 %vm2232_vm2, %v35722_v7  ;;  %23549 = vmatmul.mubr.msk.bf16.gmra.mrb[72].mxu0 %vm2232_vm2, %v35828_v10  ;;  %v35835_v10 = vld [vmem:[#allocation148_spill] sm:$0xff] }
 0x808   : > { %22688 = vmatprep.mubr.msk.bf16.mxu1 %vm2232_vm2, %v35723_v2  ;;  %23552 = vmatprep.mubr.msk.bf16.mxu0 %vm2232_vm2, %v35829_v5 }
 0x80a   : > { %v31819_v52 = vpop.f32.mrb[136].mxu1 }
 0x80b   : > { %35830 = vst [vmem:[#allocation142_spill] sm:$0xff] %v31819_v52  ;;  %v31821_v27 = vpop.f32.mrb[137].mxu1 }
 0x80c   : > { %35831 = vst [vmem:[#allocation143_spill] sm:$0xff] %v31821_v27  ;;  %v31823_v43 = vpop.f32.mrb[138].mxu1 }
 0x80d   : > { %35832 = vst [vmem:[#allocation327_spill] sm:$0xff] %v31823_v43  ;;  %v31825_v51 = vpop.f32.mrb[139].mxu1 }
 0x80e   : > { %35833 = vst [vmem:[#allocation328_spill] sm:$0xff] %v31825_v51  ;;  %v35840_v51 = vld [vmem:[#allocation150_spill] sm:$0xff] }
 0x80f   : > { %22689 = vmatmul.mubr.msk.bf16.gmra.mrb[244].mxu1 %vm2232_vm2, %v35724_v22  ;;  %23553 = vmatmul.mubr.msk.bf16.gmra.mrb[76].mxu0 %vm2232_vm2, %v35834_v55  ;;  %v35841_v55 = vld [vmem:[#allocation151_spill] sm:$0xff] }
 0x810   : > { %22692 = vmatprep.mubr.msk.bf16.mxu1 %vm2232_vm2, %v35725_v62  ;;  %23556 = vmatprep.mubr.msk.bf16.mxu0 %vm2232_vm2, %v35835_v10  ;;  %v36109_v62 = vld [vmem:[#allocation257_spill] sm:$0xff] }
 0x812   : > { %v31835_v5 = vpop.f32.mrb[140].mxu1 }
 0x813   : > { %35836 = vst [vmem:[#allocation147_spill] sm:$0xff] %v31835_v5  ;;  %v31837_v52 = vpop.f32.mrb[141].mxu1 }
 0x814   : > { %35837 = vst [vmem:[#allocation148_spill] sm:$0xff] %v31837_v52  ;;  %v31839_v27 = vpop.f32.mrb[142].mxu1 }
 0x815   : > { %35838 = vst [vmem:[#allocation329_spill] sm:$0xff] %v31839_v27  ;;  %v31841_v43 = vpop.f32.mrb[143].mxu1 }
 0x816   : > { %35839 = vst [vmem:[#allocation330_spill] sm:$0xff] %v31841_v43  ;;  %v35846_v43 = vld [vmem:[#allocation63_spill] sm:$0xff] }
 0x817   : > { %22693 = vmatmul.mubr.msk.bf16.gmra.mrb[248].mxu1 %vm2232_vm2, %v35726_v32  ;;  %23557 = vmatmul.mubr.msk.bf16.gmra.mrb[80].mxu0 %vm2232_vm2, %v35840_v51  ;;  %v35847_v51 = vld [vmem:[#allocation64_spill] sm:$0xff] }
 0x818   : > { %22696 = vmatprep.mubr.msk.bf16.mxu1 %vm2232_vm2, %v35727_v61  ;;  %23560 = vmatprep.mubr.msk.bf16.mxu0 %vm2232_vm2, %v35841_v55 }
 0x81a   : > { %v31851_v10 = vpop.f32.mrb[144].mxu1 }
 0x81b   : > { %35842 = vst [vmem:[#allocation150_spill] sm:$0xff] %v31851_v10  ;;  %v31853_v5 = vpop.f32.mrb[145].mxu1 }
 0x81c   : > { %35843 = vst [vmem:[#allocation151_spill] sm:$0xff] %v31853_v5  ;;  %v31855_v52 = vpop.f32.mrb[146].mxu1 }
 0x81d   : > { %35844 = vst [vmem:[#allocation331_spill] sm:$0xff] %v31855_v52  ;;  %v31857_v27 = vpop.f32.mrb[147].mxu1  ;;  %v35852_v52 = vld [vmem:[#allocation67_spill] sm:$0xff] }
 0x81e   : > { %35845 = vst [vmem:[#allocation332_spill] sm:$0xff] %v31857_v27  ;;  %v35853_v27 = vld [vmem:[#allocation73_spill] sm:$0xff] }
 0x81f   : > { %22697 = vmatmul.mubr.msk.bf16.gmra.mrb[252].mxu1 %vm2232_vm2, %v35728_v56  ;;  %23561 = vmatmul.mubr.msk.bf16.gmra.mrb[84].mxu0 %vm2232_vm2, %v35846_v43 }
 0x820   : > { %23564 = vmatprep.mubr.msk.bf16.mxu0 %vm2232_vm2, %v35847_v51 }
 0x822   : > { %v31865_v45 = vpop.f32.mrb[148].mxu1 }
 0x823   : > { %35848 = vst [vmem:[#allocation63_spill] sm:$0xff] %v31865_v45  ;;  %v31867_v55 = vpop.f32.mrb[149].mxu1  ;;  %v35858_v45 = vld [vmem:[#allocation77_spill] sm:$0xff] }
 0x824   : > { %35849 = vst [vmem:[#allocation64_spill] sm:$0xff] %v31867_v55  ;;  %v31869_v10 = vpop.f32.mrb[150].mxu1 }
 0x825   : > { %35850 = vst [vmem:[#allocation333_spill] sm:$0xff] %v31869_v10  ;;  %v31871_v5 = vpop.f32.mrb[151].mxu1  ;;  %v35859_v10 = vld [vmem:[#allocation83_spill] sm:$0xff] }
 0x826   : > { %35851 = vst [vmem:[#allocation334_spill] sm:$0xff] %v31871_v5 }
 0x827   : > { %23565 = vmatmul.mubr.msk.bf16.gmra.mrb[88].mxu0 %vm2232_vm2, %v35852_v52 }
 0x828   : > { %23568 = vmatprep.mubr.msk.bf16.mxu0 %vm2232_vm2, %v35853_v27 }
 0x82a   : > { %v31877_v56 = vpop.f32.mrb[152].mxu1 }
 0x82b   : > { %35854 = vst [vmem:[#allocation67_spill] sm:$0xff] %v31877_v56  ;;  %v31879_v43 = vpop.f32.mrb[153].mxu1  ;;  %v35864_v56 = vld [vmem:[#allocation84_spill] sm:$0xff] }
 0x82c   : > { %35855 = vst [vmem:[#allocation73_spill] sm:$0xff] %v31879_v43  ;;  %v31881_v61 = vpop.f32.mrb[154].mxu1 }
 0x82d   : > { %35856 = vst [vmem:[#allocation335_spill] sm:$0xff] %v31881_v61  ;;  %v31883_v51 = vpop.f32.mrb[155].mxu1  ;;  %v35865_v61 = vld [vmem:[#allocation90_spill] sm:$0xff] }
 0x82e   : > { %35857 = vst [vmem:[#allocation336_spill] sm:$0xff] %v31883_v51 }
 0x82f   : > { %23569 = vmatmul.mubr.msk.bf16.gmra.mrb[92].mxu0 %vm2232_vm2, %v35858_v45 }
 0x830   : > { %23572 = vmatprep.mubr.msk.bf16.mxu0 %vm2232_vm2, %v35859_v10 }
 0x832   : > { %v31889_v5 = vpop.f32.mrb[156].mxu1 }
 0x833   : > { %35860 = vst [vmem:[#allocation77_spill] sm:$0xff] %v31889_v5  ;;  %v31891_v52 = vpop.f32.mrb[157].mxu1  ;;  %v35870_v5 = vld [vmem:[#allocation94_spill] sm:$0xff] }
 0x834   : > { %35861 = vst [vmem:[#allocation83_spill] sm:$0xff] %v31891_v52  ;;  %v31893_v55 = vpop.f32.mrb[158].mxu1 }
 0x835   : > { %35862 = vst [vmem:[#allocation337_spill] sm:$0xff] %v31893_v55  ;;  %v31895_v27 = vpop.f32.mrb[159].mxu1  ;;  %v35871_v55 = vld [vmem:[#allocation100_spill] sm:$0xff] }
 0x836   : > { %35863 = vst [vmem:[#allocation338_spill] sm:$0xff] %v31895_v27 }
 0x837   : > { %23573 = vmatmul.mubr.msk.bf16.gmra.mrb[96].mxu0 %vm2232_vm2, %v35864_v56 }
 0x838   : > { %23576 = vmatprep.mubr.msk.bf16.mxu0 %vm2232_vm2, %v35865_v61 }
 0x83a   : > { %v31901_v51 = vpop.f32.mrb[160].mxu1 }
 0x83b   : > { %35866 = vst [vmem:[#allocation84_spill] sm:$0xff] %v31901_v51  ;;  %v31903_v45 = vpop.f32.mrb[161].mxu1  ;;  %v35876_v51 = vld [vmem:[#allocation104_spill] sm:$0xff] }
 0x83c   : > { %35867 = vst [vmem:[#allocation90_spill] sm:$0xff] %v31903_v45  ;;  %v31905_v43 = vpop.f32.mrb[162].mxu1 }
 0x83d   : > { %35868 = vst [vmem:[#allocation339_spill] sm:$0xff] %v31905_v43  ;;  %v31907_v10 = vpop.f32.mrb[163].mxu1  ;;  %v35877_v43 = vld [vmem:[#allocation110_spill] sm:$0xff] }
 0x83e   : > { %35869 = vst [vmem:[#allocation340_spill] sm:$0xff] %v31907_v10 }
 0x83f   : > { %23577 = vmatmul.mubr.msk.bf16.gmra.mrb[100].mxu0 %vm2232_vm2, %v35870_v5 }
 0x840   : > { %23580 = vmatprep.mubr.msk.bf16.mxu0 %vm2232_vm2, %v35871_v55 }
 0x842   : > { %v31913_v27 = vpop.f32.mrb[164].mxu1 }
 0x843   : > { %35872 = vst [vmem:[#allocation94_spill] sm:$0xff] %v31913_v27  ;;  %v31915_v56 = vpop.f32.mrb[165].mxu1  ;;  %v35882_v27 = vld [vmem:[#allocation174_spill] sm:$0xff] }
 0x844   : > { %35873 = vst [vmem:[#allocation100_spill] sm:$0xff] %v31915_v56  ;;  %v31917_v52 = vpop.f32.mrb[166].mxu1 }
 0x845   : > { %35874 = vst [vmem:[#allocation341_spill] sm:$0xff] %v31917_v52  ;;  %v31919_v61 = vpop.f32.mrb[167].mxu1  ;;  %v35883_v52 = vld [vmem:[#allocation175_spill] sm:$0xff] }
 0x846   : > { %35875 = vst [vmem:[#allocation342_spill] sm:$0xff] %v31919_v61 }
 0x847   : > { %23581 = vmatmul.mubr.msk.bf16.gmra.mrb[104].mxu0 %vm2232_vm2, %v35876_v51 }
 0x848   : > { %23584 = vmatprep.mubr.msk.bf16.mxu0 %vm2232_vm2, %v35877_v43 }
 0x84a   : > { %v31925_v10 = vpop.f32.mrb[168].mxu1 }
 0x84b   : > { %35878 = vst [vmem:[#allocation104_spill] sm:$0xff] %v31925_v10  ;;  %v31927_v5 = vpop.f32.mrb[169].mxu1  ;;  %v35888_v10 = vld [vmem:[#allocation177_spill] sm:$0xff] }
 0x84c   : > { %35879 = vst [vmem:[#allocation110_spill] sm:$0xff] %v31927_v5  ;;  %v31929_v45 = vpop.f32.mrb[170].mxu1 }
 0x84d   : > { %35880 = vst [vmem:[#allocation343_spill] sm:$0xff] %v31929_v45  ;;  %v31931_v55 = vpop.f32.mrb[171].mxu1  ;;  %v35889_v45 = vld [vmem:[#allocation178_spill] sm:$0xff] }
 0x84e   : > { %35881 = vst [vmem:[#allocation344_spill] sm:$0xff] %v31931_v55 }
 0x84f   : > { %23585 = vmatmul.mubr.msk.bf16.gmra.mrb[108].mxu0 %vm2232_vm2, %v35882_v27 }
 0x850   : > { %23588 = vmatprep.mubr.msk.bf16.mxu0 %vm2232_vm2, %v35883_v52 }
 0x852   : > { %v31937_v61 = vpop.f32.mrb[172].mxu1 }
 0x853   : > { %35884 = vst [vmem:[#allocation174_spill] sm:$0xff] %v31937_v61  ;;  %v31939_v51 = vpop.f32.mrb[173].mxu1  ;;  %v35894_v61 = vld [vmem:[#allocation181_spill] sm:$0xff] }
 0x854   : > { %35885 = vst [vmem:[#allocation175_spill] sm:$0xff] %v31939_v51  ;;  %v31941_v56 = vpop.f32.mrb[174].mxu1 }
 0x855   : > { %35886 = vst [vmem:[#allocation345_spill] sm:$0xff] %v31941_v56  ;;  %v31943_v43 = vpop.f32.mrb[175].mxu1  ;;  %v35895_v56 = vld [vmem:[#allocation182_spill] sm:$0xff] }
 0x856   : > { %35887 = vst [vmem:[#allocation346_spill] sm:$0xff] %v31943_v43 }
 0x857   : > { %23589 = vmatmul.mubr.msk.bf16.gmra.mrb[112].mxu0 %vm2232_vm2, %v35888_v10 }
 0x858   : > { %23592 = vmatprep.mubr.msk.bf16.mxu0 %vm2232_vm2, %v35889_v45 }
 0x85a   : > { %v31949_v55 = vpop.f32.mrb[176].mxu1 }
 0x85b   : > { %35890 = vst [vmem:[#allocation177_spill] sm:$0xff] %v31949_v55  ;;  %v31951_v27 = vpop.f32.mrb[177].mxu1  ;;  %v35900_v55 = vld [vmem:[#allocation185_spill] sm:$0xff] }
 0x85c   : > { %35891 = vst [vmem:[#allocation178_spill] sm:$0xff] %v31951_v27  ;;  %v31953_v5 = vpop.f32.mrb[178].mxu1 }
 0x85d   : > { %35892 = vst [vmem:[#allocation347_spill] sm:$0xff] %v31953_v5  ;;  %v31955_v52 = vpop.f32.mrb[179].mxu1  ;;  %v35901_v5 = vld [vmem:[#allocation186_spill] sm:$0xff] }
 0x85e   : > { %35893 = vst [vmem:[#allocation348_spill] sm:$0xff] %v31955_v52 }
 0x85f   : > { %23593 = vmatmul.mubr.msk.bf16.gmra.mrb[116].mxu0 %vm2232_vm2, %v35894_v61 }
 0x860   : > { %23596 = vmatprep.mubr.msk.bf16.mxu0 %vm2232_vm2, %v35895_v56 }
 0x862   : > { %v31961_v43 = vpop.f32.mrb[180].mxu1 }
 0x863   : > { %35896 = vst [vmem:[#allocation181_spill] sm:$0xff] %v31961_v43  ;;  %v31963_v10 = vpop.f32.mrb[181].mxu1  ;;  %v35906_v43 = vld [vmem:[#allocation190_spill] sm:$0xff] }
 0x864   : > { %35897 = vst [vmem:[#allocation182_spill] sm:$0xff] %v31963_v10  ;;  %v31965_v51 = vpop.f32.mrb[182].mxu1 }
 0x865   : > { %35898 = vst [vmem:[#allocation349_spill] sm:$0xff] %v31965_v51  ;;  %v31967_v45 = vpop.f32.mrb[183].mxu1  ;;  %v35907_v51 = vld [vmem:[#allocation191_spill] sm:$0xff] }
 0x866   : > { %35899 = vst [vmem:[#allocation350_spill] sm:$0xff] %v31967_v45 }
 0x867   : > { %23597 = vmatmul.mubr.msk.bf16.gmra.mrb[120].mxu0 %vm2232_vm2, %v35900_v55 }
 0x868   : > { %23600 = vmatprep.mubr.msk.bf16.mxu0 %vm2232_vm2, %v35901_v5 }
 0x86a   : > { %v31973_v52 = vpop.f32.mrb[184].mxu1 }
 0x86b   : > { %35902 = vst [vmem:[#allocation185_spill] sm:$0xff] %v31973_v52  ;;  %v31975_v61 = vpop.f32.mrb[185].mxu1  ;;  %v35912_v52 = vld [vmem:[#allocation193_spill] sm:$0xff] }
 0x86c   : > { %35903 = vst [vmem:[#allocation186_spill] sm:$0xff] %v31975_v61  ;;  %v31977_v27 = vpop.f32.mrb[186].mxu1 }
 0x86d   : > { %35904 = vst [vmem:[#allocation351_spill] sm:$0xff] %v31977_v27  ;;  %v31979_v56 = vpop.f32.mrb[187].mxu1  ;;  %v35913_v27 = vld [vmem:[#allocation194_spill] sm:$0xff] }
 0x86e   : > { %35905 = vst [vmem:[#allocation352_spill] sm:$0xff] %v31979_v56 }
 0x86f   : > { %23601 = vmatmul.mubr.msk.bf16.gmra.mrb[124].mxu0 %vm2232_vm2, %v35906_v43 }
 0x870   : > { %23604 = vmatprep.mubr.msk.bf16.mxu0 %vm2232_vm2, %v35907_v51 }
 0x872   : > { %v31985_v45 = vpop.f32.mrb[188].mxu1 }
 0x873   : > { %35908 = vst [vmem:[#allocation190_spill] sm:$0xff] %v31985_v45  ;;  %v31987_v55 = vpop.f32.mrb[189].mxu1  ;;  %v35918_v45 = vld [vmem:[#allocation197_spill] sm:$0xff] }
 0x874   : > { %35909 = vst [vmem:[#allocation191_spill] sm:$0xff] %v31987_v55  ;;  %v31989_v10 = vpop.f32.mrb[190].mxu1 }
 0x875   : > { %35910 = vst [vmem:[#allocation353_spill] sm:$0xff] %v31989_v10  ;;  %v31991_v5 = vpop.f32.mrb[191].mxu1  ;;  %v35919_v10 = vld [vmem:[#allocation198_spill] sm:$0xff] }
 0x876   : > { %35911 = vst [vmem:[#allocation354_spill] sm:$0xff] %v31991_v5 }
 0x877   : > { %23605 = vmatmul.mubr.msk.bf16.gmra.mrb[128].mxu0 %vm2232_vm2, %v35912_v52 }
 0x878   : > { %23608 = vmatprep.mubr.msk.bf16.mxu0 %vm2232_vm2, %v35913_v27 }
 0x87a   : > { %v31997_v56 = vpop.f32.mrb[192].mxu1 }
 0x87b   : > { %35914 = vst [vmem:[#allocation193_spill] sm:$0xff] %v31997_v56  ;;  %v31999_v43 = vpop.f32.mrb[193].mxu1  ;;  %v35924_v56 = vld [vmem:[#allocation201_spill] sm:$0xff] }
 0x87c   : > { %35915 = vst [vmem:[#allocation194_spill] sm:$0xff] %v31999_v43  ;;  %v32001_v61 = vpop.f32.mrb[194].mxu1 }
 0x87d   : > { %35916 = vst [vmem:[#allocation355_spill] sm:$0xff] %v32001_v61  ;;  %v32003_v51 = vpop.f32.mrb[195].mxu1  ;;  %v35925_v61 = vld [vmem:[#allocation202_spill] sm:$0xff] }
 0x87e   : > { %35917 = vst [vmem:[#allocation356_spill] sm:$0xff] %v32003_v51 }
 0x87f   : > { %23609 = vmatmul.mubr.msk.bf16.gmra.mrb[132].mxu0 %vm2232_vm2, %v35918_v45 }
 0x880   : > { %23612 = vmatprep.mubr.msk.bf16.mxu0 %vm2232_vm2, %v35919_v10 }
 0x882   : > { %v32009_v5 = vpop.f32.mrb[196].mxu1 }
 0x883   : > { %35920 = vst [vmem:[#allocation197_spill] sm:$0xff] %v32009_v5  ;;  %v32011_v52 = vpop.f32.mrb[197].mxu1  ;;  %v35930_v5 = vld [vmem:[#allocation207_spill] sm:$0xff] }
 0x884   : > { %35921 = vst [vmem:[#allocation198_spill] sm:$0xff] %v32011_v52  ;;  %v32013_v55 = vpop.f32.mrb[198].mxu1 }
 0x885   : > { %35922 = vst [vmem:[#allocation357_spill] sm:$0xff] %v32013_v55  ;;  %v32015_v27 = vpop.f32.mrb[199].mxu1  ;;  %v35931_v55 = vld [vmem:[#allocation208_spill] sm:$0xff] }
 0x886   : > { %35923 = vst [vmem:[#allocation358_spill] sm:$0xff] %v32015_v27 }
 0x887   : > { %23613 = vmatmul.mubr.msk.bf16.gmra.mrb[136].mxu0 %vm2232_vm2, %v35924_v56 }
 0x888   : > { %23616 = vmatprep.mubr.msk.bf16.mxu0 %vm2232_vm2, %v35925_v61 }
 0x88a   : > { %v32021_v51 = vpop.f32.mrb[200].mxu1 }
 0x88b   : > { %35926 = vst [vmem:[#allocation201_spill] sm:$0xff] %v32021_v51  ;;  %v32023_v45 = vpop.f32.mrb[201].mxu1  ;;  %v35936_v51 = vld [vmem:[#allocation211_spill] sm:$0xff] }
 0x88c   : > { %35927 = vst [vmem:[#allocation202_spill] sm:$0xff] %v32023_v45  ;;  %v32025_v43 = vpop.f32.mrb[202].mxu1 }
 0x88d   : > { %35928 = vst [vmem:[#allocation359_spill] sm:$0xff] %v32025_v43  ;;  %v32027_v10 = vpop.f32.mrb[203].mxu1  ;;  %v35937_v43 = vld [vmem:[#allocation212_spill] sm:$0xff] }
 0x88e   : > { %35929 = vst [vmem:[#allocation360_spill] sm:$0xff] %v32027_v10 }
 0x88f   : > { %23617 = vmatmul.mubr.msk.bf16.gmra.mrb[140].mxu0 %vm2232_vm2, %v35930_v5 }
 0x890   : > { %23620 = vmatprep.mubr.msk.bf16.mxu0 %vm2232_vm2, %v35931_v55 }
 0x892   : > { %v32033_v27 = vpop.f32.mrb[204].mxu1 }
 0x893   : > { %35932 = vst [vmem:[#allocation207_spill] sm:$0xff] %v32033_v27  ;;  %v32035_v56 = vpop.f32.mrb[205].mxu1  ;;  %v35942_v27 = vld [vmem:[#allocation153_spill] sm:$0xff] }
 0x894   : > { %35933 = vst [vmem:[#allocation208_spill] sm:$0xff] %v32035_v56  ;;  %v32037_v52 = vpop.f32.mrb[206].mxu1 }
 0x895   : > { %35934 = vst [vmem:[#allocation361_spill] sm:$0xff] %v32037_v52  ;;  %v32039_v61 = vpop.f32.mrb[207].mxu1  ;;  %v35943_v52 = vld [vmem:[#allocation65_spill] sm:$0xff] }
 0x896   : > { %35935 = vst [vmem:[#allocation362_spill] sm:$0xff] %v32039_v61 }
 0x897   : > { %23621 = vmatmul.mubr.msk.bf16.gmra.mrb[144].mxu0 %vm2232_vm2, %v35936_v51 }
 0x898   : > { %23624 = vmatprep.mubr.msk.bf16.mxu0 %vm2232_vm2, %v35937_v43 }
 0x89a   : > { %v32045_v10 = vpop.f32.mrb[208].mxu1 }
 0x89b   : > { %35938 = vst [vmem:[#allocation211_spill] sm:$0xff] %v32045_v10  ;;  %v32047_v5 = vpop.f32.mrb[209].mxu1  ;;  %v35948_v10 = vld [vmem:[#allocation158_spill] sm:$0xff] }
 0x89c   : > { %35939 = vst [vmem:[#allocation212_spill] sm:$0xff] %v32047_v5  ;;  %v32049_v45 = vpop.f32.mrb[210].mxu1 }
 0x89d   : > { %35940 = vst [vmem:[#allocation363_spill] sm:$0xff] %v32049_v45  ;;  %v32051_v55 = vpop.f32.mrb[211].mxu1  ;;  %v35949_v45 = vld [vmem:[#allocation74_spill] sm:$0xff] }
 0x89e   : > { %35941 = vst [vmem:[#allocation364_spill] sm:$0xff] %v32051_v55 }
 0x89f   : > { %23625 = vmatmul.mubr.msk.bf16.gmra.mrb[148].mxu0 %vm2232_vm2, %v35942_v27 }
 0x8a0   : > { %23628 = vmatprep.mubr.msk.bf16.mxu0 %vm2232_vm2, %v35943_v52 }
 0x8a2   : > { %v32057_v61 = vpop.f32.mrb[212].mxu1 }
 0x8a3   : > { %35944 = vst [vmem:[#allocation153_spill] sm:$0xff] %v32057_v61  ;;  %v32059_v51 = vpop.f32.mrb[213].mxu1  ;;  %v35954_v61 = vld [vmem:[#allocation163_spill] sm:$0xff] }
 0x8a4   : > { %35945 = vst [vmem:[#allocation65_spill] sm:$0xff] %v32059_v51  ;;  %v32061_v56 = vpop.f32.mrb[214].mxu1 }
 0x8a5   : > { %35946 = vst [vmem:[#allocation365_spill] sm:$0xff] %v32061_v56  ;;  %v32063_v43 = vpop.f32.mrb[215].mxu1  ;;  %v35955_v56 = vld [vmem:[#allocation165_spill] sm:$0xff] }
 0x8a6   : > { %35947 = vst [vmem:[#allocation366_spill] sm:$0xff] %v32063_v43 }
 0x8a7   : > { %23629 = vmatmul.mubr.msk.bf16.gmra.mrb[152].mxu0 %vm2232_vm2, %v35948_v10 }
 0x8a8   : > { %23632 = vmatprep.mubr.msk.bf16.mxu0 %vm2232_vm2, %v35949_v45 }
 0x8aa   : > { %v32069_v55 = vpop.f32.mrb[216].mxu1 }
 0x8ab   : > { %35950 = vst [vmem:[#allocation158_spill] sm:$0xff] %v32069_v55  ;;  %v32071_v27 = vpop.f32.mrb[217].mxu1  ;;  %v35960_v55 = vld [vmem:[#allocation166_spill] sm:$0xff] }
 0x8ac   : > { %35951 = vst [vmem:[#allocation74_spill] sm:$0xff] %v32071_v27  ;;  %v32073_v5 = vpop.f32.mrb[218].mxu1 }
 0x8ad   : > { %35952 = vst [vmem:[#allocation367_spill] sm:$0xff] %v32073_v5  ;;  %v32075_v52 = vpop.f32.mrb[219].mxu1  ;;  %v35961_v5 = vld [vmem:[#allocation91_spill] sm:$0xff] }
 0x8ae   : > { %35953 = vst [vmem:[#allocation368_spill] sm:$0xff] %v32075_v52 }
 0x8af   : > { %23633 = vmatmul.mubr.msk.bf16.gmra.mrb[156].mxu0 %vm2232_vm2, %v35954_v61 }
 0x8b0   : > { %23636 = vmatprep.mubr.msk.bf16.mxu0 %vm2232_vm2, %v35955_v56 }
 0x8b2   : > { %v32081_v43 = vpop.f32.mrb[220].mxu1 }
 0x8b3   : > { %35956 = vst [vmem:[#allocation163_spill] sm:$0xff] %v32081_v43  ;;  %v32083_v10 = vpop.f32.mrb[221].mxu1  ;;  %v35966_v43 = vld [vmem:[#allocation168_spill] sm:$0xff] }
 0x8b4   : > { %35957 = vst [vmem:[#allocation165_spill] sm:$0xff] %v32083_v10  ;;  %v32085_v51 = vpop.f32.mrb[222].mxu1 }
 0x8b5   : > { %35958 = vst [vmem:[#allocation369_spill] sm:$0xff] %v32085_v51  ;;  %v32087_v45 = vpop.f32.mrb[223].mxu1  ;;  %v35967_v51 = vld [vmem:[#allocation225_spill] sm:$0xff] }
 0x8b6   : > { %35959 = vst [vmem:[#allocation370_spill] sm:$0xff] %v32087_v45 }
 0x8b7   : > { %23637 = vmatmul.mubr.msk.bf16.gmra.mrb[160].mxu0 %vm2232_vm2, %v35960_v55 }
 0x8b8   : > { %23640 = vmatprep.mubr.msk.bf16.mxu0 %vm2232_vm2, %v35961_v5 }
 0x8ba   : > { %v32093_v52 = vpop.f32.mrb[224].mxu1 }
 0x8bb   : > { %35962 = vst [vmem:[#allocation166_spill] sm:$0xff] %v32093_v52  ;;  %v32095_v61 = vpop.f32.mrb[225].mxu1  ;;  %v35972_v52 = vld [vmem:[#allocation102_spill] sm:$0xff] }
 0x8bc   : > { %35963 = vst [vmem:[#allocation91_spill] sm:$0xff] %v32095_v61  ;;  %v32097_v27 = vpop.f32.mrb[226].mxu1 }
 0x8bd   : > { %35964 = vst [vmem:[#allocation371_spill] sm:$0xff] %v32097_v27  ;;  %v32099_v56 = vpop.f32.mrb[227].mxu1  ;;  %v35973_v27 = vld [vmem:[#allocation226_spill] sm:$0xff] }
 0x8be   : > { %35965 = vst [vmem:[#allocation372_spill] sm:$0xff] %v32099_v56 }
 0x8bf   : > { %23641 = vmatmul.mubr.msk.bf16.gmra.mrb[164].mxu0 %vm2232_vm2, %v35966_v43 }
 0x8c0   : > { %23644 = vmatprep.mubr.msk.bf16.mxu0 %vm2232_vm2, %v35967_v51 }
 0x8c2   : > { %v32105_v45 = vpop.f32.mrb[228].mxu1 }
 0x8c3   : > { %35968 = vst [vmem:[#allocation168_spill] sm:$0xff] %v32105_v45  ;;  %v32107_v55 = vpop.f32.mrb[229].mxu1  ;;  %v35978_v45 = vld [vmem:[#allocation227_spill] sm:$0xff] }
 0x8c4   : > { %35969 = vst [vmem:[#allocation225_spill] sm:$0xff] %v32107_v55  ;;  %v32109_v10 = vpop.f32.mrb[230].mxu1 }
 0x8c5   : > { %35970 = vst [vmem:[#allocation373_spill] sm:$0xff] %v32109_v10  ;;  %v32111_v5 = vpop.f32.mrb[231].mxu1  ;;  %v35979_v10 = vld [vmem:[#allocation228_spill] sm:$0xff] }
 0x8c6   : > { %35971 = vst [vmem:[#allocation374_spill] sm:$0xff] %v32111_v5 }
 0x8c7   : > { %23645 = vmatmul.mubr.msk.bf16.gmra.mrb[168].mxu0 %vm2232_vm2, %v35972_v52 }
 0x8c8   : > { %23648 = vmatprep.mubr.msk.bf16.mxu0 %vm2232_vm2, %v35973_v27 }
 0x8ca   : > { %v32117_v56 = vpop.f32.mrb[232].mxu1 }
 0x8cb   : > { %35974 = vst [vmem:[#allocation102_spill] sm:$0xff] %v32117_v56  ;;  %v32119_v43 = vpop.f32.mrb[233].mxu1  ;;  %v35984_v56 = vld [vmem:[#allocation229_spill] sm:$0xff] }
 0x8cc   : > { %35975 = vst [vmem:[#allocation226_spill] sm:$0xff] %v32119_v43  ;;  %v32121_v61 = vpop.f32.mrb[234].mxu1 }
 0x8cd   : > { %35976 = vst [vmem:[#allocation375_spill] sm:$0xff] %v32121_v61  ;;  %v32123_v51 = vpop.f32.mrb[235].mxu1  ;;  %v35985_v61 = vld [vmem:[#allocation230_spill] sm:$0xff] }
 0x8ce   : > { %35977 = vst [vmem:[#allocation376_spill] sm:$0xff] %v32123_v51 }
 0x8cf   : > { %23649 = vmatmul.mubr.msk.bf16.gmra.mrb[172].mxu0 %vm2232_vm2, %v35978_v45 }
 0x8d0   : > { %23652 = vmatprep.mubr.msk.bf16.mxu0 %vm2232_vm2, %v35979_v10 }
 0x8d2   : > { %v32129_v5 = vpop.f32.mrb[236].mxu1 }
 0x8d3   : > { %35980 = vst [vmem:[#allocation227_spill] sm:$0xff] %v32129_v5  ;;  %v32131_v52 = vpop.f32.mrb[237].mxu1  ;;  %v35990_v5 = vld [vmem:[#allocation231_spill] sm:$0xff] }
 0x8d4   : > { %35981 = vst [vmem:[#allocation228_spill] sm:$0xff] %v32131_v52  ;;  %v32133_v55 = vpop.f32.mrb[238].mxu1 }
 0x8d5   : > { %35982 = vst [vmem:[#allocation377_spill] sm:$0xff] %v32133_v55  ;;  %v32135_v27 = vpop.f32.mrb[239].mxu1  ;;  %v35991_v55 = vld [vmem:[#allocation232_spill] sm:$0xff] }
 0x8d6   : > { %35983 = vst [vmem:[#allocation378_spill] sm:$0xff] %v32135_v27 }
 0x8d7   : > { %23653 = vmatmul.mubr.msk.bf16.gmra.mrb[176].mxu0 %vm2232_vm2, %v35984_v56 }
 0x8d8   : > { %23656 = vmatprep.mubr.msk.bf16.mxu0 %vm2232_vm2, %v35985_v61 }
 0x8da   : > { %v32141_v51 = vpop.f32.mrb[240].mxu1 }
 0x8db   : > { %35986 = vst [vmem:[#allocation229_spill] sm:$0xff] %v32141_v51  ;;  %v32143_v45 = vpop.f32.mrb[241].mxu1  ;;  %v35996_v51 = vld [vmem:[#allocation233_spill] sm:$0xff] }
 0x8dc   : > { %35987 = vst [vmem:[#allocation230_spill] sm:$0xff] %v32143_v45  ;;  %v32145_v43 = vpop.f32.mrb[242].mxu1 }
 0x8dd   : > { %35988 = vst [vmem:[#allocation379_spill] sm:$0xff] %v32145_v43  ;;  %v32147_v10 = vpop.f32.mrb[243].mxu1  ;;  %v35997_v43 = vld [vmem:[#allocation234_spill] sm:$0xff] }
 0x8de   : > { %35989 = vst [vmem:[#allocation380_spill] sm:$0xff] %v32147_v10 }
 0x8df   : > { %23657 = vmatmul.mubr.msk.bf16.gmra.mrb[180].mxu0 %vm2232_vm2, %v35990_v5 }
 0x8e0   : > { %23660 = vmatprep.mubr.msk.bf16.mxu0 %vm2232_vm2, %v35991_v55 }
 0x8e2   : > { %v32153_v27 = vpop.f32.mrb[244].mxu1 }
 0x8e3   : > { %35992 = vst [vmem:[#allocation231_spill] sm:$0xff] %v32153_v27  ;;  %v32155_v56 = vpop.f32.mrb[245].mxu1  ;;  %v36002_v27 = vld [vmem:[#allocation235_spill] sm:$0xff] }
 0x8e4   : > { %35993 = vst [vmem:[#allocation232_spill] sm:$0xff] %v32155_v56  ;;  %v32157_v52 = vpop.f32.mrb[246].mxu1 }
 0x8e5   : > { %35994 = vst [vmem:[#allocation381_spill] sm:$0xff] %v32157_v52  ;;  %v32159_v61 = vpop.f32.mrb[247].mxu1  ;;  %v36003_v52 = vld [vmem:[#allocation236_spill] sm:$0xff] }
 0x8e6   : > { %35995 = vst [vmem:[#allocation382_spill] sm:$0xff] %v32159_v61 }
 0x8e7   : > { %23661 = vmatmul.mubr.msk.bf16.gmra.mrb[184].mxu0 %vm2232_vm2, %v35996_v51 }
 0x8e8   : > { %23664 = vmatprep.mubr.msk.bf16.mxu0 %vm2232_vm2, %v35997_v43 }
 0x8ea   : > { %v32165_v10 = vpop.f32.mrb[248].mxu1 }
 0x8eb   : > { %35998 = vst [vmem:[#allocation233_spill] sm:$0xff] %v32165_v10  ;;  %v32167_v5 = vpop.f32.mrb[249].mxu1  ;;  %v36008_v10 = vld [vmem:[#allocation237_spill] sm:$0xff] }
 0x8ec   : > { %35999 = vst [vmem:[#allocation234_spill] sm:$0xff] %v32167_v5  ;;  %v32169_v45 = vpop.f32.mrb[250].mxu1 }
 0x8ed   : > { %36000 = vst [vmem:[#allocation383_spill] sm:$0xff] %v32169_v45  ;;  %v32171_v55 = vpop.f32.mrb[251].mxu1  ;;  %v36009_v45 = vld [vmem:[#allocation238_spill] sm:$0xff] }
 0x8ee   : > { %36001 = vst [vmem:[#allocation384_spill] sm:$0xff] %v32171_v55  ;;  %v36010_v55 = vld [vmem:[#allocation239_spill] sm:$0xff] }
 0x8ef   : > { %23665 = vmatmul.mubr.msk.bf16.gmra.mrb[188].mxu0 %vm2232_vm2, %v36002_v27  ;;  %v36011_v27 = vld [vmem:[#allocation240_spill] sm:$0xff] }
 0x8f0   : > { %23668 = vmatprep.mubr.msk.bf16.mxu0 %vm2232_vm2, %v36003_v52  ;;  %v36012_v52 = vld [vmem:[#allocation241_spill] sm:$0xff] }
 0x8f2   : > { %v32177_v61 = vpop.f32.mrb[252].mxu1 }
 0x8f3   : > { %36004 = vst [vmem:[#allocation235_spill] sm:$0xff] %v32177_v61  ;;  %v32179_v51 = vpop.f32.mrb[253].mxu1 }
 0x8f4   : > { %36005 = vst [vmem:[#allocation236_spill] sm:$0xff] %v32179_v51  ;;  %v32181_v56 = vpop.f32.mrb[254].mxu1  ;;  %v36013_v51 = vld [vmem:[#allocation242_spill] sm:$0xff] }
 0x8f5   : > { %36006 = vst [vmem:[#allocation385_spill] sm:$0xff] %v32181_v56  ;;  %v32183_v43 = vpop.f32.mrb[255].mxu1  ;;  %v36014_v56 = vld [vmem:[#allocation244_spill] sm:$0xff] }
 0x8f6   : > { %36007 = vst [vmem:[#allocation386_spill] sm:$0xff] %v32183_v43  ;;  %v36015_v43 = vld [vmem:[#allocation245_spill] sm:$0xff] }
 0x8f7   : > { %23669 = vmatmul.mubr.msk.bf16.gmra.mrb[192].mxu0 %vm2232_vm2, %v36008_v10  ;;  %v36016_v10 = vld [vmem:[#allocation209_spill] sm:$0xff] }
 0x8f8   : > { %23672 = vmatprep.mubr.msk.bf16.mxu0 %vm2232_vm2, %v36009_v45  ;;  %v36017_v45 = vld [vmem:[#allocation213_spill] sm:$0xff] }
 0x8ff   : > { %23673 = vmatmul.mubr.msk.bf16.gmra.mrb[196].mxu0 %vm2232_vm2, %v36010_v55  ;;  %v36018_v55 = vld [vmem:[#allocation214_spill] sm:$0xff] }
 0x900   : > { %23676 = vmatprep.mubr.msk.bf16.mxu0 %vm2232_vm2, %v36011_v27  ;;  %v36019_v27 = vld [vmem:[#allocation215_spill] sm:$0xff] }
 0x907   : > { %23677 = vmatmul.mubr.msk.bf16.gmra.mrb[200].mxu0 %vm2232_vm2, %v36012_v52  ;;  %v36020_v52 = vld [vmem:[#allocation217_spill] sm:$0xff] }
 0x908   : > { %23680 = vmatprep.mubr.msk.bf16.mxu0 %vm2232_vm2, %v36013_v51  ;;  %v36021_v51 = vld [vmem:[#allocation155_spill] sm:$0xff] }
 0x90f   : > { %23681 = vmatmul.mubr.msk.bf16.gmra.mrb[204].mxu0 %vm2232_vm2, %v36014_v56  ;;  %v36022_v56 = vld [vmem:[#allocation219_spill] sm:$0xff] }
 0x910   : > { %23684 = vmatprep.mubr.msk.bf16.mxu0 %vm2232_vm2, %v36015_v43  ;;  %v36023_v43 = vld [vmem:[#allocation11_spill] sm:$0xff] }
 0x917   : > { %23685 = vmatmul.mubr.msk.bf16.gmra.mrb[208].mxu0 %vm2232_vm2, %v36016_v10  ;;  %v36024_v10 = vld [vmem:[#allocation16_spill] sm:$0xff] }
 0x918   : > { %23688 = vmatprep.mubr.msk.bf16.mxu0 %vm2232_vm2, %v36017_v45  ;;  %v36025_v45 = vld [vmem:[#allocation17_spill] sm:$0xff] }
 0x91f   : > { %23689 = vmatmul.mubr.msk.bf16.gmra.mrb[212].mxu0 %vm2232_vm2, %v36018_v55  ;;  %v36026_v55 = vld [vmem:[#allocation248_spill] sm:$0xff] }
 0x920   : > { %23692 = vmatprep.mubr.msk.bf16.mxu0 %vm2232_vm2, %v36019_v27  ;;  %v36027_v27 = vld [vmem:[#allocation249_spill] sm:$0xff] }
 0x927   : > { %23693 = vmatmul.mubr.msk.bf16.gmra.mrb[216].mxu0 %vm2232_vm2, %v36020_v52  ;;  %v36028_v52 = vld [vmem:[#allocation254_spill] sm:$0xff] }
 0x928   : > { %23696 = vmatprep.mubr.msk.bf16.mxu0 %vm2232_vm2, %v36021_v51  ;;  %v36029_v51 = vld [vmem:[#allocation255_spill] sm:$0xff] }
 0x92f   : > { %23697 = vmatmul.mubr.msk.bf16.gmra.mrb[220].mxu0 %vm2232_vm2, %v36022_v56  ;;  %v11869_v56 = vpack.c.bf16 %v31461_v37, %v31450_v23  ;;  %v11873_v23 = vpack.c.bf16 %v31517_v50, %v31498_v20  ;;  %v11875_v37 = vpack.c.bf16 %v31545_v63, %v31526_v53  ;;  %v36031_v50 = vld [vmem:[#allocation21_spill] sm:$0xff]  ;;  %v36032_v20 = vld [vmem:[#allocation22_spill] sm:$0xff] }
 0x930   : > { %23700 = vmatprep.mubr.msk.bf16.mxu0 %vm2232_vm2, %v36023_v43  ;;  %v36030_v43 = vld [vmem:[#allocation258_spill] sm:$0xff]  ;;  %v36035_v53 = vld [vmem:[#allocation25_spill] sm:$0xff] }
 0x931   : > { %v36040_v63 = vld [vmem:[#allocation33_spill] sm:$0xff] }
 0x937   : > { %23701 = vmatmul.mubr.msk.bf16.gmra.mrb[224].mxu0 %vm2232_vm2, %v36024_v10  ;;  %v11870_v10 = vpack.c.bf16 %v31467_v30, %v31464_v11  ;;  %v11874_v11 = vpack.c.bf16 %v31523_v57, %v31520_v34  ;;  %v1964_v30 = vld [vmem:[%s27833_s19 + $0xa10] sm:$0xff]  ;;  %v36034_v34 = vld [vmem:[#allocation24_spill] sm:$0xff]  ;;  %v36036_v57 = vld [vmem:[#allocation26_spill] sm:$0xff] }
 0x938   : > { %23704 = vmatprep.mubr.msk.bf16.mxu0 %vm2232_vm2, %v36025_v45  ;;  %v11871_v45 = vpack.c.bf16 %v31489_v1, %v31470_v29  ;;  %v36038_v29 = vld [vmem:[#allocation259_spill] sm:$0xff] }
 0x939   : > { %v36039_v1 = vld [vmem:[#allocation31_spill] sm:$0xff] }
 0x93f   : > { %23705 = vmatmul.mubr.msk.bf16.gmra.mrb[228].mxu0 %vm2232_vm2, %v36026_v55  ;;  %v11872_v55 = vpack.c.bf16 %v31495_v3, %v31492_v26  ;;  %v11876_v3 = vpack.c.bf16 %v1964_v30, %v31548_v18  ;;  %v36033_v26 = vld [vmem:[#allocation23_spill] sm:$0xff]  ;;  %v36051_v30 = vld [vmem:[#allocation70_spill] sm:$0xff] }
 0x940   : > { %23708 = vmatprep.mubr.msk.bf16.mxu0 %vm2232_vm2, %v36027_v27  ;;  %v36037_v18 = vld [vmem:[#allocation27_spill] sm:$0xff]  ;;  %v36041_v27 = vld [vmem:[#allocation37_spill] sm:$0xff] }
 0x947   : > { %23709 = vmatmul.mubr.msk.bf16.gmra.mrb[232].mxu0 %vm2232_vm2, %v36028_v52  ;;  %v36042_v52 = vld [vmem:[#allocation39_spill] sm:$0xff] }
 0x948   : > { %23712 = vmatprep.mubr.msk.bf16.mxu0 %vm2232_vm2, %v36029_v51  ;;  %v36043_v51 = vld [vmem:[#allocation43_spill] sm:$0xff] }
 0x94f   : > { %23713 = vmatmul.mubr.msk.bf16.gmra.mrb[236].mxu0 %vm2232_vm2, %v36030_v43  ;;  %v36045_v43 = vld [vmem:[#allocation49_spill] sm:$0xff] }
 0x950   : > { %23716 = vmatprep.mubr.msk.bf16.mxu0 %vm2232_vm2, %v11869_v56  ;;  %v36044_v56 = vld [vmem:[#allocation45_spill] sm:$0xff] }
 0x957   : > { %23717 = vmatmul.mubr.msk.bf16.gmra.mrb[240].mxu0 %vm2232_vm2, %v11870_v10  ;;  %v36046_v10 = vld [vmem:[#allocation260_spill] sm:$0xff] }
 0x958   : > { %23720 = vmatprep.mubr.msk.bf16.mxu0 %vm2232_vm2, %v11871_v45  ;;  %v36047_v45 = vld [vmem:[#allocation54_spill] sm:$0xff] }
 0x95f   : > { %23721 = vmatmul.mubr.msk.bf16.gmra.mrb[244].mxu0 %vm2232_vm2, %v11872_v55  ;;  %v36048_v55 = vld [vmem:[#allocation56_spill] sm:$0xff] }
 0x960   : > { %23724 = vmatprep.mubr.msk.bf16.mxu0 %vm2232_vm2, %v11873_v23  ;;  %v26745_v23 = vld [vmem:[%s34346_s3 + $0x10] sm:$0xff]  }
 0x961   : > { %23990 = vmatprep.subr.bf16.mxu1 %v26745_v23 }
 0x962   : > { %23991 = vmatpush3.bf16.msra.mxu1 %v26745_v23  ;;  %v36069_v23 = vld [vmem:[#allocation263_spill] sm:$0xff] }
 0x967   : > { %23725 = vmatmul.mubr.msk.bf16.gmra.mrb[248].mxu0 %vm2232_vm2, %v11874_v11  ;;  %v36049_v11 = vld [vmem:[#allocation60_spill] sm:$0xff] }
 0x968   : > { %23728 = vmatprep.mubr.msk.bf16.mxu0 %vm2232_vm2, %v11875_v37  ;;  %v36050_v37 = vld [vmem:[#allocation62_spill] sm:$0xff] }
 0x96f   : > { %23729 = vmatmul.mubr.msk.bf16.gmra.mrb[252].mxu0 %vm2232_vm2, %v11876_v3  ;;  %v36052_v3 = vld [vmem:[#allocation72_spill] sm:$0xff] }
 0x970   : > { %23734 = vmatprep.mubr.msk.bf16.mxu0 %vm2232_vm2, %v36031_v50  ;;  %v36053_v50 = vld [vmem:[#allocation80_spill] sm:$0xff] }
 0x977   : > { %23735 = vmatmul.mubr.msk.bf16.vlgmr.msra.gmra.mrb[0].mxu0 %vm2232_vm2, %v36032_v20  ;;  %v36054_v20 = vld [vmem:[#allocation261_spill] sm:$0xff] }
 0x978   : > { %23738 = vmatprep.mubr.msk.bf16.mxu0 %vm2232_vm2, %v36033_v26  ;;  %v36055_v26 = vld [vmem:[#allocation87_spill] sm:$0xff] }
 0x97f   : > { %23739 = vmatmul.mubr.msk.bf16.gmra.mrb[4].mxu0 %vm2232_vm2, %v36034_v34  ;;  %v36056_v34 = vld [vmem:[#allocation89_spill] sm:$0xff] }
 0x980   : > { %23742 = vmatprep.mubr.msk.bf16.mxu0 %vm2232_vm2, %v36035_v53  ;;  %v36057_v53 = vld [vmem:[#allocation97_spill] sm:$0xff] }
 0x987   : > { %23743 = vmatmul.mubr.msk.bf16.gmra.mrb[8].mxu0 %vm2232_vm2, %v36036_v57  ;;  %v36058_v57 = vld [vmem:[#allocation99_spill] sm:$0xff] }
 0x988   : > { %23746 = vmatprep.mubr.msk.bf16.mxu0 %vm2232_vm2, %v36037_v18  ;;  %v36059_v18 = vld [vmem:[#allocation107_spill] sm:$0xff] }
 0x98f   : > { %23747 = vmatmul.mubr.msk.bf16.gmra.mrb[12].mxu0 %vm2232_vm2, %v36038_v29  ;;  %v36060_v29 = vld [vmem:[#allocation109_spill] sm:$0xff] }
 0x990   : > { %23750 = vmatprep.mubr.msk.bf16.mxu0 %vm2232_vm2, %v36039_v1  ;;  %v36061_v1 = vld [vmem:[#allocation114_spill] sm:$0xff] }
 0x997   : > { %23751 = vmatmul.mubr.msk.bf16.gmra.mrb[16].mxu0 %vm2232_vm2, %v36040_v63  ;;  %v36062_v63 = vld [vmem:[#allocation262_spill] sm:$0xff] }
 0x998   : > { %23754 = vmatprep.mubr.msk.bf16.mxu0 %vm2232_vm2, %v36041_v27  ;;  %v36063_v27 = vld [vmem:[#allocation119_spill] sm:$0xff] }
 0x99f   : > { %23755 = vmatmul.mubr.msk.bf16.gmra.mrb[20].mxu0 %vm2232_vm2, %v36042_v52  ;;  %v36064_v52 = vld [vmem:[#allocation34_spill] sm:$0xff] }
 0x9a0   : > { %23758 = vmatprep.mubr.msk.bf16.mxu0 %vm2232_vm2, %v36043_v51  ;;  %v36065_v51 = vld [vmem:[#allocation35_spill] sm:$0xff] }
 0x9a7   : > { %23759 = vmatmul.mubr.msk.bf16.gmra.mrb[24].mxu0 %vm2232_vm2, %v36044_v56  ;;  %v36066_v56 = vld [vmem:[#allocation40_spill] sm:$0xff] }
 0x9a8   : > { %23762 = vmatprep.mubr.msk.bf16.mxu0 %vm2232_vm2, %v36045_v43  ;;  %v26746_v43 = vld [vmem:[%s34346_s3 + $0x18] sm:$0x7f]  }
 0x9a9   : > { %26688 = vmatprep.subr.msk.bf16.mxu1 %vm15386_vm3, %v26746_v43 }
 0x9af   : > { %23763 = vmatmul.mubr.msk.bf16.gmra.mrb[28].mxu0 %vm2232_vm2, %v36046_v10  ;;  %v15388_v10 = vsel %vm15386_vm3, %v26746_v43, 0 }
 0x9b0   : > { %23766 = vmatprep.mubr.msk.bf16.mxu0 %vm2232_vm2, %v36047_v45  ;;  %v36067_v45 = vld [vmem:[#allocation46_spill] sm:$0xff]  ;;  %23993 = vmatpush3.bf16.msra.mxu1 %v15388_v10 }
 0x9b7   : > { %23767 = vmatmul.mubr.msk.bf16.gmra.mrb[32].mxu0 %vm2232_vm2, %v36048_v55  ;;  %v36068_v55 = vld [vmem:[#allocation47_spill] sm:$0xff] }
 0x9b8   : > { %23770 = vmatprep.mubr.msk.bf16.mxu0 %vm2232_vm2, %v36049_v11  ;;  %v36071_v11 = vld [vmem:[#allocation57_spill] sm:$0xff] }
 0x9bf   : > { %23771 = vmatmul.mubr.msk.bf16.gmra.mrb[36].mxu0 %vm2232_vm2, %v36050_v37  ;;  %v36072_v37 = vld [vmem:[#allocation58_spill] sm:$0xff] }
 0x9c0   : > { %23774 = vmatprep.mubr.msk.bf16.mxu0 %vm2232_vm2, %v36051_v30  ;;  %v36073_v30 = vld [vmem:[#allocation66_spill] sm:$0xff] }
 0x9c7   : > { %23775 = vmatmul.mubr.msk.bf16.gmra.mrb[40].mxu0 %vm2232_vm2, %v36052_v3  ;;  %v36074_v3 = vld [vmem:[#allocation68_spill] sm:$0xff] }
 0x9c8   : > { %23778 = vmatprep.mubr.msk.bf16.mxu0 %vm2232_vm2, %v36053_v50  ;;  %v36075_v50 = vld [vmem:[#allocation264_spill] sm:$0xff] }
 0x9cf   : > { %23779 = vmatmul.mubr.msk.bf16.gmra.mrb[44].mxu0 %vm2232_vm2, %v36054_v20  ;;  %v36076_v20 = vld [vmem:[#allocation85_spill] sm:$0xff] }
 0x9d0   : > { %23782 = vmatprep.mubr.msk.bf16.mxu0 %vm2232_vm2, %v36055_v26  ;;  %v36077_v26 = vld [vmem:[#allocation93_spill] sm:$0xff] }
 0x9d7   : > { %23783 = vmatmul.mubr.msk.bf16.gmra.mrb[48].mxu0 %vm2232_vm2, %v36056_v34  ;;  %v36078_v34 = vld [vmem:[#allocation95_spill] sm:$0xff] }
 0x9d8   : > { %23786 = vmatprep.mubr.msk.bf16.mxu0 %vm2232_vm2, %v36057_v53  ;;  %v36079_v53 = vld [vmem:[#allocation103_spill] sm:$0xff] }
 0x9df   : > { %23787 = vmatmul.mubr.msk.bf16.gmra.mrb[52].mxu0 %vm2232_vm2, %v36058_v57  ;;  %v36080_v57 = vld [vmem:[#allocation105_spill] sm:$0xff] }
 0x9e0   : > { %23790 = vmatprep.mubr.msk.bf16.mxu0 %vm2232_vm2, %v36059_v18 }
 0x9e7   : > { %23791 = vmatmul.mubr.msk.bf16.gmra.mrb[56].mxu0 %vm2232_vm2, %v36060_v29  ;;  %v36083_v29 = vld [vmem:[#allocation203_spill] sm:$0xff] }
 0x9e8   : > { %23794 = vmatprep.mubr.msk.bf16.mxu0 %vm2232_vm2, %v36061_v1 }
 0x9ef   : > { %23795 = vmatmul.mubr.msk.bf16.gmra.mrb[60].mxu0 %vm2232_vm2, %v36062_v63 }
 0x9f0   : > { %23798 = vmatprep.mubr.msk.bf16.mxu0 %vm2232_vm2, %v36063_v27  ;;  %v36084_v27 = vld [vmem:[#allocation75_spill] sm:$0xff] }
 0x9f7   : > { %23799 = vmatmul.mubr.msk.bf16.gmra.mrb[64].mxu0 %vm2232_vm2, %v36064_v52 }
 0x9f8   : > { %23802 = vmatprep.mubr.msk.bf16.mxu0 %vm2232_vm2, %v36065_v51 }
 0x9ff   : > { %23803 = vmatmul.mubr.msk.bf16.gmra.mrb[68].mxu0 %vm2232_vm2, %v36066_v56  ;;  %v36085_v56 = vld [vmem:[#allocation243_spill] sm:$0xff] }
 0xa00   : > { %23806 = vmatprep.mubr.msk.bf16.mxu0 %vm2232_vm2, %v35711_v12  ;;  %v36070_v12 = vld [vmem:[#allocation52_spill] sm:$0xff] }
 0xa07   : > { %23807 = vmatmul.mubr.msk.bf16.gmra.mrb[72].mxu0 %vm2232_vm2, %v36067_v45  ;;  %v36086_v45 = vld [vmem:[#allocation156_spill] sm:$0xff] }
 0xa08   : > { %23810 = vmatprep.mubr.msk.bf16.mxu0 %vm2232_vm2, %v36068_v55 }
 0xa0f   : > { %23811 = vmatmul.mubr.msk.bf16.gmra.mrb[76].mxu0 %vm2232_vm2, %v36069_v23  ;;  %v36087_v23 = vld [vmem:[#allocation167_spill] sm:$0xff] }
 0xa10   : > { %23814 = vmatprep.mubr.msk.bf16.mxu0 %vm2232_vm2, %v36070_v12  ;;  %v36088_v12 = vld [vmem:[#allocation117_spill] sm:$0xff] }
 0xa17   : > { %23815 = vmatmul.mubr.msk.bf16.gmra.mrb[80].mxu0 %vm2232_vm2, %v36071_v11 }
 0xa18   : > { %23818 = vmatprep.mubr.msk.bf16.mxu0 %vm2232_vm2, %v36072_v37  ;;  %v36089_v37 = vld [vmem:[#allocation221_spill] sm:$0xff] }
 0xa1f   : > { %23819 = vmatmul.mubr.msk.bf16.gmra.mrb[84].mxu0 %vm2232_vm2, %v36073_v30 }
 0xa20   : > { %23822 = vmatprep.mubr.msk.bf16.mxu0 %vm2232_vm2, %v36074_v3 }
 0xa27   : > { %23823 = vmatmul.mubr.msk.bf16.gmra.mrb[88].mxu0 %vm2232_vm2, %v35718_v4  ;;  %v36081_v4 = vld [vmem:[#allocation111_spill] sm:$0xff] }
 0xa28   : > { %23826 = vmatprep.mubr.msk.bf16.mxu0 %vm2232_vm2, %v35600_v59  ;;  %v36082_v59 = vld [vmem:[#allocation112_spill] sm:$0xff] }
 0xa2f   : > { %23827 = vmatmul.mubr.msk.bf16.gmra.mrb[92].mxu0 %vm2232_vm2, %v36075_v50  ;;  %v36090_v50 = vld [vmem:[#allocation12_spill] sm:$0xff] }
 0xa30   : > { %23830 = vmatprep.mubr.msk.bf16.mxu0 %vm2232_vm2, %v36076_v20 }
 0xa37   : > { %23831 = vmatmul.mubr.msk.bf16.gmra.mrb[96].mxu0 %vm2232_vm2, %v36077_v26 }
 0xa38   : > { %23834 = vmatprep.mubr.msk.bf16.mxu0 %vm2232_vm2, %v36078_v34  ;;  %v36091_v34 = vld [vmem:[#allocation13_spill] sm:$0xff] }
 0xa3f   : > { %23835 = vmatmul.mubr.msk.bf16.gmra.mrb[100].mxu0 %vm2232_vm2, %v36079_v53 }
 0xa40   : > { %23838 = vmatprep.mubr.msk.bf16.mxu0 %vm2232_vm2, %v36080_v57 }
 0xa47   : > { %23839 = vmatmul.mubr.msk.bf16.gmra.mrb[104].mxu0 %vm2232_vm2, %v36081_v4  ;;  %v36092_v4 = vld [vmem:[#allocation14_spill] sm:$0xff] }
 0xa48   : > { %23842 = vmatprep.mubr.msk.bf16.mxu0 %vm2232_vm2, %v36082_v59 }
 0xa4a   : > { %v23736_v18 = vpop.f32.mrb[0].mxu0 }
 0xa4b   : > { %v24352_v1 = vadd.f32 %v23736_v18, %v36083_v29  ;;  %v13258_v63 = vpop.f32.mrb[1].mxu0  ;;  %v36093_v18 = vld [vmem:[#allocation121_spill] sm:$0xff]  ;;  %v36094_v29 = vld [vmem:[#allocation122_spill] sm:$0xff] }
 0xa4c   : > { %v24353_v52 = vadd.f32 %v13258_v63, %v36084_v27  ;;  %v23737_v51 = vpop.f32.mrb[2].mxu0  ;;  %v36095_v27 = vld [vmem:[#allocation15_spill] sm:$0xff] }
 0xa4d   : > { %v24354_v43 = vadd.f32 %v23737_v51, %v36085_v56  ;;  %v13261_v10 = vpop.f32.mrb[3].mxu0 }
 0xa4e   : > { %v24355_v55 = vadd.f32 %v13261_v10, %v36086_v45  ;;  %v36096_v10 = vld [vmem:[#allocation18_spill] sm:$0xff] }
 0xa4f   : > { %23843 = vmatmul.mubr.msk.bf16.gmra.mrb[108].mxu0 %vm2232_vm2, %v36087_v23 }
 0xa50   : > { %23846 = vmatprep.mubr.msk.bf16.mxu0 %vm2232_vm2, %v36088_v12  ;;  %v36097_v12 = vld [vmem:[#allocation19_spill] sm:$0xff] }
 0xa52   : > { %v23740_v11 = vpop.f32.mrb[4].mxu0 }
 0xa53   : > { %v24356_v30 = vadd.f32 %v23740_v11, %v36089_v37  ;;  %v13274_v3 = vpop.f32.mrb[5].mxu0 }
 0xa54   : > { %v24357_v20 = vadd.f32 %v13274_v3, %v36090_v50  ;;  %v23741_v26 = vpop.f32.mrb[6].mxu0  ;;  %v36098_v3 = vld [vmem:[#allocation246_spill] sm:$0xff] }
 0xa55   : > { %v32384_v53 = vadd.f32 %v23741_v26, %v36091_v34  ;;  %v13277_v57 = vpop.f32.mrb[7].mxu0  ;;  %v36099_v26 = vld [vmem:[#allocation125_spill] sm:$0xff]  ;;  %v36100_v34 = vld [vmem:[#allocation126_spill] sm:$0xff] }
 0xa56   : > { %v32387_v59 = vadd.f32 %v13277_v57, %v36092_v4  ;;  %v36101_v4 = vld [vmem:[#allocation247_spill] sm:$0xff] }
 0xa57   : > { %23847 = vmatmul.mubr.msk.bf16.gmra.mrb[112].mxu0 %vm2232_vm2, %v36093_v18 }
 0xa58   : > { %23850 = vmatprep.mubr.msk.bf16.mxu0 %vm2232_vm2, %v36094_v29 }
 0xa5a   : > { %v23744_v63 = vpop.f32.mrb[8].mxu0 }
 0xa5b   : > { %v32394_v51 = vadd.f32 %v23744_v63, %v36095_v27  ;;  %v13290_v56 = vpop.f32.mrb[9].mxu0  ;;  %v36102_v63 = vld [vmem:[#allocation250_spill] sm:$0xff] }
 0xa5c   : > { %v32397_v45 = vadd.f32 %v13290_v56, %v36096_v10  ;;  %v23745_v23 = vpop.f32.mrb[10].mxu0  ;;  %v36103_v10 = vld [vmem:[#allocation251_spill] sm:$0xff] }
 0xa5d   : > { %v32400_v11 = vadd.f32 %v23745_v23, %v36097_v12  ;;  %v13293_v37 = vpop.f32.mrb[11].mxu0 }
 0xa5e   : > { %v32403_v50 = vadd.f32 %v13293_v37, %v36098_v3  ;;  %v36104_v37 = vld [vmem:[#allocation252_spill] sm:$0xff] }
 0xa5f   : > { %23851 = vmatmul.mubr.msk.bf16.gmra.mrb[116].mxu0 %vm2232_vm2, %v36099_v26  ;;  %v36105_v26 = vld [vmem:[#allocation129_spill] sm:$0xff] }
 0xa60   : > { %23854 = vmatprep.mubr.msk.bf16.mxu0 %vm2232_vm2, %v36100_v34  ;;  %v32426_v34 = vld [vmem:[%s34345_s2] ss:$0 sm:$0xff] }
 0xa62   : > { %v23748_v57 = vpop.f32.mrb[12].mxu0 }
 0xa63   : > { %v32410_v18 = vadd.f32 %v23748_v57, %v36101_v4  ;;  %v13306_v29 = vpop.f32.mrb[13].mxu0  ;;  %v36106_v57 = vld [vmem:[#allocation130_spill] sm:$0xff] }
 0xa64   : > { %v32413_v27 = vadd.f32 %v13306_v29, %v36102_v63  ;;  %v23749_v56 = vpop.f32.mrb[14].mxu0  ;;  %v14545_v29 = vadd.f32 %v24352_v1, %v32426_v34  ;;  %v36107_v63 = vld [vmem:[#allocation253_spill] sm:$0xff]  ;;  %v36110_v1 = vld [vmem:[#allocation20_spill] sm:$0xff] }
 0xa65   : > { %v32416_v23 = vadd.f32 %v23749_v56, %v36103_v10  ;;  %v13309_v12 = vpop.f32.mrb[15].mxu0 }
 0xa66   : > { %v32419_v3 = vadd.f32 %v13309_v12, %v36104_v37  ;;  %v14543_v12 = vadd.f32 %v24353_v52, %v32426_v34  ;;  %v36108_v37 = vld [vmem:[#allocation256_spill] sm:$0xff] }
 0xa67   : > { %23855 = vmatmul.mubr.msk.bf16.gmra.mrb[120].mxu0 %vm2232_vm2, %v36105_v26  ;;  %v14546_v26 = vadd.f32 %v24354_v43, %v32426_v34 }
 0xa68   : > { %23858 = vmatprep.mubr.msk.bf16.mxu0 %vm2232_vm2, %v36106_v57  ;;  %v14544_v57 = vadd.f32 %v24355_v55, %v32426_v34 }
 0xa6a   : > { %v23752_v4 = vpop.f32.mrb[16].mxu0 }
 0xa6b   : > { %v24368_v56 = vadd.f32 %v23752_v4, %v36107_v63  ;;  %v13322_v10 = vpop.f32.mrb[17].mxu0  ;;  %v14801_v4 = vmax.f32 %v14545_v29, 0.0 }
 0xa6c   : > { %v24369_v61 = vadd.f32 %v13322_v10, %v36108_v37  ;;  %v23753_v5 = vpop.f32.mrb[18].mxu0  ;;  %v14799_v10 = vmax.f32 %v14543_v12, 0.0  ;;  %v36112_v37 = vld [vmem:[#allocation133_spill] sm:$0xff] }
 0xa6d   : > { %v14561_v32 = vadd.f32 %v24368_v56, %v32426_v34  ;;  %v24370_v22 = vadd.f32 %v23753_v5, %v36109_v62  ;;  %v13325_v2 = vpop.f32.mrb[19].mxu0  ;;  %v14802_v62 = vmax.f32 %v14546_v26, 0.0  ;;  %v14550_v26 = vadd.f32 %v32384_v53, %v32426_v34 }
 0xa6e   : > { %v14559_v39 = vadd.f32 %v24369_v61, %v32426_v34  ;;  %v24371_v7 = vadd.f32 %v13325_v2, %v36110_v1  ;;  %v14800_v61 = vmax.f32 %v14544_v57, 0.0  ;;  %v36113_v1 = vld [vmem:[#allocation29_spill] sm:$0xff] }
 0xa6f   : > { %v14817_v63 = vmax.f32 %v14561_v32, 0.0  ;;  %v14562_v52 = vadd.f32 %v24370_v22, %v32426_v34  ;;  %23859 = vmatmul.mubr.msk.bf16.gmra.mrb[124].mxu0 %vm2232_vm2, %v36111_v19  ;;  %v14549_v32 = vadd.f32 %v24356_v30, %v32426_v34  ;;  %v14548_v30 = vadd.f32 %v32387_v59, %v32426_v34 }
 0xa70   : > { %v14815_v43 = vmax.f32 %v14559_v39, 0.0  ;;  %v14560_v56 = vadd.f32 %v24371_v7, %v32426_v34  ;;  %23862 = vmatprep.mubr.msk.bf16.mxu0 %vm2232_vm2, %v36112_v37  ;;  %v14547_v39 = vadd.f32 %v24357_v20, %v32426_v34  ;;  %v36114_v7 = vld [vmem:[#allocation51_spill] sm:$0xff]  ;;  %v36116_v20 = vld [vmem:[#allocation265_spill] sm:$0xff] }
 0xa71   : > { %v15057_v5 = vmax.f32 %v14801_v4, %v14817_v63  ;;  %v14818_v55 = vmax.f32 %v14562_v52, 0.0  ;;  %v36115_v63 = vld [vmem:[#allocation78_spill] sm:$0xff] }
 0xa72   : > { %v15055_v58 = vmax.f32 %v14799_v10, %v14815_v43  ;;  %v14816_v2 = vmax.f32 %v14560_v56, 0.0  ;;  %v23756_v29 = vpop.f32.mrb[20].mxu0  ;;  %v14803_v53 = vmax.f32 %v14547_v39, 0.0  ;;  %v14551_v39 = vadd.f32 %v32397_v45, %v32426_v34 }
 0xa73   : > { %v15058_v22 = vmax.f32 %v14802_v62, %v14818_v55  ;;  %v24372_v47 = vadd.f32 %v23756_v29, %v36113_v1  ;;  %v13338_v19 = vpop.f32.mrb[21].mxu0  ;;  %v14805_v62 = vmax.f32 %v14549_v32, 0.0  ;;  %v14552_v45 = vadd.f32 %v32403_v50, %v32426_v34  ;;  %v36124_v50 = vld [vmem:[#allocation141_spill] sm:$0xff] }
 0xa74   : > { %v15056_v12 = vmax.f32 %v14800_v61, %v14816_v2  ;;  %v24373_v44 = vadd.f32 %v13338_v19, %v36114_v7  ;;  %v23757_v40 = vpop.f32.mrb[22].mxu0  ;;  %v36117_v2 = vld [vmem:[#allocation136_spill] sm:$0xff] }
 0xa75   : > { %v15184_v4 = vmax.f32 %v15057_v5, %v15058_v22  ;;  %v14565_v57 = vadd.f32 %v24372_v47, %v32426_v34  ;;  %v24374_v52 = vadd.f32 %v23757_v40, %v36115_v63  ;;  %v13341_v10 = vpop.f32.mrb[23].mxu0  ;;  %v36118_v5 = vld [vmem:[#allocation137_spill] sm:$0xff]  ;;  %v14804_v22 = vmax.f32 %v14548_v30, 0.0 }
 0xa76   : > { %v15183_v43 = vmax.f32 %v15055_v58, %v15056_v12  ;;  %v14563_v56 = vadd.f32 %v24373_v44, %v32426_v34  ;;  %v24375_v37 = vadd.f32 %v13341_v10, %v36116_v20  ;;  %v14806_v58 = vmax.f32 %v14550_v26, 0.0 }
 0xa77   : > { %v14821_v55 = vmax.f32 %v14565_v57, 0.0  ;;  %v14566_v61 = vadd.f32 %v24374_v52, %v32426_v34  ;;  %23863 = vmatmul.mubr.msk.bf16.gmra.mrb[128].mxu0 %vm2232_vm2, %v36117_v2  ;;  %v14553_v12 = vadd.f32 %v32394_v51, %v32426_v34  ;;  %v36119_v57 = vld [vmem:[#allocation82_spill] sm:$0xff]  ;;  %v14554_v30 = vadd.f32 %v32400_v11, %v32426_v34  ;;  %v36123_v11 = vld [vmem:[#allocation140_spill] sm:$0xff] }
 0xa78   : > { %v14819_v47 = vmax.f32 %v14563_v56, 0.0  ;;  %v14564_v40 = vadd.f32 %v24375_v37, %v32426_v34  ;;  %23866 = vmatprep.mubr.msk.bf16.mxu0 %vm2232_vm2, %v36118_v5  ;;  %v32464_v59 = vpack.c.bf16 %v15184_v4, %v15183_v43  ;;  %v36120_v43 = vld [vmem:[#allocation266_spill] sm:$0xff]  ;;  %v14807_v5 = vmax.f32 %v14551_v39, 0.0 }
 0xa79   : > { %v15061_v44 = vmax.f32 %v14805_v62, %v14821_v55  ;;  %v14822_v29 = vmax.f32 %v14566_v61, 0.0  ;;  %v36121_v62 = vld [vmem:[#allocation267_spill] sm:$0xff] }
 0xa7a   : > { %v15059_v32 = vmax.f32 %v14803_v53, %v14819_v47  ;;  %v14820_v1 = vmax.f32 %v14564_v40, 0.0  ;;  %v23760_v19 = vpop.f32.mrb[24].mxu0  ;;  %v36122_v53 = vld [vmem:[#allocation268_spill] sm:$0xff]  ;;  %v14809_v40 = vmax.f32 %v14553_v12, 0.0  ;;  %v14808_v12 = vmax.f32 %v14552_v45, 0.0 }
 0xa7b   : > { %v15062_v7 = vmax.f32 %v14806_v58, %v14822_v29  ;;  %v24376_v63 = vadd.f32 %v23760_v19, %v36119_v57  ;;  %v13354_v52 = vpop.f32.mrb[25].mxu0  ;;  %v14558_v45 = vadd.f32 %v32416_v23, %v32426_v34  ;;  %v36129_v23 = vld [vmem:[#allocation145_spill] sm:$0xff] }
 0xa7c   : > { %v15060_v10 = vmax.f32 %v14804_v22, %v14820_v1  ;;  %v24377_v56 = vadd.f32 %v13354_v52, %v36120_v43  ;;  %v23761_v26 = vpop.f32.mrb[26].mxu0  ;;  %v14555_v43 = vadd.f32 %v32413_v27, %v32426_v34  ;;  %v14556_v27 = vadd.f32 %v32419_v3, %v32426_v34 }
 0xa7d   : > { %v15186_v20 = vmax.f32 %v15061_v44, %v15062_v7  ;;  %v14569_v37 = vadd.f32 %v24376_v63, %v32426_v34  ;;  %v24378_v51 = vadd.f32 %v23761_v26, %v36121_v62  ;;  %v13357_v55 = vpop.f32.mrb[27].mxu0 }
 0xa7e   : > { %v15185_v61 = vmax.f32 %v15059_v32, %v15060_v10  ;;  %v14567_v2 = vadd.f32 %v24377_v56, %v32426_v34  ;;  %v24379_v47 = vadd.f32 %v13357_v55, %v36122_v53  ;;  %v14810_v32 = vmax.f32 %v14554_v30, 0.0  ;;  %v36126_v30 = vld [vmem:[#allocation270_spill] sm:$0xff]  ;;  %v36127_v53 = vld [vmem:[#allocation271_spill] sm:$0xff] }
 0xa7f   : > { %v14825_v58 = vmax.f32 %v14569_v37, 0.0  ;;  %v14570_v29 = vadd.f32 %v24378_v51, %v32426_v34  ;;  %23867 = vmatmul.mubr.msk.bf16.gmra.mrb[132].mxu0 %vm2232_vm2, %v36123_v11  ;;  %v14557_v10 = vadd.f32 %v32410_v18, %v32426_v34 }
 0xa80   : > { %v32483_v44 = vpack.c.bf16 %v15186_v20, %v15185_v61  ;;  %v14823_v22 = vmax.f32 %v14567_v2, 0.0  ;;  %v14568_v1 = vadd.f32 %v24379_v47, %v32426_v34  ;;  %v15302_v19 = vpack.c.bf16 %v15185_v61, %v15184_v4  ;;  %23870 = vmatprep.mubr.msk.bf16.mxu0 %vm2232_vm2, %v36124_v50  ;;  %v36125_v4 = vld [vmem:[#allocation269_spill] sm:$0xff] }
 0xa81   : > { %v15065_v7 = vmax.f32 %v14809_v40, %v14825_v58  ;;  %v14826_v57 = vmax.f32 %v14570_v29, 0.0  ;;  %v36128_v58 = vld [vmem:[#allocation272_spill] sm:$0xff]  ;;  %v14813_v11 = vmax.f32 %v14557_v10, 0.0 }
 0xa82   : > { %v15063_v39 = vmax.f32 %v14807_v5, %v14823_v22  ;;  %v14824_v63 = vmax.f32 %v14568_v1, 0.0  ;;  %v23764_v52 = vpop.f32.mrb[28].mxu0  ;;  %23994 = vmatprep.mubr.msk.bf16.mxu1 %vm15331_vm4, %v15302_v19  ;;  %v14811_v22 = vmax.f32 %v14555_v43, 0.0 }
 0xa83   : > { %v15066_v56 = vmax.f32 %v14810_v32, %v14826_v57  ;;  %v24380_v26 = vadd.f32 %v23764_v52, %v36125_v4  ;;  %v13370_v37 = vpop.f32.mrb[29].mxu0  ;;  %v36130_v57 = vld [vmem:[#allocation146_spill] sm:$0xff]  ;;  %v14812_v52 = vmax.f32 %v14556_v27, 0.0 }
 0xa84   : > { %v15064_v62 = vmax.f32 %v14808_v12, %v14824_v63  ;;  %v24381_v51 = vadd.f32 %v13370_v37, %v36126_v30  ;;  %v23765_v55 = vpop.f32.mrb[30].mxu0  ;;  %v14814_v12 = vmax.f32 %v14558_v45, 0.0  ;;  %v36132_v30 = vld [vmem:[#allocation274_spill] sm:$0xff] }
 0xa85   : > { %v15188_v61 = vmax.f32 %v15065_v7, %v15066_v56  ;;  %v14573_v2 = vadd.f32 %v24380_v26, %v32426_v34  ;;  %v24382_v47 = vadd.f32 %v23765_v55, %v36127_v53  ;;  %v13373_v18 = vpop.f32.mrb[31].mxu0  ;;  %v36131_v26 = vld [vmem:[#allocation273_spill] sm:$0xff]  ;;  %v36133_v53 = vld [vmem:[#allocation275_spill] sm:$0xff] }
 0xa86   : > { %v15187_v40 = vmax.f32 %v15063_v39, %v15064_v62  ;;  %v14571_v5 = vadd.f32 %v24381_v51, %v32426_v34  ;;  %v24383_v29 = vadd.f32 %v13373_v18, %v36128_v58 }
 0xa87   : > { %v14829_v1 = vmax.f32 %v14573_v2, 0.0  ;;  %v14574_v19 = vadd.f32 %v24382_v47, %v32426_v34  ;;  %23871 = vmatmul.mubr.msk.bf16.gmra.mrb[136].mxu0 %vm2232_vm2, %v36129_v23 }
 0xa88   : > { %v15303_v50 = vpack.c.bf16 %v15187_v40, %v15186_v20  ;;  %v14827_v32 = vmax.f32 %v14571_v5, 0.0  ;;  %v14572_v7 = vadd.f32 %v24383_v29, %v32426_v34  ;;  %23874 = vmatprep.mubr.msk.bf16.mxu0 %vm2232_vm2, %v36130_v57  ;;  %v32509_v3 = vpack.c.bf16 %v15188_v61, %v15187_v40  ;;  %v36134_v40 = vld [vmem:[#allocation276_spill] sm:$0xff]  ;;  %v36136_v29 = vld [vmem:[#allocation149_spill] sm:$0xff]  ;;  %v36140_v57 = vld [vmem:[#allocation279_spill] sm:$0xff] }
 0xa89   : > { %v15069_v39 = vmax.f32 %v14813_v11, %v14829_v1  ;;  %v14830_v63 = vmax.f32 %v14574_v19, 0.0  ;;  %v36135_v5 = vld [vmem:[#allocation176_spill] sm:$0xff]  ;;  %v36138_v1 = vld [vmem:[#allocation277_spill] sm:$0xff] }
 0xa8a   : > { %v15067_v10 = vmax.f32 %v14811_v22, %v14827_v32  ;;  %v14828_v43 = vmax.f32 %v14572_v7, 0.0  ;;  %v23768_v56 = vpop.f32.mrb[32].mxu0  ;;  %23995 = vmatmul.mubr.msk.bf16.vlgmr.msra.gmra.mrb[0].mxu1 %vm15331_vm4, %v15303_v50  ;;  %v36139_v50 = vld [vmem:[#allocation278_spill] sm:$0xff] }
 0xa8b   : > { %v15070_v4 = vmax.f32 %v14814_v12, %v14830_v63  ;;  %v24384_v20 = vadd.f32 %v23768_v56, %v36131_v26  ;;  %v13386_v37 = vpop.f32.mrb[33].mxu0  ;;  %v36141_v63 = vld [vmem:[#allocation280_spill] sm:$0xff] }
 0xa8c   : > { %v15068_v62 = vmax.f32 %v14812_v52, %v14828_v43  ;;  %v24385_v51 = vadd.f32 %v13386_v37, %v36132_v30  ;;  %v23769_v55 = vpop.f32.mrb[34].mxu0  ;;  %v36144_v56 = vld [vmem:[#allocation116_spill] sm:$0xff]  ;;  %v36145_v37 = vld [vmem:[#allocation281_spill] sm:$0xff] }
 0xa8d   : > { %v15190_v2 = vmax.f32 %v15069_v39, %v15070_v4  ;;  %v24386_v47 = vadd.f32 %v23769_v55, %v36133_v53  ;;  %v13389_v45 = vpop.f32.mrb[35].mxu0  ;;  %v36146_v55 = vld [vmem:[#allocation282_spill] sm:$0xff] }
 0xa8e   : > { %v15189_v18 = vmax.f32 %v15067_v10, %v15068_v62  ;;  %v24387_v27 = vadd.f32 %v13389_v45, %v36134_v40  ;;  %v36143_v10 = vld [vmem:[#allocation154_spill] sm:$0xff]  ;;  %v36147_v45 = vld [vmem:[#allocation283_spill] sm:$0xff]  ;;  %v36148_v40 = vld [vmem:[#allocation157_spill] sm:$0xff] }
 0xa8f   : > { %23875 = vmatmul.mubr.msk.bf16.gmra.mrb[140].mxu0 %vm2232_vm2, %v36135_v5  ;;  %v36149_v5 = vld [vmem:[#allocation159_spill] sm:$0xff] }
 0xa90   : > { %v15304_v58 = vpack.c.bf16 %v15189_v18, %v15188_v61  ;;  %23878 = vmatprep.mubr.msk.bf16.mxu0 %vm2232_vm2, %v36136_v29  ;;  %v32520_v11 = vpack.c.bf16 %v15190_v2, %v15189_v18  ;;  %v36142_v61 = vld [vmem:[#allocation152_spill] sm:$0xff] }
 0xa91   : > { %v36150_v29 = vld [vmem:[#allocation284_spill] sm:$0xff] }
 0xa92   : > { %36137 = vst [vmem:[#allocation237_spill] sm:$0xff] %v32520_v11  ;;  %v23772_v22 = vpop.f32.mrb[36].mxu0  ;;  %23998 = vmatprep.mubr.msk.bf16.mxu1 %vm15331_vm4, %v15304_v58 }
 0xa93   : > { %v24388_v19 = vadd.f32 %v23772_v22, %v36138_v1  ;;  %v13402_v23 = vpop.f32.mrb[37].mxu0 }
 0xa94   : > { %v24389_v32 = vadd.f32 %v13402_v23, %v36139_v50  ;;  %v23773_v7 = vpop.f32.mrb[38].mxu0  ;;  %v36151_v23 = vld [vmem:[#allocation285_spill] sm:$0xff] }
 0xa95   : > { %v24390_v12 = vadd.f32 %v23773_v7, %v36140_v57  ;;  %v13405_v39 = vpop.f32.mrb[39].mxu0  ;;  %v36152_v57 = vld [vmem:[#allocation286_spill] sm:$0xff] }
 0xa96   : > { %v32527_v52 = vadd.f32 %v13405_v39, %v36141_v63 }
 0xa97   : > { %23879 = vmatmul.mubr.msk.bf16.gmra.mrb[144].mxu0 %vm2232_vm2, %v36142_v61  ;;  %v36153_v61 = vld [vmem:[#allocation287_spill] sm:$0xff] }
 0xa98   : > { %23882 = vmatprep.mubr.msk.bf16.mxu0 %vm2232_vm2, %v36143_v10 }
 0xa9a   : > { %v23776_v43 = vpop.f32.mrb[40].mxu0 }
 0xa9b   : > { %v32534_v4 = vadd.f32 %v23776_v43, %v36144_v56  ;;  %v13418_v26 = vpop.f32.mrb[41].mxu0  ;;  %v14577_v56 = vadd.f32 %v24384_v20, %v32426_v34  ;;  %v36157_v20 = vld [vmem:[#allocation291_spill] sm:$0xff] }
 0xa9c   : > { %v32537_v62 = vadd.f32 %v13418_v26, %v36145_v37  ;;  %v23777_v30 = vpop.f32.mrb[42].mxu0  ;;  %v36154_v26 = vld [vmem:[#allocation288_spill] sm:$0xff] }
 0xa9d   : > { %v32540_v2 = vadd.f32 %v23777_v30, %v36146_v55  ;;  %v13421_v53 = vpop.f32.mrb[43].mxu0  ;;  %v14575_v55 = vadd.f32 %v24385_v51, %v32426_v34 }
 0xa9e   : > { %v32543_v18 = vadd.f32 %v13421_v53, %v36147_v45  ;;  %v36155_v53 = vld [vmem:[#allocation289_spill] sm:$0xff] }
 0xa9f   : > { %23883 = vmatmul.mubr.msk.bf16.gmra.mrb[148].mxu0 %vm2232_vm2, %v36148_v40 }
 0xaa0   : > { %23886 = vmatprep.mubr.msk.bf16.mxu0 %vm2232_vm2, %v36149_v5  ;;  %v14578_v5 = vadd.f32 %v24386_v47, %v32426_v34 }
 0xaa2   : > { %v23780_v58 = vpop.f32.mrb[44].mxu0 }
 0xaa3   : > { %v32550_v22 = vadd.f32 %v23780_v58, %v36150_v29  ;;  %v13434_v1 = vpop.f32.mrb[45].mxu0  ;;  %v36156_v29 = vld [vmem:[#allocation290_spill] sm:$0xff] }
 0xaa4   : > { %v32553_v50 = vadd.f32 %v13434_v1, %v36151_v23  ;;  %v23781_v7 = vpop.f32.mrb[46].mxu0 }
 0xaa5   : > { %v32556_v39 = vadd.f32 %v23781_v7, %v36152_v57  ;;  %v13437_v63 = vpop.f32.mrb[47].mxu0  ;;  %v14833_v57 = vmax.f32 %v14577_v56, 0.0 }
 0xaa6   : > { %v32559_v10 = vadd.f32 %v13437_v63, %v36153_v61  ;;  %v36158_v61 = vld [vmem:[#allocation179_spill] sm:$0xff] }
 0xaa7   : > { %23887 = vmatmul.mubr.msk.bf16.gmra.mrb[152].mxu0 %vm2232_vm2, %v35739_v15 }
 0xaa8   : > { %23890 = vmatprep.mubr.msk.bf16.mxu0 %vm2232_vm2, %v35741_v13  ;;  %v14576_v13 = vadd.f32 %v24387_v27, %v32426_v34 }
 0xaaa   : > { %v23784_v43 = vpop.f32.mrb[48].mxu0 }
 0xaab   : > { %v24400_v37 = vadd.f32 %v23784_v43, %v36154_v26  ;;  %v13450_v30 = vpop.f32.mrb[49].mxu0  ;;  %v14831_v43 = vmax.f32 %v14575_v55, 0.0  ;;  %v14579_v55 = vadd.f32 %v24389_v32, %v32426_v34 }
 0xaac   : > { %v24401_v45 = vadd.f32 %v13450_v30, %v36155_v53  ;;  %v23785_v40 = vpop.f32.mrb[50].mxu0  ;;  %v14832_v53 = vmax.f32 %v14576_v13, 0.0 }
 0xaad   : > { %v14593_v58 = vadd.f32 %v24400_v37, %v32426_v34  ;;  %v24402_v15 = vadd.f32 %v23785_v40, %v36156_v29  ;;  %v13453_v1 = vpop.f32.mrb[51].mxu0  ;;  %v14834_v37 = vmax.f32 %v14578_v5, 0.0 }
 0xaae   : > { %v14591_v23 = vadd.f32 %v24401_v45, %v32426_v34  ;;  %v24403_v7 = vadd.f32 %v13453_v1, %v36157_v20 }
 0xaaf   : > { %v14849_v63 = vmax.f32 %v14593_v58, 0.0  ;;  %v14594_v51 = vadd.f32 %v24402_v15, %v32426_v34  ;;  %23891 = vmatmul.mubr.msk.bf16.gmra.mrb[156].mxu0 %vm2232_vm2, %v36158_v61  ;;  %v14581_v58 = vadd.f32 %v24388_v19, %v32426_v34  ;;  %v36159_v15 = vld [vmem:[#allocation292_spill] sm:$0xff]  ;;  %v14580_v19 = vadd.f32 %v32527_v52, %v32426_v34 }
 0xab0   : > { %v14847_v47 = vmax.f32 %v14591_v23, 0.0  ;;  %v14592_v26 = vadd.f32 %v24403_v7, %v32426_v34  ;;  %23894 = vmatprep.mubr.msk.bf16.mxu0 %vm2232_vm2, %v35475_v25  ;;  %v36160_v7 = vld [vmem:[#allocation293_spill] sm:$0xff]  ;;  %v14582_v25 = vadd.f32 %v24390_v12, %v32426_v34  ;;  %v14835_v12 = vmax.f32 %v14579_v55, 0.0 }
 0xab1   : > { %v15073_v27 = vmax.f32 %v14833_v57, %v14849_v63  ;;  %v14850_v30 = vmax.f32 %v14594_v51, 0.0  ;;  %v36161_v57 = vld [vmem:[#allocation294_spill] sm:$0xff] }
 0xab2   : > { %v15071_v45 = vmax.f32 %v14831_v43, %v14847_v47  ;;  %v14848_v40 = vmax.f32 %v14592_v26, 0.0  ;;  %v23788_v56 = vpop.f32.mrb[52].mxu0  ;;  %v36162_v26 = vld [vmem:[#allocation295_spill] sm:$0xff]  ;;  %v14838_v52 = vmax.f32 %v14582_v25, 0.0 }
 0xab3   : > { %v15074_v29 = vmax.f32 %v14834_v37, %v14850_v30  ;;  %v24404_v1 = vadd.f32 %v23788_v56, %v36159_v15  ;;  %v13466_v20 = vpop.f32.mrb[53].mxu0  ;;  %v14837_v37 = vmax.f32 %v14581_v58, 0.0 }
 0xab4   : > { %v15072_v23 = vmax.f32 %v14832_v53, %v14848_v40  ;;  %v24405_v61 = vadd.f32 %v13466_v20, %v36160_v7  ;;  %v23789_v11 = vpop.f32.mrb[54].mxu0  ;;  %v14585_v20 = vadd.f32 %v32534_v4, %v32426_v34 }
 0xab5   : > { %v15192_v5 = vmax.f32 %v15073_v27, %v15074_v29  ;;  %v14597_v13 = vadd.f32 %v24404_v1, %v32426_v34  ;;  %v24406_v63 = vadd.f32 %v23789_v11, %v36161_v57  ;;  %v13469_v51 = vpop.f32.mrb[55].mxu0  ;;  %v14836_v29 = vmax.f32 %v14580_v19, 0.0  ;;  %v36164_v57 = vld [vmem:[#allocation297_spill] sm:$0xff] }
 0xab6   : > { %v15191_v43 = vmax.f32 %v15071_v45, %v15072_v23  ;;  %v14595_v47 = vadd.f32 %v24405_v61, %v32426_v34  ;;  %v24407_v32 = vadd.f32 %v13469_v51, %v36162_v26  ;;  %v36163_v23 = vld [vmem:[#allocation296_spill] sm:$0xff] }
 0xab7   : > { %v14853_v30 = vmax.f32 %v14597_v13, 0.0  ;;  %v14598_v53 = vadd.f32 %v24406_v63, %v32426_v34  ;;  %23895 = vmatmul.mubr.msk.bf16.gmra.mrb[160].mxu0 %vm2232_vm2, %v35476_v21  ;;  %v14583_v21 = vadd.f32 %v32537_v62, %v32426_v34  ;;  %v14586_v63 = vadd.f32 %v32540_v2, %v32426_v34 }
 0xab8   : > { %v32595_v27 = vpack.c.bf16 %v15192_v5, %v15191_v43  ;;  %v14851_v11 = vmax.f32 %v14595_v47, 0.0  ;;  %v14596_v40 = vadd.f32 %v24407_v32, %v32426_v34  ;;  %23898 = vmatprep.mubr.msk.bf16.mxu0 %vm2232_vm2, %v35477_v24  ;;  %v36165_v43 = vld [vmem:[#allocation298_spill] sm:$0xff]  ;;  %v14584_v62 = vadd.f32 %v32543_v18, %v32426_v34 }
 0xab9   : > { %v15077_v45 = vmax.f32 %v14837_v37, %v14853_v30  ;;  %v14854_v56 = vmax.f32 %v14598_v53, 0.0  ;;  %v36166_v37 = vld [vmem:[#allocation299_spill] sm:$0xff]  ;;  %v14841_v53 = vmax.f32 %v14585_v20, 0.0 }
 0xaba   : > { %v15075_v58 = vmax.f32 %v14835_v12, %v14851_v11  ;;  %v14852_v15 = vmax.f32 %v14596_v40, 0.0  ;;  %v23792_v1 = vpop.f32.mrb[56].mxu0  ;;  %v14839_v12 = vmax.f32 %v14583_v21, 0.0 }
 0xabb   : > { %v15078_v55 = vmax.f32 %v14838_v52, %v14854_v56  ;;  %v24408_v7 = vadd.f32 %v23792_v1, %v36163_v23  ;;  %v13482_v61 = vpop.f32.mrb[57].mxu0  ;;  %v36167_v56 = vld [vmem:[#allocation170_spill] sm:$0xff]  ;;  %v14840_v1 = vmax.f32 %v14584_v62, 0.0 }
 0xabc   : > { %v15076_v13 = vmax.f32 %v14836_v29, %v14852_v15  ;;  %v24409_v24 = vadd.f32 %v13482_v61, %v36164_v57  ;;  %v23793_v25 = vpop.f32.mrb[58].mxu0  ;;  %v14842_v29 = vmax.f32 %v14586_v63, 0.0 }
 0xabd   : > { %v15194_v51 = vmax.f32 %v15077_v45, %v15078_v55  ;;  %v14601_v19 = vadd.f32 %v24408_v7, %v32426_v34  ;;  %v24410_v47 = vadd.f32 %v23793_v25, %v36165_v43  ;;  %v13485_v4 = vpop.f32.mrb[59].mxu0  ;;  %v36168_v7 = vld [vmem:[#allocation300_spill] sm:$0xff] }
 0xabe   : > { %v15193_v26 = vmax.f32 %v15075_v58, %v15076_v13  ;;  %v14599_v32 = vadd.f32 %v24409_v24, %v32426_v34  ;;  %v24411_v30 = vadd.f32 %v13485_v4, %v36166_v37  ;;  %v36169_v24 = vld [vmem:[#allocation301_spill] sm:$0xff]  ;;  %v36170_v4 = vld [vmem:[#allocation302_spill] sm:$0xff]  ;;  %v36171_v37 = vld [vmem:[#allocation303_spill] sm:$0xff] }
 0xabf   : > { %v14857_v11 = vmax.f32 %v14601_v19, 0.0  ;;  %v14602_v40 = vadd.f32 %v24410_v47, %v32426_v34  ;;  %23899 = vmatmul.mubr.msk.bf16.gmra.mrb[164].mxu0 %vm2232_vm2, %v35748_v48  ;;  %v14589_v48 = vadd.f32 %v32550_v22, %v32426_v34  ;;  %v14590_v19 = vadd.f32 %v32556_v39, %v32426_v34  ;;  %v36172_v39 = vld [vmem:[#allocation172_spill] sm:$0xff] }
 0xac0   : > { %v32617_v2 = vpack.c.bf16 %v15193_v26, %v15192_v5  ;;  %v14855_v52 = vmax.f32 %v14599_v32, 0.0  ;;  %v14600_v45 = vadd.f32 %v24411_v30, %v32426_v34  ;;  %23902 = vmatprep.mubr.msk.bf16.mxu0 %vm2232_vm2, %v36167_v56  ;;  %v32622_v18 = vpack.c.bf16 %v15194_v51, %v15193_v26 }
 0xac1   : > { %v15081_v58 = vmax.f32 %v14841_v53, %v14857_v11  ;;  %v14858_v15 = vmax.f32 %v14602_v40, 0.0  ;;  %v14587_v5 = vadd.f32 %v32553_v50, %v32426_v34  ;;  %v14588_v50 = vadd.f32 %v32559_v10, %v32426_v34 }
 0xac2   : > { %v15079_v20 = vmax.f32 %v14839_v12, %v14855_v52  ;;  %v14856_v21 = vmax.f32 %v14600_v45, 0.0  ;;  %v23796_v55 = vpop.f32.mrb[60].mxu0  ;;  %23999 = vmatmul.mubr.msk.bf16.gmra.mrb[4].mxu1 %vm15331_vm4, %v32617_v2  ;;  %v14845_v53 = vmax.f32 %v14589_v48, 0.0  ;;  %v14846_v10 = vmax.f32 %v14590_v19, 0.0 }
 0xac3   : > { %v15082_v23 = vmax.f32 %v14842_v29, %v14858_v15  ;;  %v24412_v61 = vadd.f32 %v23796_v55, %v36168_v7  ;;  %v13498_v13 = vpop.f32.mrb[61].mxu0  ;;  %v14843_v12 = vmax.f32 %v14587_v5, 0.0  ;;  %v36173_v5 = vld [vmem:[#allocation304_spill] sm:$0xff] }
 0xac4   : > { %v15080_v57 = vmax.f32 %v14840_v1, %v14856_v21  ;;  %v24413_v25 = vadd.f32 %v13498_v13, %v36169_v24  ;;  %v23797_v63 = vpop.f32.mrb[62].mxu0  ;;  %v14844_v1 = vmax.f32 %v14588_v50, 0.0 }
 0xac5   : > { %v15196_v43 = vmax.f32 %v15081_v58, %v15082_v23  ;;  %v14605_v47 = vadd.f32 %v24412_v61, %v32426_v34  ;;  %v24414_v62 = vadd.f32 %v23797_v63, %v36170_v4  ;;  %v13501_v22 = vpop.f32.mrb[63].mxu0 }
 0xac6   : > { %v15195_v26 = vmax.f32 %v15079_v20, %v15080_v57  ;;  %v14603_v32 = vadd.f32 %v24413_v25, %v32426_v34  ;;  %v24415_v30 = vadd.f32 %v13501_v22, %v36171_v37 }
 0xac7   : > { %v14861_v11 = vmax.f32 %v14605_v47, 0.0  ;;  %v14606_v40 = vadd.f32 %v24414_v62, %v32426_v34  ;;  %23903 = vmatmul.mubr.msk.bf16.gmra.mrb[168].mxu0 %vm2232_vm2, %v36172_v39  ;;  %v36176_v47 = vld [vmem:[#allocation307_spill] sm:$0xff]  ;;  %v36177_v62 = vld [vmem:[#allocation180_spill] sm:$0xff] }
 0xac8   : > { %v32643_v52 = vpack.c.bf16 %v15196_v43, %v15195_v26  ;;  %v14859_v45 = vmax.f32 %v14603_v32, 0.0  ;;  %v14604_v56 = vadd.f32 %v24415_v30, %v32426_v34  ;;  %v32646_v29 = vpack.c.bf16 %v15195_v26, %v15194_v51  ;;  %23906 = vmatprep.mubr.msk.bf16.mxu0 %vm2232_vm2, %v35482_v31  ;;  %v36174_v51 = vld [vmem:[#allocation305_spill] sm:$0xff]  ;;  %v36175_v31 = vld [vmem:[#allocation306_spill] sm:$0xff]  ;;  %v36179_v32 = vld [vmem:[#allocation308_spill] sm:$0xff] }
 0xac9   : > { %v15085_v58 = vmax.f32 %v14845_v53, %v14861_v11  ;;  %v14862_v15 = vmax.f32 %v14606_v40, 0.0  ;;  %v36180_v53 = vld [vmem:[#allocation309_spill] sm:$0xff]  ;;  %v36181_v40 = vld [vmem:[#allocation310_spill] sm:$0xff] }
 0xaca   : > { %v15083_v20 = vmax.f32 %v14843_v12, %v14859_v45  ;;  %v14860_v21 = vmax.f32 %v14604_v56, 0.0  ;;  %v23800_v55 = vpop.f32.mrb[64].mxu0  ;;  %24002 = vmatprep.mubr.msk.bf16.mxu1 %vm15331_vm4, %v32646_v29 }
 0xacb   : > { %v15086_v48 = vmax.f32 %v14846_v10, %v14862_v15  ;;  %v24416_v23 = vadd.f32 %v23800_v55, %v36173_v5  ;;  %v13514_v7 = vpop.f32.mrb[65].mxu0  ;;  %v36183_v10 = vld [vmem:[#allocation312_spill] sm:$0xff]  ;;  %v36185_v55 = vld [vmem:[#allocation314_spill] sm:$0xff] }
 0xacc   : > { %v15084_v61 = vmax.f32 %v14844_v1, %v14860_v21  ;;  %v24417_v13 = vadd.f32 %v13514_v7, %v36174_v51  ;;  %v23801_v57 = vpop.f32.mrb[66].mxu0  ;;  %v36184_v1 = vld [vmem:[#allocation313_spill] sm:$0xff]  ;;  %v36186_v7 = vld [vmem:[#allocation315_spill] sm:$0xff] }
 0xacd   : > { %v15198_v24 = vmax.f32 %v15085_v58, %v15086_v48  ;;  %v24418_v25 = vadd.f32 %v23801_v57, %v36175_v31  ;;  %v13517_v63 = vpop.f32.mrb[67].mxu0 }
 0xace   : > { %v15197_v19 = vmax.f32 %v15083_v20, %v15084_v61  ;;  %v24419_v4 = vadd.f32 %v13517_v63, %v36176_v47 }
 0xacf   : > { %23907 = vmatmul.mubr.msk.bf16.gmra.mrb[172].mxu0 %vm2232_vm2, %v36177_v62 }
 0xad0   : > { %v32658_v22 = vpack.c.bf16 %v15197_v19, %v15196_v43  ;;  %v32660_v50 = vpack.c.bf16 %v15198_v24, %v15197_v19  ;;  %23910 = vmatprep.mubr.msk.bf16.mxu0 %vm2232_vm2, %v35484_v28  ;;  %v36182_v43 = vld [vmem:[#allocation311_spill] sm:$0xff]  ;;  %v36188_v24 = vld [vmem:[#allocation317_spill] sm:$0xff]  ;;  %v36189_v19 = vld [vmem:[#allocation318_spill] sm:$0xff] }
 0xad2   : > { %36178 = vst [vmem:[#allocation238_spill] sm:$0xff] %v32658_v22  ;;  %v23804_v26 = vpop.f32.mrb[68].mxu0  ;;  %24003 = vmatmul.mubr.msk.bf16.gmra.mrb[8].mxu1 %vm15331_vm4, %v32658_v22 }
 0xad3   : > { %v24420_v37 = vadd.f32 %v23804_v26, %v36179_v32  ;;  %v13530_v30 = vpop.f32.mrb[69].mxu0  ;;  %v36190_v26 = vld [vmem:[#allocation319_spill] sm:$0xff] }
 0xad4   : > { %v24421_v12 = vadd.f32 %v13530_v30, %v36180_v53  ;;  %v23805_v11 = vpop.f32.mrb[70].mxu0  ;;  %v36191_v30 = vld [vmem:[#allocation320_spill] sm:$0xff] }
 0xad5   : > { %v24422_v39 = vadd.f32 %v23805_v11, %v36181_v40  ;;  %v13533_v45 = vpop.f32.mrb[71].mxu0  ;;  %v14607_v40 = vadd.f32 %v24417_v13, %v32426_v34 }
 0xad6   : > { %v32670_v56 = vadd.f32 %v13533_v45, %v36182_v43  ;;  %v36192_v45 = vld [vmem:[#allocation321_spill] sm:$0xff] }
 0xad7   : > { %23911 = vmatmul.mubr.msk.bf16.gmra.mrb[176].mxu0 %vm2232_vm2, %v35485_v54 }
 0xad8   : > { %23914 = vmatprep.mubr.msk.bf16.mxu0 %vm2232_vm2, %v35486_v38  ;;  %v36187_v38 = vld [vmem:[#allocation316_spill] sm:$0xff] }
 0xada   : > { %v23808_v28 = vpop.f32.mrb[72].mxu0 }
 0xadb   : > { %v32677_v58 = vadd.f32 %v23808_v28, %v36183_v10  ;;  %v13546_v15 = vpop.f32.mrb[73].mxu0  ;;  %v14610_v10 = vadd.f32 %v24418_v25, %v32426_v34 }
 0xadc   : > { %v32680_v20 = vadd.f32 %v13546_v15, %v36184_v1  ;;  %v23809_v21 = vpop.f32.mrb[74].mxu0  ;;  %v36193_v1 = vld [vmem:[#allocation322_spill] sm:$0xff] }
 0xadd   : > { %v32683_v48 = vadd.f32 %v23809_v21, %v36185_v55  ;;  %v13549_v5 = vpop.f32.mrb[75].mxu0 }
 0xade   : > { %v32686_v61 = vadd.f32 %v13549_v5, %v36186_v7 }
 0xadf   : > { %23915 = vmatmul.mubr.msk.bf16.gmra.mrb[180].mxu0 %vm2232_vm2, %v35487_v8 }
 0xae0   : > { %23918 = vmatprep.mubr.msk.bf16.mxu0 %vm2232_vm2, %v35488_v36  ;;  %v14609_v36 = vadd.f32 %v24416_v23, %v32426_v34  ;;  %v36194_v23 = vld [vmem:[#allocation323_spill] sm:$0xff] }
 0xae2   : > { %v23812_v54 = vpop.f32.mrb[76].mxu0  ;;  %v14865_v7 = vmax.f32 %v14609_v36, 0.0 }
 0xae3   : > { %v32693_v51 = vadd.f32 %v23812_v54, %v36187_v38  ;;  %v13562_v57 = vpop.f32.mrb[77].mxu0  ;;  %v36195_v38 = vld [vmem:[#allocation183_spill] sm:$0xff] }
 0xae4   : > { %v32696_v31 = vadd.f32 %v13562_v57, %v36188_v24  ;;  %v23813_v63 = vpop.f32.mrb[78].mxu0  ;;  %v14863_v57 = vmax.f32 %v14607_v40, 0.0  ;;  %v14611_v40 = vadd.f32 %v24421_v12, %v32426_v34 }
 0xae5   : > { %v32699_v47 = vadd.f32 %v23813_v63, %v36189_v19  ;;  %v13565_v62 = vpop.f32.mrb[79].mxu0  ;;  %v14866_v63 = vmax.f32 %v14610_v10, 0.0 }
 0xae6   : > { %v32702_v32 = vadd.f32 %v13565_v62, %v36190_v26 }
 0xae7   : > { %23919 = vmatmul.mubr.msk.bf16.gmra.mrb[184].mxu0 %vm2232_vm2, %v35489_v16 }
 0xae8   : > { %23922 = vmatprep.mubr.msk.bf16.mxu0 %vm2232_vm2, %v35491_v14  ;;  %v14608_v14 = vadd.f32 %v24419_v4, %v32426_v34 }
 0xaea   : > { %v23816_v8 = vpop.f32.mrb[80].mxu0  ;;  %v14864_v62 = vmax.f32 %v14608_v14, 0.0 }
 0xaeb   : > { %v24432_v53 = vadd.f32 %v23816_v8, %v36191_v30  ;;  %v13578_v11 = vpop.f32.mrb[81].mxu0  ;;  %v14613_v30 = vadd.f32 %v24420_v37, %v32426_v34  ;;  %v14612_v37 = vadd.f32 %v32670_v56, %v32426_v34 }
 0xaec   : > { %v24433_v43 = vadd.f32 %v13578_v11, %v36192_v45  ;;  %v23817_v28 = vpop.f32.mrb[82].mxu0 }
 0xaed   : > { %v14625_v15 = vadd.f32 %v24432_v53, %v32426_v34  ;;  %v24434_v16 = vadd.f32 %v23817_v28, %v36193_v1  ;;  %v13581_v21 = vpop.f32.mrb[83].mxu0  ;;  %v36196_v28 = vld [vmem:[#allocation144_spill] sm:$0xff] }
 0xaee   : > { %v14623_v55 = vadd.f32 %v24433_v43, %v32426_v34  ;;  %v24435_v5 = vadd.f32 %v13581_v21, %v36194_v23  ;;  %v36197_v21 = vld [vmem:[#allocation92_spill] sm:$0xff] }
 0xaef   : > { %v14881_v54 = vmax.f32 %v14625_v15, 0.0  ;;  %v14626_v13 = vadd.f32 %v24434_v16, %v32426_v34  ;;  %23923 = vmatmul.mubr.msk.bf16.gmra.mrb[188].mxu0 %vm2232_vm2, %v36195_v38 }
 0xaf0   : > { %v14879_v25 = vmax.f32 %v14623_v55, 0.0  ;;  %v14624_v24 = vadd.f32 %v24435_v5, %v32426_v34  ;;  %23926 = vmatprep.mubr.msk.bf16.mxu0 %vm2232_vm2, %v35493_v9  ;;  %v14614_v9 = vadd.f32 %v24422_v39, %v32426_v34  ;;  %v36198_v5 = vld [vmem:[#allocation76_spill] sm:$0xff]  ;;  %v14867_v39 = vmax.f32 %v14611_v40, 0.0 }
 0xaf1   : > { %v15089_v4 = vmax.f32 %v14865_v7, %v14881_v54  ;;  %v14882_v19 = vmax.f32 %v14626_v13, 0.0  ;;  %v14869_v7 = vmax.f32 %v14613_v30, 0.0  ;;  %v36199_v30 = vld [vmem:[#allocation9_spill] sm:$0xff] }
 0xaf2   : > { %v15087_v26 = vmax.f32 %v14863_v57, %v14879_v25  ;;  %v14880_v8 = vmax.f32 %v14624_v24, 0.0  ;;  %v23820_v36 = vpop.f32.mrb[84].mxu0  ;;  %v14870_v25 = vmax.f32 %v14614_v9, 0.0  ;;  %v36201_v9 = vld [vmem:[#allocation173_spill] sm:$0xff] }
 0xaf3   : > { %v15090_v53 = vmax.f32 %v14866_v63, %v14882_v19  ;;  %v24436_v11 = vadd.f32 %v23820_v36, %v31611_v35  ;;  %v13594_v45 = vpop.f32.mrb[85].mxu0 }
 0xaf4   : > { %v15088_v43 = vmax.f32 %v14864_v62, %v14880_v8  ;;  %v24437_v15 = vadd.f32 %v13594_v45, %v36196_v28  ;;  %v23821_v1 = vpop.f32.mrb[86].mxu0  ;;  %v14617_v8 = vadd.f32 %v32677_v58, %v32426_v34  ;;  %v36200_v45 = vld [vmem:[#allocation160_spill] sm:$0xff]  ;;  %v14618_v28 = vadd.f32 %v32683_v48, %v32426_v34 }
 0xaf5   : > { %v15200_v10 = vmax.f32 %v15089_v4, %v15090_v53  ;;  %v14629_v16 = vadd.f32 %v24436_v11, %v32426_v34  ;;  %v24438_v14 = vadd.f32 %v23821_v1, %v36197_v21  ;;  %v13597_v55 = vpop.f32.mrb[87].mxu0  ;;  %v14868_v4 = vmax.f32 %v14612_v37, 0.0 }
 0xaf6   : > { %v15199_v23 = vmax.f32 %v15087_v26, %v15088_v43  ;;  %v14627_v35 = vadd.f32 %v24437_v15, %v32426_v34  ;;  %v24439_v12 = vadd.f32 %v13597_v55, %v36198_v5  ;;  %v36202_v55 = vld [vmem:[#allocation28_spill] sm:$0xff] }
 0xaf7   : > { %v14885_v54 = vmax.f32 %v14629_v16, 0.0  ;;  %v14630_v13 = vadd.f32 %v24438_v14, %v32426_v34  ;;  %23927 = vmatmul.mubr.msk.bf16.gmra.mrb[192].mxu0 %vm2232_vm2, %v35494_v41  ;;  %v14615_v41 = vadd.f32 %v32680_v20, %v32426_v34  ;;  %v14616_v20 = vadd.f32 %v32686_v61, %v32426_v34 }
 0xaf8   : > { %v14883_v38 = vmax.f32 %v14627_v35, 0.0  ;;  %v14628_v57 = vadd.f32 %v24439_v12, %v32426_v34  ;;  %23930 = vmatprep.mubr.msk.bf16.mxu0 %vm2232_vm2, %v35495_v60  ;;  %v32741_v56 = vpack.c.bf16 %v15200_v10, %v15199_v23  ;;  %v14873_v23 = vmax.f32 %v14617_v8, 0.0  ;;  %v36205_v8 = vld [vmem:[#allocation162_spill] sm:$0xff] }
 0xaf9   : > { %v15093_v24 = vmax.f32 %v14869_v7, %v14885_v54  ;;  %v14886_v63 = vmax.f32 %v14630_v13, 0.0  ;;  %v14871_v35 = vmax.f32 %v14615_v41, 0.0  ;;  %v14874_v61 = vmax.f32 %v14618_v28, 0.0  ;;  %v36207_v28 = vld [vmem:[#allocation164_spill] sm:$0xff] }
 0xafa   : > { %v15091_v19 = vmax.f32 %v14867_v39, %v14883_v38  ;;  %v14884_v62 = vmax.f32 %v14628_v57, 0.0  ;;  %v23824_v26 = vpop.f32.mrb[88].mxu0  ;;  %v14872_v57 = vmax.f32 %v14616_v20, 0.0 }
 0xafb   : > { %v15094_v36 = vmax.f32 %v14870_v25, %v14886_v63  ;;  %v24440_v53 = vadd.f32 %v23824_v26, %v36199_v30  ;;  %v13610_v11 = vpop.f32.mrb[89].mxu0  ;;  %v14622_v30 = vadd.f32 %v32699_v47, %v32426_v34 }
 0xafc   : > { %v15092_v60 = vmax.f32 %v14868_v4, %v14884_v62  ;;  %v24441_v40 = vadd.f32 %v13610_v11, %v36200_v45  ;;  %v23825_v43 = vpop.f32.mrb[90].mxu0 }
 0xafd   : > { %v15202_v15 = vmax.f32 %v15093_v24, %v15094_v36  ;;  %v14633_v1 = vadd.f32 %v24440_v53, %v32426_v34  ;;  %v24442_v16 = vadd.f32 %v23825_v43, %v36201_v9  ;;  %v13613_v58 = vpop.f32.mrb[91].mxu0 }
 0xafe   : > { %v15201_v21 = vmax.f32 %v15091_v19, %v15092_v60  ;;  %v14631_v14 = vadd.f32 %v24441_v40, %v32426_v34  ;;  %v24443_v37 = vadd.f32 %v13613_v58, %v36202_v55  ;;  %v36204_v19 = vld [vmem:[#allocation30_spill] sm:$0xff]  ;;  %v36206_v60 = vld [vmem:[#allocation32_spill] sm:$0xff]  ;;  %v14878_v55 = vmax.f32 %v14622_v30, 0.0 }
 0xaff   : > { %v14889_v5 = vmax.f32 %v14633_v1, 0.0  ;;  %v14634_v12 = vadd.f32 %v24442_v16, %v32426_v34  ;;  %23931 = vmatmul.mubr.msk.bf16.gmra.mrb[196].mxu0 %vm2232_vm2, %v35496_v42  ;;  %v14621_v42 = vadd.f32 %v32693_v51, %v32426_v34 }
 0xb00   : > { %v32760_v48 = vpack.c.bf16 %v15202_v15, %v15201_v21  ;;  %v14887_v7 = vmax.f32 %v14631_v14, 0.0  ;;  %v14632_v54 = vadd.f32 %v24443_v37, %v32426_v34  ;;  %v32763_v13 = vpack.c.bf16 %v15201_v21, %v15200_v10  ;;  %23934 = vmatprep.mubr.msk.bf16.mxu0 %vm2232_vm2, %v35497_v33 }
 0xb01   : > { %v15097_v39 = vmax.f32 %v14873_v23, %v14889_v5  ;;  %v14890_v38 = vmax.f32 %v14634_v12, 0.0  ;;  %v14619_v10 = vadd.f32 %v32696_v31, %v32426_v34  ;;  %v14620_v31 = vadd.f32 %v32702_v32, %v32426_v34 }
 0xb02   : > { %36203 = vst [vmem:[#allocation239_spill] sm:$0xff] %v32763_v13  ;;  %v15095_v25 = vmax.f32 %v14871_v35, %v14887_v7  ;;  %v14888_v24 = vmax.f32 %v14632_v54, 0.0  ;;  %v23828_v63 = vpop.f32.mrb[92].mxu0  ;;  %24006 = vmatprep.mubr.msk.bf16.mxu1 %vm15331_vm4, %v32763_v13  ;;  %v14877_v9 = vmax.f32 %v14621_v42, 0.0  ;;  %v36209_v54 = vld [vmem:[#allocation36_spill] sm:$0xff] }
 0xb03   : > { %v15098_v4 = vmax.f32 %v14874_v61, %v14890_v38  ;;  %v24444_v62 = vadd.f32 %v23828_v63, %v36204_v19  ;;  %v13626_v33 = vpop.f32.mrb[93].mxu0  ;;  %v14875_v16 = vmax.f32 %v14619_v10, 0.0  ;;  %v14876_v35 = vmax.f32 %v14620_v31, 0.0  ;;  %v36210_v38 = vld [vmem:[#allocation161_spill] sm:$0xff]  ;;  %v36212_v10 = vld [vmem:[#allocation42_spill] sm:$0xff]  ;;  %v36213_v19 = vld [vmem:[#allocation184_spill] sm:$0xff] }
 0xb04   : > { %v15096_v26 = vmax.f32 %v14872_v57, %v14888_v24  ;;  %v24445_v41 = vadd.f32 %v13626_v33, %v36205_v8  ;;  %v23829_v36 = vpop.f32.mrb[94].mxu0 }
 0xb05   : > { %v15204_v53 = vmax.f32 %v15097_v39, %v15098_v4  ;;  %v14637_v11 = vadd.f32 %v24444_v62, %v32426_v34  ;;  %v24446_v45 = vadd.f32 %v23829_v36, %v36206_v60  ;;  %v13629_v51 = vpop.f32.mrb[95].mxu0  ;;  %v36215_v36 = vld [vmem:[#allocation44_spill] sm:$0xff] }
 0xb06   : > { %v15203_v40 = vmax.f32 %v15095_v25, %v15096_v26  ;;  %v14635_v43 = vadd.f32 %v24445_v41, %v32426_v34  ;;  %v24447_v1 = vadd.f32 %v13629_v51, %v36207_v28  ;;  %v36216_v60 = vld [vmem:[#allocation48_spill] sm:$0xff]  ;;  %v36217_v51 = vld [vmem:[#allocation101_spill] sm:$0xff] }
 0xb07   : > { %v14893_v58 = vmax.f32 %v14637_v11, 0.0  ;;  %v14638_v20 = vadd.f32 %v24446_v45, %v32426_v34  ;;  %23935 = vmatmul.mubr.msk.bf16.gmra.mrb[200].mxu0 %vm2232_vm2, %v35498_v0 }
 0xb08   : > { %v32786_v47 = vpack.c.bf16 %v15204_v53, %v15203_v40  ;;  %v32788_v21 = vpack.c.bf16 %v15203_v40, %v15202_v15  ;;  %v14891_v14 = vmax.f32 %v14635_v43, 0.0  ;;  %v14636_v32 = vadd.f32 %v24447_v1, %v32426_v34  ;;  %23938 = vmatprep.mubr.msk.bf16.mxu0 %vm2232_vm2, %v35500_v6  ;;  %v36211_v6 = vld [vmem:[#allocation38_spill] sm:$0xff] }
 0xb09   : > { %v15101_v37 = vmax.f32 %v14877_v9, %v14893_v58  ;;  %v14894_v23 = vmax.f32 %v14638_v20, 0.0  ;;  %v36219_v43 = vld [vmem:[#allocation50_spill] sm:$0xff]  ;;  %v36220_v9 = vld [vmem:[#allocation53_spill] sm:$0xff]  ;;  %v36221_v20 = vld [vmem:[#allocation55_spill] sm:$0xff] }
 0xb0a   : > { %36208 = vst [vmem:[#allocation240_spill] sm:$0xff] %v32788_v21  ;;  %v15099_v5 = vmax.f32 %v14875_v16, %v14891_v14  ;;  %v14892_v12 = vmax.f32 %v14636_v32, 0.0  ;;  %v23832_v7 = vpop.f32.mrb[96].mxu0  ;;  %24007 = vmatmul.mubr.msk.bf16.gmra.mrb[12].mxu1 %vm15331_vm4, %v32788_v21  ;;  %v36222_v32 = vld [vmem:[#allocation59_spill] sm:$0xff] }
 0xb0b   : > { %v15102_v0 = vmax.f32 %v14878_v55, %v14894_v23  ;;  %v24448_v15 = vadd.f32 %v23832_v7, %v36209_v54  ;;  %v13642_v61 = vpop.f32.mrb[97].mxu0  ;;  %v36224_v23 = vld [vmem:[#allocation222_spill] sm:$0xff] }
 0xb0c   : > { %v15100_v39 = vmax.f32 %v14876_v35, %v14892_v12  ;;  %v24449_v34 = vadd.f32 %v13642_v61, %v36210_v38  ;;  %v23833_v57 = vpop.f32.mrb[98].mxu0 }
 0xb0d   : > { %v15206_v25 = vmax.f32 %v15101_v37, %v15102_v0  ;;  %v24450_v24 = vadd.f32 %v23833_v57, %v36211_v6  ;;  %v13645_v63 = vpop.f32.mrb[99].mxu0  ;;  %v36223_v37 = vld [vmem:[#allocation220_spill] sm:$0xff]  ;;  %v36226_v0 = vld [vmem:[#allocation69_spill] sm:$0xff] }
 0xb0e   : > { %v15205_v42 = vmax.f32 %v15099_v5, %v15100_v39  ;;  %v24451_v4 = vadd.f32 %v13645_v63, %v36212_v10  ;;  %v36225_v5 = vld [vmem:[#allocation61_spill] sm:$0xff]  ;;  %v36227_v39 = vld [vmem:[#allocation71_spill] sm:$0xff] }
 0xb0f   : > { %23939 = vmatmul.mubr.msk.bf16.gmra.mrb[204].mxu0 %vm2232_vm2, %v36213_v19  ;;  %v36229_v63 = vld [vmem:[#allocation223_spill] sm:$0xff]  ;;  %v32861_v19 = vld [vmem:[%s34345_s2] ss:$0 sm:$0xff] }
 0xb10   : > { %v32801_v62 = vpack.c.bf16 %v15205_v42, %v15204_v53  ;;  %23942 = vmatprep.mubr.msk.bf16.mxu0 %vm2232_vm2, %v35701_v46  ;;  %v32805_v33 = vpack.c.bf16 %v15206_v25, %v15205_v42  ;;  %v26747_v46 = vld [vmem:[%s34346_s3] sm:$0xff]   ;;  %v36228_v25 = vld [vmem:[#allocation79_spill] sm:$0xff]  ;;  %v36230_v42 = vld [vmem:[#allocation224_spill] sm:$0xff] }
 0xb11   : > { %24030 = vmatprep.subr.bf16.mxu1 %v26747_v46 }
 0xb12   : > { %36214 = vst [vmem:[#allocation241_spill] sm:$0xff] %v32801_v62  ;;  %v23836_v26 = vpop.f32.mrb[100].mxu0  ;;  %24010 = vmatprep.mubr.msk.bf16.mxu1 %vm15331_vm4, %v32801_v62  ;;  %24031 = vmatpush3.bf16.msra.mxu1 %v26747_v46  ;;  %v36321_v62 = vld [vmem:[#allocation181_spill] sm:$0xff] }
 0xb13   : > { %v24452_v8 = vadd.f32 %v23836_v26, %v31675_v49  ;;  %v13658_v41 = vpop.f32.mrb[101].mxu0  ;;  %v36218_v49 = vld [vmem:[#allocation218_spill] sm:$0xff]  ;;  %v14641_v26 = vadd.f32 %v32861_v19, %v24448_v15  ;;  %v36234_v15 = vld [vmem:[#allocation96_spill] sm:$0xff] }
 0xb14   : > { %v32811_v30 = vadd.f32 %v13658_v41, %v36215_v36  ;;  %v23837_v11 = vpop.f32.mrb[102].mxu0  ;;  %v36231_v41 = vld [vmem:[#allocation81_spill] sm:$0xff] }
 0xb15   : > { %v32814_v45 = vadd.f32 %v23837_v11, %v36216_v60  ;;  %v13661_v53 = vpop.f32.mrb[103].mxu0  ;;  %v14639_v60 = vadd.f32 %v32861_v19, %v24449_v34 }
 0xb16   : > { %v32817_v31 = vadd.f32 %v13661_v53, %v36217_v51  ;;  %v36232_v53 = vld [vmem:[#allocation86_spill] sm:$0xff] }
 0xb17   : > { %23943 = vmatmul.mubr.msk.bf16.gmra.mrb[208].mxu0 %vm2232_vm2, %v35702_v17 }
 0xb18   : > { %23946 = vmatprep.mubr.msk.bf16.mxu0 %vm2232_vm2, %v36218_v49  ;;  %v14642_v49 = vadd.f32 %v32861_v19, %v24450_v24 }
 0xb1a   : > { %v23840_v40 = vpop.f32.mrb[104].mxu0 }
 0xb1b   : > { %v32827_v28 = vadd.f32 %v23840_v40, %v36219_v43  ;;  %v13674_v1 = vpop.f32.mrb[105].mxu0  ;;  %v36233_v43 = vld [vmem:[#allocation88_spill] sm:$0xff] }
 0xb1c   : > { %v32830_v16 = vadd.f32 %v13674_v1, %v36220_v9  ;;  %v23841_v58 = vpop.f32.mrb[106].mxu0 }
 0xb1d   : > { %v32833_v17 = vadd.f32 %v23841_v58, %v36221_v20  ;;  %v13677_v14 = vpop.f32.mrb[107].mxu0  ;;  %v14640_v58 = vadd.f32 %v32861_v19, %v24451_v4 }
 0xb1e   : > { %v32836_v55 = vadd.f32 %v13677_v14, %v36222_v32  ;;  %v14897_v32 = vmax.f32 %v14641_v26, 0.0  ;;  %v36237_v26 = vld [vmem:[#allocation98_spill] sm:$0xff] }
 0xb1f   : > { %23947 = vmatmul.mubr.msk.bf16.gmra.mrb[212].mxu0 %vm2232_vm2, %v36223_v37 }
 0xb20   : > { %23950 = vmatprep.mubr.msk.bf16.mxu0 %vm2232_vm2, %v36224_v23  ;;  %v36235_v23 = vld [vmem:[#allocation188_spill] sm:$0xff] }
 0xb22   : > { %v23844_v35 = vpop.f32.mrb[108].mxu0 }
 0xb23   : > { %v32843_v12 = vadd.f32 %v23844_v35, %v36225_v5  ;;  %v13690_v7 = vpop.f32.mrb[109].mxu0  ;;  %v14895_v35 = vmax.f32 %v14639_v60, 0.0 }
 0xb24   : > { %v32846_v54 = vadd.f32 %v13690_v7, %v36226_v0  ;;  %v23845_v61 = vpop.f32.mrb[110].mxu0  ;;  %v36236_v7 = vld [vmem:[#allocation189_spill] sm:$0xff]  ;;  %v14898_v0 = vmax.f32 %v14642_v49, 0.0  ;;  %v14646_v49 = vadd.f32 %v32861_v19, %v32814_v45 }
 0xb25   : > { %v32849_v38 = vadd.f32 %v23845_v61, %v36227_v39  ;;  %v13693_v57 = vpop.f32.mrb[111].mxu0  ;;  %v14896_v39 = vmax.f32 %v14640_v58, 0.0  ;;  %v14644_v58 = vadd.f32 %v32861_v19, %v32817_v31 }
 0xb26   : > { %v32852_v6 = vadd.f32 %v13693_v57, %v36228_v25  ;;  %v14902_v31 = vmax.f32 %v14646_v49, 0.0 }
 0xb27   : > { %23951 = vmatmul.mubr.msk.bf16.gmra.mrb[216].mxu0 %vm2232_vm2, %v36229_v63 }
 0xb28   : > { %23954 = vmatprep.mubr.msk.bf16.mxu0 %vm2232_vm2, %v36230_v42  ;;  %v14645_v42 = vadd.f32 %v32861_v19, %v24452_v8 }
 0xb2a   : > { %v23848_v10 = vpop.f32.mrb[112].mxu0 }
 0xb2b   : > { %v24464_v36 = vadd.f32 %v23848_v10, %v36231_v41  ;;  %v13706_v11 = vpop.f32.mrb[113].mxu0 }
 0xb2c   : > { %v24465_v51 = vadd.f32 %v13706_v11, %v36232_v53  ;;  %v23849_v46 = vpop.f32.mrb[114].mxu0  ;;  %v14643_v11 = vadd.f32 %v32861_v19, %v32811_v30  ;;  %v36238_v53 = vld [vmem:[#allocation106_spill] sm:$0xff]  ;;  %v36240_v30 = vld [vmem:[#allocation113_spill] sm:$0xff] }
 0xb2d   : > { %v14657_v40 = vadd.f32 %v32861_v19, %v24464_v36  ;;  %v24466_v1 = vadd.f32 %v23849_v46, %v36233_v43  ;;  %v13709_v9 = vpop.f32.mrb[115].mxu0 }
 0xb2e   : > { %v14655_v20 = vadd.f32 %v32861_v19, %v24465_v51  ;;  %v24467_v14 = vadd.f32 %v13709_v9, %v36234_v15  ;;  %v14899_v45 = vmax.f32 %v14643_v11, 0.0 }
 0xb2f   : > { %v14913_v37 = vmax.f32 %v14657_v40, 0.0  ;;  %v14658_v34 = vadd.f32 %v32861_v19, %v24466_v1  ;;  %23955 = vmatmul.mubr.msk.bf16.gmra.mrb[220].mxu0 %vm2232_vm2, %v36235_v23  ;;  %v36239_v1 = vld [vmem:[#allocation108_spill] sm:$0xff] }
 0xb30   : > { %v14911_v24 = vmax.f32 %v14655_v20, 0.0  ;;  %v14656_v5 = vadd.f32 %v32861_v19, %v24467_v14  ;;  %23958 = vmatprep.mubr.msk.bf16.mxu0 %vm2232_vm2, %v36236_v7  ;;  %v36241_v23 = vld [vmem:[#allocation192_spill] sm:$0xff]  ;;  %v36242_v7 = vld [vmem:[#allocation195_spill] sm:$0xff] }
 0xb31   : > { %v15105_v4 = vmax.f32 %v14897_v32, %v14913_v37  ;;  %v14914_v61 = vmax.f32 %v14658_v34, 0.0  ;;  %v14901_v32 = vmax.f32 %v14645_v42, 0.0  ;;  %v14647_v42 = vadd.f32 %v32861_v19, %v32830_v16 }
 0xb32   : > { %v15103_v57 = vmax.f32 %v14895_v35, %v14911_v24  ;;  %v14912_v25 = vmax.f32 %v14656_v5, 0.0  ;;  %v23852_v63 = vpop.f32.mrb[116].mxu0  ;;  %v14648_v16 = vadd.f32 %v32861_v19, %v32836_v55 }
 0xb33   : > { %v15106_v10 = vmax.f32 %v14898_v0, %v14914_v61  ;;  %v24468_v41 = vadd.f32 %v23852_v63, %v36237_v26  ;;  %v13722_v36 = vpop.f32.mrb[117].mxu0  ;;  %v14900_v61 = vmax.f32 %v14644_v58, 0.0  ;;  %v14649_v63 = vadd.f32 %v32861_v19, %v32827_v28  ;;  %v36243_v26 = vld [vmem:[#allocation115_spill] sm:$0xff] }
 0xb34   : > { %v15104_v60 = vmax.f32 %v14896_v39, %v14912_v25  ;;  %v24469_v51 = vadd.f32 %v13722_v36, %v36238_v53  ;;  %v23853_v46 = vpop.f32.mrb[118].mxu0 }
 0xb35   : > { %v15208_v40 = vmax.f32 %v15105_v4, %v15106_v10  ;;  %v14661_v43 = vadd.f32 %v32861_v19, %v24468_v41  ;;  %v24470_v9 = vadd.f32 %v23853_v46, %v36239_v1  ;;  %v13725_v8 = vpop.f32.mrb[119].mxu0  ;;  %v14650_v46 = vadd.f32 %v32861_v19, %v32833_v17  ;;  %v36245_v1 = vld [vmem:[#allocation120_spill] sm:$0xff] }
 0xb36   : > { %v15207_v20 = vmax.f32 %v15103_v57, %v15104_v60  ;;  %v14659_v15 = vadd.f32 %v32861_v19, %v24469_v51  ;;  %v24471_v14 = vadd.f32 %v13725_v8, %v36240_v30  ;;  %v36244_v60 = vld [vmem:[#allocation118_spill] sm:$0xff]  ;;  %v14905_v30 = vmax.f32 %v14649_v63, 0.0  ;;  %v36247_v17 = vld [vmem:[#allocation196_spill] sm:$0xff] }
 0xb37   : > { %v14917_v37 = vmax.f32 %v14661_v43, 0.0  ;;  %v14662_v34 = vadd.f32 %v32861_v19, %v24470_v9  ;;  %23959 = vmatmul.mubr.msk.bf16.gmra.mrb[224].mxu0 %vm2232_vm2, %v36241_v23  ;;  %v14651_v63 = vadd.f32 %v32861_v19, %v32846_v54  ;;  %v14652_v54 = vadd.f32 %v32861_v19, %v32852_v6  ;;  %v36256_v6 = vld [vmem:[#allocation205_spill] sm:$0xff] }
 0xb38   : > { %v32895_v35 = vpack.c.bf16 %v15208_v40, %v15207_v20  ;;  %v14915_v24 = vmax.f32 %v14659_v15, 0.0  ;;  %v14660_v5 = vadd.f32 %v32861_v19, %v24471_v14  ;;  %23962 = vmatprep.mubr.msk.bf16.mxu0 %vm2232_vm2, %v36242_v7  ;;  %v36246_v20 = vld [vmem:[#allocation123_spill] sm:$0xff]  ;;  %v14903_v14 = vmax.f32 %v14647_v42, 0.0 }
 0xb39   : > { %v15109_v0 = vmax.f32 %v14901_v32, %v14917_v37  ;;  %v14918_v4 = vmax.f32 %v14662_v34, 0.0  ;;  %v14906_v7 = vmax.f32 %v14650_v46, 0.0 }
 0xb3a   : > { %v15107_v39 = vmax.f32 %v14899_v45, %v14915_v24  ;;  %v14916_v57 = vmax.f32 %v14660_v5, 0.0  ;;  %v23856_v25 = vpop.f32.mrb[120].mxu0  ;;  %v36249_v24 = vld [vmem:[#allocation199_spill] sm:$0xff]  ;;  %v26748_v5 = vld [vmem:[%s34346_s3 + $0x8] sm:$0x7f]  }
 0xb3b   : > { %v15110_v10 = vmax.f32 %v14902_v31, %v14918_v4  ;;  %v24472_v41 = vadd.f32 %v23856_v25, %v36243_v26  ;;  %v13738_v36 = vpop.f32.mrb[121].mxu0  ;;  %v14904_v4 = vmax.f32 %v14648_v16, 0.0  ;;  %26689 = vmatprep.subr.msk.bf16.mxu1 %vm15386_vm3, %v26748_v5  ;;  %v14653_v25 = vadd.f32 %v32861_v19, %v32843_v12 }
 0xb3c   : > { %v15108_v11 = vmax.f32 %v14900_v61, %v14916_v57  ;;  %v24473_v53 = vadd.f32 %v13738_v36, %v36244_v60  ;;  %v23857_v51 = vpop.f32.mrb[122].mxu0 }
 0xb3d   : > { %v15210_v49 = vmax.f32 %v15109_v0, %v15110_v10  ;;  %v14665_v43 = vadd.f32 %v32861_v19, %v24472_v41  ;;  %v24474_v9 = vadd.f32 %v23857_v51, %v36245_v1  ;;  %v13741_v28 = vpop.f32.mrb[123].mxu0  ;;  %v36250_v10 = vld [vmem:[#allocation124_spill] sm:$0xff]  ;;  %v14654_v51 = vadd.f32 %v32861_v19, %v32849_v38 }
 0xb3e   : > { %v15209_v8 = vmax.f32 %v15107_v39, %v15108_v11  ;;  %v14663_v58 = vadd.f32 %v32861_v19, %v24473_v53  ;;  %v24475_v15 = vadd.f32 %v13741_v28, %v36246_v20  ;;  %v36251_v11 = vld [vmem:[#allocation127_spill] sm:$0xff]  ;;  %v36252_v1 = vld [vmem:[#allocation128_spill] sm:$0xff]  ;;  %v14909_v20 = vmax.f32 %v14653_v25, 0.0 }
 0xb3f   : > { %v14921_v32 = vmax.f32 %v14665_v43, 0.0  ;;  %v14666_v37 = vadd.f32 %v32861_v19, %v24474_v9  ;;  %23963 = vmatmul.mubr.msk.bf16.gmra.mrb[228].mxu0 %vm2232_vm2, %v36247_v17  ;;  %v36254_v38 = vld [vmem:[#allocation200_spill] sm:$0xff] }
 0xb40   : > { %v32917_v34 = vpack.c.bf16 %v15210_v49, %v15209_v8  ;;  %v32919_v23 = vpack.c.bf16 %v15209_v8, %v15208_v40  ;;  %v14919_v45 = vmax.f32 %v14663_v58, 0.0  ;;  %v14664_v55 = vadd.f32 %v32861_v19, %v24475_v15  ;;  %23966 = vmatprep.mubr.msk.bf16.mxu0 %vm2232_vm2, %v36249_v24  ;;  %v36253_v8 = vld [vmem:[#allocation131_spill] sm:$0xff] }
 0xb41   : > { %v15113_v31 = vmax.f32 %v14905_v30, %v14921_v32  ;;  %v14922_v0 = vmax.f32 %v14666_v37, 0.0  ;;  %v15633_v40 = vsel %vm15386_vm3, %v26748_v5, 0  ;;  %v14907_v15 = vmax.f32 %v14651_v63, 0.0 }
 0xb42   : > { %36248 = vst [vmem:[#allocation242_spill] sm:$0xff] %v32919_v23  ;;  %v15111_v61 = vmax.f32 %v14903_v14, %v14919_v45  ;;  %v14920_v39 = vmax.f32 %v14664_v55, 0.0  ;;  %v23860_v57 = vpop.f32.mrb[124].mxu0  ;;  %24011 = vmatmul.mubr.msk.bf16.gmra.mrb[16].mxu1 %vm15331_vm4, %v32919_v23  ;;  %v14910_v55 = vmax.f32 %v14654_v51, 0.0  ;;  %v36261_v51 = vld [vmem:[#allocation206_spill] sm:$0xff] }
 0xb43   : > { %v15114_v42 = vmax.f32 %v14906_v7, %v14922_v0  ;;  %v24476_v26 = vadd.f32 %v23860_v57, %v36250_v10  ;;  %v13754_v41 = vpop.f32.mrb[125].mxu0  ;;  %24033 = vmatpush3.bf16.msra.mxu1 %v15633_v40  ;;  %v14908_v7 = vmax.f32 %v14652_v54, 0.0  ;;  %v36264_v54 = vld [vmem:[#allocation138_spill] sm:$0xff] }
 0xb44   : > { %v15112_v36 = vmax.f32 %v14904_v4, %v14920_v39  ;;  %v24477_v60 = vadd.f32 %v13754_v41, %v36251_v11  ;;  %v23861_v53 = vpop.f32.mrb[126].mxu0  ;;  %v36257_v39 = vld [vmem:[#allocation132_spill] sm:$0xff] }
 0xb45   : > { %v15212_v46 = vmax.f32 %v15113_v31, %v15114_v42  ;;  %v14669_v43 = vadd.f32 %v32861_v19, %v24476_v26  ;;  %v24478_v12 = vadd.f32 %v23861_v53, %v36252_v1  ;;  %v13757_v9 = vpop.f32.mrb[127].mxu0  ;;  %v36259_v26 = vld [vmem:[#allocation135_spill] sm:$0xff] }
 0xb46   : > { %v15211_v28 = vmax.f32 %v15111_v61, %v15112_v36  ;;  %v14667_v16 = vadd.f32 %v32861_v19, %v24477_v60  ;;  %v24479_v58 = vadd.f32 %v13757_v9, %v36253_v8  ;;  %v36260_v60 = vld [vmem:[#allocation324_spill] sm:$0xff]  ;;  %v36265_v8 = vld [vmem:[#allocation139_spill] sm:$0xff] }
 0xb47   : > { %v14925_v30 = vmax.f32 %v14669_v43, 0.0  ;;  %v14670_v14 = vadd.f32 %v32861_v19, %v24478_v12  ;;  %23967 = vmatmul.mubr.msk.bf16.gmra.mrb[232].mxu0 %vm2232_vm2, %v36254_v38  ;;  %v36263_v12 = vld [vmem:[#allocation171_spill] sm:$0xff] }
 0xb48   : > { %v32948_v32 = vpack.c.bf16 %v15212_v46, %v15211_v28  ;;  %v14923_v37 = vmax.f32 %v14667_v16, 0.0  ;;  %v14668_v17 = vadd.f32 %v32861_v19, %v24479_v58  ;;  %v32951_v45 = vpack.c.bf16 %v15211_v28, %v15210_v49  ;;  %23970 = vmatprep.mubr.msk.bf16.mxu0 %vm2232_vm2, %v36256_v6  ;;  %v36258_v49 = vld [vmem:[#allocation134_spill] sm:$0xff] }
 0xb49   : > { %v15117_v24 = vmax.f32 %v14909_v20, %v14925_v30  ;;  %v14926_v5 = vmax.f32 %v14670_v14, 0.0  ;;  %v36267_v14 = vld [vmem:[#allocation326_spill] sm:$0xff] }
 0xb4a   : > { %36255 = vst [vmem:[#allocation244_spill] sm:$0xff] %v32951_v45  ;;  %v15115_v31 = vmax.f32 %v14907_v15, %v14923_v37  ;;  %v14924_v0 = vmax.f32 %v14668_v17, 0.0  ;;  %v23864_v4 = vpop.f32.mrb[128].mxu0  ;;  %24014 = vmatprep.mubr.msk.bf16.mxu1 %vm15331_vm4, %v32951_v45  ;;  %v36266_v15 = vld [vmem:[#allocation325_spill] sm:$0xff]  ;;  %v36268_v37 = vld [vmem:[#allocation187_spill] sm:$0xff]  ;;  %v36269_v17 = vld [vmem:[#allocation204_spill] sm:$0xff] }
 0xb4b   : > { %v15118_v61 = vmax.f32 %v14910_v55, %v14926_v5  ;;  %v24480_v57 = vadd.f32 %v23864_v4, %v36257_v39  ;;  %v13770_v40 = vpop.f32.mrb[129].mxu0  ;;  %v36270_v55 = vld [vmem:[#allocation142_spill] sm:$0xff]  ;;  %v36272_v4 = vld [vmem:[#allocation327_spill] sm:$0xff] }
 0xb4c   : > { %v15116_v25 = vmax.f32 %v14908_v7, %v14924_v0  ;;  %v24481_v63 = vadd.f32 %v13770_v40, %v36258_v49  ;;  %v23865_v42 = vpop.f32.mrb[130].mxu0  ;;  %v36271_v7 = vld [vmem:[#allocation143_spill] sm:$0xff]  ;;  %v36273_v40 = vld [vmem:[#allocation328_spill] sm:$0xff]  ;;  %v36274_v49 = vld [vmem:[#allocation210_spill] sm:$0xff] }
 0xb4d   : > { %v15214_v10 = vmax.f32 %v15117_v24, %v15118_v61  ;;  %v24482_v41 = vadd.f32 %v23865_v42, %v36259_v26  ;;  %v13773_v36 = vpop.f32.mrb[131].mxu0  ;;  %v33002_v42 = vld [vmem:[%s34346_s3 + $0x20] sm:$0xff]  }
 0xb4e   : > { %v15213_v11 = vmax.f32 %v15115_v31, %v15116_v25  ;;  %v24483_v53 = vadd.f32 %v13773_v36, %v36260_v60  ;;  %24070 = vmatprep.subr.bf16.mxu1 %v33002_v42  ;;  %v36276_v36 = vld [vmem:[#allocation147_spill] sm:$0xff] }
 0xb4f   : > { %23971 = vmatmul.mubr.msk.bf16.gmra.mrb[236].mxu0 %vm2232_vm2, %v36261_v51  ;;  %v36277_v51 = vld [vmem:[#allocation148_spill] sm:$0xff] }
 0xb50   : > { %v32963_v43 = vpack.c.bf16 %v15213_v11, %v15212_v46  ;;  %v32965_v1 = vpack.c.bf16 %v15214_v10, %v15213_v11  ;;  %23974 = vmatprep.mubr.msk.bf16.mxu0 %vm2232_vm2, %v36263_v12  ;;  %v36275_v10 = vld [vmem:[#allocation216_spill] sm:$0xff] }
 0xb52   : > { %36262 = vst [vmem:[#allocation245_spill] sm:$0xff] %v32963_v43  ;;  %v23868_v9 = vpop.f32.mrb[132].mxu0  ;;  %24015 = vmatmul.mubr.msk.bf16.gmra.mrb[20].mxu1 %vm15331_vm4, %v32963_v43 }
 0xb53   : > { %v24484_v28 = vadd.f32 %v23868_v9, %v36264_v54  ;;  %v13786_v16 = vpop.f32.mrb[133].mxu0  ;;  %v36278_v54 = vld [vmem:[#allocation329_spill] sm:$0xff] }
 0xb54   : > { %v32973_v58 = vadd.f32 %v13786_v16, %v36265_v8  ;;  %v23869_v20 = vpop.f32.mrb[134].mxu0 }
 0xb55   : > { %v32976_v30 = vadd.f32 %v23869_v20, %v36266_v15  ;;  %v13789_v46 = vpop.f32.mrb[135].mxu0  ;;  %v36279_v20 = vld [vmem:[#allocation330_spill] sm:$0xff] }
 0xb56   : > { %v32979_v38 = vadd.f32 %v13789_v46, %v36267_v14  ;;  %v36280_v46 = vld [vmem:[#allocation10_spill] sm:$0xff]  ;;  %v36281_v14 = vld [vmem:[#allocation41_spill] sm:$0xff] }
 0xb57   : > { %23975 = vmatmul.mubr.msk.bf16.gmra.mrb[240].mxu0 %vm2232_vm2, %v36268_v37  ;;  %v1965_v37 = vld [vmem:[%s27833_s19 + $0xa18] sm:$0xff] }
 0xb58   : > { %23978 = vmatprep.mubr.msk.bf16.mxu0 %vm2232_vm2, %v36269_v17 }
 0xb5a   : > { %v23872_v6 = vpop.f32.mrb[136].mxu0 }
 0xb5b   : > { %v32986_v24 = vadd.f32 %v23872_v6, %v36270_v55  ;;  %v13802_v5 = vpop.f32.mrb[137].mxu0  ;;  %v14673_v6 = vadd.f32 %v32861_v19, %v24480_v57  ;;  %v36282_v55 = vld [vmem:[#allocation150_spill] sm:$0xff] }
 0xb5c   : > { %v32989_v31 = vadd.f32 %v13802_v5, %v36271_v7  ;;  %v23873_v0 = vpop.f32.mrb[138].mxu0 }
 0xb5d   : > { %v32992_v61 = vadd.f32 %v23873_v0, %v36272_v4  ;;  %v13805_v39 = vpop.f32.mrb[139].mxu0  ;;  %v26958_v0 = vld [vmem:[%s27833_s19 + $0xa10] sm:$0xff] }
 0xb5e   : > { %v32995_v25 = vadd.f32 %v13805_v39, %v36273_v40  ;;  %v13217_v4 = vpack.c.bf16 %v1965_v37, %v26958_v0  ;;  %v14671_v39 = vadd.f32 %v32861_v19, %v24481_v63  ;;  %v36283_v40 = vld [vmem:[#allocation151_spill] sm:$0xff] }
 0xb5f   : > { %23979 = vmatmul.mubr.msk.bf16.gmra.mrb[244].mxu0 %vm2232_vm2, %v36274_v49 }
 0xb60   : > { %23982 = vmatprep.mubr.msk.bf16.mxu0 %vm2232_vm2, %v36275_v10  ;;  %v14927_v37 = vmax.f32 %v14671_v39, 0.0 }
 0xb62   : > { %v23876_v26 = vpop.f32.mrb[140].mxu0 }
 0xb63   : > { %v33008_v11 = vadd.f32 %v23876_v26, %v36276_v36  ;;  %v13818_v60 = vpop.f32.mrb[141].mxu0  ;;  %v14674_v26 = vadd.f32 %v32861_v19, %v24482_v41 }
 0xb64   : > { %v33011_v12 = vadd.f32 %v13818_v60, %v36277_v51  ;;  %v23877_v9 = vpop.f32.mrb[142].mxu0  ;;  %v36284_v60 = vld [vmem:[#allocation331_spill] sm:$0xff] }
 0xb65   : > { %v33014_v16 = vadd.f32 %v23877_v9, %v36278_v54  ;;  %v13821_v8 = vpop.f32.mrb[143].mxu0  ;;  %v14672_v54 = vadd.f32 %v32861_v19, %v24483_v53 }
 0xb66   : > { %v33017_v15 = vadd.f32 %v13821_v8, %v36279_v20  ;;  %v36285_v8 = vld [vmem:[#allocation332_spill] sm:$0xff] }
 0xb67   : > { %23983 = vmatmul.mubr.msk.bf16.gmra.mrb[248].mxu0 %vm2232_vm2, %v36280_v46  ;;  %v14929_v46 = vmax.f32 %v14673_v6, 0.0  ;;  %v14928_v0 = vmax.f32 %v14672_v54, 0.0  ;;  %v36286_v6 = vld [vmem:[#allocation63_spill] sm:$0xff] }
 0xb68   : > { %23986 = vmatprep.mubr.msk.bf16.mxu0 %vm2232_vm2, %v36281_v14 }
 0xb6a   : > { %v23880_v17 = vpop.f32.mrb[144].mxu0 }
 0xb6b   : > { %v24496_v5 = vadd.f32 %v23880_v17, %v36282_v55  ;;  %v13834_v7 = vpop.f32.mrb[145].mxu0  ;;  %v14930_v55 = vmax.f32 %v14674_v26, 0.0  ;;  %v14678_v26 = vadd.f32 %v32861_v19, %v32976_v30 }
 0xb6c   : > { %v24497_v49 = vadd.f32 %v13834_v7, %v36283_v40  ;;  %v23881_v10 = vpop.f32.mrb[146].mxu0 }
 0xb6d   : > { %v14689_v36 = vadd.f32 %v32861_v19, %v24496_v5  ;;  %v24498_v51 = vadd.f32 %v23881_v10, %v36284_v60  ;;  %v13837_v9 = vpop.f32.mrb[147].mxu0 }
 0xb6e   : > { %v14687_v57 = vadd.f32 %v32861_v19, %v24497_v49  ;;  %v24499_v20 = vadd.f32 %v13837_v9, %v36285_v8  ;;  %v14677_v49 = vadd.f32 %v32861_v19, %v24484_v28 }
 0xb6f   : > { %v14945_v14 = vmax.f32 %v14689_v36, 0.0  ;;  %v14690_v63 = vadd.f32 %v32861_v19, %v24498_v51  ;;  %23987 = vmatmul.mubr.msk.bf16.gmra.mrb[252].mxu0 %vm2232_vm2, %v13217_v4  ;;  %v14675_v4 = vadd.f32 %v32861_v19, %v32973_v58  ;;  %v36287_v51 = vld [vmem:[#allocation64_spill] sm:$0xff]  ;;  %v36289_v58 = vld [vmem:[#allocation334_spill] sm:$0xff] }
 0xb70   : > { %v14943_v17 = vmax.f32 %v14687_v57, 0.0  ;;  %v14688_v41 = vadd.f32 %v32861_v19, %v24499_v20 }
 0xb71   : > { %v15121_v5 = vmax.f32 %v14929_v46, %v14945_v14  ;;  %v14946_v7 = vmax.f32 %v14690_v63, 0.0  ;;  %v36288_v46 = vld [vmem:[#allocation333_spill] sm:$0xff]  ;;  %v14676_v63 = vadd.f32 %v32861_v19, %v32979_v38 }
 0xb72   : > { %v15119_v40 = vmax.f32 %v14927_v37, %v14943_v17  ;;  %v14944_v53 = vmax.f32 %v14688_v41, 0.0  ;;  %v23884_v10 = vpop.f32.mrb[148].mxu0 }
 0xb73   : > { %v15122_v60 = vmax.f32 %v14930_v55, %v14946_v7  ;;  %v24500_v36 = vadd.f32 %v23884_v10, %v36286_v6  ;;  %v13850_v9 = vpop.f32.mrb[149].mxu0  ;;  %v14933_v55 = vmax.f32 %v14677_v49, 0.0  ;;  %v14679_v49 = vadd.f32 %v32861_v19, %v32989_v31 }
 0xb74   : > { %v15120_v39 = vmax.f32 %v14928_v0, %v14944_v53  ;;  %v24501_v57 = vadd.f32 %v13850_v9, %v36287_v51  ;;  %v23885_v8 = vpop.f32.mrb[150].mxu0  ;;  %v14931_v53 = vmax.f32 %v14675_v4, 0.0  ;;  %v14932_v9 = vmax.f32 %v14676_v63, 0.0  ;;  %v36290_v4 = vld [vmem:[#allocation67_spill] sm:$0xff] }
 0xb75   : > { %v15216_v54 = vmax.f32 %v15121_v5, %v15122_v60  ;;  %v14693_v20 = vadd.f32 %v32861_v19, %v24500_v36  ;;  %v24502_v14 = vadd.f32 %v23885_v8, %v36288_v46  ;;  %v13853_v28 = vpop.f32.mrb[151].mxu0  ;;  %v14934_v60 = vmax.f32 %v14678_v26, 0.0 }
 0xb76   : > { %v15215_v37 = vmax.f32 %v15119_v40, %v15120_v39  ;;  %v14691_v17 = vadd.f32 %v32861_v19, %v24501_v57  ;;  %v24503_v41 = vadd.f32 %v13853_v28, %v36289_v58  ;;  %v14681_v51 = vadd.f32 %v32861_v19, %v32986_v24  ;;  %v36292_v58 = vld [vmem:[#allocation335_spill] sm:$0xff] }
 0xb77   : > { %v14949_v7 = vmax.f32 %v14693_v20, 0.0  ;;  %v14694_v0 = vadd.f32 %v32861_v19, %v24502_v14  ;;  %v36291_v14 = vld [vmem:[#allocation73_spill] sm:$0xff]  ;;  %v14682_v63 = vadd.f32 %v32861_v19, %v32992_v61  ;;  %v14680_v31 = vadd.f32 %v32861_v19, %v32995_v25 }
 0xb78   : > { %v14947_v30 = vmax.f32 %v14691_v17, 0.0  ;;  %v14692_v5 = vadd.f32 %v32861_v19, %v24503_v41  ;;  %v33053_v10 = vpack.c.bf16 %v15216_v54, %v15215_v37 }
 0xb79   : > { %v15125_v6 = vmax.f32 %v14933_v55, %v14949_v7  ;;  %v14950_v36 = vmax.f32 %v14694_v0, 0.0  ;;  %v36293_v0 = vld [vmem:[#allocation336_spill] sm:$0xff] }
 0xb7a   : > { %v15123_v38 = vmax.f32 %v14931_v53, %v14947_v30  ;;  %v14948_v40 = vmax.f32 %v14692_v5, 0.0  ;;  %v23888_v39 = vpop.f32.mrb[152].mxu0  ;;  %v14937_v30 = vmax.f32 %v14681_v51, 0.0  ;;  %v14935_v5 = vmax.f32 %v14679_v49, 0.0 }
 0xb7b   : > { %v15126_v57 = vmax.f32 %v14934_v60, %v14950_v36  ;;  %v24504_v8 = vadd.f32 %v23888_v39, %v36290_v4  ;;  %v13866_v20 = vpop.f32.mrb[153].mxu0  ;;  %v14938_v39 = vmax.f32 %v14682_v63, 0.0  ;;  %v14685_v51 = vadd.f32 %v32861_v19, %v33008_v11  ;;  %v36296_v63 = vld [vmem:[#allocation83_spill] sm:$0xff] }
 0xb7c   : > { %v15124_v46 = vmax.f32 %v14932_v9, %v14948_v40  ;;  %v24505_v28 = vadd.f32 %v13866_v20, %v36291_v14  ;;  %v23889_v26 = vpop.f32.mrb[154].mxu0  ;;  %v14683_v49 = vadd.f32 %v32861_v19, %v33011_v12  ;;  %v36295_v14 = vld [vmem:[#allocation77_spill] sm:$0xff]  ;;  %v14684_v12 = vadd.f32 %v32861_v19, %v33017_v15 }
 0xb7d   : > { %v15218_v37 = vmax.f32 %v15125_v6, %v15126_v57  ;;  %v14697_v17 = vadd.f32 %v32861_v19, %v24504_v8  ;;  %v24506_v41 = vadd.f32 %v23889_v26, %v36292_v58  ;;  %v13869_v24 = vpop.f32.mrb[155].mxu0 }
 0xb7e   : > { %v15217_v55 = vmax.f32 %v15123_v38, %v15124_v46  ;;  %v14695_v7 = vadd.f32 %v32861_v19, %v24505_v28  ;;  %v24507_v53 = vadd.f32 %v13869_v24, %v36293_v0  ;;  %v14936_v38 = vmax.f32 %v14680_v31, 0.0 }
 0xb7f   : > { %v14953_v60 = vmax.f32 %v14697_v17, 0.0  ;;  %v14698_v36 = vadd.f32 %v32861_v19, %v24506_v41  ;;  %v14686_v41 = vadd.f32 %v32861_v19, %v33014_v16 }
 0xb80   : > { %v33070_v61 = vpack.c.bf16 %v15218_v37, %v15217_v55  ;;  %v14951_v6 = vmax.f32 %v14695_v7, 0.0  ;;  %v14696_v9 = vadd.f32 %v32861_v19, %v24507_v53  ;;  %v33073_v40 = vpack.c.bf16 %v15217_v55, %v15216_v54  ;;  %v36297_v55 = vld [vmem:[#allocation337_spill] sm:$0xff] }
 0xb81   : > { %v15129_v57 = vmax.f32 %v14937_v30, %v14953_v60  ;;  %v14954_v25 = vmax.f32 %v14698_v36, 0.0  ;;  %v36298_v30 = vld [vmem:[#allocation338_spill] sm:$0xff]  ;;  %v14941_v60 = vmax.f32 %v14685_v51, 0.0  ;;  %v14939_v36 = vmax.f32 %v14683_v49, 0.0  ;;  %v36300_v49 = vld [vmem:[#allocation84_spill] sm:$0xff] }
 0xb82   : > { %36294 = vst [vmem:[#allocation209_spill] sm:$0xff] %v33073_v40  ;;  %v15127_v4 = vmax.f32 %v14935_v5, %v14951_v6  ;;  %v14952_v8 = vmax.f32 %v14696_v9, 0.0  ;;  %v23892_v20 = vpop.f32.mrb[156].mxu0  ;;  %24018 = vmatprep.mubr.msk.bf16.mxu1 %vm15331_vm4, %v33073_v40 }
 0xb83   : > { %v15130_v46 = vmax.f32 %v14938_v39, %v14954_v25  ;;  %v24508_v54 = vadd.f32 %v23892_v20, %v36295_v14  ;;  %v13882_v28 = vpop.f32.mrb[157].mxu0 }
 0xb84   : > { %v15128_v26 = vmax.f32 %v14936_v38, %v14952_v8  ;;  %v24509_v17 = vadd.f32 %v13882_v28, %v36296_v63  ;;  %v23893_v58 = vpop.f32.mrb[158].mxu0  ;;  %v14942_v38 = vmax.f32 %v14686_v41, 0.0 }
 0xb85   : > { %v15220_v24 = vmax.f32 %v15129_v57, %v15130_v46  ;;  %v14701_v31 = vadd.f32 %v32861_v19, %v24508_v54  ;;  %v24510_v7 = vadd.f32 %v23893_v58, %v36297_v55  ;;  %v13885_v11 = vpop.f32.mrb[159].mxu0 }
 0xb86   : > { %v15219_v0 = vmax.f32 %v15127_v4, %v15128_v26  ;;  %v14699_v53 = vadd.f32 %v32861_v19, %v24509_v17  ;;  %v24511_v5 = vadd.f32 %v13885_v11, %v36298_v30  ;;  %v14940_v4 = vmax.f32 %v14684_v12, 0.0  ;;  %v36303_v11 = vld [vmem:[#allocation340_spill] sm:$0xff] }
 0xb87   : > { %v14957_v6 = vmax.f32 %v14701_v31, 0.0  ;;  %v14702_v9 = vadd.f32 %v32861_v19, %v24510_v7  ;;  %v36302_v31 = vld [vmem:[#allocation339_spill] sm:$0xff] }
 0xb88   : > { %v33092_v16 = vpack.c.bf16 %v15220_v24, %v15219_v0  ;;  %v33094_v39 = vpack.c.bf16 %v15219_v0, %v15218_v37  ;;  %v14955_v57 = vmax.f32 %v14699_v53, 0.0  ;;  %v14700_v25 = vadd.f32 %v32861_v19, %v24511_v5  ;;  %v36301_v37 = vld [vmem:[#allocation90_spill] sm:$0xff] }
 0xb89   : > { %v15133_v8 = vmax.f32 %v14941_v60, %v14957_v6  ;;  %v14958_v15 = vmax.f32 %v14702_v9, 0.0  ;;  %v36305_v5 = vld [vmem:[#allocation94_spill] sm:$0xff]  ;;  %v36306_v6 = vld [vmem:[#allocation100_spill] sm:$0xff] }
 0xb8a   : > { %36299 = vst [vmem:[#allocation213_spill] sm:$0xff] %v33094_v39  ;;  %v15131_v20 = vmax.f32 %v14939_v36, %v14955_v57  ;;  %v14956_v46 = vmax.f32 %v14700_v25, 0.0  ;;  %v23896_v14 = vpop.f32.mrb[160].mxu0  ;;  %24019 = vmatmul.mubr.msk.bf16.gmra.mrb[24].mxu1 %vm15331_vm4, %v33094_v39  ;;  %v36307_v25 = vld [vmem:[#allocation341_spill] sm:$0xff] }
 0xb8b   : > { %v15134_v51 = vmax.f32 %v14942_v38, %v14958_v15  ;;  %v24512_v54 = vadd.f32 %v23896_v14, %v36300_v49  ;;  %v13898_v28 = vpop.f32.mrb[161].mxu0  ;;  %v36308_v15 = vld [vmem:[#allocation342_spill] sm:$0xff] }
 0xb8c   : > { %v15132_v26 = vmax.f32 %v14940_v4, %v14956_v46  ;;  %v24513_v63 = vadd.f32 %v13898_v28, %v36301_v37  ;;  %v23897_v17 = vpop.f32.mrb[162].mxu0 }
 0xb8d   : > { %v15222_v58 = vmax.f32 %v15133_v8, %v15134_v51  ;;  %v24514_v41 = vadd.f32 %v23897_v17, %v36302_v31  ;;  %v13901_v55 = vpop.f32.mrb[163].mxu0  ;;  %v36310_v51 = vld [vmem:[#allocation110_spill] sm:$0xff] }
 0xb8e   : > { %v15221_v7 = vmax.f32 %v15131_v20, %v15132_v26  ;;  %v24515_v12 = vadd.f32 %v13901_v55, %v36303_v11  ;;  %v36311_v26 = vld [vmem:[#allocation343_spill] sm:$0xff] }
 0xb90   : > { %v33103_v0 = vpack.c.bf16 %v15221_v7, %v15220_v24  ;;  %v33105_v53 = vpack.c.bf16 %v15222_v58, %v15221_v7  ;;  %v36309_v24 = vld [vmem:[#allocation104_spill] sm:$0xff]  ;;  %v36313_v7 = vld [vmem:[#allocation174_spill] sm:$0xff] }
 0xb91   : > { %v36312_v58 = vld [vmem:[#allocation344_spill] sm:$0xff] }
 0xb92   : > { %36304 = vst [vmem:[#allocation214_spill] sm:$0xff] %v33103_v0  ;;  %v23900_v30 = vpop.f32.mrb[164].mxu0  ;;  %24022 = vmatprep.mubr.msk.bf16.mxu1 %vm15331_vm4, %v33103_v0 }
 0xb93   : > { %v24516_v60 = vadd.f32 %v23900_v30, %v36305_v5  ;;  %v13914_v36 = vpop.f32.mrb[165].mxu0  ;;  %v36314_v5 = vld [vmem:[#allocation175_spill] sm:$0xff] }
 0xb94   : > { %v24517_v9 = vadd.f32 %v13914_v36, %v36306_v6  ;;  %v23901_v57 = vpop.f32.mrb[166].mxu0 }
 0xb95   : > { %v24518_v38 = vadd.f32 %v23901_v57, %v36307_v25  ;;  %v13917_v8 = vpop.f32.mrb[167].mxu0  ;;  %v36315_v57 = vld [vmem:[#allocation345_spill] sm:$0xff] }
 0xb96   : > { %v24519_v4 = vadd.f32 %v13917_v8, %v36308_v15  ;;  %v36316_v15 = vld [vmem:[#allocation346_spill] sm:$0xff] }
 0xb9a   : > { %v23904_v20 = vpop.f32.mrb[168].mxu0 }
 0xb9b   : > { %v33114_v46 = vadd.f32 %v23904_v20, %v36309_v24  ;;  %v13930_v14 = vpop.f32.mrb[169].mxu0 }
 0xb9c   : > { %v33117_v49 = vadd.f32 %v13930_v14, %v36310_v51  ;;  %v23905_v28 = vpop.f32.mrb[170].mxu0  ;;  %v14705_v14 = vadd.f32 %v32861_v19, %v24512_v54  ;;  %v36317_v51 = vld [vmem:[#allocation177_spill] sm:$0xff]  ;;  %v36320_v54 = vld [vmem:[#allocation348_spill] sm:$0xff] }
 0xb9d   : > { %v33120_v37 = vadd.f32 %v23905_v28, %v36311_v26  ;;  %v13933_v17 = vpop.f32.mrb[171].mxu0 }
 0xb9e   : > { %v33123_v31 = vadd.f32 %v13933_v17, %v36312_v58  ;;  %v14703_v17 = vadd.f32 %v32861_v19, %v24513_v63  ;;  %v36318_v58 = vld [vmem:[#allocation178_spill] sm:$0xff] }
 0xba0   : > { %v14959_v40 = vmax.f32 %v14703_v17, 0.0  ;;  %v36322_v17 = vld [vmem:[#allocation182_spill] sm:$0xff] }
 0xba2   : > { %v23908_v55 = vpop.f32.mrb[172].mxu0 }
 0xba3   : > { %v33126_v11 = vadd.f32 %v23908_v55, %v36313_v7  ;;  %v13946_v30 = vpop.f32.mrb[173].mxu0 }
 0xba4   : > { %v33129_v36 = vadd.f32 %v13946_v30, %v36314_v5  ;;  %v23909_v6 = vpop.f32.mrb[174].mxu0  ;;  %v14706_v30 = vadd.f32 %v32861_v19, %v24514_v41 }
 0xba5   : > { %v33132_v25 = vadd.f32 %v23909_v6, %v36315_v57  ;;  %v13949_v8 = vpop.f32.mrb[175].mxu0  ;;  %v36319_v6 = vld [vmem:[#allocation347_spill] sm:$0xff] }
 0xba6   : > { %v33135_v20 = vadd.f32 %v13949_v8, %v36316_v15  ;;  %v14704_v8 = vadd.f32 %v32861_v19, %v24515_v12  ;;  %v14962_v41 = vmax.f32 %v14706_v30, 0.0  ;;  %v14709_v12 = vadd.f32 %v32861_v19, %v24516_v60 }
 0xba7   : > { %v14708_v60 = vadd.f32 %v32861_v19, %v24519_v4 }
 0xba8   : > { %v14960_v45 = vmax.f32 %v14704_v8, 0.0 }
 0xbaa   : > { %v23912_v24 = vpop.f32.mrb[176].mxu0 }
 0xbab   : > { %v24528_v28 = vadd.f32 %v23912_v24, %v36317_v51  ;;  %v13962_v26 = vpop.f32.mrb[177].mxu0  ;;  %v14961_v24 = vmax.f32 %v14705_v14, 0.0 }
 0xbac   : > { %v24529_v55 = vadd.f32 %v13962_v26, %v36318_v58  ;;  %v23913_v7 = vpop.f32.mrb[178].mxu0 }
 0xbad   : > { %v14721_v5 = vadd.f32 %v32861_v19, %v24528_v28  ;;  %v24530_v57 = vadd.f32 %v23913_v7, %v36319_v6  ;;  %v13965_v0 = vpop.f32.mrb[179].mxu0 }
 0xbae   : > { %v14719_v15 = vadd.f32 %v32861_v19, %v24529_v55  ;;  %v24531_v39 = vadd.f32 %v13965_v0, %v36320_v54 }
 0xbaf   : > { %v14977_v51 = vmax.f32 %v14721_v5, 0.0  ;;  %v14722_v63 = vadd.f32 %v32861_v19, %v24530_v57  ;;  %v14707_v5 = vadd.f32 %v32861_v19, %v24517_v9  ;;  %v14965_v9 = vmax.f32 %v14709_v12, 0.0 }
 0xbb0   : > { %v14975_v26 = vmax.f32 %v14719_v15, 0.0  ;;  %v14720_v58 = vadd.f32 %v32861_v19, %v24531_v39  ;;  %v14710_v39 = vadd.f32 %v32861_v19, %v24518_v38  ;;  %v14711_v12 = vadd.f32 %v32861_v19, %v33117_v49 }
 0xbb1   : > { %v15137_v43 = vmax.f32 %v14961_v24, %v14977_v51  ;;  %v14978_v28 = vmax.f32 %v14722_v63, 0.0  ;;  %v14712_v49 = vadd.f32 %v32861_v19, %v33123_v31 }
 0xbb2   : > { %v15135_v7 = vmax.f32 %v14959_v40, %v14975_v26  ;;  %v14976_v6 = vmax.f32 %v14720_v58, 0.0  ;;  %v23916_v23 = vpop.f32.mrb[180].mxu0  ;;  %v36323_v40 = vld [vmem:[#allocation349_spill] sm:$0xff] }
 0xbb3   : > { %v15138_v55 = vmax.f32 %v14962_v41, %v14978_v28  ;;  %v24532_v0 = vadd.f32 %v23916_v23, %v36321_v62  ;;  %v13978_v14 = vpop.f32.mrb[181].mxu0  ;;  %v36324_v23 = vld [vmem:[#allocation350_spill] sm:$0xff]  ;;  %v14963_v41 = vmax.f32 %v14707_v5, 0.0  ;;  %v36325_v5 = vld [vmem:[#allocation185_spill] sm:$0xff] }
 0xbb4   : > { %v15136_v57 = vmax.f32 %v14960_v45, %v14976_v6  ;;  %v24533_v15 = vadd.f32 %v13978_v14, %v36322_v17  ;;  %v23917_v54 = vpop.f32.mrb[182].mxu0  ;;  %v14966_v6 = vmax.f32 %v14710_v39, 0.0  ;;  %v14964_v14 = vmax.f32 %v14708_v60, 0.0 }
 0xbb5   : > { %v15224_v30 = vmax.f32 %v15137_v43, %v15138_v55  ;;  %v14725_v8 = vadd.f32 %v32861_v19, %v24532_v0  ;;  %v24534_v24 = vadd.f32 %v23917_v54, %v36323_v40  ;;  %v13981_v51 = vpop.f32.mrb[183].mxu0  ;;  %v14713_v17 = vadd.f32 %v32861_v19, %v33114_v46 }
 0xbb6   : > { %v15223_v63 = vmax.f32 %v15135_v7, %v15136_v57  ;;  %v14723_v62 = vadd.f32 %v32861_v19, %v24533_v15  ;;  %v24535_v26 = vadd.f32 %v13981_v51, %v36324_v23  ;;  %v14714_v60 = vadd.f32 %v32861_v19, %v33120_v37  ;;  %v36327_v23 = vld [vmem:[#allocation351_spill] sm:$0xff] }
 0xbb7   : > { %v14981_v45 = vmax.f32 %v14725_v8, 0.0  ;;  %v14726_v58 = vadd.f32 %v32861_v19, %v24534_v24  ;;  %v36326_v24 = vld [vmem:[#allocation186_spill] sm:$0xff] }
 0xbb8   : > { %v33160_v28 = vpack.c.bf16 %v15224_v30, %v15223_v63  ;;  %v14979_v43 = vmax.f32 %v14723_v62, 0.0  ;;  %v14724_v38 = vadd.f32 %v32861_v19, %v24535_v26 }
 0xbb9   : > { %v15141_v55 = vmax.f32 %v14965_v9, %v14981_v45  ;;  %v14982_v0 = vmax.f32 %v14726_v58, 0.0  ;;  %v36328_v58 = vld [vmem:[#allocation352_spill] sm:$0xff] }
 0xbba   : > { %v15139_v4 = vmax.f32 %v14963_v41, %v14979_v43  ;;  %v14980_v7 = vmax.f32 %v14724_v38, 0.0  ;;  %v23920_v57 = vpop.f32.mrb[184].mxu0  ;;  %v14969_v43 = vmax.f32 %v14713_v17, 0.0  ;;  %v14967_v38 = vmax.f32 %v14711_v12, 0.0 }
 0xbbb   : > { %v15142_v15 = vmax.f32 %v14966_v6, %v14982_v0  ;;  %v24536_v54 = vadd.f32 %v23920_v57, %v36325_v5  ;;  %v13994_v8 = vpop.f32.mrb[185].mxu0  ;;  %v14970_v57 = vmax.f32 %v14714_v60, 0.0  ;;  %v14717_v17 = vadd.f32 %v32861_v19, %v33126_v11  ;;  %v36331_v60 = vld [vmem:[#allocation191_spill] sm:$0xff] }
 0xbbc   : > { %v15140_v40 = vmax.f32 %v14964_v14, %v14980_v7  ;;  %v24537_v51 = vadd.f32 %v13994_v8, %v36326_v24  ;;  %v23921_v39 = vpop.f32.mrb[186].mxu0 }
 0xbbd   : > { %v15226_v63 = vmax.f32 %v15141_v55, %v15142_v15  ;;  %v14729_v62 = vadd.f32 %v32861_v19, %v24536_v54  ;;  %v24538_v26 = vadd.f32 %v23921_v39, %v36327_v23  ;;  %v13997_v46 = vpop.f32.mrb[187].mxu0 }
 0xbbe   : > { %v15225_v9 = vmax.f32 %v15139_v4, %v15140_v40  ;;  %v14727_v45 = vadd.f32 %v32861_v19, %v24537_v51  ;;  %v24539_v41 = vadd.f32 %v13997_v46, %v36328_v58  ;;  %v14968_v4 = vmax.f32 %v14712_v49, 0.0  ;;  %v36330_v40 = vld [vmem:[#allocation190_spill] sm:$0xff] }
 0xbbf   : > { %v14985_v6 = vmax.f32 %v14729_v62, 0.0  ;;  %v14730_v0 = vadd.f32 %v32861_v19, %v24538_v26  ;;  %v14718_v26 = vadd.f32 %v32861_v19, %v33132_v25 }
 0xbc0   : > { %v33178_v37 = vpack.c.bf16 %v15226_v63, %v15225_v9  ;;  %v33180_v55 = vpack.c.bf16 %v15225_v9, %v15224_v30  ;;  %v14983_v14 = vmax.f32 %v14727_v45, 0.0  ;;  %v14728_v7 = vadd.f32 %v32861_v19, %v24539_v41  ;;  %v36332_v9 = vld [vmem:[#allocation353_spill] sm:$0xff] }
 0xbc1   : > { %v15145_v15 = vmax.f32 %v14969_v43, %v14985_v6  ;;  %v14986_v31 = vmax.f32 %v14730_v0, 0.0  ;;  %v14715_v30 = vadd.f32 %v32861_v19, %v33129_v36  ;;  %v14716_v36 = vadd.f32 %v32861_v19, %v33135_v20  ;;  %v36333_v43 = vld [vmem:[#allocation354_spill] sm:$0xff] }
 0xbc2   : > { %36329 = vst [vmem:[#allocation215_spill] sm:$0xff] %v33180_v55  ;;  %v15143_v5 = vmax.f32 %v14967_v38, %v14983_v14  ;;  %v14984_v54 = vmax.f32 %v14728_v7, 0.0  ;;  %v23924_v8 = vpop.f32.mrb[188].mxu0  ;;  %24023 = vmatmul.mubr.msk.bf16.gmra.mrb[28].mxu1 %vm15331_vm4, %v33180_v55  ;;  %v14973_v6 = vmax.f32 %v14717_v17, 0.0 }
 0xbc3   : > { %v15146_v12 = vmax.f32 %v14970_v57, %v14986_v31  ;;  %v24540_v24 = vadd.f32 %v23924_v8, %v36330_v40  ;;  %v14010_v51 = vpop.f32.mrb[189].mxu0  ;;  %v14971_v0 = vmax.f32 %v14715_v30, 0.0  ;;  %v36335_v30 = vld [vmem:[#allocation193_spill] sm:$0xff] }
 0xbc4   : > { %v15144_v39 = vmax.f32 %v14968_v4, %v14984_v54  ;;  %v24541_v62 = vadd.f32 %v14010_v51, %v36331_v60  ;;  %v23925_v23 = vpop.f32.mrb[190].mxu0  ;;  %v14974_v4 = vmax.f32 %v14718_v26, 0.0  ;;  %v36336_v60 = vld [vmem:[#allocation194_spill] sm:$0xff] }
 0xbc5   : > { %v15228_v46 = vmax.f32 %v15145_v15, %v15146_v12  ;;  %v14733_v49 = vadd.f32 %v32861_v19, %v24540_v24  ;;  %v24542_v45 = vadd.f32 %v23925_v23, %v36332_v9  ;;  %v14013_v11 = vpop.f32.mrb[191].mxu0  ;;  %v36337_v23 = vld [vmem:[#allocation355_spill] sm:$0xff] }
 0xbc6   : > { %v15227_v58 = vmax.f32 %v15143_v5, %v15144_v39  ;;  %v14731_v41 = vadd.f32 %v32861_v19, %v24541_v62  ;;  %v24543_v38 = vadd.f32 %v14013_v11, %v36333_v43  ;;  %v14972_v5 = vmax.f32 %v14716_v36, 0.0  ;;  %v36340_v43 = vld [vmem:[#allocation197_spill] sm:$0xff] }
 0xbc7   : > { %v14989_v14 = vmax.f32 %v14733_v49, 0.0  ;;  %v14734_v7 = vadd.f32 %v32861_v19, %v24542_v45  ;;  %v36338_v45 = vld [vmem:[#allocation356_spill] sm:$0xff] }
 0xbc8   : > { %v33200_v25 = vpack.c.bf16 %v15228_v46, %v15227_v58  ;;  %v14987_v57 = vmax.f32 %v14731_v41, 0.0  ;;  %v14732_v15 = vadd.f32 %v32861_v19, %v24543_v38  ;;  %v33203_v31 = vpack.c.bf16 %v15227_v58, %v15226_v63 }
 0xbc9   : > { %v15149_v54 = vmax.f32 %v14973_v6, %v14989_v14  ;;  %v14990_v20 = vmax.f32 %v14734_v7, 0.0 }
 0xbca   : > { %36334 = vst [vmem:[#allocation217_spill] sm:$0xff] %v33203_v31  ;;  %v15147_v8 = vmax.f32 %v14971_v0, %v14987_v57  ;;  %v14988_v12 = vmax.f32 %v14732_v15, 0.0  ;;  %v23928_v40 = vpop.f32.mrb[192].mxu0  ;;  %24026 = vmatprep.mubr.msk.bf16.mxu1 %vm15331_vm4, %v33203_v31  ;;  %v36341_v0 = vld [vmem:[#allocation198_spill] sm:$0xff]  ;;  %v36342_v57 = vld [vmem:[#allocation357_spill] sm:$0xff] }
 0xbcb   : > { %v15150_v17 = vmax.f32 %v14974_v4, %v14990_v20  ;;  %v24544_v24 = vadd.f32 %v23928_v40, %v36335_v30  ;;  %v14026_v51 = vpop.f32.mrb[193].mxu0  ;;  %v36343_v4 = vld [vmem:[#allocation358_spill] sm:$0xff] }
 0xbcc   : > { %v15148_v39 = vmax.f32 %v14972_v5, %v14988_v12  ;;  %v24545_v62 = vadd.f32 %v14026_v51, %v36336_v60  ;;  %v23929_v19 = vpop.f32.mrb[194].mxu0  ;;  %v26750_v20 = vld [vmem:[%s34346_s3 + $0x28] sm:$0x7f]   ;;  %v36346_v60 = vld [vmem:[#allocation359_spill] sm:$0xff] }
 0xbcd   : > { %v15230_v63 = vmax.f32 %v15149_v54, %v15150_v17  ;;  %v24546_v26 = vadd.f32 %v23929_v19, %v36337_v23  ;;  %v14029_v49 = vpop.f32.mrb[195].mxu0  ;;  %v36345_v40 = vld [vmem:[#allocation202_spill] sm:$0xff]  ;;  %v15848_v51 = vsel %vm15386_vm3, %v26750_v20, 0  ;;  %v36347_v23 = vld [vmem:[#allocation360_spill] sm:$0xff] }
 0xbce   : > { %v15229_v9 = vmax.f32 %v15147_v8, %v15148_v39  ;;  %v24547_v11 = vadd.f32 %v14029_v49, %v36338_v45  ;;  %v33250_v39 = vld [vmem:[%s34346_s3 + $0x30] sm:$0xff]  }
 0xbd0   : > { %v33211_v36 = vpack.c.bf16 %v15229_v9, %v15228_v46  ;;  %v33213_v58 = vpack.c.bf16 %v15230_v63, %v15229_v9  ;;  %v36348_v9 = vld [vmem:[#allocation207_spill] sm:$0xff] }
 0xbd2   : > { %36339 = vst [vmem:[#allocation155_spill] sm:$0xff] %v33211_v36  ;;  %v23932_v41 = vpop.f32.mrb[196].mxu0  ;;  %24027 = vmatmul.mubr.msk.bf16.gmra.mrb[32].mxu1 %vm15331_vm4, %v33211_v36 }
 0xbd3   : > { %v33218_v38 = vadd.f32 %v23932_v41, %v36340_v43  ;;  %v14042_v6 = vpop.f32.mrb[197].mxu0  ;;  %24034 = vmatprep.mubr.msk.bf16.mxu1 %vm15331_vm4, %v32464_v59  ;;  %v36344_v59 = vld [vmem:[#allocation201_spill] sm:$0xff]  ;;  %v36349_v43 = vld [vmem:[#allocation208_spill] sm:$0xff] }
 0xbd4   : > { %v33223_v14 = vadd.f32 %v14042_v6, %v36341_v0  ;;  %v23933_v7 = vpop.f32.mrb[198].mxu0 }
 0xbd5   : > { %v33226_v46 = vadd.f32 %v23933_v7, %v36342_v57  ;;  %v14045_v15 = vpop.f32.mrb[199].mxu0  ;;  %v36350_v7 = vld [vmem:[#allocation361_spill] sm:$0xff] }
 0xbd6   : > { %v33229_v54 = vadd.f32 %v14045_v15, %v36343_v4  ;;  %v36351_v4 = vld [vmem:[#allocation362_spill] sm:$0xff] }
 0xbda   : > { %v23936_v5 = vpop.f32.mrb[200].mxu0  ;;  %24035 = vmatmul.mubr.msk.bf16.vlgmr.msra.gmra.mrb[0].mxu1 %vm15331_vm4, %v32483_v44 }
 0xbdb   : > { %v33237_v8 = vadd.f32 %v23936_v5, %v36344_v59  ;;  %v14058_v12 = vpop.f32.mrb[201].mxu0  ;;  %24038 = vmatprep.mubr.msk.bf16.mxu1 %vm15331_vm4, %v32509_v3  ;;  %24071 = vmatpush3.bf16.msra.mxu1 %v33002_v42  ;;  %v33280_v59 = vld [vmem:[%s34345_s2] ss:$0 sm:$0xff] }
 0xbdc   : > { %v33243_v17 = vadd.f32 %v14058_v12, %v36345_v40  ;;  %v23937_v30 = vpop.f32.mrb[202].mxu0  ;;  %26690 = vmatprep.subr.msk.bf16.mxu1 %vm15386_vm3, %v26750_v20  ;;  %v14737_v12 = vadd.f32 %v33280_v59, %v24544_v24  ;;  %v36352_v40 = vld [vmem:[#allocation211_spill] sm:$0xff]  ;;  %v14736_v24 = vadd.f32 %v33280_v59, %v24547_v11  ;;  %v14741_v11 = vadd.f32 %v33280_v59, %v33218_v38 }
 0xbdd   : > { %v33253_v19 = vadd.f32 %v23937_v30, %v36346_v60  ;;  %v14061_v63 = vpop.f32.mrb[203].mxu0  ;;  %v14735_v60 = vadd.f32 %v33280_v59, %v24545_v62 }
 0xbde   : > { %v33256_v49 = vadd.f32 %v14061_v63, %v36347_v23  ;;  %v36353_v63 = vld [vmem:[#allocation212_spill] sm:$0xff]  ;;  %v14992_v21 = vmax.f32 %v14736_v24, 0.0  ;;  %v14742_v24 = vadd.f32 %v33280_v59, %v33226_v46 }
 0xbdf   : > { %24073 = vmatpush3.bf16.msra.mxu1 %v15848_v51  ;;  %v14991_v31 = vmax.f32 %v14735_v60, 0.0 }
 0xbe0   : > { %24110 = vmatprep.subr.bf16.mxu1 %v33250_v39 }
 0xbe2   : > { %v23940_v42 = vpop.f32.mrb[204].mxu0  ;;  %24039 = vmatmul.mubr.msk.bf16.gmra.mrb[4].mxu1 %vm15331_vm4, %v32595_v27 }
 0xbe3   : > { %v33262_v45 = vadd.f32 %v23940_v42, %v36348_v9  ;;  %v14074_v41 = vpop.f32.mrb[205].mxu0  ;;  %24042 = vmatprep.mubr.msk.bf16.mxu1 %vm15331_vm4, %v32622_v18  ;;  %v14738_v9 = vadd.f32 %v33280_v59, %v24546_v26 }
 0xbe4   : > { %v33267_v6 = vadd.f32 %v14074_v41, %v36349_v43  ;;  %v23941_v0 = vpop.f32.mrb[206].mxu0  ;;  %v36354_v43 = vld [vmem:[#allocation363_spill] sm:$0xff] }
 0xbe5   : > { %v33270_v57 = vadd.f32 %v23941_v0, %v36350_v7  ;;  %v14077_v15 = vpop.f32.mrb[207].mxu0  ;;  %v14994_v26 = vmax.f32 %v14738_v9, 0.0 }
 0xbe6   : > { %v33273_v20 = vadd.f32 %v14077_v15, %v36351_v4  ;;  %v36355_v4 = vld [vmem:[#allocation364_spill] sm:$0xff] }
 0xbea   : > { %v23944_v5 = vpop.f32.mrb[208].mxu0  ;;  %24043 = vmatmul.mubr.msk.bf16.gmra.mrb[8].mxu1 %vm15331_vm4, %v32643_v52 }
 0xbeb   : > { %v24560_v30 = vadd.f32 %v23944_v5, %v36352_v40  ;;  %v14090_v51 = vpop.f32.mrb[209].mxu0  ;;  %24046 = vmatprep.mubr.msk.bf16.mxu1 %vm15331_vm4, %v32741_v56  ;;  %v14993_v40 = vmax.f32 %v14737_v12, 0.0 }
 0xbec   : > { %v24561_v23 = vadd.f32 %v14090_v51, %v36353_v63  ;;  %v23945_v42 = vpop.f32.mrb[210].mxu0 }
 0xbed   : > { %v14753_v41 = vadd.f32 %v33280_v59, %v24560_v30  ;;  %v24562_v0 = vadd.f32 %v23945_v42, %v36354_v43  ;;  %v14093_v7 = vpop.f32.mrb[211].mxu0 }
 0xbee   : > { %v14751_v15 = vadd.f32 %v33280_v59, %v24561_v23  ;;  %v24563_v5 = vadd.f32 %v14093_v7, %v36355_v4  ;;  %v36356_v23 = vld [vmem:[#allocation153_spill] sm:$0xff] }
 0xbef   : > { %v15009_v36 = vmax.f32 %v14753_v41, 0.0  ;;  %v14754_v62 = vadd.f32 %v33280_v59, %v24562_v0  ;;  %v36358_v4 = vld [vmem:[#allocation365_spill] sm:$0xff] }
 0xbf0   : > { %v15007_v51 = vmax.f32 %v14751_v15, 0.0  ;;  %v14752_v63 = vadd.f32 %v33280_v59, %v24563_v5 }
 0xbf1   : > { %v15153_v55 = vmax.f32 %v14993_v40, %v15009_v36  ;;  %v15010_v30 = vmax.f32 %v14754_v62, 0.0  ;;  %v14739_v36 = vadd.f32 %v33280_v59, %v33223_v14  ;;  %v14740_v40 = vadd.f32 %v33280_v59, %v33229_v54  ;;  %v36359_v14 = vld [vmem:[#allocation366_spill] sm:$0xff] }
 0xbf2   : > { %v15151_v42 = vmax.f32 %v14991_v31, %v15007_v51  ;;  %v15008_v43 = vmax.f32 %v14752_v63, 0.0  ;;  %v23948_v13 = vpop.f32.mrb[212].mxu0  ;;  %24047 = vmatmul.mubr.msk.bf16.gmra.mrb[12].mxu1 %vm15331_vm4, %v32760_v48  ;;  %v36357_v31 = vld [vmem:[#allocation65_spill] sm:$0xff]  ;;  %v14997_v63 = vmax.f32 %v14741_v11, 0.0  ;;  %v14745_v11 = vadd.f32 %v33280_v59, %v33237_v8 }
 0xbf3   : > { %v15154_v12 = vmax.f32 %v14994_v26, %v15010_v30  ;;  %v24564_v41 = vadd.f32 %v23948_v13, %v36356_v23  ;;  %v14106_v60 = vpop.f32.mrb[213].mxu0  ;;  %24050 = vmatprep.mubr.msk.bf16.mxu1 %vm15331_vm4, %v32786_v47  ;;  %v14998_v23 = vmax.f32 %v14742_v24, 0.0 }
 0xbf4   : > { %v15152_v9 = vmax.f32 %v14992_v21, %v15008_v43  ;;  %v24565_v0 = vadd.f32 %v14106_v60, %v36357_v31  ;;  %v23949_v7 = vpop.f32.mrb[214].mxu0  ;;  %v14995_v43 = vmax.f32 %v14739_v36, 0.0  ;;  %v14996_v31 = vmax.f32 %v14740_v40, 0.0 }
 0xbf5   : > { %v15232_v15 = vmax.f32 %v15153_v55, %v15154_v12  ;;  %v14757_v38 = vadd.f32 %v33280_v59, %v24564_v41  ;;  %v24566_v5 = vadd.f32 %v23949_v7, %v36358_v4  ;;  %v14109_v13 = vpop.f32.mrb[215].mxu0  ;;  %v14743_v36 = vadd.f32 %v33280_v59, %v33243_v17  ;;  %v36360_v7 = vld [vmem:[#allocation158_spill] sm:$0xff] }
 0xbf6   : > { %v15231_v62 = vmax.f32 %v15151_v42, %v15152_v9  ;;  %v14755_v51 = vadd.f32 %v33280_v59, %v24565_v0  ;;  %v24567_v21 = vadd.f32 %v14109_v13, %v36359_v14  ;;  %v36362_v14 = vld [vmem:[#allocation367_spill] sm:$0xff] }
 0xbf7   : > { %v15013_v26 = vmax.f32 %v14757_v38, 0.0  ;;  %v14758_v30 = vadd.f32 %v33280_v59, %v24566_v5  ;;  %v36361_v5 = vld [vmem:[#allocation74_spill] sm:$0xff] }
 0xbf8   : > { %v33315_v46 = vpack.c.bf16 %v15232_v15, %v15231_v62  ;;  %v15011_v55 = vmax.f32 %v14755_v51, 0.0  ;;  %v14756_v12 = vadd.f32 %v33280_v59, %v24567_v21  ;;  %v14746_v62 = vadd.f32 %v33280_v59, %v33253_v19 }
 0xbf9   : > { %v15157_v41 = vmax.f32 %v14997_v63, %v15013_v26  ;;  %v15014_v60 = vmax.f32 %v14758_v30, 0.0  ;;  %v14744_v63 = vadd.f32 %v33280_v59, %v33256_v49 }
 0xbfa   : > { %v15155_v54 = vmax.f32 %v14995_v43, %v15011_v55  ;;  %v15012_v42 = vmax.f32 %v14756_v12, 0.0  ;;  %v23952_v9 = vpop.f32.mrb[216].mxu0  ;;  %24051 = vmatmul.mubr.msk.bf16.gmra.mrb[16].mxu1 %vm15331_vm4, %v32895_v35  ;;  %v36363_v43 = vld [vmem:[#allocation368_spill] sm:$0xff]  ;;  %v15001_v12 = vmax.f32 %v14745_v11, 0.0  ;;  %v14749_v11 = vadd.f32 %v33280_v59, %v33262_v45 }
 0xbfb   : > { %v15158_v0 = vmax.f32 %v14998_v23, %v15014_v60  ;;  %v24568_v38 = vadd.f32 %v23952_v9, %v36360_v7  ;;  %v14122_v4 = vpop.f32.mrb[217].mxu0  ;;  %24054 = vmatprep.mubr.msk.bf16.mxu1 %vm15331_vm4, %v32917_v34  ;;  %v14999_v23 = vmax.f32 %v14743_v36, 0.0 }
 0xbfc   : > { %v15156_v24 = vmax.f32 %v14996_v31, %v15012_v42  ;;  %v24569_v13 = vadd.f32 %v14122_v4, %v36361_v5  ;;  %v23953_v40 = vpop.f32.mrb[218].mxu0  ;;  %v36365_v5 = vld [vmem:[#allocation163_spill] sm:$0xff] }
 0xbfd   : > { %v15234_v51 = vmax.f32 %v15157_v41, %v15158_v0  ;;  %v14761_v8 = vadd.f32 %v33280_v59, %v24568_v38  ;;  %v24570_v21 = vadd.f32 %v23953_v40, %v36362_v14  ;;  %v14125_v17 = vpop.f32.mrb[219].mxu0  ;;  %v15002_v0 = vmax.f32 %v14746_v62, 0.0 }
 0xbfe   : > { %v15233_v26 = vmax.f32 %v15155_v54, %v15156_v24  ;;  %v14759_v30 = vadd.f32 %v33280_v59, %v24569_v13  ;;  %v24571_v55 = vadd.f32 %v14125_v17, %v36363_v43  ;;  %v15000_v54 = vmax.f32 %v14744_v63, 0.0 }
 0xbff   : > { %v15017_v60 = vmax.f32 %v14761_v8, 0.0  ;;  %v14762_v31 = vadd.f32 %v33280_v59, %v24570_v21  ;;  %v36366_v8 = vld [vmem:[#allocation165_spill] sm:$0xff]  ;;  %v14750_v17 = vadd.f32 %v33280_v59, %v33270_v57  ;;  %v14748_v43 = vadd.f32 %v33280_v59, %v33273_v20 }
 0xc00   : > { %v33337_v19 = vpack.c.bf16 %v15233_v26, %v15232_v15  ;;  %v15015_v41 = vmax.f32 %v14759_v30, 0.0  ;;  %v14760_v42 = vadd.f32 %v33280_v59, %v24571_v55  ;;  %v33340_v9 = vpack.c.bf16 %v15234_v51, %v15233_v26  ;;  %v36367_v26 = vld [vmem:[#allocation369_spill] sm:$0xff] }
 0xc01   : > { %v15161_v7 = vmax.f32 %v15001_v12, %v15017_v60  ;;  %v15018_v49 = vmax.f32 %v14762_v31, 0.0  ;;  %v14747_v15 = vadd.f32 %v33280_v59, %v33267_v6  ;;  %v15005_v31 = vmax.f32 %v14749_v11, 0.0 }
 0xc02   : > { %36364 = vst [vmem:[#allocation219_spill] sm:$0xff] %v33337_v19  ;;  %v15159_v38 = vmax.f32 %v14999_v23, %v15015_v41  ;;  %v15016_v4 = vmax.f32 %v14760_v42, 0.0  ;;  %v23956_v24 = vpop.f32.mrb[220].mxu0  ;;  %24055 = vmatmul.mubr.msk.bf16.gmra.mrb[20].mxu1 %vm15331_vm4, %v32948_v32  ;;  %v36368_v23 = vld [vmem:[#allocation370_spill] sm:$0xff] }
 0xc03   : > { %v15162_v36 = vmax.f32 %v15002_v0, %v15018_v49  ;;  %v24572_v13 = vadd.f32 %v23956_v24, %v36365_v5  ;;  %v14138_v40 = vpop.f32.mrb[221].mxu0  ;;  %24058 = vmatprep.mubr.msk.bf16.mxu1 %vm15331_vm4, %v33053_v10  ;;  %v15003_v41 = vmax.f32 %v14747_v15, 0.0  ;;  %v36370_v15 = vld [vmem:[#allocation166_spill] sm:$0xff] }
 0xc04   : > { %v15160_v62 = vmax.f32 %v15000_v54, %v15016_v4  ;;  %v24573_v14 = vadd.f32 %v14138_v40, %v36366_v8  ;;  %v23957_v21 = vpop.f32.mrb[222].mxu0  ;;  %v15006_v4 = vmax.f32 %v14750_v17, 0.0 }
 0xc05   : > { %v15236_v63 = vmax.f32 %v15161_v7, %v15162_v36  ;;  %v14765_v45 = vadd.f32 %v33280_v59, %v24572_v13  ;;  %v24574_v30 = vadd.f32 %v23957_v21, %v36367_v26  ;;  %v14141_v6 = vpop.f32.mrb[223].mxu0 }
 0xc06   : > { %v15235_v55 = vmax.f32 %v15159_v38, %v15160_v62  ;;  %v14763_v12 = vadd.f32 %v33280_v59, %v24573_v14  ;;  %v24575_v60 = vadd.f32 %v14141_v6, %v36368_v23  ;;  %v15004_v38 = vmax.f32 %v14748_v43, 0.0  ;;  %v36373_v43 = vld [vmem:[#allocation372_spill] sm:$0xff] }
 0xc07   : > { %v15021_v42 = vmax.f32 %v14765_v45, 0.0  ;;  %v14766_v0 = vadd.f32 %v33280_v59, %v24574_v30  ;;  %v36372_v45 = vld [vmem:[#allocation371_spill] sm:$0xff] }
 0xc08   : > { %v33361_v57 = vpack.c.bf16 %v15236_v63, %v15235_v55  ;;  %v15019_v7 = vmax.f32 %v14763_v12, 0.0  ;;  %v14764_v49 = vadd.f32 %v33280_v59, %v24575_v60  ;;  %v33364_v54 = vpack.c.bf16 %v15235_v55, %v15234_v51  ;;  %v36371_v51 = vld [vmem:[#allocation91_spill] sm:$0xff] }
 0xc09   : > { %v15165_v24 = vmax.f32 %v15005_v31, %v15021_v42  ;;  %v15022_v20 = vmax.f32 %v14766_v0, 0.0  ;;  %v36376_v31 = vld [vmem:[#allocation168_spill] sm:$0xff]  ;;  %v36377_v0 = vld [vmem:[#allocation225_spill] sm:$0xff] }
 0xc0a   : > { %36369 = vst [vmem:[#allocation11_spill] sm:$0xff] %v33364_v54  ;;  %v15163_v36 = vmax.f32 %v15003_v41, %v15019_v7  ;;  %v15020_v5 = vmax.f32 %v14764_v49, 0.0  ;;  %v23960_v13 = vpop.f32.mrb[224].mxu0  ;;  %24059 = vmatmul.mubr.msk.bf16.gmra.mrb[24].mxu1 %vm15331_vm4, %v33070_v61 }
 0xc0b   : > { %v15166_v11 = vmax.f32 %v15006_v4, %v15022_v20  ;;  %v24576_v40 = vadd.f32 %v23960_v13, %v36370_v15  ;;  %v14154_v62 = vpop.f32.mrb[225].mxu0  ;;  %24062 = vmatprep.mubr.msk.bf16.mxu1 %vm15331_vm4, %v33092_v16  ;;  %v36378_v4 = vld [vmem:[#allocation373_spill] sm:$0xff]  ;;  %v36379_v20 = vld [vmem:[#allocation374_spill] sm:$0xff] }
 0xc0c   : > { %v15164_v8 = vmax.f32 %v15004_v38, %v15020_v5  ;;  %v24577_v14 = vadd.f32 %v14154_v62, %v36371_v51  ;;  %v23961_v21 = vpop.f32.mrb[226].mxu0  ;;  %v36380_v5 = vld [vmem:[#allocation102_spill] sm:$0xff]  ;;  %v36382_v51 = vld [vmem:[#allocation375_spill] sm:$0xff] }
 0xc0d   : > { %v15238_v17 = vmax.f32 %v15165_v24, %v15166_v11  ;;  %v24578_v26 = vadd.f32 %v23961_v21, %v36372_v45  ;;  %v14157_v30 = vpop.f32.mrb[227].mxu0  ;;  %v36381_v15 = vld [vmem:[#allocation226_spill] sm:$0xff]  ;;  %v36383_v45 = vld [vmem:[#allocation376_spill] sm:$0xff] }
 0xc0e   : > { %v15237_v6 = vmax.f32 %v15163_v36, %v15164_v8  ;;  %v24579_v55 = vadd.f32 %v14157_v30, %v36373_v43 }
 0xc10   : > { %v33374_v12 = vpack.c.bf16 %v15237_v6, %v15236_v63  ;;  %v33376_v23 = vpack.c.bf16 %v15238_v17, %v15237_v6  ;;  %v26752_v6 = vld [vmem:[%s34346_s3 + $0x38] sm:$0x7f]  }
 0xc12   : > { %36374 = vst [vmem:[#allocation16_spill] sm:$0xff] %v33374_v12  ;;  %36375 = vst [vmem:[#allocation17_spill] sm:$0xff] %v33376_v23  ;;  %v23964_v60 = vpop.f32.mrb[228].mxu0  ;;  %24063 = vmatmul.mubr.msk.bf16.gmra.mrb[28].mxu1 %vm15331_vm4, %v33160_v28 }
 0xc13   : > { %v33381_v41 = vadd.f32 %v23964_v60, %v36376_v31  ;;  %v14170_v42 = vpop.f32.mrb[229].mxu0  ;;  %24066 = vmatprep.mubr.msk.bf16.mxu1 %vm15331_vm4, %v33178_v37 }
 0xc14   : > { %v33386_v7 = vadd.f32 %v14170_v42, %v36377_v0  ;;  %v23965_v49 = vpop.f32.mrb[230].mxu0  ;;  %v36385_v42 = vld [vmem:[#allocation237_spill] sm:$0xff]  ;;  %v36386_v0 = vld [vmem:[#allocation228_spill] sm:$0xff] }
 0xc15   : > { %v33389_v63 = vadd.f32 %v23965_v49, %v36378_v4  ;;  %v14173_v24 = vpop.f32.mrb[231].mxu0 }
 0xc16   : > { %v33392_v38 = vadd.f32 %v14173_v24, %v36379_v20  ;;  %v16087_v24 = vsel %vm15386_vm3, %v26752_v6, 0  ;;  %v36387_v20 = vld [vmem:[#allocation377_spill] sm:$0xff] }
 0xc1a   : > { %v23968_v36 = vpop.f32.mrb[232].mxu0  ;;  %24067 = vmatmul.mubr.msk.bf16.gmra.mrb[32].mxu1 %vm15331_vm4, %v33200_v25 }
 0xc1b   : > { %v33397_v13 = vadd.f32 %v23968_v36, %v36380_v5  ;;  %v14186_v11 = vpop.f32.mrb[233].mxu0  ;;  %24074 = vmatprep.mubr.msk.bf16.mxu1 %vm15331_vm4, %v32483_v44  ;;  %v36384_v44 = vld [vmem:[#allocation227_spill] sm:$0xff] }
 0xc1c   : > { %v33402_v62 = vadd.f32 %v14186_v11, %v36381_v15  ;;  %v23969_v8 = vpop.f32.mrb[234].mxu0  ;;  %v36388_v11 = vld [vmem:[#allocation378_spill] sm:$0xff] }
 0xc1d   : > { %v33405_v21 = vadd.f32 %v23969_v8, %v36382_v51  ;;  %v14189_v17 = vpop.f32.mrb[235].mxu0  ;;  %v14769_v8 = vadd.f32 %v33280_v59, %v24576_v40  ;;  %v36389_v51 = vld [vmem:[#allocation229_spill] sm:$0xff]  ;;  %v14768_v40 = vadd.f32 %v33280_v59, %v24579_v55  ;;  %v14773_v55 = vadd.f32 %v33280_v59, %v33381_v41 }
 0xc1e   : > { %v33408_v30 = vadd.f32 %v14189_v17, %v36383_v45 }
 0xc1f   : > { %v15024_v19 = vmax.f32 %v14768_v40, 0.0  ;;  %v14774_v40 = vadd.f32 %v33280_v59, %v33389_v63 }
 0xc22   : > { %v23972_v43 = vpop.f32.mrb[236].mxu0  ;;  %24075 = vmatmul.mubr.msk.bf16.vlgmr.msra.gmra.mrb[0].mxu1 %vm15331_vm4, %v32509_v3  ;;  %v33429_v3 = vld [vmem:[%s34346_s3 + $0x40] sm:$0xff]  }
 0xc23   : > { %v33416_v60 = vadd.f32 %v23972_v43, %v36384_v44  ;;  %v14202_v31 = vpop.f32.mrb[237].mxu0  ;;  %24078 = vmatprep.mubr.msk.bf16.mxu1 %vm15331_vm4, %v36385_v42  ;;  %24111 = vmatpush3.bf16.msra.mxu1 %v33250_v39  ;;  %v36390_v43 = vld [vmem:[#allocation230_spill] sm:$0xff]  ;;  %v14770_v42 = vadd.f32 %v33280_v59, %v24578_v26 }
 0xc24   : > { %v33422_v49 = vadd.f32 %v14202_v31, %v36386_v0  ;;  %v23973_v4 = vpop.f32.mrb[238].mxu0  ;;  %26691 = vmatprep.subr.msk.bf16.mxu1 %vm15386_vm3, %v26752_v6  ;;  %v14767_v6 = vadd.f32 %v33280_v59, %v24577_v14 }
 0xc25   : > { %v33432_v36 = vadd.f32 %v23973_v4, %v36387_v20  ;;  %v14205_v5 = vpop.f32.mrb[239].mxu0  ;;  %v36391_v4 = vld [vmem:[#allocation379_spill] sm:$0xff]  ;;  %v15026_v26 = vmax.f32 %v14770_v42, 0.0 }
 0xc26   : > { %v33435_v15 = vadd.f32 %v14205_v5, %v36388_v11  ;;  %v36392_v11 = vld [vmem:[#allocation380_spill] sm:$0xff]  ;;  %v15023_v12 = vmax.f32 %v14767_v6, 0.0 }
 0xc27   : > { %24113 = vmatpush3.bf16.msra.mxu1 %v16087_v24 }
 0xc28   : > { %24150 = vmatprep.subr.bf16.mxu1 %v33429_v3 }
 0xc2a   : > { %v23976_v39 = vpop.f32.mrb[240].mxu0  ;;  %24079 = vmatmul.mubr.msk.bf16.gmra.mrb[4].mxu1 %vm15331_vm4, %v32622_v18 }
 0xc2b   : > { %v24592_v17 = vadd.f32 %v23976_v39, %v36389_v51  ;;  %v14218_v45 = vpop.f32.mrb[241].mxu0  ;;  %24082 = vmatprep.mubr.msk.bf16.mxu1 %vm15331_vm4, %v32643_v52  ;;  %v15025_v51 = vmax.f32 %v14769_v8, 0.0 }
 0xc2c   : > { %v24593_v44 = vadd.f32 %v14218_v45, %v36390_v43  ;;  %v23977_v31 = vpop.f32.mrb[242].mxu0 }
 0xc2d   : > { %v14785_v0 = vadd.f32 %v33280_v59, %v24592_v17  ;;  %v24594_v24 = vadd.f32 %v23977_v31, %v36391_v4  ;;  %v14221_v20 = vpop.f32.mrb[243].mxu0 }
 0xc2e   : > { %v14783_v5 = vadd.f32 %v33280_v59, %v24593_v44  ;;  %v24595_v39 = vadd.f32 %v14221_v20, %v36392_v11  ;;  %v36393_v44 = vld [vmem:[#allocation231_spill] sm:$0xff]  ;;  %v36395_v11 = vld [vmem:[#allocation381_spill] sm:$0xff] }
 0xc2f   : > { %v15041_v23 = vmax.f32 %v14785_v0, 0.0  ;;  %v14786_v14 = vadd.f32 %v33280_v59, %v24594_v24 }
 0xc30   : > { %v15039_v45 = vmax.f32 %v14783_v5, 0.0  ;;  %v14784_v43 = vadd.f32 %v33280_v59, %v24595_v39 }
 0xc31   : > { %v15169_v54 = vmax.f32 %v15025_v51, %v15041_v23  ;;  %v15042_v17 = vmax.f32 %v14786_v14, 0.0  ;;  %v14771_v23 = vadd.f32 %v33280_v59, %v33386_v7  ;;  %v14772_v51 = vadd.f32 %v33280_v59, %v33392_v38 }
 0xc32   : > { %v15167_v31 = vmax.f32 %v15023_v12, %v15039_v45  ;;  %v15040_v4 = vmax.f32 %v14784_v43, 0.0  ;;  %v23980_v22 = vpop.f32.mrb[244].mxu0  ;;  %24083 = vmatmul.mubr.msk.bf16.gmra.mrb[8].mxu1 %vm15331_vm4, %v32660_v50  ;;  %v36394_v12 = vld [vmem:[#allocation232_spill] sm:$0xff]  ;;  %v15029_v43 = vmax.f32 %v14773_v55, 0.0  ;;  %v14777_v55 = vadd.f32 %v33280_v59, %v33397_v13 }
 0xc33   : > { %v15170_v8 = vmax.f32 %v15026_v26, %v15042_v17  ;;  %v24596_v0 = vadd.f32 %v23980_v22, %v36393_v44  ;;  %v14234_v6 = vpop.f32.mrb[245].mxu0  ;;  %24086 = vmatprep.mubr.msk.bf16.mxu1 %vm15331_vm4, %v32760_v48  ;;  %v15027_v63 = vmax.f32 %v14771_v23, 0.0  ;;  %v15030_v44 = vmax.f32 %v14774_v40, 0.0 }
 0xc34   : > { %v15168_v42 = vmax.f32 %v15024_v19, %v15040_v4  ;;  %v24597_v24 = vadd.f32 %v14234_v6, %v36394_v12  ;;  %v23981_v20 = vpop.f32.mrb[246].mxu0  ;;  %v36396_v19 = vld [vmem:[#allocation382_spill] sm:$0xff]  ;;  %v15028_v38 = vmax.f32 %v14772_v51, 0.0  ;;  %v14775_v23 = vadd.f32 %v33280_v59, %v33402_v62 }
 0xc35   : > { %v33466_v5 = vmax.f32 %v15169_v54, %v15170_v8  ;;  %v14789_v41 = vadd.f32 %v33280_v59, %v24596_v0  ;;  %v24598_v22 = vadd.f32 %v23981_v20, %v36395_v11  ;;  %v14237_v39 = vpop.f32.mrb[247].mxu0  ;;  %v36397_v20 = vld [vmem:[#allocation233_spill] sm:$0xff] }
 0xc36   : > { %v15239_v14 = vmax.f32 %v15167_v31, %v15168_v42  ;;  %v14787_v7 = vadd.f32 %v33280_v59, %v24597_v24  ;;  %v24599_v45 = vadd.f32 %v14237_v39, %v36396_v19  ;;  %v36399_v19 = vld [vmem:[#allocation383_spill] sm:$0xff] }
 0xc37   : > { %v15045_v26 = vmax.f32 %v14789_v41, 0.0  ;;  %v14790_v17 = vadd.f32 %v33280_v59, %v24598_v22  ;;  %v36398_v22 = vld [vmem:[#allocation234_spill] sm:$0xff] }
 0xc38   : > { %v33476_v54 = vpack.c.bf16 %v33466_v5, %v15239_v14  ;;  %v15043_v4 = vmax.f32 %v14787_v7, 0.0  ;;  %v14788_v8 = vadd.f32 %v33280_v59, %v24599_v45  ;;  %v14778_v14 = vadd.f32 %v33280_v59, %v33405_v21 }
 0xc39   : > { %v15173_v0 = vmax.f32 %v15029_v43, %v15045_v26  ;;  %v15046_v6 = vmax.f32 %v14790_v17, 0.0  ;;  %v14776_v43 = vadd.f32 %v33280_v59, %v33408_v30 }
 0xc3a   : > { %v15171_v31 = vmax.f32 %v15027_v63, %v15043_v4  ;;  %v15044_v42 = vmax.f32 %v14788_v8, 0.0  ;;  %v23984_v12 = vpop.f32.mrb[248].mxu0  ;;  %24087 = vmatmul.mubr.msk.bf16.gmra.mrb[12].mxu1 %vm15331_vm4, %v32786_v47  ;;  %v36400_v63 = vld [vmem:[#allocation384_spill] sm:$0xff]  ;;  %v15033_v8 = vmax.f32 %v14777_v55, 0.0 }
 0xc3b   : > { %v15174_v24 = vmax.f32 %v15030_v44, %v15046_v6  ;;  %v24600_v41 = vadd.f32 %v23984_v12, %v36397_v20  ;;  %v14250_v11 = vpop.f32.mrb[249].mxu0  ;;  %24090 = vmatprep.mubr.msk.bf16.mxu1 %vm15331_vm4, %v32805_v33  ;;  %v15031_v44 = vmax.f32 %v14775_v23, 0.0  ;;  %v15032_v20 = vmax.f32 %v14776_v43, 0.0 }
 0xc3c   : > { %v15172_v40 = vmax.f32 %v15028_v38, %v15044_v42  ;;  %v24601_v39 = vadd.f32 %v14250_v11, %v36398_v22  ;;  %v23985_v51 = vpop.f32.mrb[250].mxu0  ;;  %v14781_v11 = vadd.f32 %v33280_v59, %v33416_v60  ;;  %v14782_v43 = vadd.f32 %v33280_v59, %v33432_v36 }
 0xc3d   : > { %v33491_v7 = vmax.f32 %v15173_v0, %v15174_v24  ;;  %v14793_v13 = vadd.f32 %v33280_v59, %v24600_v41  ;;  %v24602_v62 = vadd.f32 %v23985_v51, %v36399_v19  ;;  %v14253_v45 = vpop.f32.mrb[251].mxu0  ;;  %v36402_v19 = vld [vmem:[#allocation236_spill] sm:$0xff] }
 0xc3e   : > { %v33497_v26 = vmax.f32 %v15171_v31, %v15172_v40  ;;  %v14791_v17 = vadd.f32 %v33280_v59, %v24601_v39  ;;  %v24603_v4 = vadd.f32 %v14253_v45, %v36400_v63  ;;  %v15034_v31 = vmax.f32 %v14778_v14, 0.0  ;;  %v36401_v39 = vld [vmem:[#allocation235_spill] sm:$0xff]  ;;  %v36403_v63 = vld [vmem:[#allocation385_spill] sm:$0xff] }
 0xc3f   : > { %v15049_v6 = vmax.f32 %v14793_v13, 0.0  ;;  %v14794_v21 = vadd.f32 %v33280_v59, %v24602_v62  ;;  %v14779_v40 = vadd.f32 %v33280_v59, %v33422_v49 }
 0xc40   : > { %v17011_v0 = vpack.c.bf16 %v33497_v26, %v33466_v5  ;;  %v15047_v38 = vmax.f32 %v14791_v17, 0.0  ;;  %v14792_v42 = vadd.f32 %v33280_v59, %v24603_v4  ;;  %v33507_v30 = vpack.c.bf16 %v33491_v7, %v33497_v26  ;;  %v26766_v5 = vld [vmem:[%s34348_s5 + $0x70] ss:$8 sps:$4 sm:$0xff]  }
 0xc41   : > { %v15177_v12 = vmax.f32 %v15033_v8, %v15049_v6  ;;  %v15050_v24 = vmax.f32 %v14794_v21, 0.0  ;;  %v14780_v8 = vadd.f32 %v33280_v59, %v33435_v15  ;;  %v36404_v21 = vld [vmem:[#allocation386_spill] sm:$0xff] }
 0xc42   : > { %v15175_v41 = vmax.f32 %v15031_v44, %v15047_v38  ;;  %v15048_v55 = vmax.f32 %v14792_v42, 0.0  ;;  %v23988_v23 = vpop.f32.mrb[252].mxu0  ;;  %24091 = vmatmul.mubr.msk.bf16.gmra.mrb[16].mxu1 %vm15331_vm4, %v32917_v34  ;;  %v15037_v42 = vmax.f32 %v14781_v11, 0.0 }
 0xc43   : > { %v15178_v22 = vmax.f32 %v15034_v31, %v15050_v24  ;;  %v24604_v51 = vadd.f32 %v23988_v23, %v36401_v39  ;;  %v14266_v13 = vpop.f32.mrb[253].mxu0  ;;  %24094 = vmatprep.mubr.msk.bf16.mxu1 %vm15331_vm4, %v32948_v32  ;;  %v15035_v31 = vmax.f32 %v14779_v40, 0.0  ;;  %v15036_v39 = vmax.f32 %v14780_v8, 0.0  ;;  %v36409_v8 = vld [vmem:[#allocation242_spill] sm:$0xff] }
 0xc44   : > { %v15176_v14 = vmax.f32 %v15032_v20, %v15048_v55  ;;  %v24605_v62 = vadd.f32 %v14266_v13, %v36402_v19  ;;  %v23989_v45 = vpop.f32.mrb[254].mxu0 }
 0xc45   : > { %v33521_v17 = vmax.f32 %v15177_v12, %v15178_v22  ;;  %v14797_v60 = vadd.f32 %v33280_v59, %v24604_v51  ;;  %v24606_v49 = vadd.f32 %v23989_v45, %v36403_v63  ;;  %v14269_v4 = vpop.f32.mrb[255].mxu0  ;;  %v26754_v45 = vld [vmem:[%s34346_s3 + $0x48] sm:$0x7f]  }
 0xc46   : > { %v33527_v44 = vmax.f32 %v15175_v41, %v15176_v14  ;;  %v14795_v6 = vadd.f32 %v33280_v59, %v24605_v62  ;;  %v24607_v38 = vadd.f32 %v14269_v4, %v36404_v21  ;;  %v15038_v41 = vmax.f32 %v14782_v43, 0.0  ;;  %v36407_v4 = vld [vmem:[#allocation240_spill] sm:$0xff]  ;;  %v36411_v21 = vld [vmem:[#allocation245_spill] sm:$0xff] }
 0xc47   : > { %v15053_v24 = vmax.f32 %v14797_v60, 0.0  ;;  %v14798_v36 = vadd.f32 %v33280_v59, %v24606_v49  ;;  %v16326_v43 = vsel %vm15386_vm3, %v26754_v45, 0  ;;  %v36405_v60 = vld [vmem:[#allocation238_spill] sm:$0xff]  ;;  %v26757_v49 = vld [vmem:[%s34346_s3 + $0x60] sm:$0xff]  }
 0xc48   : > { %v33534_v12 = vpack.c.bf16 %v33521_v17, %v33527_v44  ;;  %v15051_v20 = vmax.f32 %v14795_v6, 0.0  ;;  %v14796_v55 = vadd.f32 %v33280_v59, %v24607_v38  ;;  %v17012_v15 = vpack.c.bf16 %v33527_v44, %v33491_v7  ;;  %v36410_v6 = vld [vmem:[#allocation244_spill] sm:$0xff]  ;;  %v36412_v38 = vld [vmem:[#allocation209_spill] sm:$0xff] }
 0xc49   : > { %v15181_v23 = vmax.f32 %v15037_v42, %v15053_v24  ;;  %v15054_v22 = vmax.f32 %v14798_v36, 0.0  ;;  %v36413_v42 = vld [vmem:[#allocation213_spill] sm:$0xff]  ;;  %v36415_v24 = vld [vmem:[#allocation215_spill] sm:$0xff] }
 0xc4a   : > { %v15179_v51 = vmax.f32 %v15035_v31, %v15051_v20  ;;  %v15052_v11 = vmax.f32 %v14796_v55, 0.0  ;;  %24095 = vmatmul.mubr.msk.bf16.gmra.mrb[20].mxu1 %vm15331_vm4, %v32965_v1  ;;  %v36414_v31 = vld [vmem:[#allocation214_spill] sm:$0xff]  ;;  %v36416_v36 = vld [vmem:[#allocation217_spill] sm:$0xff]  ;;  %v36417_v20 = vld [vmem:[#allocation155_spill] sm:$0xff] }
 0xc4b   : > { %v15182_v40 = vmax.f32 %v15038_v41, %v15054_v22  ;;  %24098 = vmatprep.mubr.msk.bf16.mxu1 %vm15331_vm4, %v33070_v61  ;;  %v36418_v55 = vld [vmem:[#allocation219_spill] sm:$0xff]  ;;  %v26758_v22 = vld [vmem:[%s34346_s3 + $0x68] sm:$0x7f]   ;;  %v33865_v7 = vld [vmem:[%s34347_s4] ss:$0 sm:$0xff] }
 0xc4c   : > { %v15180_v13 = vmax.f32 %v15036_v39, %v15052_v11  ;;  %v36419_v41 = vld [vmem:[#allocation11_spill] sm:$0xff]  ;;  %v16796_v39 = vsel %vm15386_vm3, %v26758_v22, 0  ;;  %v26761_v11 = vld [vmem:[%s34346_s3 + $0x80] sm:$0xff]  }
 0xc4d   : > { %v15246_v14 = vmax.f32 %v15181_v23, %v15182_v40  ;;  %v36420_v23 = vld [vmem:[#allocation16_spill] sm:$0xff] }
 0xc4e   : > { %v33543_v19 = vmax.f32 %v15179_v51, %v15180_v13  ;;  %v26759_v51 = vld [vmem:[%s34346_s3 + $0x70] sm:$0xff]  }
 0xc50   : > { %v17013_v59 = vpack.c.bf16 %v33543_v19, %v33521_v17  ;;  %v33548_v62 = vpack.c.bf16 %v15246_v14, %v33543_v19 }
 0xc52   : > { %24099 = vmatmul.mubr.msk.bf16.gmra.mrb[24].mxu1 %vm15331_vm4, %v33092_v16 }
 0xc53   : > { %24102 = vmatprep.mubr.msk.bf16.mxu1 %vm15331_vm4, %v33105_v53 }
 0xc5a   : > { %24103 = vmatmul.mubr.msk.bf16.gmra.mrb[28].mxu1 %vm15331_vm4, %v33178_v37 }
 0xc5b   : > { %24106 = vmatprep.mubr.msk.bf16.mxu1 %vm15331_vm4, %v33200_v25 }
 0xc62   : > { %24107 = vmatmul.mubr.msk.bf16.gmra.mrb[32].mxu1 %vm15331_vm4, %v33213_v58 }
 0xc63   : > { %24114 = vmatprep.mubr.msk.bf16.mxu1 %vm15331_vm4, %v32595_v27  ;;  %v26755_v27 = vld [vmem:[%s34346_s3 + $0x50] sm:$0xff]  }
 0xc6a   : > { %24115 = vmatmul.mubr.msk.bf16.vlgmr.msra.gmra.mrb[0].mxu1 %vm15331_vm4, %v32622_v18 }
 0xc6b   : > { %24118 = vmatprep.mubr.msk.bf16.mxu1 %vm15331_vm4, %v32643_v52  ;;  %24151 = vmatpush3.bf16.msra.mxu1 %v33429_v3  ;;  %v26756_v3 = vld [vmem:[%s34346_s3 + $0x58] sm:$0x7f]  }
 0xc6c   : > { %26692 = vmatprep.subr.msk.bf16.mxu1 %vm15386_vm3, %v26754_v45  ;;  %v16557_v63 = vsel %vm15386_vm3, %v26756_v3, 0 }
 0xc6f   : > { %24153 = vmatpush3.bf16.msra.mxu1 %v16326_v43 }
 0xc70   : > { %24190 = vmatprep.subr.bf16.mxu1 %v26755_v27 }
 0xc72   : > { %24119 = vmatmul.mubr.msk.bf16.gmra.mrb[4].mxu1 %vm15331_vm4, %v32741_v56 }
 0xc73   : > { %24122 = vmatprep.mubr.msk.bf16.mxu1 %vm15331_vm4, %v32760_v48 }
 0xc7a   : > { %24123 = vmatmul.mubr.msk.bf16.gmra.mrb[8].mxu1 %vm15331_vm4, %v32786_v47 }
 0xc7b   : > { %24126 = vmatprep.mubr.msk.bf16.mxu1 %vm15331_vm4, %v32895_v35 }
 0xc82   : > { %24127 = vmatmul.mubr.msk.bf16.gmra.mrb[12].mxu1 %vm15331_vm4, %v32917_v34 }
 0xc83   : > { %24130 = vmatprep.mubr.msk.bf16.mxu1 %vm15331_vm4, %v32948_v32 }
 0xc8a   : > { %24131 = vmatmul.mubr.msk.bf16.gmra.mrb[16].mxu1 %vm15331_vm4, %v33053_v10 }
 0xc8b   : > { %24134 = vmatprep.mubr.msk.bf16.mxu1 %vm15331_vm4, %v33070_v61 }
 0xc92   : > { %24135 = vmatmul.mubr.msk.bf16.gmra.mrb[20].mxu1 %vm15331_vm4, %v33092_v16 }
 0xc93   : > { %24138 = vmatprep.mubr.msk.bf16.mxu1 %vm15331_vm4, %v33160_v28 }
 0xc9a   : > { %24139 = vmatmul.mubr.msk.bf16.gmra.mrb[24].mxu1 %vm15331_vm4, %v33178_v37 }
 0xc9b   : > { %24142 = vmatprep.mubr.msk.bf16.mxu1 %vm15331_vm4, %v33200_v25 }
 0xca2   : > { %24143 = vmatmul.mubr.msk.bf16.gmra.mrb[28].mxu1 %vm15331_vm4, %v33315_v46 }
 0xca3   : > { %24146 = vmatprep.mubr.msk.bf16.mxu1 %vm15331_vm4, %v33340_v9 }
 0xcaa   : > { %24147 = vmatmul.mubr.msk.bf16.gmra.mrb[32].mxu1 %vm15331_vm4, %v33361_v57 }
 0xcab   : > { %24154 = vmatprep.mubr.msk.bf16.mxu1 %vm15331_vm4, %v32617_v2  ;;  %v36406_v2 = vld [vmem:[#allocation239_spill] sm:$0xff] }
 0xcb2   : > { %24155 = vmatmul.mubr.msk.bf16.vlgmr.msra.gmra.mrb[0].mxu1 %vm15331_vm4, %v32646_v29  ;;  %v36408_v29 = vld [vmem:[#allocation241_spill] sm:$0xff] }
 0xcb3   : > { %24158 = vmatprep.mubr.msk.bf16.mxu1 %vm15331_vm4, %v36405_v60  ;;  %24191 = vmatpush3.bf16.msra.mxu1 %v26755_v27 }
 0xcb4   : > { %26693 = vmatprep.subr.msk.bf16.mxu1 %vm15386_vm3, %v26756_v3 }
 0xcb7   : > { %24193 = vmatpush3.bf16.msra.mxu1 %v16557_v63 }
 0xcb8   : > { %24230 = vmatprep.subr.bf16.mxu1 %v26757_v49 }
 0xcba   : > { %24159 = vmatmul.mubr.msk.bf16.gmra.mrb[4].mxu1 %vm15331_vm4, %v36406_v2 }
 0xcbb   : > { %24162 = vmatprep.mubr.msk.bf16.mxu1 %vm15331_vm4, %v36407_v4 }
 0xcc2   : > { %24163 = vmatmul.mubr.msk.bf16.gmra.mrb[8].mxu1 %vm15331_vm4, %v36408_v29 }
 0xcc3   : > { %24166 = vmatprep.mubr.msk.bf16.mxu1 %vm15331_vm4, %v36409_v8 }
 0xcca   : > { %24167 = vmatmul.mubr.msk.bf16.gmra.mrb[12].mxu1 %vm15331_vm4, %v36410_v6 }
 0xccb   : > { %24170 = vmatprep.mubr.msk.bf16.mxu1 %vm15331_vm4, %v36411_v21 }
 0xcd2   : > { %24171 = vmatmul.mubr.msk.bf16.gmra.mrb[16].mxu1 %vm15331_vm4, %v36412_v38 }
 0xcd3   : > { %24174 = vmatprep.mubr.msk.bf16.mxu1 %vm15331_vm4, %v36413_v42 }
 0xcda   : > { %24175 = vmatmul.mubr.msk.bf16.gmra.mrb[20].mxu1 %vm15331_vm4, %v36414_v31 }
 0xcdb   : > { %24178 = vmatprep.mubr.msk.bf16.mxu1 %vm15331_vm4, %v36415_v24 }
 0xce2   : > { %24179 = vmatmul.mubr.msk.bf16.gmra.mrb[24].mxu1 %vm15331_vm4, %v36416_v36 }
 0xce3   : > { %24182 = vmatprep.mubr.msk.bf16.mxu1 %vm15331_vm4, %v36417_v20 }
 0xcea   : > { %24183 = vmatmul.mubr.msk.bf16.gmra.mrb[28].mxu1 %vm15331_vm4, %v36418_v55 }
 0xceb   : > { %24186 = vmatprep.mubr.msk.bf16.mxu1 %vm15331_vm4, %v36419_v41 }
 0xcf2   : > { %24187 = vmatmul.mubr.msk.bf16.gmra.mrb[32].mxu1 %vm15331_vm4, %v36420_v23 }
 0xcf3   : > { %24194 = vmatprep.mubr.msk.bf16.mxu1 %vm15331_vm4, %v32622_v18  ;;  %v36421_v18 = vld [vmem:[#allocation17_spill] sm:$0xff] }
 0xcfa   : > { %24195 = vmatmul.mubr.msk.bf16.vlgmr.msra.gmra.mrb[0].mxu1 %vm15331_vm4, %v32643_v52  ;;  %v26760_v52 = vld [vmem:[%s34346_s3 + $0x78] sm:$0x7f]  }
 0xcfb   : > { %24198 = vmatprep.mubr.msk.bf16.mxu1 %vm15331_vm4, %v32660_v50  ;;  %24231 = vmatpush3.bf16.msra.mxu1 %v26757_v49  ;;  %v17035_v50 = vsel %vm15386_vm3, %v26760_v52, 0 }
 0xcfc   : > { %26694 = vmatprep.subr.msk.bf16.mxu1 %vm15386_vm3, %v26758_v22 }
 0xcff   : > { %24233 = vmatpush3.bf16.msra.mxu1 %v16796_v39 }
 0xd00   : > { %24270 = vmatprep.subr.bf16.mxu1 %v26759_v51 }
 0xd02   : > { %24199 = vmatmul.mubr.msk.bf16.gmra.mrb[4].mxu1 %vm15331_vm4, %v32760_v48 }
 0xd03   : > { %24202 = vmatprep.mubr.msk.bf16.mxu1 %vm15331_vm4, %v32786_v47 }
 0xd0a   : > { %24203 = vmatmul.mubr.msk.bf16.gmra.mrb[8].mxu1 %vm15331_vm4, %v32805_v33 }
 0xd0b   : > { %24206 = vmatprep.mubr.msk.bf16.mxu1 %vm15331_vm4, %v32917_v34 }
 0xd12   : > { %24207 = vmatmul.mubr.msk.bf16.gmra.mrb[12].mxu1 %vm15331_vm4, %v32948_v32 }
 0xd13   : > { %24210 = vmatprep.mubr.msk.bf16.mxu1 %vm15331_vm4, %v32965_v1 }
 0xd1a   : > { %24211 = vmatmul.mubr.msk.bf16.gmra.mrb[16].mxu1 %vm15331_vm4, %v33070_v61 }
 0xd1b   : > { %24214 = vmatprep.mubr.msk.bf16.mxu1 %vm15331_vm4, %v33092_v16 }
 0xd22   : > { %24215 = vmatmul.mubr.msk.bf16.gmra.mrb[20].mxu1 %vm15331_vm4, %v33105_v53 }
 0xd23   : > { %24218 = vmatprep.mubr.msk.bf16.mxu1 %vm15331_vm4, %v33178_v37 }
 0xd2a   : > { %24219 = vmatmul.mubr.msk.bf16.gmra.mrb[24].mxu1 %vm15331_vm4, %v33200_v25 }
 0xd2b   : > { %24222 = vmatprep.mubr.msk.bf16.mxu1 %vm15331_vm4, %v33213_v58 }
 0xd32   : > { %24223 = vmatmul.mubr.msk.bf16.gmra.mrb[28].mxu1 %vm15331_vm4, %v33340_v9 }
 0xd33   : > { %24226 = vmatprep.mubr.msk.bf16.mxu1 %vm15331_vm4, %v33361_v57 }
 0xd3a   : > { %24227 = vmatmul.mubr.msk.bf16.gmra.mrb[32].mxu1 %vm15331_vm4, %v36421_v18 }
 0xd3b   : > { %24234 = vmatprep.mubr.msk.bf16.mxu1 %vm15331_vm4, %v32741_v56  ;;  %v26762_v56 = vld [vmem:[%s34346_s3 + $0x88] sm:$0x7f]  }
 0xd42   : > { %24235 = vmatmul.mubr.msk.bf16.vlgmr.msra.gmra.mrb[0].mxu1 %vm15331_vm4, %v32760_v48 }
 0xd43   : > { %24238 = vmatprep.mubr.msk.bf16.mxu1 %vm15331_vm4, %v32786_v47  ;;  %24271 = vmatpush3.bf16.msra.mxu1 %v26759_v51 }
 0xd44   : > { %26695 = vmatprep.subr.msk.bf16.mxu1 %vm15386_vm3, %v26760_v52 }
 0xd47   : > { %24273 = vmatpush3.bf16.msra.mxu1 %v17035_v50 }
 0xd48   : > { %24310 = vmatprep.subr.bf16.mxu1 %v26761_v11 }
 0xd4a   : > { %24239 = vmatmul.mubr.msk.bf16.gmra.mrb[4].mxu1 %vm15331_vm4, %v32895_v35  ;;  %v17266_v35 = vsel %vm15386_vm3, %v26762_v56, 0 }
 0xd4b   : > { %24242 = vmatprep.mubr.msk.bf16.mxu1 %vm15331_vm4, %v32917_v34 }
 0xd52   : > { %24243 = vmatmul.mubr.msk.bf16.gmra.mrb[8].mxu1 %vm15331_vm4, %v32948_v32 }
 0xd53   : > { %24246 = vmatprep.mubr.msk.bf16.mxu1 %vm15331_vm4, %v33053_v10  ;;  %v26765_v10 = vld [vmem:[%s34348_s5 + $0x64] ss:$8 sps:$4 sm:$0xff]  }
 0xd5a   : > { %24247 = vmatmul.mubr.msk.bf16.gmra.mrb[12].mxu1 %vm15331_vm4, %v33070_v61 }
 0xd5b   : > { %24250 = vmatprep.mubr.msk.bf16.mxu1 %vm15331_vm4, %v33092_v16 }
 0xd62   : > { %24251 = vmatmul.mubr.msk.bf16.gmra.mrb[16].mxu1 %vm15331_vm4, %v33160_v28  ;;  %v26763_v28 = vld [vmem:[%s34348_s5 + $0x60] ss:$8 sps:$4 sm:$0xff]  }
 0xd63   : > { %24254 = vmatprep.mubr.msk.bf16.mxu1 %vm15331_vm4, %v33178_v37 }
 0xd6a   : > { %24255 = vmatmul.mubr.msk.bf16.gmra.mrb[20].mxu1 %vm15331_vm4, %v33200_v25 }
 0xd6b   : > { %24258 = vmatprep.mubr.msk.bf16.mxu1 %vm15331_vm4, %v33315_v46  ;;  %v26768_v46 = vld [vmem:[%s34348_s5 + $0x74] ss:$8 sps:$4 sm:$0xff]  }
 0xd72   : > { %24259 = vmatmul.mubr.msk.bf16.gmra.mrb[24].mxu1 %vm15331_vm4, %v33340_v9 }
 0xd73   : > { %24262 = vmatprep.mubr.msk.bf16.mxu1 %vm15331_vm4, %v33361_v57 }
 0xd7a   : > { %24263 = vmatmul.mubr.msk.bf16.gmra.mrb[28].mxu1 %vm15331_vm4, %v33476_v54  ;;  %v26769_v54 = vld [vmem:[%s34348_s5 + $0x80] ss:$8 sps:$4 sm:$0xff]  }
 0xd7b   : > { %24266 = vmatprep.mubr.msk.bf16.mxu1 %vm15331_vm4, %v33507_v30 }
 0xd82   : > { %24267 = vmatmul.mubr.msk.bf16.gmra.mrb[32].mxu1 %vm15331_vm4, %v33534_v12 }
 0xd83   : > { %24274 = vmatprep.mubr.msk.bf16.mxu1 %vm15331_vm4, %v36406_v2 }
 0xd8a   : > { %24275 = vmatmul.mubr.msk.bf16.vlgmr.msra.gmra.mrb[0].mxu1 %vm15331_vm4, %v36407_v4 }
 0xd8b   : > { %24278 = vmatprep.mubr.msk.bf16.mxu1 %vm15331_vm4, %v36408_v29  ;;  %24311 = vmatpush3.bf16.msra.mxu1 %v26761_v11 }
 0xd8c   : > { %26696 = vmatprep.subr.msk.bf16.mxu1 %vm15386_vm3, %v26762_v56 }
 0xd8f   : > { %24313 = vmatpush3.bf16.msra.mxu1 %v17266_v35 }
 0xd90   : > { %17765 = vmatprep.subr.bf16.mxu1 %v26765_v10 }
 0xd92   : > { %24279 = vmatmul.mubr.msk.bf16.gmra.mrb[4].mxu1 %vm15331_vm4, %v36409_v8 }
 0xd93   : > { %24282 = vmatprep.mubr.msk.bf16.mxu1 %vm15331_vm4, %v36410_v6 }
 0xd9a   : > { %24283 = vmatmul.mubr.msk.bf16.gmra.mrb[8].mxu1 %vm15331_vm4, %v36411_v21 }
 0xd9b   : > { %24286 = vmatprep.mubr.msk.bf16.mxu1 %vm15331_vm4, %v36412_v38 }
 0xda2   : > { %24287 = vmatmul.mubr.msk.bf16.gmra.mrb[12].mxu1 %vm15331_vm4, %v36413_v42 }
 0xda3   : > { %24290 = vmatprep.mubr.msk.bf16.mxu1 %vm15331_vm4, %v36414_v31 }
 0xdaa   : > { %24291 = vmatmul.mubr.msk.bf16.gmra.mrb[16].mxu1 %vm15331_vm4, %v36415_v24 }
 0xdab   : > { %24294 = vmatprep.mubr.msk.bf16.mxu1 %vm15331_vm4, %v36416_v36 }
 0xdb2   : > { %24295 = vmatmul.mubr.msk.bf16.gmra.mrb[20].mxu1 %vm15331_vm4, %v36417_v20 }
 0xdb3   : > { %24298 = vmatprep.mubr.msk.bf16.mxu1 %vm15331_vm4, %v36418_v55 }
 0xdba   : > { %24299 = vmatmul.mubr.msk.bf16.gmra.mrb[24].mxu1 %vm15331_vm4, %v36419_v41 }
 0xdbb   : > { %24302 = vmatprep.mubr.msk.bf16.mxu1 %vm15331_vm4, %v36420_v23 }
 0xdc2   : > { %24303 = vmatmul.mubr.msk.bf16.gmra.mrb[28].mxu1 %vm15331_vm4, %v17011_v0 }
 0xdc3   : > { %24306 = vmatprep.mubr.msk.bf16.mxu1 %vm15331_vm4, %v17012_v15 }
 0xdca   : > { %24307 = vmatmul.mubr.msk.bf16.gmra.mrb[32].mxu1 %vm15331_vm4, %v17013_v59 }
 0xdcb   : > { %24314 = vmatprep.mubr.msk.bf16.mxu1 %vm15331_vm4, %v32760_v48  ;;  %v26771_v48 = vld [vmem:[%s34348_s5 + $0x84] ss:$8 sps:$4 sm:$0xff]  }
 0xdd2   : > { %24315 = vmatmul.mubr.msk.bf16.vlgmr.msra.gmra.mrb[0].mxu1 %vm15331_vm4, %v32786_v47  ;;  %v26774_v47 = vld [vmem:[%s34348_s5 + $0x94] ss:$8 sps:$4 sm:$0xff]  }
 0xdd3   : > { %24318 = vmatprep.mubr.msk.bf16.mxu1 %vm15331_vm4, %v32805_v33  ;;  %17766 = vmatpush1.bf16.msra.mxu1 %v26763_v28  ;;  %v26772_v33 = vld [vmem:[%s34348_s5 + $0x90] ss:$8 sps:$4 sm:$0xff]   ;;  %v26781_v28 = vld [vmem:[%s34348_s5] ss:$8 sps:$4 sm:$0xff]  }
 0xdd4   : > { %17767 = vmatprep.subr.bf16.mxu1 %v26768_v46 }
 0xdd7   : > { %17768 = vmatpush1.bf16.msra.mxu1 %v26766_v5  ;;  %v26786_v5 = vld [vmem:[%s34348_s5 + $0x14] ss:$8 sps:$4 sm:$0xff]  }
 0xdd8   : > { %17769 = vmatprep.subr.bf16.mxu1 %v26771_v48 }
 0xdda   : > { %24319 = vmatmul.mubr.msk.bf16.gmra.mrb[4].mxu1 %vm15331_vm4, %v32917_v34  ;;  %v26775_v34 = vld [vmem:[%s34348_s5 + $0xa0] ss:$8 sps:$4 sm:$0xff]  }
 0xddb   : > { %24322 = vmatprep.mubr.msk.bf16.mxu1 %vm15331_vm4, %v32948_v32  ;;  %17770 = vmatpush1.bf16.msra.mxu1 %v26769_v54  ;;  %v26777_v32 = vld [vmem:[%s34348_s5 + $0xa4] ss:$8 sps:$4 sm:$0xff]   ;;  %v26784_v54 = vld [vmem:[%s34348_s5 + $0x10] ss:$8 sps:$4 sm:$0xff]  }
 0xddc   : > { %17771 = vmatprep.subr.bf16.mxu1 %v26774_v47 }
 0xddf   : > { %17772 = vmatpush1.bf16.msra.mxu1 %v26772_v33  ;;  %v26789_v33 = vld [vmem:[%s34348_s5 + $0x24] ss:$8 sps:$4 sm:$0xff]  }
 0xde0   : > { %17773 = vmatprep.subr.bf16.mxu1 %v26777_v32 }
 0xde2   : > { %24323 = vmatmul.mubr.msk.bf16.gmra.mrb[8].mxu1 %vm15331_vm4, %v32965_v1  ;;  %v26778_v1 = vld [vmem:[%s34348_s5 + $0xb4] ss:$8 sps:$4 sm:$0x1f]  }
 0xde3   : > { %24326 = vmatprep.mubr.msk.bf16.mxu1 %vm15331_vm4, %v33070_v61  ;;  %17774 = vmatpush1.bf16.msra.mxu1 %v26775_v34  ;;  %v26780_v61 = vld [vmem:[%s34348_s5 + $0xb0] ss:$8 sps:$4 sm:$0x1f]  }
 0xde4   : > { %20203 = vmatprep.subr.msk.bf16.mxu1 %vm17758_vm5, %v26778_v1 }
 0xdea   : > { %24327 = vmatmul.mubr.msk.bf16.gmra.mrb[12].mxu1 %vm15331_vm4, %v33092_v16  ;;  %v17760_v16 = vsel %vm17758_vm5, %v26780_v61, 0 }
 0xdeb   : > { %24330 = vmatprep.mubr.msk.bf16.mxu1 %vm15331_vm4, %v33105_v53  ;;  %17776 = vmatpush1.bf16.msra.mxu1 %v17760_v16  ;;  %v26783_v53 = vld [vmem:[%s34348_s5 + $0x4] ss:$8 sps:$4 sm:$0xff]  }
 0xdec   : > { %17873 = vmatprep.subr.bf16.mxu1 %v26783_v53 }
 0xdf2   : > { %24331 = vmatmul.mubr.msk.bf16.gmra.mrb[16].mxu1 %vm15331_vm4, %v33178_v37  ;;  %v27057_v37 = vmov 0  }
 0xdf3   : > { %24334 = vmatprep.mubr.msk.bf16.mxu1 %vm15331_vm4, %v33200_v25 }
 0xdfa   : > { %24335 = vmatmul.mubr.msk.bf16.gmra.mrb[20].mxu1 %vm15331_vm4, %v33213_v58 }
 0xdfb   : > { %24338 = vmatprep.mubr.msk.bf16.mxu1 %vm15331_vm4, %v33340_v9 }
 0xe02   : > { %24339 = vmatmul.mubr.msk.bf16.gmra.mrb[24].mxu1 %vm15331_vm4, %v33361_v57 }
 0xe03   : > { %24342 = vmatprep.mubr.msk.bf16.mxu1 %vm15331_vm4, %v36421_v18 }
 0xe0a   : > { %24343 = vmatmul.mubr.msk.bf16.gmra.mrb[28].mxu1 %vm15331_vm4, %v33507_v30 }
 0xe0b   : > { %24346 = vmatprep.mubr.msk.bf16.mxu1 %vm15331_vm4, %v33534_v12 }
 0xe12   : > { %24347 = vmatmul.mubr.msk.bf16.gmra.mrb[32].mxu1 %vm15331_vm4, %v33548_v62 }
 0xe13   : > { %17797 = vmatprep.mubr.bf16.mxu1 %v27057_v37 }
 0xea5   : > { %v24316_v25 = vpop.f32.mrb[0].mxu1 }
 0xea6   : > { %v17302_v58 = vpop.f32.mrb[1].mxu1  ;;  %v17489_v27 = vadd.f32 %v24316_v25, %v33865_v7 }
 0xea7   : > { %v24317_v9 = vpop.f32.mrb[2].mxu1  ;;  %v17487_v26 = vadd.f32 %v33865_v7, %v17302_v58 }
 0xea8   : > { %v17305_v57 = vpop.f32.mrb[3].mxu1  ;;  %v17490_v4 = vadd.f32 %v24317_v9, %v33865_v7  ;;  %v17525_v31 = vmax.f32 %v17489_v27, 0.0  ;;  %v26787_v9 = vld [vmem:[%s34348_s5 + $0x20] ss:$8 sps:$4 sm:$0xff]  }
 0xea9   : > { %v17488_v30 = vadd.f32 %v33865_v7, %v17305_v57  ;;  %v17523_v15 = vmax.f32 %v17487_v26, 0.0  ;;  %v26792_v57 = vld [vmem:[%s34348_s5 + $0x34] ss:$8 sps:$4 sm:$0xff]  }
 0xeaa   : > { %v17526_v23 = vmax.f32 %v17490_v4, 0.0 }
 0xeab   : > { %v17524_v19 = vmax.f32 %v17488_v30, 0.0 }
 0xead   : > { %v24320_v0 = vpop.f32.mrb[4].mxu1 }
 0xeae   : > { %v17493_v17 = vadd.f32 %v24320_v0, %v33865_v7  ;;  %v17318_v44 = vpop.f32.mrb[5].mxu1 }
 0xeaf   : > { %v24321_v12 = vpop.f32.mrb[6].mxu1  ;;  %v17491_v45 = vadd.f32 %v33865_v7, %v17318_v44 }
 0xeb0   : > { %v17529_v40 = vmax.f32 %v17493_v17, 0.0  ;;  %v17494_v13 = vadd.f32 %v24321_v12, %v33865_v7  ;;  %v17321_v14 = vpop.f32.mrb[7].mxu1  ;;  %v26790_v12 = vld [vmem:[%s34348_s5 + $0x30] ss:$8 sps:$4 sm:$0xff]  }
 0xeb1   : > { %v17492_v63 = vadd.f32 %v33865_v7, %v17321_v14  ;;  %v17527_v6 = vmax.f32 %v17491_v45, 0.0 }
 0xeb2   : > { %v17559_v59 = vmax.f32 %v17523_v15, %v17529_v40  ;;  %v17530_v62 = vmax.f32 %v17494_v13, 0.0  ;;  %v26795_v13 = vld [vmem:[%s34348_s5 + $0x44] ss:$8 sps:$4 sm:$0xff]  }
 0xeb3   : > { %v17528_v20 = vmax.f32 %v17492_v63, 0.0 }
 0xeb4   : > { %v17560_v43 = vmax.f32 %v17524_v19, %v17530_v62 }
 0xeb5   : > { %v24324_v3 = vpop.f32.mrb[8].mxu1 }
 0xeb6   : > { %v33873_v60 = vmax.f32 %v17559_v59, %v17560_v43  ;;  %v17497_v49 = vadd.f32 %v24324_v3, %v33865_v7  ;;  %v17334_v2 = vpop.f32.mrb[9].mxu1  ;;  %v26793_v3 = vld [vmem:[%s34348_s5 + $0x40] ss:$8 sps:$4 sm:$0xff]  }
 0xeb7   : > { %v17495_v29 = vadd.f32 %v33865_v7, %v17334_v2  ;;  %v24325_v8 = vpop.f32.mrb[10].mxu1 }
 0xeb8   : > { %v17533_v21 = vmax.f32 %v17497_v49, 0.0  ;;  %v17498_v38 = vadd.f32 %v24325_v8, %v33865_v7  ;;  %v17337_v42 = vpop.f32.mrb[11].mxu1 }
 0xeb9   : > { %v17531_v24 = vmax.f32 %v17495_v29, 0.0  ;;  %v17496_v36 = vadd.f32 %v33865_v7, %v17337_v42  ;;  %v26796_v29 = vld [vmem:[%s34348_s5 + $0x54] ss:$8 sps:$4 sm:$0x1f]  }
 0xeba   : > { %v17563_v55 = vmax.f32 %v17527_v6, %v17533_v21  ;;  %v17534_v41 = vmax.f32 %v17498_v38, 0.0  ;;  %v26798_v38 = vld [vmem:[%s34348_s5 + $0x50] ss:$8 sps:$4 sm:$0x1f]  }
 0xebb   : > { %v17561_v22 = vmax.f32 %v17525_v31, %v17531_v24  ;;  %v17532_v39 = vmax.f32 %v17496_v36, 0.0 }
 0xebc   : > { %v17564_v51 = vmax.f32 %v17528_v20, %v17534_v41 }
 0xebd   : > { %v17562_v18 = vmax.f32 %v17526_v23, %v17532_v39  ;;  %v24328_v52 = vpop.f32.mrb[12].mxu1  ;;  %v17868_v39 = vsel %vm17758_vm5, %v26798_v38, 0 }
 0xebe   : > { %v33881_v50 = vmax.f32 %v17563_v55, %v17564_v51  ;;  %v17350_v11 = vpop.f32.mrb[13].mxu1  ;;  %v17501_v15 = vadd.f32 %v24328_v52, %v33865_v7  ;;  %v26801_v51 = vld [vmem:[%s34348_s5 + $0xc4] ss:$8 sps:$4 sm:$0xff]  }
 0xebf   : > { %v17578_v56 = vmax.f32 %v17561_v22, %v17562_v18  ;;  %v24329_v35 = vpop.f32.mrb[14].mxu1  ;;  %v17499_v48 = vadd.f32 %v33865_v7, %v17350_v11 }
 0xec0   : > { %v17353_v10 = vpop.f32.mrb[15].mxu1  ;;  %v17502_v45 = vadd.f32 %v24329_v35, %v33865_v7  ;;  %v17537_v8 = vmax.f32 %v17501_v15, 0.0  ;;  %v26813_v15 = vld [vmem:[%s34348_s5 + $0x104] ss:$8 sps:$4 sm:$0xff]  }
 0xec1   : > { %v17695_v46 = vpack.c.bf16 %v17578_v56, %v17578_v56  ;;  %v17500_v34 = vadd.f32 %v33865_v7, %v17353_v10  ;;  %v17535_v16 = vmax.f32 %v17499_v48, 0.0  ;;  %v26799_v10 = vld [vmem:[%s34348_s5 + $0xc0] ss:$8 sps:$4 sm:$0xff]   ;;  %v26802_v48 = vld [vmem:[%s34348_s5 + $0xd0] ss:$8 sps:$4 sm:$0xff]  }
 0xec2   : > { %v17538_v36 = vmax.f32 %v17502_v45, 0.0 }
 0xec3   : > { %20204 = vmatmul.mubr.msk.bf16.vlgmr.msra.gmra.mrb[36].mxu1 %vm17754_vm6, %v17695_v46  ;;  %v17536_v26 = vmax.f32 %v17500_v34, 0.0  ;;  %v26804_v46 = vld [vmem:[%s34348_s5 + $0xd4] ss:$8 sps:$4 sm:$0xff]  }
 0xec4   : > { %17874 = vmatpush1.bf16.msra.mxu1 %v26781_v28  ;;  %17905 = vmatprep.mubr.bf16.mxu1 %v27057_v37  ;;  %v17694_v28 = vpack.c.bf16 %v33873_v60, %v33873_v60  ;;  %v26807_v60 = vld [vmem:[%s34348_s5 + $0xe4] ss:$8 sps:$4 sm:$0xff]  }
 0xec5   : > { %v24332_v47 = vpop.f32.mrb[16].mxu1  ;;  %17875 = vmatprep.subr.bf16.mxu1 %v26786_v5 }
 0xec6   : > { %v17505_v32 = vadd.f32 %v24332_v47, %v33865_v7  ;;  %v17366_v1 = vpop.f32.mrb[17].mxu1 }
 0xec7   : > { %v24333_v61 = vpop.f32.mrb[18].mxu1  ;;  %v17503_v17 = vadd.f32 %v33865_v7, %v17366_v1 }
 0xec8   : > { %v17541_v53 = vmax.f32 %v17505_v32, 0.0  ;;  %v17506_v25 = vadd.f32 %v24333_v61, %v33865_v7  ;;  %17876 = vmatpush1.bf16.msra.mxu1 %v26784_v54  ;;  %v17369_v58 = vpop.f32.mrb[19].mxu1 }
 0xec9   : > { %17877 = vmatprep.subr.bf16.mxu1 %v26789_v33  ;;  %v17504_v19 = vadd.f32 %v33865_v7, %v17369_v58  ;;  %v17539_v63 = vmax.f32 %v17503_v17, 0.0  ;;  %v26810_v58 = vld [vmem:[%s34348_s5 + $0xf4] ss:$8 sps:$4 sm:$0xff]   ;;  %v26808_v17 = vld [vmem:[%s34348_s5 + $0xf0] ss:$8 sps:$4 sm:$0xff]  }
 0xeca   : > { %v17565_v0 = vmax.f32 %v17535_v16, %v17541_v53  ;;  %v17542_v30 = vmax.f32 %v17506_v25, 0.0  ;;  %v26805_v25 = vld [vmem:[%s34348_s5 + $0xe0] ss:$8 sps:$4 sm:$0xff]  }
 0xecb   : > { %v17540_v42 = vmax.f32 %v17504_v19, 0.0 }
 0xecc   : > { %v17566_v44 = vmax.f32 %v17536_v26, %v17542_v30  ;;  %17878 = vmatpush1.bf16.msra.mxu1 %v26787_v9 }
 0xecd   : > { %v24336_v40 = vpop.f32.mrb[20].mxu1  ;;  %17879 = vmatprep.subr.bf16.mxu1 %v26792_v57 }
 0xece   : > { %v33915_v14 = vmax.f32 %v17565_v0, %v17566_v44  ;;  %v17509_v59 = vadd.f32 %v24336_v40, %v33865_v7  ;;  %v17382_v62 = vpop.f32.mrb[21].mxu1 }
 0xecf   : > { %v17507_v43 = vadd.f32 %v33865_v7, %v17382_v62  ;;  %v24337_v27 = vpop.f32.mrb[22].mxu1 }
 0xed0   : > { %v17545_v49 = vmax.f32 %v17509_v59, 0.0  ;;  %v17510_v2 = vadd.f32 %v24337_v27, %v33865_v7  ;;  %17880 = vmatpush1.bf16.msra.mxu1 %v26790_v12  ;;  %v17385_v4 = vpop.f32.mrb[23].mxu1  ;;  %v26811_v27 = vld [vmem:[%s34348_s5 + $0x100] ss:$8 sps:$4 sm:$0xff]  }
 0xed1   : > { %v17543_v6 = vmax.f32 %v17507_v43, 0.0  ;;  %v17508_v21 = vadd.f32 %v33865_v7, %v17385_v4  ;;  %17881 = vmatprep.subr.bf16.mxu1 %v26795_v13  ;;  %v26814_v4 = vld [vmem:[%s34348_s5 + $0x114] ss:$8 sps:$4 sm:$0x1f]  }
 0xed2   : > { %v17569_v31 = vmax.f32 %v17539_v63, %v17545_v49  ;;  %v17546_v24 = vmax.f32 %v17510_v2, 0.0 }
 0xed3   : > { %v17567_v20 = vmax.f32 %v17537_v8, %v17543_v6  ;;  %v17544_v55 = vmax.f32 %v17508_v21, 0.0  ;;  %v26816_v21 = vld [vmem:[%s34348_s5 + $0x110] ss:$8 sps:$4 sm:$0x1f]  }
 0xed4   : > { %v17570_v41 = vmax.f32 %v17540_v42, %v17546_v24  ;;  %17882 = vmatpush1.bf16.msra.mxu1 %v26793_v3 }
 0xed5   : > { %v17568_v23 = vmax.f32 %v17538_v36, %v17544_v55  ;;  %v24340_v22 = vpop.f32.mrb[24].mxu1  ;;  %20217 = vmatprep.subr.msk.bf16.mxu1 %vm17758_vm5, %v26796_v29 }
 0xed6   : > { %v33937_v18 = vmax.f32 %v17569_v31, %v17570_v41  ;;  %v17398_v52 = vpop.f32.mrb[25].mxu1  ;;  %v17513_v44 = vadd.f32 %v24340_v22, %v33865_v7 }
 0xed7   : > { %v33939_v11 = vmax.f32 %v17567_v20, %v17568_v23  ;;  %v24341_v56 = vpop.f32.mrb[26].mxu1  ;;  %v17511_v5 = vadd.f32 %v33865_v7, %v17398_v52  ;;  %v17977_v23 = vsel %vm17758_vm5, %v26816_v21, 0  ;;  %v17914_v52 = vpack.c.bf16 %v33881_v50, %v33881_v50  ;;  %v26823_v50 = vld [vmem:[%s34348_s5 + $0x140] ss:$8 sps:$4 sm:$0xff]   ;;  %v26880_v21 = vld [vmem:[%s34348_s5 + $0x270] ss:$8 sps:$4 sm:$0xff]  }
 0xed8   : > { %17884 = vmatpush1.bf16.msra.mxu1 %v17868_v39  ;;  %v17401_v35 = vpop.f32.mrb[27].mxu1  ;;  %v17514_v62 = vadd.f32 %v24341_v56, %v33865_v7  ;;  %v17549_v29 = vmax.f32 %v17513_v44, 0.0  ;;  %v26822_v56 = vld [vmem:[%s34348_s5 + $0x134] ss:$8 sps:$4 sm:$0xff]  }
 0xed9   : > { %17982 = vmatprep.subr.bf16.mxu1 %v26801_v51  ;;  %v17512_v47 = vadd.f32 %v33865_v7, %v17401_v35  ;;  %v17547_v1 = vmax.f32 %v17511_v5, 0.0  ;;  %v26817_v51 = vld [vmem:[%s34348_s5 + $0x120] ss:$8 sps:$4 sm:$0xff]   ;;  %v26820_v35 = vld [vmem:[%s34348_s5 + $0x130] ss:$8 sps:$4 sm:$0xff]   ;;  %v18136_v44 = vpack.c.bf16 %v33939_v11, %v33939_v11 }
 0xeda   : > { %v17550_v24 = vmax.f32 %v17514_v62, 0.0  ;;  %v26831_v5 = vld [vmem:[%s34348_s5 + $0x164] ss:$8 sps:$4 sm:$0xff]   ;;  %v26859_v11 = vld [vmem:[%s34348_s5 + $0x200] ss:$8 sps:$4 sm:$0xff]  }
 0xedb   : > { %20218 = vmatmul.mubr.msk.bf16.vlgmr.msra.gmra.mrb[40].mxu1 %vm17754_vm6, %v17694_v28  ;;  %v17548_v9 = vmax.f32 %v17512_v47, 0.0  ;;  %v26828_v28 = vld [vmem:[%s34348_s5 + $0x154] ss:$8 sps:$4 sm:$0xff]   ;;  %v26867_v62 = vld [vmem:[%s34348_s5 + $0x224] ss:$8 sps:$4 sm:$0xff]  }
 0xedc   : > { %17983 = vmatpush1.bf16.msra.mxu1 %v26799_v10  ;;  %18014 = vmatprep.mubr.bf16.mxu1 %v27057_v37  ;;  %v26825_v10 = vld [vmem:[%s34348_s5 + $0x144] ss:$8 sps:$4 sm:$0xff]  }
 0xedd   : > { %v24344_v54 = vpop.f32.mrb[28].mxu1  ;;  %17984 = vmatprep.subr.bf16.mxu1 %v26804_v46  ;;  %v26826_v46 = vld [vmem:[%s34348_s5 + $0x150] ss:$8 sps:$4 sm:$0xff]  }
 0xede   : > { %v17517_v33 = vadd.f32 %v24344_v54, %v33865_v7  ;;  %v17414_v34 = vpop.f32.mrb[29].mxu1  ;;  %v26832_v54 = vld [vmem:[%s34348_s5 + $0x174] ss:$8 sps:$4 sm:$0x1f]  }
 0xedf   : > { %v24345_v32 = vpop.f32.mrb[30].mxu1  ;;  %v17515_v0 = vadd.f32 %v33865_v7, %v17414_v34  ;;  %v26835_v34 = vld [vmem:[%s34348_s5 + $0x180] ss:$8 sps:$4 sm:$0xff]  }
 0xee0   : > { %v17553_v61 = vmax.f32 %v17517_v33, 0.0  ;;  %v17518_v16 = vadd.f32 %v24345_v32, %v33865_v7  ;;  %17985 = vmatpush1.bf16.msra.mxu1 %v26802_v48  ;;  %v17417_v53 = vpop.f32.mrb[31].mxu1  ;;  %v26829_v48 = vld [vmem:[%s34348_s5 + $0x160] ss:$8 sps:$4 sm:$0xff]   ;;  %v26837_v33 = vld [vmem:[%s34348_s5 + $0x184] ss:$8 sps:$4 sm:$0xff]   ;;  %v18025_v32 = vpack.c.bf16 %v33915_v14, %v33915_v14 }
 0xee1   : > { %17986 = vmatprep.subr.bf16.mxu1 %v26807_v60  ;;  %v17516_v13 = vadd.f32 %v33865_v7, %v17417_v53  ;;  %v17551_v3 = vmax.f32 %v17515_v0, 0.0  ;;  %v26834_v60 = vld [vmem:[%s34348_s5 + $0x170] ss:$8 sps:$4 sm:$0x1f]   ;;  %v26841_v14 = vld [vmem:[%s34348_s5 + $0x1a0] ss:$8 sps:$4 sm:$0xff]  }
 0xee2   : > { %v17571_v57 = vmax.f32 %v17547_v1, %v17553_v61  ;;  %v17554_v26 = vmax.f32 %v17518_v16, 0.0  ;;  %v18088_v47 = vsel %vm17758_vm5, %v26834_v60, 0  ;;  %v26840_v1 = vld [vmem:[%s34348_s5 + $0x194] ss:$8 sps:$4 sm:$0xff]   ;;  %v26838_v61 = vld [vmem:[%s34348_s5 + $0x190] ss:$8 sps:$4 sm:$0xff]  }
 0xee3   : > { %v17552_v38 = vmax.f32 %v17516_v13, 0.0  ;;  %v26843_v16 = vld [vmem:[%s34348_s5 + $0x1a4] ss:$8 sps:$4 sm:$0xff]   ;;  %v26846_v53 = vld [vmem:[%s34348_s5 + $0x1b4] ss:$8 sps:$4 sm:$0xff]  }
 0xee4   : > { %v17572_v30 = vmax.f32 %v17548_v9, %v17554_v26  ;;  %17987 = vmatpush1.bf16.msra.mxu1 %v26805_v25  ;;  %v26844_v25 = vld [vmem:[%s34348_s5 + $0x1b0] ss:$8 sps:$4 sm:$0xff]   ;;  %v26847_v9 = vld [vmem:[%s34348_s5 + $0x1c0] ss:$8 sps:$4 sm:$0xff]   ;;  %v26861_v13 = vld [vmem:[%s34348_s5 + $0x204] ss:$8 sps:$4 sm:$0xff]  }
 0xee5   : > { %v24348_v12 = vpop.f32.mrb[32].mxu1  ;;  %17988 = vmatprep.subr.bf16.mxu1 %v26810_v58  ;;  %v26849_v58 = vld [vmem:[%s34348_s5 + $0x1c4] ss:$8 sps:$4 sm:$0xff]   ;;  %v26852_v26 = vld [vmem:[%s34348_s5 + $0x1d0] ss:$8 sps:$4 sm:$0x1f]  }
 0xee6   : > { %v33975_v40 = vmax.f32 %v17571_v57, %v17572_v30  ;;  %v17521_v19 = vadd.f32 %v24348_v12, %v33865_v7  ;;  %v17430_v59 = vpop.f32.mrb[33].mxu1  ;;  %v26850_v57 = vld [vmem:[%s34348_s5 + $0x1d4] ss:$8 sps:$4 sm:$0x1f]   ;;  %v18199_v0 = vsel %vm17758_vm5, %v26852_v26, 0 }
 0xee7   : > { %v17519_v45 = vadd.f32 %v33865_v7, %v17430_v59  ;;  %v24349_v43 = vpop.f32.mrb[34].mxu1  ;;  %v26855_v30 = vld [vmem:[%s34348_s5 + $0x1e4] ss:$8 sps:$4 sm:$0xff]   ;;  %v26858_v12 = vld [vmem:[%s34348_s5 + $0x1f4] ss:$8 sps:$4 sm:$0xff]  }
 0xee8   : > { %v17557_v63 = vmax.f32 %v17521_v19, 0.0  ;;  %v17522_v49 = vadd.f32 %v24349_v43, %v33865_v7  ;;  %17989 = vmatpush1.bf16.msra.mxu1 %v26808_v17  ;;  %v17433_v2 = vpop.f32.mrb[35].mxu1  ;;  %v26853_v17 = vld [vmem:[%s34348_s5 + $0x1e0] ss:$8 sps:$4 sm:$0xff]   ;;  %v26864_v19 = vld [vmem:[%s34348_s5 + $0x214] ss:$8 sps:$4 sm:$0xff]  }
 0xee9   : > { %v17555_v8 = vmax.f32 %v17519_v45, 0.0  ;;  %v17520_v6 = vadd.f32 %v33865_v7, %v17433_v2  ;;  %17990 = vmatprep.subr.bf16.mxu1 %v26813_v15  ;;  %v26819_v7 = vld [vmem:[%s34348_s5 + $0x124] ss:$8 sps:$4 sm:$0xff]   ;;  %v26856_v15 = vld [vmem:[%s34348_s5 + $0x1f0] ss:$8 sps:$4 sm:$0xff]   ;;  %v18247_v2 = vpack.c.bf16 %v33937_v18, %v33937_v18 }
 0xeea   : > { %v17575_v42 = vmax.f32 %v17551_v3, %v17557_v63  ;;  %v17558_v31 = vmax.f32 %v17522_v49, 0.0  ;;  %v26862_v59 = vld [vmem:[%s34348_s5 + $0x210] ss:$8 sps:$4 sm:$0xff]   ;;  %v26865_v45 = vld [vmem:[%s34348_s5 + $0x220] ss:$8 sps:$4 sm:$0xff]  }
 0xeeb   : > { %v17573_v36 = vmax.f32 %v17549_v29, %v17555_v8  ;;  %v17556_v20 = vmax.f32 %v17520_v6, 0.0  ;;  %v26868_v43 = vld [vmem:[%s34348_s5 + $0x234] ss:$8 sps:$4 sm:$0x1f]   ;;  %v26873_v63 = vld [vmem:[%s34348_s5 + $0x244] ss:$8 sps:$4 sm:$0xff]  }
 0xeec   : > { %v17576_v55 = vmax.f32 %v17552_v38, %v17558_v31  ;;  %17991 = vmatpush1.bf16.msra.mxu1 %v26811_v27  ;;  %v26870_v27 = vld [vmem:[%s34348_s5 + $0x230] ss:$8 sps:$4 sm:$0x1f]   ;;  %v26871_v49 = vld [vmem:[%s34348_s5 + $0x240] ss:$8 sps:$4 sm:$0xff]  }
 0xeed   : > { %v17574_v41 = vmax.f32 %v17550_v24, %v17556_v20  ;;  %20231 = vmatprep.subr.msk.bf16.mxu1 %vm17758_vm5, %v26814_v4  ;;  %v18310_v3 = vsel %vm17758_vm5, %v26870_v27, 0  ;;  %v26876_v4 = vld [vmem:[%s34348_s5 + $0x254] ss:$8 sps:$4 sm:$0xff]   ;;  %v26874_v29 = vld [vmem:[%s34348_s5 + $0x250] ss:$8 sps:$4 sm:$0xff]  }
 0xeee   : > { %v33997_v22 = vmax.f32 %v17575_v42, %v17576_v55  ;;  %v26879_v8 = vld [vmem:[%s34348_s5 + $0x264] ss:$8 sps:$4 sm:$0xff]   ;;  %v26877_v18 = vld [vmem:[%s34348_s5 + $0x260] ss:$8 sps:$4 sm:$0xff]   ;;  %v26882_v6 = vld [vmem:[%s34348_s5 + $0x274] ss:$8 sps:$4 sm:$0xff]  }
 0xeef   : > { %v33999_v39 = vmax.f32 %v17573_v36, %v17574_v41  ;;  %v26885_v38 = vld [vmem:[%s34348_s5 + $0x284] ss:$8 sps:$4 sm:$0xff]   ;;  %v26883_v42 = vld [vmem:[%s34348_s5 + $0x280] ss:$8 sps:$4 sm:$0xff]   ;;  %v18358_v41 = vpack.c.bf16 %v33975_v40, %v33975_v40  ;;  %v26912_v60 = vld [vmem:[%s34348_s5 + $0x314] ss:$8 sps:$4 sm:$0xff]  }
 0xef0   : > { %17993 = vmatpush1.bf16.msra.mxu1 %v17977_v23  ;;  %v26886_v31 = vld [vmem:[%s34348_s5 + $0x294] ss:$8 sps:$4 sm:$0x1f]   ;;  %v26888_v24 = vld [vmem:[%s34348_s5 + $0x290] ss:$8 sps:$4 sm:$0x1f]  }
 0xef1   : > { %18093 = vmatprep.subr.bf16.mxu1 %v26819_v7  ;;  %v18421_v36 = vsel %vm17758_vm5, %v26888_v24, 0  ;;  %v26891_v20 = vld [vmem:[%s34348_s5 + $0x2a4] ss:$8 sps:$4 sm:$0xff]   ;;  %v26889_v55 = vld [vmem:[%s34348_s5 + $0x2a0] ss:$8 sps:$4 sm:$0xff]  }
 0xef2   : > { %v26894_v23 = vld [vmem:[%s34348_s5 + $0x2b4] ss:$8 sps:$4 sm:$0xff]   ;;  %v26892_v7 = vld [vmem:[%s34348_s5 + $0x2b0] ss:$8 sps:$4 sm:$0xff]   ;;  %v26895_v40 = vld [vmem:[%s34348_s5 + $0x2c0] ss:$8 sps:$4 sm:$0xff]  }
 0xef3   : > { %20232 = vmatmul.mubr.msk.bf16.vlgmr.msra.gmra.mrb[44].mxu1 %vm17754_vm6, %v17914_v52  ;;  %v26900_v52 = vld [vmem:[%s34348_s5 + $0x2d4] ss:$8 sps:$4 sm:$0xff]  }
 0xef4   : > { %18094 = vmatpush1.bf16.msra.mxu1 %v26817_v51  ;;  %18125 = vmatprep.mubr.bf16.mxu1 %v27057_v37  ;;  %v26897_v51 = vld [vmem:[%s34348_s5 + $0x2c4] ss:$8 sps:$4 sm:$0xff]  }
 0xef5   : > { %18095 = vmatprep.subr.bf16.mxu1 %v26822_v56  ;;  %v26898_v56 = vld [vmem:[%s34348_s5 + $0x2d0] ss:$8 sps:$4 sm:$0xff]  }
 0xef8   : > { %18096 = vmatpush1.bf16.msra.mxu1 %v26820_v35  ;;  %v26903_v35 = vld [vmem:[%s34348_s5 + $0x2e4] ss:$8 sps:$4 sm:$0xff]  }
 0xef9   : > { %18097 = vmatprep.subr.bf16.mxu1 %v26825_v10  ;;  %v26901_v10 = vld [vmem:[%s34348_s5 + $0x2e0] ss:$8 sps:$4 sm:$0xff]  }
 0xefc   : > { %18098 = vmatpush1.bf16.msra.mxu1 %v26823_v50  ;;  %v26904_v50 = vld [vmem:[%s34348_s5 + $0x2f4] ss:$8 sps:$4 sm:$0x1f]  }
 0xefd   : > { %18099 = vmatprep.subr.bf16.mxu1 %v26828_v28  ;;  %v26906_v28 = vld [vmem:[%s34348_s5 + $0x2f0] ss:$8 sps:$4 sm:$0x1f]  }
 0xf00   : > { %18100 = vmatpush1.bf16.msra.mxu1 %v26826_v46  ;;  %v18532_v46 = vsel %vm17758_vm5, %v26906_v28, 0 }
 0xf01   : > { %18101 = vmatprep.subr.bf16.mxu1 %v26831_v5  ;;  %v26909_v5 = vld [vmem:[%s34348_s5 + $0x304] ss:$8 sps:$4 sm:$0xff]  }
 0xf04   : > { %18102 = vmatpush1.bf16.msra.mxu1 %v26829_v48  ;;  %v26907_v48 = vld [vmem:[%s34348_s5 + $0x300] ss:$8 sps:$4 sm:$0xff]  }
 0xf05   : > { %20245 = vmatprep.subr.msk.bf16.mxu1 %vm17758_vm5, %v26832_v54  ;;  %v18469_v54 = vpack.c.bf16 %v33999_v39, %v33999_v39  ;;  %v26913_v39 = vld [vmem:[%s34348_s5 + $0x320] ss:$8 sps:$4 sm:$0xff]  }
 0xf08   : > { %18104 = vmatpush1.bf16.msra.mxu1 %v18088_v47  ;;  %v26910_v47 = vld [vmem:[%s34348_s5 + $0x310] ss:$8 sps:$4 sm:$0xff]  }
 0xf09   : > { %18204 = vmatprep.subr.bf16.mxu1 %v26837_v33  ;;  %v26915_v33 = vld [vmem:[%s34348_s5 + $0x324] ss:$8 sps:$4 sm:$0xff]  }
 0xf0b   : > { %20246 = vmatmul.mubr.msk.bf16.vlgmr.msra.gmra.mrb[48].mxu1 %vm17754_vm6, %v18025_v32  ;;  %v26921_v32 = vld [vmem:[%s34348_s5 + $0x344] ss:$8 sps:$4 sm:$0xff]  }
 0xf0c   : > { %18205 = vmatpush1.bf16.msra.mxu1 %v26835_v34  ;;  %18236 = vmatprep.mubr.bf16.mxu1 %v27057_v37  ;;  %v26918_v34 = vld [vmem:[%s34348_s5 + $0x334] ss:$8 sps:$4 sm:$0xff]  }
 0xf0d   : > { %18206 = vmatprep.subr.bf16.mxu1 %v26840_v1  ;;  %v26919_v1 = vld [vmem:[%s34348_s5 + $0x340] ss:$8 sps:$4 sm:$0xff]  }
 0xf10   : > { %18207 = vmatpush1.bf16.msra.mxu1 %v26838_v61  ;;  %v26922_v61 = vld [vmem:[%s34348_s5 + $0x354] ss:$8 sps:$4 sm:$0x1f]  }
 0xf11   : > { %18208 = vmatprep.subr.bf16.mxu1 %v26843_v16  ;;  %v26924_v16 = vld [vmem:[%s34348_s5 + $0x350] ss:$8 sps:$4 sm:$0x1f]  }
 0xf14   : > { %18209 = vmatpush1.bf16.msra.mxu1 %v26841_v14  ;;  %v18643_v14 = vsel %vm17758_vm5, %v26924_v16, 0 }
 0xf15   : > { %18210 = vmatprep.subr.bf16.mxu1 %v26846_v53  ;;  %v18580_v53 = vpack.c.bf16 %v33997_v22, %v33997_v22 }
 0xf18   : > { %18211 = vmatpush1.bf16.msra.mxu1 %v26844_v25 }
 0xf19   : > { %18212 = vmatprep.subr.bf16.mxu1 %v26849_v58 }
 0xf1c   : > { %18213 = vmatpush1.bf16.msra.mxu1 %v26847_v9 }
 0xf1d   : > { %20259 = vmatprep.subr.msk.bf16.mxu1 %vm17758_vm5, %v26850_v57 }
 0xf20   : > { %18215 = vmatpush1.bf16.msra.mxu1 %v18199_v0 }
 0xf21   : > { %18315 = vmatprep.subr.bf16.mxu1 %v26855_v30 }
 0xf23   : > { %20260 = vmatmul.mubr.msk.bf16.vlgmr.msra.gmra.mrb[52].mxu1 %vm17754_vm6, %v18136_v44 }
 0xf24   : > { %18316 = vmatpush1.bf16.msra.mxu1 %v26853_v17  ;;  %18347 = vmatprep.mubr.bf16.mxu1 %v27057_v37 }
 0xf25   : > { %18317 = vmatprep.subr.bf16.mxu1 %v26858_v12 }
 0xf28   : > { %18318 = vmatpush1.bf16.msra.mxu1 %v26856_v15 }
 0xf29   : > { %18319 = vmatprep.subr.bf16.mxu1 %v26861_v13 }
 0xf2c   : > { %18320 = vmatpush1.bf16.msra.mxu1 %v26859_v11 }
 0xf2d   : > { %18321 = vmatprep.subr.bf16.mxu1 %v26864_v19 }
 0xf30   : > { %18322 = vmatpush1.bf16.msra.mxu1 %v26862_v59 }
 0xf31   : > { %18323 = vmatprep.subr.bf16.mxu1 %v26867_v62 }
 0xf34   : > { %18324 = vmatpush1.bf16.msra.mxu1 %v26865_v45 }
 0xf35   : > { %20273 = vmatprep.subr.msk.bf16.mxu1 %vm17758_vm5, %v26868_v43 }
 0xf38   : > { %18326 = vmatpush1.bf16.msra.mxu1 %v18310_v3 }
 0xf39   : > { %18426 = vmatprep.subr.bf16.mxu1 %v26873_v63 }
 0xf3b   : > { %20274 = vmatmul.mubr.msk.bf16.vlgmr.msra.gmra.mrb[56].mxu1 %vm17754_vm6, %v18247_v2 }
 0xf3c   : > { %18427 = vmatpush1.bf16.msra.mxu1 %v26871_v49  ;;  %18458 = vmatprep.mubr.bf16.mxu1 %v27057_v37 }
 0xf3d   : > { %18428 = vmatprep.subr.bf16.mxu1 %v26876_v4 }
 0xf40   : > { %18429 = vmatpush1.bf16.msra.mxu1 %v26874_v29 }
 0xf41   : > { %18430 = vmatprep.subr.bf16.mxu1 %v26879_v8 }
 0xf44   : > { %18431 = vmatpush1.bf16.msra.mxu1 %v26877_v18 }
 0xf45   : > { %18432 = vmatprep.subr.bf16.mxu1 %v26882_v6 }
 0xf48   : > { %18433 = vmatpush1.bf16.msra.mxu1 %v26880_v21 }
 0xf49   : > { %18434 = vmatprep.subr.bf16.mxu1 %v26885_v38 }
 0xf4c   : > { %18435 = vmatpush1.bf16.msra.mxu1 %v26883_v42 }
 0xf4d   : > { %20287 = vmatprep.subr.msk.bf16.mxu1 %vm17758_vm5, %v26886_v31 }
 0xf50   : > { %18437 = vmatpush1.bf16.msra.mxu1 %v18421_v36 }
 0xf51   : > { %18537 = vmatprep.subr.bf16.mxu1 %v26891_v20 }
 0xf53   : > { %20288 = vmatmul.mubr.msk.bf16.vlgmr.msra.gmra.mrb[60].mxu1 %vm17754_vm6, %v18358_v41 }
 0xf54   : > { %18538 = vmatpush1.bf16.msra.mxu1 %v26889_v55  ;;  %18569 = vmatprep.mubr.bf16.mxu1 %v27057_v37 }
 0xf55   : > { %18539 = vmatprep.subr.bf16.mxu1 %v26894_v23 }
 0xf58   : > { %18540 = vmatpush1.bf16.msra.mxu1 %v26892_v7 }
 0xf59   : > { %18541 = vmatprep.subr.bf16.mxu1 %v26897_v51 }
 0xf5c   : > { %18542 = vmatpush1.bf16.msra.mxu1 %v26895_v40 }
 0xf5d   : > { %18543 = vmatprep.subr.bf16.mxu1 %v26900_v52 }
 0xf60   : > { %18544 = vmatpush1.bf16.msra.mxu1 %v26898_v56 }
 0xf61   : > { %18545 = vmatprep.subr.bf16.mxu1 %v26903_v35 }
 0xf64   : > { %18546 = vmatpush1.bf16.msra.mxu1 %v26901_v10 }
 0xf65   : > { %20301 = vmatprep.subr.msk.bf16.mxu1 %vm17758_vm5, %v26904_v50  ;;  %v18693_v50 = vlaneseq }
 0xf67   : > { %v18694_v28 = vshrl.u32 %v18693_v50, 7 }
 0xf68   : > { %18548 = vmatpush1.bf16.msra.mxu1 %v18532_v46 }
 0xf69   : > { %18648 = vmatprep.subr.bf16.mxu1 %v26909_v5  ;;  %v18695_v46 = vsub.s32 0, %v18694_v28  ;;  %v18691_v5 = vld [vmem:[%s34349_s6] sm:$0x3] }
 0xf6b   : > { %20302 = vmatmul.mubr.msk.bf16.vlgmr.msra.gmra.mrb[64].mxu1 %vm17754_vm6, %v18469_v54  ;;  %v18696_v54 = vrot.slane %v18691_v5, %v18695_v46 }
 0xf6c   : > { %18649 = vmatpush1.bf16.msra.mxu1 %v26907_v48  ;;  %18680 = vmatprep.mubr.bf16.mxu1 %v27057_v37  ;;  %v26916_v37 = vld [vmem:[%s34348_s5 + $0x330] ss:$8 sps:$4 sm:$0xff]   ;;  %v18699_v48 = vsub.s32 1, %v18694_v28 }
 0xf6d   : > { %18650 = vmatprep.subr.bf16.mxu1 %v26912_v60 }
 0xf70   : > { %18651 = vmatpush1.bf16.msra.mxu1 %v26910_v47  ;;  %v18700_v47 = vrot.slane %v18691_v5, %v18699_v48 }
 0xf71   : > { %18652 = vmatprep.subr.bf16.mxu1 %v26915_v33 }
 0xf74   : > { %18653 = vmatpush1.bf16.msra.mxu1 %v26913_v39 }
 0xf75   : > { %18654 = vmatprep.subr.bf16.mxu1 %v26918_v34 }
 0xf78   : > { %18655 = vmatpush1.bf16.msra.mxu1 %v26916_v37 }
 0xf79   : > { %18656 = vmatprep.subr.bf16.mxu1 %v26921_v32 }
 0xf7c   : > { %18657 = vmatpush1.bf16.msra.mxu1 %v26919_v1 }
 0xf7d   : > { %20315 = vmatprep.subr.msk.bf16.mxu1 %vm17758_vm5, %v26922_v61 }
 0xf80   : > { %18659 = vmatpush1.bf16.msra.mxu1 %v18643_v14 }
 0xf83   : > { %20316 = vmatmul.mubr.msk.bf16.vlgmr.msra.gmra.mrb[68].mxu1 %vm17754_vm6, %v18580_v53 }
 0xf96   : > { %v17799_v25 = vpop.f32.mrb[36].mxu1 }
 0xf97   : > { %v17801_v58 = vpop.f32.mrb[37].mxu1 }
 0xf98   : > { %v17803_v9 = vpop.f32.mrb[38].mxu1 }
 0xf99   : > { %v17804_v57 = vpop.f32.mrb[39].mxu1 }
 0xfae   : > { %v17907_v26 = vpop.f32.mrb[40].mxu1 }
 0xfaf   : > { %v17908_v0 = vadd.f32 %v17907_v26, %v17799_v25  ;;  %v17909_v30 = vpop.f32.mrb[41].mxu1 }
 0xfb0   : > { %v17910_v17 = vadd.f32 %v17909_v30, %v17801_v58  ;;  %v17911_v44 = vpop.f32.mrb[42].mxu1 }
 0xfb1   : > { %v17912_v12 = vpop.f32.mrb[43].mxu1 }
 0xfc6   : > { %v18016_v15 = vpop.f32.mrb[44].mxu1 }
 0xfc7   : > { %v18023_v13 = vadd.f32 %v18016_v15, %v17908_v0  ;;  %v18018_v11 = vpop.f32.mrb[45].mxu1 }
 0xfc8   : > { %v18024_v19 = vadd.f32 %v18018_v11, %v17910_v17  ;;  %v18020_v59 = vpop.f32.mrb[46].mxu1 }
 0xfc9   : > { %v18021_v62 = vpop.f32.mrb[47].mxu1 }
 0xfde   : > { %v18127_v45 = vpop.f32.mrb[48].mxu1 }
 0xfdf   : > { %v18134_v22 = vadd.f32 %v18127_v45, %v18023_v13  ;;  %v18129_v43 = vpop.f32.mrb[49].mxu1 }
 0xfe0   : > { %v18135_v27 = vadd.f32 %v18129_v43, %v18024_v19  ;;  %v18131_v3 = vpop.f32.mrb[50].mxu1 }
 0xfe1   : > { %v18132_v63 = vpop.f32.mrb[51].mxu1 }
 0xff6   : > { %v18238_v49 = vpop.f32.mrb[52].mxu1 }
 0xff7   : > { %v18245_v2 = vadd.f32 %v18238_v49, %v18134_v22  ;;  %v18240_v4 = vpop.f32.mrb[53].mxu1 }
 0xff8   : > { %v18246_v29 = vadd.f32 %v18240_v4, %v18135_v27  ;;  %v18242_v8 = vpop.f32.mrb[54].mxu1 }
 0xff9   : > { %v18243_v18 = vpop.f32.mrb[55].mxu1 }
0x100e   : > { %v18349_v6 = vpop.f32.mrb[56].mxu1 }
0x100f   : > { %v18356_v21 = vadd.f32 %v18349_v6, %v18245_v2  ;;  %v18351_v38 = vpop.f32.mrb[57].mxu1 }
0x1010   : > { %v18357_v42 = vadd.f32 %v18351_v38, %v18246_v29  ;;  %v18353_v31 = vpop.f32.mrb[58].mxu1 }
0x1011   : > { %v18354_v24 = vpop.f32.mrb[59].mxu1 }
0x1026   : > { %v18460_v36 = vpop.f32.mrb[60].mxu1 }
0x1027   : > { %v18467_v20 = vadd.f32 %v18460_v36, %v18356_v21  ;;  %v18462_v55 = vpop.f32.mrb[61].mxu1 }
0x1028   : > { %v18468_v41 = vadd.f32 %v18462_v55, %v18357_v42  ;;  %v18464_v23 = vpop.f32.mrb[62].mxu1 }
0x1029   : > { %v18465_v7 = vpop.f32.mrb[63].mxu1 }
0x103e   : > { %v18571_v51 = vpop.f32.mrb[64].mxu1 }
0x103f   : > { %v18578_v40 = vadd.f32 %v18571_v51, %v18467_v20  ;;  %v18573_v52 = vpop.f32.mrb[65].mxu1 }
0x1040   : > { %v18579_v56 = vadd.f32 %v18573_v52, %v18468_v41  ;;  %v18575_v35 = vpop.f32.mrb[66].mxu1 }
0x1041   : > { %v18576_v10 = vpop.f32.mrb[67].mxu1 }
0x1056   : > { %v18682_v60 = vpop.f32.mrb[68].mxu1 }
0x1057   : > { %v18689_v33 = vadd.f32 %v18682_v60, %v18578_v40  ;;  %v18684_v39 = vpop.f32.mrb[69].mxu1 }
0x1058   : > { %v18690_v34 = vadd.f32 %v18684_v39, %v18579_v56  ;;  %v18686_v37 = vpop.f32.mrb[70].mxu1 }
0x1059   : > { %v18703_v32 = vadd.f32 %v18696_v54, %v18689_v33  ;;  %v18687_v1 = vpop.f32.mrb[71].mxu1 }
0x105a   : > { %v18704_v61 = vadd.f32 %v18700_v47, %v18690_v34 }
0x105b   : > { %18705 = vst [vmem:[%s1640_s22] sm:$0xff] %v18703_v32  ;;  %v18707_v16 = vsub.f32 0.0, %v18703_v32 }
0x105c   : > { %18706 = vst [vmem:[%s1640_s22 + $0x8] sm:$0xff] %v18704_v61  ;;  %v18708_v14 = vsub.f32 0.0, %v18704_v61 }
0x105d   : > { %v18709_v53 = vmul.f32 1.442695, %v18707_v16 }
0x105e   : > { %26973 = shalt.err (!%p26970_p5)
}
0x105f   : > { %s26974_s18 = scalar_lea.hbm %s34267_s25, 256  ;;  %s26978_s24 = scalar_lea.hbm %s34351_s8, 512 }
0x1060   : > { %p26975_p7 = scmp.ne.s32.totalorder %s34267_s25, %s26974_s18  ;;  %p26979_p12 = scmp.lt.u32.totalorder %s34267_s25, %s34351_s8 }
0x1061   : > { %p26980_p13 = scmp.lt.u32.totalorder %s26978_s24, %s26974_s18  ;;  %p26982_p1 = scmp.lt.u32.totalorder %s26974_s18, %s34267_s25 }
0x1062   : > { %p26976_p10 = pnand %p26975_p7, %p27143_p6 }
0x1063   : > { %p26981_p0 = por %p26980_p13, %p26979_p12 }
0x1064   : > { %p26977_p11 = pneg %p26976_p10 }
0x1065   : > { %p26983_p2 = por %p26982_p1, %p26981_p0 }
0x1067   : > { %p26984_p3 = pnand %p26983_p2, %p26977_p11 }
0x1069   : > { %26987 = shalt.err (!%p26984_p3)
}
0x106a   : > { %26700 = dma.vmem_to_hbm [thread:$0]  (%p27143_p6), %s34269_s23, 256, %s34267_s25, %s18725_s9   ;;  %v18711_v25 = vmul.f32 1.442695, %v18708_v14  ;;  %26925 = vpow2.f32 %v18709_v53 }
0x106b   : > { %s1633_s10 = scalar_lea.vmem [#allocation3], %s18855_s20  ;;  %s34299_s19 = scalar_lea.hbm %s34350_s7, %s34259_s21 }
0x106c   : > { %26927 = vpow2.f32 %v18711_v25  ;;  %s18739_s17 = sshll.u32 %s1633_s10, 4  ;;  %s18720_s23 = scalar_lea.sflag [#allocation4], %s27817_s26  ;;  %s34301_s17 = int_to_ptr.vmem [resolvable:$true] %s18739_s17 }
0x106d   : > { %s26988_s25 = scalar_lea.vmem %s34301_s17, 256  ;;  %s27059_s20 = smov [#allocation3]  }
0x106e   : > { %p26989_p4 = scmp.ne.s32.totalorder %s34301_s17, %s26988_s25  ;;  %s26992_s9 = sshll.u32 %s27059_s20, 4  ;;  %s26993_s9 = int_to_ptr.vmem [resolvable:$false] %s26992_s9 }
0x106f   : > { %s26994_s24 = scalar_lea.vmem %s26993_s9, 512  ;;  %p26995_p10 = scmp.lt.s32.totalorder %s34301_s17, %s26993_s9 }
0x1070   : > { %p26990_p5 = pnand %p26989_p4, %p27143_p6  ;;  %p26996_p11 = scmp.lt.s32.totalorder %s26994_s24, %s26988_s25 }
0x1072   : > { %p26991_p7 = pneg %p26990_p5  ;;  %p26997_p12 = por %p26996_p11, %p26995_p10 }
0x1074   : > { %v26926_v58 = vpop.eup %26925  ;;  %p26998_p13 = pnand %p26997_p12, %p26991_p7 }
0x1075   : > { %v18713_v57 = vadd.f32 1.0, %v26926_v58 }
0x1076   : > { %v26928_v9 = vpop.eup %26927 }
0x1077   : > { %v18714_v26 = vadd.f32 1.0, %v26928_v9  ;;  %26929 = vrcp.f32 %v18713_v57 }
0x1079   : > { %26931 = vrcp.f32 %v18714_v26 }
0x1081   : > { %v26930_v0 = vpop.eup %26929 }
0x1082   : > { %18717 = vst [vmem:[%s1633_s10] sm:$0xff] %v26930_v0 }
0x1083   : > { %v26932_v30 = vpop.eup %26931 }
0x1084   : > { %18718 = vst [vmem:[%s1633_s10 + $0x8] sm:$0xff] %v26932_v30 }
0x1085   : > { %27001 = shalt.err (!%p26998_p13)
}
0x1086   : > { %s27002_s26 = scalar_lea.hbm %s34299_s19, 256  ;;  %s27006_s13 = scalar_lea.hbm %s34350_s7, 512 }
0x1087   : > { %p27003_p0 = scmp.ne.s32.totalorder %s34299_s19, %s27002_s26  ;;  %p27007_p3 = scmp.lt.u32.totalorder %s34299_s19, %s34350_s7 }
0x1088   : > { %p27008_p4 = scmp.lt.u32.totalorder %s27006_s13, %s27002_s26  ;;  %p27010_p7 = scmp.lt.u32.totalorder %s27002_s26, %s34299_s19 }
0x1089   : > { %p27004_p1 = pnand %p27003_p0, %p27143_p6 }
0x108a   : > { %p27009_p5 = por %p27008_p4, %p27007_p3 }
0x108b   : > { %p27005_p2 = pneg %p27004_p1 }
0x108c   : > { %p27011_p10 = por %p27010_p7, %p27009_p5 }
0x108e   : > { %p27012_p11 = pnand %p27011_p10, %p27005_p2 }
0x1090   : > { %27015 = shalt.err (!%p27012_p11)
}
0x1091   : > { %26699 = dma.vmem_to_hbm [thread:$0]  (%p27143_p6), %s34301_s17, 256, %s34299_s19, %s18720_s23  }
0x1092 PF: > { %s18765_s22 = sand.u32 1, %s27042_s27   ;;  %p26704_p12 = pnand %p18852_p9, %p27147_p8 }
0x1093   : > { %s18766_s25 = scalar_lea.sflag [#allocation4], %s18765_s22 }
0x1094   : > { %27033 = dma.done.wait (!%p26704_p12), %s18766_s25, 256  }
0x1095   : > { %27035 = vsyncadd (!%p26704_p12), %s18766_s25, 4294967040  ;;  %s18775_s20 = scalar_lea.sflag [#allocation6], %s18765_s22 }
0x1096   : > { %27037 = dma.done.wait (!%p26704_p12), %s18775_s20, 256  }
0x1097   : > { %27039 = vsyncadd (!%p26704_p12), %s18775_s20, 4294967040  ;;  %p22_p6 = scmp.ge.s32.totalorder %s27128_s11, 4   ;;  %s36422_s27 = smov %s27046_s28 }
0x1098   : > { %s36423_s28 = smov %s27050_s29  ;;  %s36424_s29 = smov %s27141_s14 }
0x1099   : > { %s36425_s30 = smov %s27128_s11  ;;  %24 = sbr.rel (!%p22_p6) target bundleno = 5 (0x5), region = 143 }
0x10a0   :  { %18780 = vsyncpa [#allocation4], 1 }
0x10a1   :  { %18782 = vsyncpa [#allocation4 + $0x1], 1 }
0x10a2   :  { %18783 = vsyncpa [#allocation6], 1 }
0x10a3   :  { %18785 = vsyncpa [#allocation6 + $0x1], 1 }

</bundles_post_ra>
